<compile_context>
chip_gen: v5e
topology: v5e:2x2
jax: 0.10.0
libtpu: 0.0.40
codegen_flags: <defaults>
</compile_context>

<pallas_src>
import jax
import jax.numpy as jnp
from jax import lax
from jax.experimental import pallas as pl
from jax.experimental.pallas import tpu as pltpu


# ------------------------------ Pallas kernels ------------------------------

def _conv_pool_kernel(a0_ref, a1_ref, a2_ref, a3_ref, w_ref, b_ref, o_ref):
    """Fused 3x3 VALID conv + bias + ReLU + 2x2/stride-2 max-pool.

    a_t (t = eps + dy) holds input rows {t, t+2, ...} flattened to
    (TB*P, K_in).  w_ref[delta*3 + dy] is the banded weight producing
    columns (px, co) for output columns ox = 2*px + delta.  The pool is the
    elementwise max over the 4 parity accumulators; ReLU/bias commute with it.
    """
    slabs = (a0_ref[...], a1_ref[...], a2_ref[...], a3_ref[...])

    def branch(eps, delta):
        acc = jnp.dot(slabs[eps], w_ref[delta * 3 + 0],
                      preferred_element_type=jnp.float32)
        acc = acc + jnp.dot(slabs[eps + 1], w_ref[delta * 3 + 1],
                            preferred_element_type=jnp.float32)
        acc = acc + jnp.dot(slabs[eps + 2], w_ref[delta * 3 + 2],
                            preferred_element_type=jnp.float32)
        return acc

    m = branch(0, 0)
    m = jnp.maximum(m, branch(0, 1))
    m = jnp.maximum(m, branch(1, 0))
    m = jnp.maximum(m, branch(1, 1))
    o_ref[...] = jnp.maximum(m + b_ref[...], 0.0)


def _head_kernel(x_ref, w3_ref, b3_ref, w4_ref, b4_ref, o_ref):
    """linear3 + ReLU + linear4 (N padded to 128 lanes) + log_softmax."""
    h = jnp.dot(x_ref[...], w3_ref[...], preferred_element_type=jnp.float32)
    h = jnp.maximum(h + b3_ref[...], 0.0)
    logits = jnp.dot(h, w4_ref[...], preferred_element_type=jnp.float32)
    logits = logits + b4_ref[...]           # pad columns carry -1e30 -> exp==0
    m = jnp.max(logits, axis=1, keepdims=True)
    s = logits - m
    lse = jnp.log(jnp.sum(jnp.exp(s), axis=1, keepdims=True))
    o_ref[...] = s - lse


# --------------------------- pallas_call wrappers ----------------------------

def _batch_tile(B):
    # Keep the second-minor block dim (TB*rows) a multiple of 8, or the block
    # equal to the full array -> TB = 8 when possible, else whole batch.
    return 8 if B % 8 == 0 else B


def conv_pool_stage(slabs, w, brow, *, rows_per_b, k_in, n_out, B, TB):
    Mb = TB * rows_per_b
    M = B * rows_per_b
    return pl.pallas_call(
        _conv_pool_kernel,
        out_shape=jax.ShapeDtypeStruct((M, n_out), jnp.float32),
        grid=(B // TB,),
        in_specs=[pl.BlockSpec((Mb, k_in), lambda i: (i, 0))] * 4
        + [pl.BlockSpec(w.shape, lambda i: (0, 0, 0)),
           pl.BlockSpec((1, n_out), lambda i: (0, 0))],
        out_specs=pl.BlockSpec((Mb, n_out), lambda i: (i, 0)),
        compiler_params=pltpu.CompilerParams(
            dimension_semantics=("parallel",)),
    )(*slabs, w, brow)


def head_stage(flat, w3p, b3row, w4p, b4row, *, B, TB):
    return pl.pallas_call(
        _head_kernel,
        out_shape=jax.ShapeDtypeStruct((B, 128), jnp.float32),
        grid=(B // TB,),
        in_specs=[pl.BlockSpec((TB, 1600), lambda i: (i, 0)),
                  pl.BlockSpec((1600, 64), lambda i: (0, 0)),
                  pl.BlockSpec((1, 64), lambda i: (0, 0)),
                  pl.BlockSpec((64, 128), lambda i: (0, 0)),
                  pl.BlockSpec((1, 128), lambda i: (0, 0))],
        out_specs=pl.BlockSpec((TB, 128), lambda i: (i, 0)),
        compiler_params=pltpu.CompilerParams(
            dimension_semantics=("parallel",)),
    )(flat, w3p, b3row, w4p, b4row)


# ------------------------- parameter packing (once) --------------------------

def pack_params(params):
    """Fold PyTorch-layout params into kernel-ready banded / permuted weights."""
    w1, b1, w2, b2, w3, b3, w4, b4 = params

    # conv1: banded weights [2(delta), 3(dy), 28(ix), 13(px), 32(co)]
    W1 = jnp.zeros((2, 3, 28, 13, 32), jnp.float32)
    px13 = jnp.arange(13)
    for d in range(2):
        for dy in range(3):
            for dx in range(3):
                rows = 2 * px13 + d + dx
                W1 = W1.at[d, dy, rows, px13, :].set(
                    jnp.broadcast_to(w1[:, 0, dy, dx], (13, 32)))
    W1 = W1.reshape(6, 28, 13 * 32)
    b1row = jnp.tile(b1, 13)[None, :]                      # [1, 416]

    # conv2: banded weights [2, 3, 13(ix), 5(px), 32(ci), 64(co2)]
    W2 = jnp.zeros((2, 3, 13, 5, 32, 64), jnp.float32)
    px5 = jnp.arange(5)
    for d in range(2):
        for dy in range(3):
            for dx in range(3):
                rows = 2 * px5 + d + dx
                W2 = W2.at[d, dy, rows, px5, :, :].set(
                    jnp.broadcast_to(w2[:, :, dy, dx].T, (5, 32, 64)))
    W2 = W2.transpose(0, 1, 2, 4, 3, 5).reshape(6, 13 * 32, 5 * 64)
    b2row = jnp.tile(b2, 5)[None, :]                       # [1, 320]

    # linear3: permute input features (co2, py, px) -> (py, px, co2)
    w3p = w3.reshape(64, 64, 5, 5).transpose(2, 3, 1, 0).reshape(1600, 64)
    b3row = b3[None, :]                                    # [1, 64]

    # linear4: pad N=10 -> 128 lanes; pad bias -1e30 so log_softmax ignores it
    w4p = jnp.zeros((64, 128), jnp.float32).at[:, :10].set(w4.T)
    b4row = jnp.full((1, 128), -1e30, jnp.float32).at[0, :10].set(b4)

    return (W1, b1row, W2, b2row, w3p, b3row, w4p, b4row)


# --------------------------------- forward -----------------------------------

def network_forward(x, packed):
    """x: [B, 1, 28, 28] float32 (NCHW). Returns [B, 10] log-probabilities."""
    W1, b1row, W2, b2row, w3p, b3row, w4p, b4row = packed
    B = x.shape[0]
    TB = _batch_tile(B)

    # parity slabs of the input rows (tiny, done once in XLA)
    x2d = x[:, 0, :, :]                                    # [B, 28, 28]
    xe = x2d[:, 0::2, :]                                   # rows 0,2,...,26
    xo = x2d[:, 1::2, :]                                   # rows 1,3,...,27
    a = [xe[:, 0:13, :], xo[:, 0:13, :], xe[:, 1:14, :], xo[:, 1:14, :]]
    a = [s.reshape(B * 13, 28) for s in a]

    # conv1 + relu + pool1  -> [B*13, 416] rows (b,py), lanes (px, co)
    h1 = conv_pool_stage(a, W1, b1row, rows_per_b=13, k_in=28, n_out=416,
                         B=B, TB=TB)

    # parity slabs of the pooled rows for conv2
    h1 = h1.reshape(B, 13, 416)
    s = [h1[:, t:t + 9:2, :].reshape(B * 5, 416) for t in range(4)]

    # conv2 + relu + pool2  -> [B*5, 320] rows (b,py), lanes (px, co2)
    h2 = conv_pool_stage(s, W2, b2row, rows_per_b=5, k_in=416, n_out=320,
                         B=B, TB=TB)

    # flatten in (py, px, co2) order (w3 already permuted to match)
    flat = h2.reshape(B, 1600)

    # head: linear3 + relu + linear4 + log_softmax (output padded to 128 lanes)
    logp = head_stage(flat, w3p, b3row, w4p, b4row, B=B, TB=TB)
    return logp[:, :10]


# ------------------------------ init / reference -----------------------------

def init_params(key):
    """Deterministic PyTorch-style uniform(-1/sqrt(fan_in), 1/sqrt(fan_in))."""
    ks = jax.random.split(key, 8)

    def u(k, shape, fan_in):
        bound = 1.0 / (fan_in ** 0.5)
        return jax.random.uniform(k, shape, jnp.float32, -bound, bound)

    w1 = u(ks[0], (32, 1, 3, 3), 1 * 9)
    b1 = u(ks[1], (32,), 1 * 9)
    w2 = u(ks[2], (64, 32, 3, 3), 32 * 9)
    b2 = u(ks[3], (64,), 32 * 9)
    w3 = u(ks[4], (64, 1600), 1600)
    b3 = u(ks[5], (64,), 1600)
    w4 = u(ks[6], (10, 64), 64)
    b4 = u(ks[7], (10,), 64)
    return (w1, b1, w2, b2, w3, b3, w4, b4)


def reference_forward(x, params):
    """Pure-JAX (XLA) reference with identical semantics."""
    w1, b1, w2, b2, w3, b3, w4, b4 = params
    dn = ('NCHW', 'OIHW', 'NCHW')
    y = lax.conv_general_dilated(x, w1, (1, 1), 'VALID', dimension_numbers=dn)
    y = jax.nn.relu(y + b1.reshape(1, -1, 1, 1))
    y = lax.reduce_window(y, -jnp.inf, lax.max, (1, 1, 2, 2), (1, 1, 2, 2), 'VALID')
    y = lax.conv_general_dilated(y, w2, (1, 1), 'VALID', dimension_numbers=dn)
    y = jax.nn.relu(y + b2.reshape(1, -1, 1, 1))
    y = lax.reduce_window(y, -jnp.inf, lax.max, (1, 1, 2, 2), (1, 1, 2, 2), 'VALID')
    y = y.reshape(y.shape[0], -1)
    y = jax.nn.relu(y @ w3.T + b3)
    y = y @ w4.T + b4
    return jax.nn.log_softmax(y, axis=1)


if __name__ == "__main__":
    key = jax.random.PRNGKey(0)
    pkey, xkey = jax.random.split(key)
    params = init_params(pkey)
    packed = pack_params(params)

    # linear3 expects 1600 = 64*5*5 features, which pins the input to 1x28x28.
    B = 2
    x = jax.random.normal(xkey, (B, 1, 28, 28), dtype=jnp.float32)

    out = jax.jit(network_forward)(x, packed)
    out = jax.block_until_ready(out)

    assert out.shape == (B, 10) and out.dtype == jnp.float32

    ref = reference_forward(x, params)
    assert jnp.allclose(out, ref, atol=1e-3, rtol=1e-3), "mismatch vs JAX reference"

    print("KERNEL_OK")
</pallas_src>

<mosaic_0001>
module attributes {stable_mosaic.version = 11 : i64} {
  func.func @_conv_pool_kernel(%arg0: i32, %arg1: memref<26x28xf32, #tpu.memory_space<vmem>>, %arg2: memref<26x28xf32, #tpu.memory_space<vmem>>, %arg3: memref<26x28xf32, #tpu.memory_space<vmem>>, %arg4: memref<26x28xf32, #tpu.memory_space<vmem>>, %arg5: memref<6x28x416xf32, #tpu.memory_space<vmem>>, %arg6: memref<1x416xf32, #tpu.memory_space<vmem>>, %arg7: memref<26x416xf32, #tpu.memory_space<vmem>>) attributes {dimension_semantics = [#tpu.dimension_semantics<parallel>], iteration_bounds = array<i64: 1>, scalar_prefetch = 0 : i64, scratch_operands = 0 : i64, tpu.core_type = #tpu.core_type<tc>, window_params = [{transform_indices = @transform_0, window_bounds = array<i64: 26, 28>}, {transform_indices = @transform_1, window_bounds = array<i64: 26, 28>}, {transform_indices = @transform_2, window_bounds = array<i64: 26, 28>}, {transform_indices = @transform_3, window_bounds = array<i64: 26, 28>}, {pipeline_mode = #tpu.pipeline_mode<synchronous>, transform_indices = @transform_4, window_bounds = array<i64: 6, 28, 416>}, {pipeline_mode = #tpu.pipeline_mode<synchronous>, transform_indices = @transform_5, window_bounds = array<i64: 1, 416>}, {transform_indices = @transform_6, window_bounds = array<i64: 26, 416>}]} {
    %c0 = arith.constant 0 : index
    %c0_0 = arith.constant 0 : index
    %0 = vector.load %arg1[%c0, %c0_0] : memref<26x28xf32, #tpu.memory_space<vmem>>, vector<26x28xf32>
    %c0_1 = arith.constant 0 : index
    %c0_2 = arith.constant 0 : index
    %1 = vector.load %arg2[%c0_1, %c0_2] : memref<26x28xf32, #tpu.memory_space<vmem>>, vector<26x28xf32>
    %c0_3 = arith.constant 0 : index
    %c0_4 = arith.constant 0 : index
    %2 = vector.load %arg3[%c0_3, %c0_4] : memref<26x28xf32, #tpu.memory_space<vmem>>, vector<26x28xf32>
    %c0_5 = arith.constant 0 : index
    %c0_6 = arith.constant 0 : index
    %3 = vector.load %arg4[%c0_5, %c0_6] : memref<26x28xf32, #tpu.memory_space<vmem>>, vector<26x28xf32>
    %c0_7 = arith.constant 0 : index
    %c0_8 = arith.constant 0 : index
    %c0_9 = arith.constant 0 : index
    %4 = vector.load %arg5[%c0_7, %c0_8, %c0_9] : memref<6x28x416xf32, #tpu.memory_space<vmem>>, vector<1x28x416xf32>
    %5 = vector.shape_cast %4 : vector<1x28x416xf32> to vector<28x416xf32>
    %cst = arith.constant dense<0.000000e+00> : vector<26x416xf32>
    %6 = tpu.matmul %0, %5, %cst {dimension_numbers = #tpu.dot_dimension_numbers<[1], [0], [0], [1], [0, 0, 1, 1], [], []>} : vector<26x28xf32>, vector<28x416xf32>, vector<26x416xf32> -> vector<26x416xf32>
    %c1 = arith.constant 1 : index
    %c0_10 = arith.constant 0 : index
    %c0_11 = arith.constant 0 : index
    %7 = vector.load %arg5[%c1, %c0_10, %c0_11] : memref<6x28x416xf32, #tpu.memory_space<vmem>>, vector<1x28x416xf32>
    %8 = vector.shape_cast %7 : vector<1x28x416xf32> to vector<28x416xf32>
    %cst_12 = arith.constant dense<0.000000e+00> : vector<26x416xf32>
    %9 = tpu.matmul %1, %8, %cst_12 {dimension_numbers = #tpu.dot_dimension_numbers<[1], [0], [0], [1], [0, 0, 1, 1], [], []>} : vector<26x28xf32>, vector<28x416xf32>, vector<26x416xf32> -> vector<26x416xf32>
    %10 = arith.addf %6, %9 : vector<26x416xf32>
    %c2 = arith.constant 2 : index
    %c0_13 = arith.constant 0 : index
    %c0_14 = arith.constant 0 : index
    %11 = vector.load %arg5[%c2, %c0_13, %c0_14] : memref<6x28x416xf32, #tpu.memory_space<vmem>>, vector<1x28x416xf32>
    %12 = vector.shape_cast %11 : vector<1x28x416xf32> to vector<28x416xf32>
    %cst_15 = arith.constant dense<0.000000e+00> : vector<26x416xf32>
    %13 = tpu.matmul %2, %12, %cst_15 {dimension_numbers = #tpu.dot_dimension_numbers<[1], [0], [0], [1], [0, 0, 1, 1], [], []>} : vector<26x28xf32>, vector<28x416xf32>, vector<26x416xf32> -> vector<26x416xf32>
    %14 = arith.addf %10, %13 : vector<26x416xf32>
    %c3 = arith.constant 3 : index
    %c0_16 = arith.constant 0 : index
    %c0_17 = arith.constant 0 : index
    %15 = vector.load %arg5[%c3, %c0_16, %c0_17] : memref<6x28x416xf32, #tpu.memory_space<vmem>>, vector<1x28x416xf32>
    %16 = vector.shape_cast %15 : vector<1x28x416xf32> to vector<28x416xf32>
    %cst_18 = arith.constant dense<0.000000e+00> : vector<26x416xf32>
    %17 = tpu.matmul %0, %16, %cst_18 {dimension_numbers = #tpu.dot_dimension_numbers<[1], [0], [0], [1], [0, 0, 1, 1], [], []>} : vector<26x28xf32>, vector<28x416xf32>, vector<26x416xf32> -> vector<26x416xf32>
    %c4 = arith.constant 4 : index
    %c0_19 = arith.constant 0 : index
    %c0_20 = arith.constant 0 : index
    %18 = vector.load %arg5[%c4, %c0_19, %c0_20] : memref<6x28x416xf32, #tpu.memory_space<vmem>>, vector<1x28x416xf32>
    %19 = vector.shape_cast %18 : vector<1x28x416xf32> to vector<28x416xf32>
    %cst_21 = arith.constant dense<0.000000e+00> : vector<26x416xf32>
    %20 = tpu.matmul %1, %19, %cst_21 {dimension_numbers = #tpu.dot_dimension_numbers<[1], [0], [0], [1], [0, 0, 1, 1], [], []>} : vector<26x28xf32>, vector<28x416xf32>, vector<26x416xf32> -> vector<26x416xf32>
    %21 = arith.addf %17, %20 : vector<26x416xf32>
    %c5 = arith.constant 5 : index
    %c0_22 = arith.constant 0 : index
    %c0_23 = arith.constant 0 : index
    %22 = vector.load %arg5[%c5, %c0_22, %c0_23] : memref<6x28x416xf32, #tpu.memory_space<vmem>>, vector<1x28x416xf32>
    %23 = vector.shape_cast %22 : vector<1x28x416xf32> to vector<28x416xf32>
    %cst_24 = arith.constant dense<0.000000e+00> : vector<26x416xf32>
    %24 = tpu.matmul %2, %23, %cst_24 {dimension_numbers = #tpu.dot_dimension_numbers<[1], [0], [0], [1], [0, 0, 1, 1], [], []>} : vector<26x28xf32>, vector<28x416xf32>, vector<26x416xf32> -> vector<26x416xf32>
    %25 = arith.addf %21, %24 : vector<26x416xf32>
    %26 = arith.maximumf %14, %25 : vector<26x416xf32>
    %c0_25 = arith.constant 0 : index
    %c0_26 = arith.constant 0 : index
    %c0_27 = arith.constant 0 : index
    %27 = vector.load %arg5[%c0_25, %c0_26, %c0_27] : memref<6x28x416xf32, #tpu.memory_space<vmem>>, vector<1x28x416xf32>
    %28 = vector.shape_cast %27 : vector<1x28x416xf32> to vector<28x416xf32>
    %cst_28 = arith.constant dense<0.000000e+00> : vector<26x416xf32>
    %29 = tpu.matmul %1, %28, %cst_28 {dimension_numbers = #tpu.dot_dimension_numbers<[1], [0], [0], [1], [0, 0, 1, 1], [], []>} : vector<26x28xf32>, vector<28x416xf32>, vector<26x416xf32> -> vector<26x416xf32>
    %c1_29 = arith.constant 1 : index
    %c0_30 = arith.constant 0 : index
    %c0_31 = arith.constant 0 : index
    %30 = vector.load %arg5[%c1_29, %c0_30, %c0_31] : memref<6x28x416xf32, #tpu.memory_space<vmem>>, vector<1x28x416xf32>
    %31 = vector.shape_cast %30 : vector<1x28x416xf32> to vector<28x416xf32>
    %cst_32 = arith.constant dense<0.000000e+00> : vector<26x416xf32>
    %32 = tpu.matmul %2, %31, %cst_32 {dimension_numbers = #tpu.dot_dimension_numbers<[1], [0], [0], [1], [0, 0, 1, 1], [], []>} : vector<26x28xf32>, vector<28x416xf32>, vector<26x416xf32> -> vector<26x416xf32>
    %33 = arith.addf %29, %32 : vector<26x416xf32>
    %c2_33 = arith.constant 2 : index
    %c0_34 = arith.constant 0 : index
    %c0_35 = arith.constant 0 : index
    %34 = vector.load %arg5[%c2_33, %c0_34, %c0_35] : memref<6x28x416xf32, #tpu.memory_space<vmem>>, vector<1x28x416xf32>
    %35 = vector.shape_cast %34 : vector<1x28x416xf32> to vector<28x416xf32>
    %cst_36 = arith.constant dense<0.000000e+00> : vector<26x416xf32>
    %36 = tpu.matmul %3, %35, %cst_36 {dimension_numbers = #tpu.dot_dimension_numbers<[1], [0], [0], [1], [0, 0, 1, 1], [], []>} : vector<26x28xf32>, vector<28x416xf32>, vector<26x416xf32> -> vector<26x416xf32>
    %37 = arith.addf %33, %36 : vector<26x416xf32>
    %38 = arith.maximumf %26, %37 : vector<26x416xf32>
    %c3_37 = arith.constant 3 : index
    %c0_38 = arith.constant 0 : index
    %c0_39 = arith.constant 0 : index
    %39 = vector.load %arg5[%c3_37, %c0_38, %c0_39] : memref<6x28x416xf32, #tpu.memory_space<vmem>>, vector<1x28x416xf32>
    %40 = vector.shape_cast %39 : vector<1x28x416xf32> to vector<28x416xf32>
    %cst_40 = arith.constant dense<0.000000e+00> : vector<26x416xf32>
    %41 = tpu.matmul %1, %40, %cst_40 {dimension_numbers = #tpu.dot_dimension_numbers<[1], [0], [0], [1], [0, 0, 1, 1], [], []>} : vector<26x28xf32>, vector<28x416xf32>, vector<26x416xf32> -> vector<26x416xf32>
    %c4_41 = arith.constant 4 : index
    %c0_42 = arith.constant 0 : index
    %c0_43 = arith.constant 0 : index
    %42 = vector.load %arg5[%c4_41, %c0_42, %c0_43] : memref<6x28x416xf32, #tpu.memory_space<vmem>>, vector<1x28x416xf32>
    %43 = vector.shape_cast %42 : vector<1x28x416xf32> to vector<28x416xf32>
    %cst_44 = arith.constant dense<0.000000e+00> : vector<26x416xf32>
    %44 = tpu.matmul %2, %43, %cst_44 {dimension_numbers = #tpu.dot_dimension_numbers<[1], [0], [0], [1], [0, 0, 1, 1], [], []>} : vector<26x28xf32>, vector<28x416xf32>, vector<26x416xf32> -> vector<26x416xf32>
    %45 = arith.addf %41, %44 : vector<26x416xf32>
    %c5_45 = arith.constant 5 : index
    %c0_46 = arith.constant 0 : index
    %c0_47 = arith.constant 0 : index
    %46 = vector.load %arg5[%c5_45, %c0_46, %c0_47] : memref<6x28x416xf32, #tpu.memory_space<vmem>>, vector<1x28x416xf32>
    %47 = vector.shape_cast %46 : vector<1x28x416xf32> to vector<28x416xf32>
    %cst_48 = arith.constant dense<0.000000e+00> : vector<26x416xf32>
    %48 = tpu.matmul %3, %47, %cst_48 {dimension_numbers = #tpu.dot_dimension_numbers<[1], [0], [0], [1], [0, 0, 1, 1], [], []>} : vector<26x28xf32>, vector<28x416xf32>, vector<26x416xf32> -> vector<26x416xf32>
    %49 = arith.addf %45, %48 : vector<26x416xf32>
    %50 = arith.maximumf %38, %49 : vector<26x416xf32>
    %c0_49 = arith.constant 0 : index
    %c0_50 = arith.constant 0 : index
    %51 = vector.load %arg6[%c0_49, %c0_50] : memref<1x416xf32, #tpu.memory_space<vmem>>, vector<1x416xf32>
    %52 = vector.broadcast %51 : vector<1x416xf32> to vector<26x416xf32>
    %53 = arith.addf %50, %52 : vector<26x416xf32>
    %cst_51 = arith.constant 0.000000e+00 : f32
    %54 = vector.broadcast %cst_51 : f32 to vector<26x416xf32>
    %55 = arith.maximumf %53, %54 : vector<26x416xf32>
    %c0_52 = arith.constant 0 : index
    %c0_53 = arith.constant 0 : index
    %56 = vector.load %arg7[%c0_52, %c0_53] : memref<26x416xf32, #tpu.memory_space<vmem>>, vector<26x416xf32>
    tpu.vector_store %arg7[%c0_52, %c0_53], %55 {strides = array<i32>} : memref<26x416xf32, #tpu.memory_space<vmem>>, vector<26x416xf32>,
    return
  }
  func.func @transform_0(%arg0: i32) -> (i32, i32) {
    %c0_i32 = arith.constant 0 : i32
    %c0_i32_0 = arith.constant 0 : i32
    return %arg0, %c0_i32 : i32, i32
  }
  func.func @transform_1(%arg0: i32) -> (i32, i32) {
    %c0_i32 = arith.constant 0 : i32
    %c0_i32_0 = arith.constant 0 : i32
    return %arg0, %c0_i32 : i32, i32
  }
  func.func @transform_2(%arg0: i32) -> (i32, i32) {
    %c0_i32 = arith.constant 0 : i32
    %c0_i32_0 = arith.constant 0 : i32
    return %arg0, %c0_i32 : i32, i32
  }
  func.func @transform_3(%arg0: i32) -> (i32, i32) {
    %c0_i32 = arith.constant 0 : i32
    %c0_i32_0 = arith.constant 0 : i32
    return %arg0, %c0_i32 : i32, i32
  }
  func.func @transform_4(%arg0: i32) -> (i32, i32, i32) {
    %c0_i32 = arith.constant 0 : i32
    %c0_i32_0 = arith.constant 0 : i32
    %c0_i32_1 = arith.constant 0 : i32
    %c0_i32_2 = arith.constant 0 : i32
    return %c0_i32, %c0_i32_0, %c0_i32_1 : i32, i32, i32
  }
  func.func @transform_5(%arg0: i32) -> (i32, i32) {
    %c0_i32 = arith.constant 0 : i32
    %c0_i32_0 = arith.constant 0 : i32
    %c0_i32_1 = arith.constant 0 : i32
    return %c0_i32, %c0_i32_0 : i32, i32
  }
  func.func @transform_6(%arg0: i32) -> (i32, i32) {
    %c0_i32 = arith.constant 0 : i32
    %c0_i32_0 = arith.constant 0 : i32
    return %arg0, %c0_i32 : i32, i32
  }
}

module attributes {stable_mosaic.version = 11 : i64} {
  func.func @_conv_pool_kernel(%arg0: i32, %arg1: memref<10x416xf32, #tpu.memory_space<vmem>>, %arg2: memref<10x416xf32, #tpu.memory_space<vmem>>, %arg3: memref<10x416xf32, #tpu.memory_space<vmem>>, %arg4: memref<10x416xf32, #tpu.memory_space<vmem>>, %arg5: memref<6x416x320xf32, #tpu.memory_space<vmem>>, %arg6: memref<1x320xf32, #tpu.memory_space<vmem>>, %arg7: memref<10x320xf32, #tpu.memory_space<vmem>>) attributes {dimension_semantics = [#tpu.dimension_semantics<parallel>], iteration_bounds = array<i64: 1>, scalar_prefetch = 0 : i64, scratch_operands = 0 : i64, tpu.core_type = #tpu.core_type<tc>, window_params = [{transform_indices = @transform_0, window_bounds = array<i64: 10, 416>}, {transform_indices = @transform_1, window_bounds = array<i64: 10, 416>}, {transform_indices = @transform_2, window_bounds = array<i64: 10, 416>}, {transform_indices = @transform_3, window_bounds = array<i64: 10, 416>}, {pipeline_mode = #tpu.pipeline_mode<synchronous>, transform_indices = @transform_4, window_bounds = array<i64: 6, 416, 320>}, {pipeline_mode = #tpu.pipeline_mode<synchronous>, transform_indices = @transform_5, window_bounds = array<i64: 1, 320>}, {transform_indices = @transform_6, window_bounds = array<i64: 10, 320>}]} {
    %c0 = arith.constant 0 : index
    %c0_0 = arith.constant 0 : index
    %0 = vector.load %arg1[%c0, %c0_0] : memref<10x416xf32, #tpu.memory_space<vmem>>, vector<10x416xf32>
    %c0_1 = arith.constant 0 : index
    %c0_2 = arith.constant 0 : index
    %1 = vector.load %arg2[%c0_1, %c0_2] : memref<10x416xf32, #tpu.memory_space<vmem>>, vector<10x416xf32>
    %c0_3 = arith.constant 0 : index
    %c0_4 = arith.constant 0 : index
    %2 = vector.load %arg3[%c0_3, %c0_4] : memref<10x416xf32, #tpu.memory_space<vmem>>, vector<10x416xf32>
    %c0_5 = arith.constant 0 : index
    %c0_6 = arith.constant 0 : index
    %3 = vector.load %arg4[%c0_5, %c0_6] : memref<10x416xf32, #tpu.memory_space<vmem>>, vector<10x416xf32>
    %c0_7 = arith.constant 0 : index
    %c0_8 = arith.constant 0 : index
    %c0_9 = arith.constant 0 : index
    %4 = vector.load %arg5[%c0_7, %c0_8, %c0_9] : memref<6x416x320xf32, #tpu.memory_space<vmem>>, vector<1x416x320xf32>
    %5 = vector.shape_cast %4 : vector<1x416x320xf32> to vector<416x320xf32>
    %cst = arith.constant dense<0.000000e+00> : vector<10x320xf32>
    %6 = tpu.matmul %0, %5, %cst {dimension_numbers = #tpu.dot_dimension_numbers<[1], [0], [0], [1], [0, 0, 1, 1], [], []>} : vector<10x416xf32>, vector<416x320xf32>, vector<10x320xf32> -> vector<10x320xf32>
    %c1 = arith.constant 1 : index
    %c0_10 = arith.constant 0 : index
    %c0_11 = arith.constant 0 : index
    %7 = vector.load %arg5[%c1, %c0_10, %c0_11] : memref<6x416x320xf32, #tpu.memory_space<vmem>>, vector<1x416x320xf32>
    %8 = vector.shape_cast %7 : vector<1x416x320xf32> to vector<416x320xf32>
    %cst_12 = arith.constant dense<0.000000e+00> : vector<10x320xf32>
    %9 = tpu.matmul %1, %8, %cst_12 {dimension_numbers = #tpu.dot_dimension_numbers<[1], [0], [0], [1], [0, 0, 1, 1], [], []>} : vector<10x416xf32>, vector<416x320xf32>, vector<10x320xf32> -> vector<10x320xf32>
    %10 = arith.addf %6, %9 : vector<10x320xf32>
    %c2 = arith.constant 2 : index
    %c0_13 = arith.constant 0 : index
    %c0_14 = arith.constant 0 : index
    %11 = vector.load %arg5[%c2, %c0_13, %c0_14] : memref<6x416x320xf32, #tpu.memory_space<vmem>>, vector<1x416x320xf32>
    %12 = vector.shape_cast %11 : vector<1x416x320xf32> to vector<416x320xf32>
    %cst_15 = arith.constant dense<0.000000e+00> : vector<10x320xf32>
    %13 = tpu.matmul %2, %12, %cst_15 {dimension_numbers = #tpu.dot_dimension_numbers<[1], [0], [0], [1], [0, 0, 1, 1], [], []>} : vector<10x416xf32>, vector<416x320xf32>, vector<10x320xf32> -> vector<10x320xf32>
    %14 = arith.addf %10, %13 : vector<10x320xf32>
    %c3 = arith.constant 3 : index
    %c0_16 = arith.constant 0 : index
    %c0_17 = arith.constant 0 : index
    %15 = vector.load %arg5[%c3, %c0_16, %c0_17] : memref<6x416x320xf32, #tpu.memory_space<vmem>>, vector<1x416x320xf32>
    %16 = vector.shape_cast %15 : vector<1x416x320xf32> to vector<416x320xf32>
    %cst_18 = arith.constant dense<0.000000e+00> : vector<10x320xf32>
    %17 = tpu.matmul %0, %16, %cst_18 {dimension_numbers = #tpu.dot_dimension_numbers<[1], [0], [0], [1], [0, 0, 1, 1], [], []>} : vector<10x416xf32>, vector<416x320xf32>, vector<10x320xf32> -> vector<10x320xf32>
    %c4 = arith.constant 4 : index
    %c0_19 = arith.constant 0 : index
    %c0_20 = arith.constant 0 : index
    %18 = vector.load %arg5[%c4, %c0_19, %c0_20] : memref<6x416x320xf32, #tpu.memory_space<vmem>>, vector<1x416x320xf32>
    %19 = vector.shape_cast %18 : vector<1x416x320xf32> to vector<416x320xf32>
    %cst_21 = arith.constant dense<0.000000e+00> : vector<10x320xf32>
    %20 = tpu.matmul %1, %19, %cst_21 {dimension_numbers = #tpu.dot_dimension_numbers<[1], [0], [0], [1], [0, 0, 1, 1], [], []>} : vector<10x416xf32>, vector<416x320xf32>, vector<10x320xf32> -> vector<10x320xf32>
    %21 = arith.addf %17, %20 : vector<10x320xf32>
    %c5 = arith.constant 5 : index
    %c0_22 = arith.constant 0 : index
    %c0_23 = arith.constant 0 : index
    %22 = vector.load %arg5[%c5, %c0_22, %c0_23] : memref<6x416x320xf32, #tpu.memory_space<vmem>>, vector<1x416x320xf32>
    %23 = vector.shape_cast %22 : vector<1x416x320xf32> to vector<416x320xf32>
    %cst_24 = arith.constant dense<0.000000e+00> : vector<10x320xf32>
    %24 = tpu.matmul %2, %23, %cst_24 {dimension_numbers = #tpu.dot_dimension_numbers<[1], [0], [0], [1], [0, 0, 1, 1], [], []>} : vector<10x416xf32>, vector<416x320xf32>, vector<10x320xf32> -> vector<10x320xf32>
    %25 = arith.addf %21, %24 : vector<10x320xf32>
    %26 = arith.maximumf %14, %25 : vector<10x320xf32>
    %c0_25 = arith.constant 0 : index
    %c0_26 = arith.constant 0 : index
    %c0_27 = arith.constant 0 : index
    %27 = vector.load %arg5[%c0_25, %c0_26, %c0_27] : memref<6x416x320xf32, #tpu.memory_space<vmem>>, vector<1x416x320xf32>
    %28 = vector.shape_cast %27 : vector<1x416x320xf32> to vector<416x320xf32>
    %cst_28 = arith.constant dense<0.000000e+00> : vector<10x320xf32>
    %29 = tpu.matmul %1, %28, %cst_28 {dimension_numbers = #tpu.dot_dimension_numbers<[1], [0], [0], [1], [0, 0, 1, 1], [], []>} : vector<10x416xf32>, vector<416x320xf32>, vector<10x320xf32> -> vector<10x320xf32>
    %c1_29 = arith.constant 1 : index
    %c0_30 = arith.constant 0 : index
    %c0_31 = arith.constant 0 : index
    %30 = vector.load %arg5[%c1_29, %c0_30, %c0_31] : memref<6x416x320xf32, #tpu.memory_space<vmem>>, vector<1x416x320xf32>
    %31 = vector.shape_cast %30 : vector<1x416x320xf32> to vector<416x320xf32>
    %cst_32 = arith.constant dense<0.000000e+00> : vector<10x320xf32>
    %32 = tpu.matmul %2, %31, %cst_32 {dimension_numbers = #tpu.dot_dimension_numbers<[1], [0], [0], [1], [0, 0, 1, 1], [], []>} : vector<10x416xf32>, vector<416x320xf32>, vector<10x320xf32> -> vector<10x320xf32>
    %33 = arith.addf %29, %32 : vector<10x320xf32>
    %c2_33 = arith.constant 2 : index
    %c0_34 = arith.constant 0 : index
    %c0_35 = arith.constant 0 : index
    %34 = vector.load %arg5[%c2_33, %c0_34, %c0_35] : memref<6x416x320xf32, #tpu.memory_space<vmem>>, vector<1x416x320xf32>
    %35 = vector.shape_cast %34 : vector<1x416x320xf32> to vector<416x320xf32>
    %cst_36 = arith.constant dense<0.000000e+00> : vector<10x320xf32>
    %36 = tpu.matmul %3, %35, %cst_36 {dimension_numbers = #tpu.dot_dimension_numbers<[1], [0], [0], [1], [0, 0, 1, 1], [], []>} : vector<10x416xf32>, vector<416x320xf32>, vector<10x320xf32> -> vector<10x320xf32>
    %37 = arith.addf %33, %36 : vector<10x320xf32>
    %38 = arith.maximumf %26, %37 : vector<10x320xf32>
    %c3_37 = arith.constant 3 : index
    %c0_38 = arith.constant 0 : index
    %c0_39 = arith.constant 0 : index
    %39 = vector.load %arg5[%c3_37, %c0_38, %c0_39] : memref<6x416x320xf32, #tpu.memory_space<vmem>>, vector<1x416x320xf32>
    %40 = vector.shape_cast %39 : vector<1x416x320xf32> to vector<416x320xf32>
    %cst_40 = arith.constant dense<0.000000e+00> : vector<10x320xf32>
    %41 = tpu.matmul %1, %40, %cst_40 {dimension_numbers = #tpu.dot_dimension_numbers<[1], [0], [0], [1], [0, 0, 1, 1], [], []>} : vector<10x416xf32>, vector<416x320xf32>, vector<10x320xf32> -> vector<10x320xf32>
    %c4_41 = arith.constant 4 : index
    %c0_42 = arith.constant 0 : index
    %c0_43 = arith.constant 0 : index
    %42 = vector.load %arg5[%c4_41, %c0_42, %c0_43] : memref<6x416x320xf32, #tpu.memory_space<vmem>>, vector<1x416x320xf32>
    %43 = vector.shape_cast %42 : vector<1x416x320xf32> to vector<416x320xf32>
    %cst_44 = arith.constant dense<0.000000e+00> : vector<10x320xf32>
    %44 = tpu.matmul %2, %43, %cst_44 {dimension_numbers = #tpu.dot_dimension_numbers<[1], [0], [0], [1], [0, 0, 1, 1], [], []>} : vector<10x416xf32>, vector<416x320xf32>, vector<10x320xf32> -> vector<10x320xf32>
    %45 = arith.addf %41, %44 : vector<10x320xf32>
    %c5_45 = arith.constant 5 : index
    %c0_46 = arith.constant 0 : index
    %c0_47 = arith.constant 0 : index
    %46 = vector.load %arg5[%c5_45, %c0_46, %c0_47] : memref<6x416x320xf32, #tpu.memory_space<vmem>>, vector<1x416x320xf32>
    %47 = vector.shape_cast %46 : vector<1x416x320xf32> to vector<416x320xf32>
    %cst_48 = arith.constant dense<0.000000e+00> : vector<10x320xf32>
    %48 = tpu.matmul %3, %47, %cst_48 {dimension_numbers = #tpu.dot_dimension_numbers<[1], [0], [0], [1], [0, 0, 1, 1], [], []>} : vector<10x416xf32>, vector<416x320xf32>, vector<10x320xf32> -> vector<10x320xf32>
    %49 = arith.addf %45, %48 : vector<10x320xf32>
    %50 = arith.maximumf %38, %49 : vector<10x320xf32>
    %c0_49 = arith.constant 0 : index
    %c0_50 = arith.constant 0 : index
    %51 = vector.load %arg6[%c0_49, %c0_50] : memref<1x320xf32, #tpu.memory_space<vmem>>, vector<1x320xf32>
    %52 = vector.broadcast %51 : vector<1x320xf32> to vector<10x320xf32>
    %53 = arith.addf %50, %52 : vector<10x320xf32>
    %cst_51 = arith.constant 0.000000e+00 : f32
    %54 = vector.broadcast %cst_51 : f32 to vector<10x320xf32>
    %55 = arith.maximumf %53, %54 : vector<10x320xf32>
    %c0_52 = arith.constant 0 : index
    %c0_53 = arith.constant 0 : index
    %56 = vector.load %arg7[%c0_52, %c0_53] : memref<10x320xf32, #tpu.memory_space<vmem>>, vector<10x320xf32>
    tpu.vector_store %arg7[%c0_52, %c0_53], %55 {strides = array<i32>} : memref<10x320xf32, #tpu.memory_space<vmem>>, vector<10x320xf32>,
    return
  }
  func.func @transform_0(%arg0: i32) -> (i32, i32) {
    %c0_i32 = arith.constant 0 : i32
    %c0_i32_0 = arith.constant 0 : i32
    return %arg0, %c0_i32 : i32, i32
  }
  func.func @transform_1(%arg0: i32) -> (i32, i32) {
    %c0_i32 = arith.constant 0 : i32
    %c0_i32_0 = arith.constant 0 : i32
    return %arg0, %c0_i32 : i32, i32
  }
  func.func @transform_2(%arg0: i32) -> (i32, i32) {
    %c0_i32 = arith.constant 0 : i32
    %c0_i32_0 = arith.constant 0 : i32
    return %arg0, %c0_i32 : i32, i32
  }
  func.func @transform_3(%arg0: i32) -> (i32, i32) {
    %c0_i32 = arith.constant 0 : i32
    %c0_i32_0 = arith.constant 0 : i32
    return %arg0, %c0_i32 : i32, i32
  }
  func.func @transform_4(%arg0: i32) -> (i32, i32, i32) {
    %c0_i32 = arith.constant 0 : i32
    %c0_i32_0 = arith.constant 0 : i32
    %c0_i32_1 = arith.constant 0 : i32
    %c0_i32_2 = arith.constant 0 : i32
    return %c0_i32, %c0_i32_0, %c0_i32_1 : i32, i32, i32
  }
  func.func @transform_5(%arg0: i32) -> (i32, i32) {
    %c0_i32 = arith.constant 0 : i32
    %c0_i32_0 = arith.constant 0 : i32
    %c0_i32_1 = arith.constant 0 : i32
    return %c0_i32, %c0_i32_0 : i32, i32
  }
  func.func @transform_6(%arg0: i32) -> (i32, i32) {
    %c0_i32 = arith.constant 0 : i32
    %c0_i32_0 = arith.constant 0 : i32
    return %arg0, %c0_i32 : i32, i32
  }
}

module attributes {stable_mosaic.version = 11 : i64} {
  func.func @_head_kernel(%arg0: i32, %arg1: memref<2x1600xf32, #tpu.memory_space<vmem>>, %arg2: memref<1600x64xf32, #tpu.memory_space<vmem>>, %arg3: memref<1x64xf32, #tpu.memory_space<vmem>>, %arg4: memref<64x128xf32, #tpu.memory_space<vmem>>, %arg5: memref<1x128xf32, #tpu.memory_space<vmem>>, %arg6: memref<2x128xf32, #tpu.memory_space<vmem>>) attributes {dimension_semantics = [#tpu.dimension_semantics<parallel>], iteration_bounds = array<i64: 1>, scalar_prefetch = 0 : i64, scratch_operands = 0 : i64, tpu.core_type = #tpu.core_type<tc>, window_params = [{transform_indices = @transform_0, window_bounds = array<i64: 2, 1600>}, {pipeline_mode = #tpu.pipeline_mode<synchronous>, transform_indices = @transform_1, window_bounds = array<i64: 1600, 64>}, {pipeline_mode = #tpu.pipeline_mode<synchronous>, transform_indices = @transform_2, window_bounds = array<i64: 1, 64>}, {pipeline_mode = #tpu.pipeline_mode<synchronous>, transform_indices = @transform_3, window_bounds = array<i64: 64, 128>}, {pipeline_mode = #tpu.pipeline_mode<synchronous>, transform_indices = @transform_4, window_bounds = array<i64: 1, 128>}, {transform_indices = @transform_5, window_bounds = array<i64: 2, 128>}]} {
    %c0 = arith.constant 0 : index
    %c0_0 = arith.constant 0 : index
    %0 = vector.load %arg1[%c0, %c0_0] : memref<2x1600xf32, #tpu.memory_space<vmem>>, vector<2x1600xf32>
    %c0_1 = arith.constant 0 : index
    %c0_2 = arith.constant 0 : index
    %1 = vector.load %arg2[%c0_1, %c0_2] : memref<1600x64xf32, #tpu.memory_space<vmem>>, vector<1600x64xf32>
    %cst = arith.constant dense<0.000000e+00> : vector<2x64xf32>
    %2 = tpu.matmul %0, %1, %cst {dimension_numbers = #tpu.dot_dimension_numbers<[1], [0], [0], [1], [0, 0, 1, 1], [], []>} : vector<2x1600xf32>, vector<1600x64xf32>, vector<2x64xf32> -> vector<2x64xf32>
    %c0_3 = arith.constant 0 : index
    %c0_4 = arith.constant 0 : index
    %3 = vector.load %arg3[%c0_3, %c0_4] : memref<1x64xf32, #tpu.memory_space<vmem>>, vector<1x64xf32>
    %4 = vector.broadcast %3 : vector<1x64xf32> to vector<2x64xf32>
    %5 = arith.addf %2, %4 : vector<2x64xf32>
    %cst_5 = arith.constant 0.000000e+00 : f32
    %6 = vector.broadcast %cst_5 : f32 to vector<2x64xf32>
    %7 = arith.maximumf %5, %6 : vector<2x64xf32>
    %c0_6 = arith.constant 0 : index
    %c0_7 = arith.constant 0 : index
    %8 = vector.load %arg4[%c0_6, %c0_7] : memref<64x128xf32, #tpu.memory_space<vmem>>, vector<64x128xf32>
    %cst_8 = arith.constant dense<0.000000e+00> : vector<2x128xf32>
    %9 = tpu.matmul %7, %8, %cst_8 {dimension_numbers = #tpu.dot_dimension_numbers<[1], [0], [0], [1], [0, 0, 1, 1], [], []>} : vector<2x64xf32>, vector<64x128xf32>, vector<2x128xf32> -> vector<2x128xf32>
    %c0_9 = arith.constant 0 : index
    %c0_10 = arith.constant 0 : index
    %10 = vector.load %arg5[%c0_9, %c0_10] : memref<1x128xf32, #tpu.memory_space<vmem>>, vector<1x128xf32>
    %11 = vector.broadcast %10 : vector<1x128xf32> to vector<2x128xf32>
    %12 = arith.addf %9, %11 : vector<2x128xf32>
    %cst_11 = arith.constant dense<0xFF800000> : vector<2xf32>
    %13 = vector.multi_reduction <maximumf>, %12, %cst_11 [1] : vector<2x128xf32> to vector<2xf32>
    %14 = vector.shape_cast %13 : vector<2xf32> to vector<2x1xf32>
    %15 = vector.broadcast %14 : vector<2x1xf32> to vector<2x128xf32>
    %16 = arith.subf %12, %15 : vector<2x128xf32>
    %17 = math.exp %16 : vector<2x128xf32>
    %cst_12 = arith.constant dense<0.000000e+00> : vector<2xf32>
    %18 = vector.multi_reduction <add>, %17, %cst_12 [1] : vector<2x128xf32> to vector<2xf32>
    %19 = vector.shape_cast %18 : vector<2xf32> to vector<2x1xf32>
    %20 = math.log %19 : vector<2x1xf32>
    %21 = vector.broadcast %20 : vector<2x1xf32> to vector<2x128xf32>
    %22 = arith.subf %16, %21 : vector<2x128xf32>
    %c0_13 = arith.constant 0 : index
    %c0_14 = arith.constant 0 : index
    %23 = vector.load %arg6[%c0_13, %c0_14] : memref<2x128xf32, #tpu.memory_space<vmem>>, vector<2x128xf32>
    tpu.vector_store %arg6[%c0_13, %c0_14], %22 {strides = array<i32>} : memref<2x128xf32, #tpu.memory_space<vmem>>, vector<2x128xf32>,
    return
  }
  func.func @transform_0(%arg0: i32) -> (i32, i32) {
    %c0_i32 = arith.constant 0 : i32
    %c0_i32_0 = arith.constant 0 : i32
    return %arg0, %c0_i32 : i32, i32
  }
  func.func @transform_1(%arg0: i32) -> (i32, i32) {
    %c0_i32 = arith.constant 0 : i32
    %c0_i32_0 = arith.constant 0 : i32
    %c0_i32_1 = arith.constant 0 : i32
    return %c0_i32, %c0_i32_0 : i32, i32
  }
  func.func @transform_2(%arg0: i32) -> (i32, i32) {
    %c0_i32 = arith.constant 0 : i32
    %c0_i32_0 = arith.constant 0 : i32
    %c0_i32_1 = arith.constant 0 : i32
    return %c0_i32, %c0_i32_0 : i32, i32
  }
  func.func @transform_3(%arg0: i32) -> (i32, i32) {
    %c0_i32 = arith.constant 0 : i32
    %c0_i32_0 = arith.constant 0 : i32
    %c0_i32_1 = arith.constant 0 : i32
    return %c0_i32, %c0_i32_0 : i32, i32
  }
  func.func @transform_4(%arg0: i32) -> (i32, i32) {
    %c0_i32 = arith.constant 0 : i32
    %c0_i32_0 = arith.constant 0 : i32
    %c0_i32_1 = arith.constant 0 : i32
    return %c0_i32, %c0_i32_0 : i32, i32
  }
  func.func @transform_5(%arg0: i32) -> (i32, i32) {
    %c0_i32 = arith.constant 0 : i32
    %c0_i32_0 = arith.constant 0 : i32
    return %arg0, %c0_i32 : i32, i32
  }
}

</mosaic_0001>

<bundles_post_ra>
// kernel: network_forward.5
= control target key start
LH: loop header
LB: loop body
LE: loop exit
PB: predicated region body
PF: predicated region fallthrough
CT: control target
= control target key end

     0   :  { %10 = vsyncpa [#allocation3], 0  ;;  %s1436_s0 = inlined_call_operand.vmem [shape: f32[2,1600], index: 0, kind: input, shape index: {}]   ;;  %s1437_s1 = inlined_call_operand.vmem [shape: f32[1600,64], index: 1, kind: input, shape index: {}]   ;;  %s1438_s2 = inlined_call_operand.hbm [shape: f32[1,64], index: 2, kind: input, shape index: {}]   ;;  %s1439_s3 = inlined_call_operand.hbm [shape: f32[64,128], index: 3, kind: input, shape index: {}]   ;;  %s1440_s4 = inlined_call_operand.hbm [shape: f32[1,128], index: 4, kind: input, shape index: {}]   ;;  %s1441_s5 = inlined_call_operand.hbm [shape: f32[2,128], index: 5, kind: output, shape index: {}]  }
   0x1   :  { %11 = vsyncpa [#allocation6], 0  ;;  %s32_s20 = sshll.u32 %s1439_s3, 4  ;;  %s33_s20 = int_to_ptr.hbm [resolvable:$true] %s32_s20 }
   0x2   :  { %12 = vsyncpa [#allocation4], 0  ;;  %s753_s21 = smov [#allocation5]   ;;  %s22_s25 = sshll.u32 %s1438_s2, 4  ;;  %s23_s25 = int_to_ptr.hbm [resolvable:$true] %s22_s25 }
   0x3   :  { %s34_s22 = sshll.u32 %s753_s21, 4  ;;  %s754_s26 = smov 128   ;;  %s35_s22 = int_to_ptr.vmem [resolvable:$true] %s34_s22 }
   0x4   :  { %s755_s27 = smov 8   ;;  %s756_s28 = smov [#allocation2]  }
   0x5   :  { %40 = dma.hbm_to_vmem [thread:$0]  %s33_s20, 1024, %s35_s22, [#allocation6], %s754_s26, %s754_s26, %s755_s27  }
   0x6   :  { %s24_s29 = sshll.u32 %s756_s28, 4  ;;  %s46_s7 = sshll.u32 %s1440_s4, 4  ;;  %s25_s29 = int_to_ptr.vmem [resolvable:$true] %s24_s29  ;;  %s47_s7 = int_to_ptr.hbm [resolvable:$true] %s46_s7 }
   0x7   :  { %27 = dma.hbm_to_vmem [thread:$0]  %s23_s25, 16, %s25_s29, [#allocation3]  }
   0x8   :  { %s757_s3 = smov [#allocation7]  }
   0x9   :  { %s48_s8 = sshll.u32 %s757_s3, 4  ;;  %s49_s8 = int_to_ptr.vmem [resolvable:$true] %s48_s8 }
   0xa   :  { %51 = dma.hbm_to_vmem [thread:$0]  %s47_s7, 16, %s49_s8, [#allocation6]  }
   0xb   :  { %747 = dma.done.wait [#allocation3], 16  }
   0xc   :  { %748 = vsyncadd [#allocation3], 4294967280 }
   0xd   :  { %749 = dma.done.wait [#allocation6], 1040  }
   0xe   :  { %750 = vsyncadd [#allocation6], 4294966256  ;;  %v83_v0 = vld [vmem:[%s1437_s1 + $0x78] sm:$0xff]  ;;  %v82_v2 = vld [vmem:[%s1437_s1 + $0x70] sm:$0xff]  ;;  %vm306_vm0 = vcmask 523264   ;;  %vm605_vm1 = vcmask 1041408  }
   0xf   :  { %v115_v1 = vld [vmem:[%s1437_s1 + $0x178] sm:$0xff]  ;;  %309 = vmatpush.msra.mxu0 %v83_v0  ;;  %v114_v4 = vld [vmem:[%s1437_s1 + $0x170] sm:$0xff]  ;;  %v81_v6 = vld [vmem:[%s1437_s1 + $0x68] sm:$0xff]  ;;  %s626_s20 = sshll.u32 %s1441_s5, 4  ;;  %s627_s20 = int_to_ptr.hbm [resolvable:$true] %s626_s20 }
  0x10   :  { %349 = vmatpush.msra.mxu2 %v115_v1  ;;  %v99_v3 = vld [vmem:[%s1437_s1 + $0xf8] sm:$0xff]  ;;  %v98_v7 = vld [vmem:[%s1437_s1 + $0xf0] sm:$0xff]  ;;  %v113_v8 = vld [vmem:[%s1437_s1 + $0x168] sm:$0xff] }
  0x11   :  { %v131_v5 = vld [vmem:[%s1437_s1 + $0x1f8] sm:$0xff]  ;;  %329 = vmatpush.msra.mxu1 %v99_v3  ;;  %310 = vmatpush.msra.mxu0 %v82_v2  ;;  %v130_v9 = vld [vmem:[%s1437_s1 + $0x1f0] sm:$0xff]  ;;  %v97_v10 = vld [vmem:[%s1437_s1 + $0xe8] sm:$0xff] }
  0x12   :  { %369 = vmatpush.msra.mxu3 %v131_v5  ;;  %350 = vmatpush.msra.mxu2 %v114_v4  ;;  %v80_v11 = vld [vmem:[%s1437_s1 + $0x60] sm:$0xff]  ;;  %v129_v13 = vld [vmem:[%s1437_s1 + $0x1e8] sm:$0xff]  ;;  %v79_v16 = vld [vmem:[%s1437_s1 + $0x58] sm:$0xff] }
  0x13   :  { %330 = vmatpush.msra.mxu1 %v98_v7  ;;  %v112_v12 = vld [vmem:[%s1437_s1 + $0x160] sm:$0xff]  ;;  %311 = vmatpush.msra.mxu0 %v81_v6  ;;  %v111_v17 = vld [vmem:[%s1437_s1 + $0x158] sm:$0xff]  ;;  %v78_v20 = vld [vmem:[%s1437_s1 + $0x50] sm:$0xff] }
  0x14   :  { %370 = vmatpush.msra.mxu3 %v130_v9  ;;  %351 = vmatpush.msra.mxu2 %v113_v8  ;;  %v96_v14 = vld [vmem:[%s1437_s1 + $0xe0] sm:$0xff]  ;;  %v95_v18 = vld [vmem:[%s1437_s1 + $0xd8] sm:$0xff]  ;;  %v110_v21 = vld [vmem:[%s1437_s1 + $0x150] sm:$0xff] }
  0x15   :  { %v128_v15 = vld [vmem:[%s1437_s1 + $0x1e0] sm:$0xff]  ;;  %331 = vmatpush.msra.mxu1 %v97_v10  ;;  %312 = vmatpush.msra.mxu0 %v80_v11  ;;  %v127_v19 = vld [vmem:[%s1437_s1 + $0x1d8] sm:$0xff]  ;;  %v94_v22 = vld [vmem:[%s1437_s1 + $0xd0] sm:$0xff] }
  0x16   :  { %371 = vmatpush.msra.mxu3 %v129_v13  ;;  %352 = vmatpush.msra.mxu2 %v112_v12  ;;  %v126_v23 = vld [vmem:[%s1437_s1 + $0x1d0] sm:$0xff]  ;;  %v77_v24 = vld [vmem:[%s1437_s1 + $0x48] sm:$0xff]  ;;  %v76_v28 = vld [vmem:[%s1437_s1 + $0x40] sm:$0xff] }
  0x17   :  { %332 = vmatpush.msra.mxu1 %v96_v14  ;;  %313 = vmatpush.msra.mxu0 %v79_v16  ;;  %v109_v25 = vld [vmem:[%s1437_s1 + $0x148] sm:$0xff]  ;;  %v108_v29 = vld [vmem:[%s1437_s1 + $0x140] sm:$0xff]  ;;  %v75_v32 = vld [vmem:[%s1437_s1 + $0x38] sm:$0xff] }
  0x18   :  { %372 = vmatpush.msra.mxu3 %v128_v15  ;;  %353 = vmatpush.msra.mxu2 %v111_v17  ;;  %v93_v26 = vld [vmem:[%s1437_s1 + $0xc8] sm:$0xff]  ;;  %v92_v30 = vld [vmem:[%s1437_s1 + $0xc0] sm:$0xff]  ;;  %v107_v33 = vld [vmem:[%s1437_s1 + $0x138] sm:$0xff] }
  0x19   :  { %333 = vmatpush.msra.mxu1 %v95_v18  ;;  %314 = vmatpush.msra.mxu0 %v78_v20  ;;  %v125_v27 = vld [vmem:[%s1437_s1 + $0x1c8] sm:$0xff]  ;;  %v124_v31 = vld [vmem:[%s1437_s1 + $0x1c0] sm:$0xff]  ;;  %v91_v34 = vld [vmem:[%s1437_s1 + $0xb8] sm:$0xff] }
  0x1a   :  { %373 = vmatpush.msra.mxu3 %v127_v19  ;;  %354 = vmatpush.msra.mxu2 %v110_v21  ;;  %v123_v35 = vld [vmem:[%s1437_s1 + $0x1b8] sm:$0xff]  ;;  %v74_v36 = vld [vmem:[%s1437_s1 + $0x30] sm:$0xff]  ;;  %v73_v40 = vld [vmem:[%s1437_s1 + $0x28] sm:$0xff] }
  0x1b   :  { %334 = vmatpush.msra.mxu1 %v94_v22  ;;  %315 = vmatpush.msra.mxu0 %v77_v24  ;;  %v106_v37 = vld [vmem:[%s1437_s1 + $0x130] sm:$0xff]  ;;  %v105_v41 = vld [vmem:[%s1437_s1 + $0x128] sm:$0xff]  ;;  %v72_v44 = vld [vmem:[%s1437_s1 + $0x20] sm:$0xff] }
  0x1c   :  { %374 = vmatpush.msra.mxu3 %v126_v23  ;;  %355 = vmatpush.msra.mxu2 %v109_v25  ;;  %v90_v38 = vld [vmem:[%s1437_s1 + $0xb0] sm:$0xff]  ;;  %v89_v42 = vld [vmem:[%s1437_s1 + $0xa8] sm:$0xff]  ;;  %v104_v45 = vld [vmem:[%s1437_s1 + $0x120] sm:$0xff] }
  0x1d   :  { %335 = vmatpush.msra.mxu1 %v93_v26  ;;  %316 = vmatpush.msra.mxu0 %v76_v28  ;;  %v122_v39 = vld [vmem:[%s1437_s1 + $0x1b0] sm:$0xff]  ;;  %v121_v43 = vld [vmem:[%s1437_s1 + $0x1a8] sm:$0xff]  ;;  %v88_v46 = vld [vmem:[%s1437_s1 + $0xa0] sm:$0xff] }
  0x1e   :  { %375 = vmatpush.msra.mxu3 %v125_v27  ;;  %356 = vmatpush.msra.mxu2 %v108_v29  ;;  %v120_v47 = vld [vmem:[%s1437_s1 + $0x1a0] sm:$0xff]  ;;  %v71_v48 = vld [vmem:[%s1437_s1 + $0x18] sm:$0xff]  ;;  %v70_v52 = vld [vmem:[%s1437_s1 + $0x10] sm:$0xff] }
  0x1f   :  { %336 = vmatpush.msra.mxu1 %v92_v30  ;;  %317 = vmatpush.msra.mxu0 %v75_v32  ;;  %v103_v49 = vld [vmem:[%s1437_s1 + $0x118] sm:$0xff]  ;;  %v102_v53 = vld [vmem:[%s1437_s1 + $0x110] sm:$0xff]  ;;  %v69_v56 = vld [vmem:[%s1437_s1 + $0x8] sm:$0xff] }
  0x20   :  { %376 = vmatpush.msra.mxu3 %v124_v31  ;;  %357 = vmatpush.msra.mxu2 %v107_v33  ;;  %v87_v50 = vld [vmem:[%s1437_s1 + $0x98] sm:$0xff]  ;;  %v86_v54 = vld [vmem:[%s1437_s1 + $0x90] sm:$0xff]  ;;  %v101_v57 = vld [vmem:[%s1437_s1 + $0x108] sm:$0xff] }
  0x21   :  { %337 = vmatpush.msra.mxu1 %v91_v34  ;;  %318 = vmatpush.msra.mxu0 %v74_v36  ;;  %v119_v51 = vld [vmem:[%s1437_s1 + $0x198] sm:$0xff]  ;;  %v118_v55 = vld [vmem:[%s1437_s1 + $0x190] sm:$0xff]  ;;  %v85_v58 = vld [vmem:[%s1437_s1 + $0x88] sm:$0xff] }
  0x22   :  { %377 = vmatpush.msra.mxu3 %v123_v35  ;;  %358 = vmatpush.msra.mxu2 %v106_v37  ;;  %v117_v59 = vld [vmem:[%s1437_s1 + $0x188] sm:$0xff]  ;;  %v68_v60 = vld [vmem:[%s1437_s1] sm:$0xff]  ;;  %v147_v62 = vld [vmem:[%s1437_s1 + $0x278] sm:$0xff] }
  0x23   :  { %338 = vmatpush.msra.mxu1 %v90_v38  ;;  %319 = vmatpush.msra.mxu0 %v73_v40  ;;  %v100_v61 = vld [vmem:[%s1437_s1 + $0x100] sm:$0xff]  ;;  %v179_v63 = vld [vmem:[%s1437_s1 + $0x378] sm:$0xff]  ;;  %v146_v2 = vld [vmem:[%s1437_s1 + $0x270] sm:$0xff] }
  0x24   :  { %378 = vmatpush.msra.mxu3 %v122_v39  ;;  %359 = vmatpush.msra.mxu2 %v105_v41  ;;  %v84_v0 = vld [vmem:[%s1437_s1 + $0x80] sm:$0xff]  ;;  %v163_v3 = vld [vmem:[%s1437_s1 + $0x2f8] sm:$0xff]  ;;  %v178_v4 = vld [vmem:[%s1437_s1 + $0x370] sm:$0xff] }
  0x25   :  { %339 = vmatpush.msra.mxu1 %v89_v42  ;;  %320 = vmatpush.msra.mxu0 %v72_v44  ;;  %v116_v1 = vld [vmem:[%s1437_s1 + $0x180] sm:$0xff]  ;;  %v195_v5 = vld [vmem:[%s1437_s1 + $0x3f8] sm:$0xff]  ;;  %v145_v6 = vld [vmem:[%s1437_s1 + $0x268] sm:$0xff] }
  0x26   :  { %379 = vmatpush.msra.mxu3 %v121_v43  ;;  %360 = vmatpush.msra.mxu2 %v104_v45  ;;  %v162_v7 = vld [vmem:[%s1437_s1 + $0x2f0] sm:$0xff]  ;;  %v177_v8 = vld [vmem:[%s1437_s1 + $0x368] sm:$0xff]  ;;  %v144_v10 = vld [vmem:[%s1437_s1 + $0x260] sm:$0xff] }
  0x27   :  { %340 = vmatpush.msra.mxu1 %v88_v46  ;;  %321 = vmatpush.msra.mxu0 %v71_v48  ;;  %v194_v9 = vld [vmem:[%s1437_s1 + $0x3f0] sm:$0xff]  ;;  %v161_v11 = vld [vmem:[%s1437_s1 + $0x2e8] sm:$0xff]  ;;  %v176_v12 = vld [vmem:[%s1437_s1 + $0x360] sm:$0xff] }
  0x28   :  { %380 = vmatpush.msra.mxu3 %v120_v47  ;;  %361 = vmatpush.msra.mxu2 %v103_v49  ;;  %v193_v13 = vld [vmem:[%s1437_s1 + $0x3e8] sm:$0xff]  ;;  %v143_v14 = vld [vmem:[%s1437_s1 + $0x258] sm:$0xff]  ;;  %v160_v15 = vld [vmem:[%s1437_s1 + $0x2e0] sm:$0xff] }
  0x29   :  { %341 = vmatpush.msra.mxu1 %v87_v50  ;;  %322 = vmatpush.msra.mxu0 %v70_v52  ;;  %v175_v16 = vld [vmem:[%s1437_s1 + $0x358] sm:$0xff]  ;;  %v192_v17 = vld [vmem:[%s1437_s1 + $0x3e0] sm:$0xff]  ;;  %v142_v18 = vld [vmem:[%s1437_s1 + $0x250] sm:$0xff] }
  0x2a   :  { %381 = vmatpush.msra.mxu3 %v119_v51  ;;  %362 = vmatpush.msra.mxu2 %v102_v53  ;;  %v159_v19 = vld [vmem:[%s1437_s1 + $0x2d8] sm:$0xff]  ;;  %v174_v20 = vld [vmem:[%s1437_s1 + $0x350] sm:$0xff]  ;;  %v64_v22 = vld [vmem:[%s1436_s0] sm:$0xff] }
  0x2b   :  { %342 = vmatpush.msra.mxu1 %v86_v54  ;;  %323 = vmatpush.msra.mxu0 %v69_v56  ;;  %v191_v21 = vld [vmem:[%s1437_s1 + $0x3d8] sm:$0xff]  ;;  %v141_v23 = vld [vmem:[%s1437_s1 + $0x248] sm:$0xff]  ;;  %v158_v24 = vld [vmem:[%s1437_s1 + $0x2d0] sm:$0xff]  ;;  %276 = vst [vmem:[#allocation1] ss:$4 sm:$0xff] %v64_v22 }
  0x2c   :  { %382 = vmatpush.msra.mxu3 %v118_v55  ;;  %363 = vmatpush.msra.mxu2 %v101_v57  ;;  %v173_v25 = vld [vmem:[%s1437_s1 + $0x348] sm:$0xff]  ;;  %v190_v26 = vld [vmem:[%s1437_s1 + $0x3d0] sm:$0xff]  ;;  %v140_v27 = vld [vmem:[%s1437_s1 + $0x240] sm:$0xff] }
  0x2d   :  { %343 = vmatpush.msra.mxu1 %v85_v58  ;;  %324 = vmatpush.msra.mxu0 %v68_v60  ;;  %v157_v28 = vld [vmem:[%s1437_s1 + $0x2c8] sm:$0xff]  ;;  %v172_v29 = vld [vmem:[%s1437_s1 + $0x340] sm:$0xff]  ;;  %v139_v31 = vld [vmem:[%s1437_s1 + $0x238] sm:$0xff] }
  0x2e   :  { %383 = vmatpush.msra.mxu3 %v117_v59  ;;  %364 = vmatpush.msra.mxu2 %v100_v61  ;;  %v189_v30 = vld [vmem:[%s1437_s1 + $0x3c8] sm:$0xff]  ;;  %v156_v32 = vld [vmem:[%s1437_s1 + $0x2c0] sm:$0xff]  ;;  %v171_v33 = vld [vmem:[%s1437_s1 + $0x338] sm:$0xff] }
  0x2f   :  { %389 = vmatpush.msrb.mxu0 %v147_v62  ;;  %344 = vmatpush.msra.mxu1 %v84_v0  ;;  %v188_v34 = vld [vmem:[%s1437_s1 + $0x3c0] sm:$0xff]  ;;  %v138_v35 = vld [vmem:[%s1437_s1 + $0x230] sm:$0xff]  ;;  %v155_v36 = vld [vmem:[%s1437_s1 + $0x2b8] sm:$0xff] }
  0x30   :  { %429 = vmatpush.msrb.mxu2 %v179_v63  ;;  %384 = vmatpush.msra.mxu3 %v116_v1  ;;  %v170_v37 = vld [vmem:[%s1437_s1 + $0x330] sm:$0xff]  ;;  %v187_v38 = vld [vmem:[%s1437_s1 + $0x3b8] sm:$0xff]  ;;  %v65_v39 = vld [vmem:[%s1436_s0 + $0x8] sm:$0xff] }
  0x31   :  { %390 = vmatpush.msrb.mxu0 %v146_v2  ;;  %409 = vmatpush.msrb.mxu1 %v163_v3  ;;  %v137_v40 = vld [vmem:[%s1437_s1 + $0x228] sm:$0xff]  ;;  %v154_v41 = vld [vmem:[%s1437_s1 + $0x2b0] sm:$0xff]  ;;  %278 = vst [vmem:[#allocation1 + $0x20] ss:$4 sm:$0xff] %v65_v39  ;;  %v136_v49 = vld [vmem:[%s1437_s1 + $0x220] sm:$0xff] }
  0x32   :  { %430 = vmatpush.msrb.mxu2 %v178_v4  ;;  %449 = vmatpush.msrb.mxu3 %v195_v5  ;;  %v66_v42 = vld [vmem:[%s1436_s0 + $0x10] sm:$0xff]  ;;  %v169_v43 = vld [vmem:[%s1437_s1 + $0x328] sm:$0xff]  ;;  %v1122_v45 = vld.sshfl [vmem:[#allocation1] sm:$0xff pattern:$0x73625140] }
  0x33   :  { %391 = vmatpush.msrb.mxu0 %v145_v6  ;;  %410 = vmatpush.msrb.mxu1 %v162_v7  ;;  %v281_v44 = vld.sshfl [vmem:[#allocation1 + $0x10] sm:$0xff pattern:$0x73625140]  ;;  %v1124_v46 = vld.sshfl [vmem:[#allocation1 + $0x18] sm:$0xff pattern:$0x73625140] }
  0x34   :  { %431 = vmatpush.msrb.mxu2 %v177_v8  ;;  %450 = vmatpush.msrb.mxu3 %v194_v9  ;;  %v1126_v47 = vld.sshfl [vmem:[#allocation1 + $0x8] sm:$0xff pattern:$0x73625140]  ;;  %v186_v48 = vld [vmem:[%s1437_s1 + $0x3b0] sm:$0xff]  ;;  %v168_v51 = vld [vmem:[%s1437_s1 + $0x320] sm:$0xff] }
  0x35   :  { %392 = vmatpush.msrb.mxu0 %v144_v10  ;;  %411 = vmatpush.msrb.mxu1 %v161_v11  ;;  %v153_v50 = vld [vmem:[%s1437_s1 + $0x2a8] sm:$0xff]  ;;  %287 = vst [vmem:[#allocation1] ss:$4 sm:$0xff] %v66_v42  ;;  %v135_v53 = vld [vmem:[%s1437_s1 + $0x218] sm:$0xff]  ;;  %v152_v54 = vld [vmem:[%s1437_s1 + $0x2a0] sm:$0xff] }
  0x36   :  { %432 = vmatpush.msrb.mxu2 %v176_v12  ;;  %451 = vmatpush.msrb.mxu3 %v193_v13  ;;  %v185_v52 = vld [vmem:[%s1437_s1 + $0x3a8] sm:$0xff]  ;;  %v167_v55 = vld [vmem:[%s1437_s1 + $0x318] sm:$0xff]  ;;  %v184_v56 = vld [vmem:[%s1437_s1 + $0x3a0] sm:$0xff] }
  0x37   :  { %393 = vmatpush.msrb.mxu0 %v143_v14  ;;  %412 = vmatpush.msrb.mxu1 %v160_v15  ;;  %v134_v57 = vld [vmem:[%s1437_s1 + $0x210] sm:$0xff]  ;;  %v151_v58 = vld [vmem:[%s1437_s1 + $0x298] sm:$0xff]  ;;  %v133_v2 = vld [vmem:[%s1437_s1 + $0x208] sm:$0xff] }
  0x38   :  { %433 = vmatpush.msrb.mxu2 %v175_v16  ;;  %452 = vmatpush.msrb.mxu3 %v192_v17  ;;  %v67_v59 = vld [vmem:[%s1436_s0 + $0x18] sm:$0x3]  ;;  %v1164_v60 = vld.sshfl [vmem:[#allocation1 + $0x30] sm:$0xff pattern:$0x73625140]  ;;  %v165_v4 = vld [vmem:[%s1437_s1 + $0x308] sm:$0xff] }
  0x39   :  { %394 = vmatpush.msrb.mxu0 %v142_v18  ;;  %413 = vmatpush.msrb.mxu1 %v159_v19  ;;  %v1166_v61 = vld.sshfl [vmem:[#allocation1 + $0x20] sm:$0xff pattern:$0x73625140]  ;;  %v1168_v62 = vld.sshfl [vmem:[#allocation1 + $0x38] sm:$0xff pattern:$0x73625140] }
  0x3a   :  { %434 = vmatpush.msrb.mxu2 %v174_v20  ;;  %453 = vmatpush.msrb.mxu3 %v191_v21  ;;  %v1170_v63 = vld.sshfl [vmem:[#allocation1 + $0x28] sm:$0xff pattern:$0x73625140]  ;;  %v166_v0 = vld [vmem:[%s1437_s1 + $0x310] sm:$0xff]  ;;  %v183_v1 = vld [vmem:[%s1437_s1 + $0x398] sm:$0xff] }
  0x3b   :  { %395 = vmatpush.msrb.mxu0 %v141_v23  ;;  %414 = vmatpush.msrb.mxu1 %v158_v24  ;;  %288 = vst [vmem:[#allocation1 + $0x20] ss:$4 sm:$0xff] %v67_v59  ;;  %v150_v3 = vld [vmem:[%s1437_s1 + $0x290] sm:$0xff]  ;;  %v132_v6 = vld [vmem:[%s1437_s1 + $0x200] sm:$0xff]  ;;  %v149_v7 = vld [vmem:[%s1437_s1 + $0x288] sm:$0xff] }
  0x3c   :  { %435 = vmatpush.msrb.mxu2 %v173_v25  ;;  %454 = vmatpush.msrb.mxu3 %v190_v26  ;;  %v182_v5 = vld [vmem:[%s1437_s1 + $0x390] sm:$0xff]  ;;  %v164_v8 = vld [vmem:[%s1437_s1 + $0x300] sm:$0xff]  ;;  %v181_v9 = vld [vmem:[%s1437_s1 + $0x388] sm:$0xff] }
  0x3d   :  { %396 = vmatpush.msrb.mxu0 %v140_v27  ;;  %415 = vmatpush.msrb.mxu1 %v157_v28  ;;  %v211_v10 = vld [vmem:[%s1437_s1 + $0x478] sm:$0xff]  ;;  %v148_v12 = vld [vmem:[%s1437_s1 + $0x280] sm:$0xff]  ;;  %v210_v14 = vld [vmem:[%s1437_s1 + $0x470] sm:$0xff] }
  0x3e   :  { %436 = vmatpush.msrb.mxu2 %v172_v29  ;;  %455 = vmatpush.msrb.mxu3 %v189_v30  ;;  %v243_v11 = vld [vmem:[%s1437_s1 + $0x578] sm:$0xff]  ;;  %v180_v13 = vld [vmem:[%s1437_s1 + $0x380] sm:$0xff]  ;;  %v242_v16 = vld [vmem:[%s1437_s1 + $0x570] sm:$0xff] }
  0x3f   :  { %397 = vmatpush.msrb.mxu0 %v139_v31  ;;  %416 = vmatpush.msrb.mxu1 %v156_v32  ;;  %v227_v15 = vld [vmem:[%s1437_s1 + $0x4f8] sm:$0xff]  ;;  %v209_v18 = vld [vmem:[%s1437_s1 + $0x468] sm:$0xff]  ;;  %v226_v19 = vld [vmem:[%s1437_s1 + $0x4f0] sm:$0xff] }
  0x40   :  { %437 = vmatpush.msrb.mxu2 %v171_v33  ;;  %456 = vmatpush.msrb.mxu3 %v188_v34  ;;  %v259_v17 = vld [vmem:[%s1437_s1 + $0x5f8] sm:$0xff]  ;;  %v241_v20 = vld [vmem:[%s1437_s1 + $0x568] sm:$0xff]  ;;  %v258_v21 = vld [vmem:[%s1437_s1 + $0x5f0] sm:$0xff] }
  0x41   :  { %398 = vmatpush.msrb.mxu0 %v138_v35  ;;  %417 = vmatpush.msrb.mxu1 %v155_v36  ;;  %v208_v22 = vld [vmem:[%s1437_s1 + $0x460] sm:$0xff]  ;;  %v225_v23 = vld [vmem:[%s1437_s1 + $0x4e8] sm:$0xff]  ;;  %v207_v26 = vld [vmem:[%s1437_s1 + $0x458] sm:$0xff] }
  0x42   :  { %438 = vmatpush.msrb.mxu2 %v170_v37  ;;  %457 = vmatpush.msrb.mxu3 %v187_v38  ;;  %v240_v24 = vld [vmem:[%s1437_s1 + $0x560] sm:$0xff]  ;;  %v257_v25 = vld [vmem:[%s1437_s1 + $0x5e8] sm:$0xff]  ;;  %v239_v28 = vld [vmem:[%s1437_s1 + $0x558] sm:$0xff] }
  0x43   :  { %399 = vmatpush.msrb.mxu0 %v137_v40  ;;  %418 = vmatpush.msrb.mxu1 %v154_v41  ;;  %v224_v27 = vld [vmem:[%s1437_s1 + $0x4e0] sm:$0xff]  ;;  %v206_v30 = vld [vmem:[%s1437_s1 + $0x450] sm:$0xff]  ;;  %v223_v31 = vld [vmem:[%s1437_s1 + $0x4d8] sm:$0xff] }
  0x44   :  { %439 = vmatpush.msrb.mxu2 %v169_v43  ;;  %458 = vmatpush.msrb.mxu3 %v186_v48  ;;  %v256_v29 = vld [vmem:[%s1437_s1 + $0x5e0] sm:$0xff]  ;;  %v238_v32 = vld [vmem:[%s1437_s1 + $0x550] sm:$0xff]  ;;  %v255_v33 = vld [vmem:[%s1437_s1 + $0x5d8] sm:$0xff] }
  0x45   :  { %400 = vmatpush.msrb.mxu0 %v136_v49  ;;  %419 = vmatpush.msrb.mxu1 %v153_v50  ;;  %v205_v34 = vld [vmem:[%s1437_s1 + $0x448] sm:$0xff]  ;;  %v222_v35 = vld [vmem:[%s1437_s1 + $0x4d0] sm:$0xff]  ;;  %v204_v38 = vld [vmem:[%s1437_s1 + $0x440] sm:$0xff] }
  0x46   :  { %440 = vmatpush.msrb.mxu2 %v168_v51  ;;  %459 = vmatpush.msrb.mxu3 %v185_v52  ;;  %v237_v36 = vld [vmem:[%s1437_s1 + $0x548] sm:$0xff]  ;;  %v254_v37 = vld [vmem:[%s1437_s1 + $0x5d0] sm:$0xff]  ;;  %v236_v40 = vld [vmem:[%s1437_s1 + $0x540] sm:$0xff] }
  0x47   :  { %401 = vmatpush.msrb.mxu0 %v135_v53  ;;  %420 = vmatpush.msrb.mxu1 %v152_v54  ;;  %v221_v39 = vld [vmem:[%s1437_s1 + $0x4c8] sm:$0xff]  ;;  %v203_v42 = vld [vmem:[%s1437_s1 + $0x438] sm:$0xff]  ;;  %v220_v43 = vld [vmem:[%s1437_s1 + $0x4c0] sm:$0xff] }
  0x48   :  { %441 = vmatpush.msrb.mxu2 %v167_v55  ;;  %460 = vmatpush.msrb.mxu3 %v184_v56  ;;  %v253_v41 = vld [vmem:[%s1437_s1 + $0x5c8] sm:$0xff]  ;;  %v234_v48 = vld [vmem:[%s1437_s1 + $0x530] sm:$0xff]  ;;  %v251_v49 = vld [vmem:[%s1437_s1 + $0x5b8] sm:$0xff] }
  0x49   :  { %402 = vmatpush.msrb.mxu0 %v134_v57  ;;  %421 = vmatpush.msrb.mxu1 %v151_v58  ;;  %v201_v50 = vld [vmem:[%s1437_s1 + $0x428] sm:$0xff]  ;;  %v218_v51 = vld [vmem:[%s1437_s1 + $0x4b0] sm:$0xff]  ;;  %v200_v54 = vld [vmem:[%s1437_s1 + $0x420] sm:$0xff] }
  0x4a   :  { %442 = vmatpush.msrb.mxu2 %v166_v0  ;;  %461 = vmatpush.msrb.mxu3 %v183_v1  ;;  %v233_v52 = vld [vmem:[%s1437_s1 + $0x528] sm:$0xff]  ;;  %v250_v53 = vld [vmem:[%s1437_s1 + $0x5b0] sm:$0xff]  ;;  %v232_v56 = vld [vmem:[%s1437_s1 + $0x520] sm:$0xff] }
  0x4b   :  { %403 = vmatpush.msrb.mxu0 %v133_v2  ;;  %422 = vmatpush.msrb.mxu1 %v150_v3  ;;  %v217_v55 = vld [vmem:[%s1437_s1 + $0x4a8] sm:$0xff]  ;;  %v199_v58 = vld [vmem:[%s1437_s1 + $0x418] sm:$0xff]  ;;  %v216_v59 = vld [vmem:[%s1437_s1 + $0x4a0] sm:$0xff] }
  0x4c   :  { %443 = vmatpush.msrb.mxu2 %v165_v4  ;;  %462 = vmatpush.msrb.mxu3 %v182_v5  ;;  %v249_v57 = vld [vmem:[%s1437_s1 + $0x5a8] sm:$0xff]  ;;  %v230_v0 = vld [vmem:[%s1437_s1 + $0x510] sm:$0xff]  ;;  %v247_v1 = vld [vmem:[%s1437_s1 + $0x598] sm:$0xff] }
  0x4d   :  { %365 = vmatmul.f32.vlgmr.msra.gmra.mxu2 %v281_v44  ;;  %404 = vmatpush.msrb.mxu0 %v132_v6  ;;  %v235_v44 = vld [vmem:[%s1437_s1 + $0x538] sm:$0xff]  ;;  %v197_v2 = vld [vmem:[%s1437_s1 + $0x408] sm:$0xff]  ;;  %v214_v3 = vld [vmem:[%s1437_s1 + $0x490] sm:$0xff] }
  0x4e   :  { %423 = vmatpush.msrb.mxu1 %v149_v7  ;;  %444 = vmatpush.msrb.mxu2 %v164_v8  ;;  %v229_v4 = vld [vmem:[%s1437_s1 + $0x508] sm:$0xff]  ;;  %v246_v5 = vld [vmem:[%s1437_s1 + $0x590] sm:$0xff]  ;;  %v196_v6 = vld [vmem:[%s1437_s1 + $0x400] sm:$0xff] }
  0x4f   :  { %463 = vmatpush.msrb.mxu3 %v181_v9  ;;  %325 = vmatmul.f32.vlgmr.msra.gmra.mxu0 %v1122_v45  ;;  %v252_v45 = vld [vmem:[%s1437_s1 + $0x5c0] sm:$0xff]  ;;  %v213_v7 = vld [vmem:[%s1437_s1 + $0x488] sm:$0xff] }
  0x50   :  { %385 = vmatmul.f32.vlgmr.msra.gmra.mxu3 %v1124_v46  ;;  %469 = vmatpush.msra.mxu0 %v211_v10  ;;  %v202_v46 = vld [vmem:[%s1437_s1 + $0x430] sm:$0xff]  ;;  %v228_v8 = vld [vmem:[%s1437_s1 + $0x500] sm:$0xff]  ;;  %v245_v9 = vld [vmem:[%s1437_s1 + $0x588] sm:$0xff] }
  0x51   :  { %509 = vmatpush.msra.mxu2 %v243_v11  ;;  %424 = vmatpush.msrb.mxu1 %v148_v12  ;;  %v289_v10 = vld.sshfl [vmem:[#allocation1] sm:$0xff pattern:$0x73625140]  ;;  %v291_v11 = vld.sshfl [vmem:[#allocation1 + $0x10] sm:$0xff pattern:$0x73625140] }
  0x52   :  { %464 = vmatpush.msrb.mxu3 %v180_v13  ;;  %345 = vmatmul.f32.vlgmr.msra.gmra.mxu1 %v1126_v47  ;;  %v219_v47 = vld [vmem:[%s1437_s1 + $0x4b8] sm:$0xff]  ;;  %v212_v13 = vld [vmem:[%s1437_s1 + $0x480] sm:$0xff] }
  0x53   :  { %470 = vmatpush.msra.mxu0 %v210_v14  ;;  %489 = vmatpush.msra.mxu1 %v227_v15  ;;  %v267_v12 = vld [vmem:[%s1437_s1 + $0x638] sm:$0xff]  ;;  %v244_v14 = vld [vmem:[%s1437_s1 + $0x580] sm:$0xff]  ;;  %v290_v15 = vld.sshfl [vmem:[#allocation1 + $0x8] sm:$0xff pattern:$0x73625140] }
  0x54   :  { %510 = vmatpush.msra.mxu2 %v242_v16  ;;  %529 = vmatpush.msra.mxu3 %v259_v17  ;;  %v292_v16 = vld.sshfl [vmem:[#allocation1 + $0x18] sm:$0xff pattern:$0x73625140]  ;;  %v266_v17 = vld [vmem:[%s1437_s1 + $0x630] sm:$0xff] }
  0x55   :  { %471 = vmatpush.msra.mxu0 %v209_v18  ;;  %490 = vmatpush.msra.mxu1 %v226_v19  ;;  %v265_v18 = vld [vmem:[%s1437_s1 + $0x628] sm:$0xff]  ;;  %v264_v19 = vld [vmem:[%s1437_s1 + $0x620] sm:$0xff] }
  0x56   :  { %511 = vmatpush.msra.mxu2 %v241_v20  ;;  %530 = vmatpush.msra.mxu3 %v258_v21  ;;  %v263_v20 = vld [vmem:[%s1437_s1 + $0x618] sm:$0xff]  ;;  %v262_v21 = vld [vmem:[%s1437_s1 + $0x610] sm:$0xff] }
  0x57   :  { %445 = vmatmul.f32.vlgmr.msrb.gmra.mxu2 %v1164_v60  ;;  %472 = vmatpush.msra.mxu0 %v208_v22  ;;  %v231_v60 = vld [vmem:[%s1437_s1 + $0x518] sm:$0xff]  ;;  %v261_v22 = vld [vmem:[%s1437_s1 + $0x608] sm:$0xff] }
  0x58   :  { %491 = vmatpush.msra.mxu1 %v225_v23  ;;  %512 = vmatpush.msra.mxu2 %v240_v24  ;;  %v260_v23 = vld [vmem:[%s1437_s1 + $0x600] sm:$0xff] }
  0x59   :  { %531 = vmatpush.msra.mxu3 %v257_v25  ;;  %405 = vmatmul.f32.vlgmr.msrb.gmra.mxu0 %v1166_v61  ;;  %v248_v61 = vld [vmem:[%s1437_s1 + $0x5a0] sm:$0xff]  ;;  %v645_v25 = vld [vmem:[#allocation2] ss:$0 sm:$0xff] }
  0x5a   :  { %465 = vmatmul.f32.vlgmr.msrb.gmra.mxu3 %v1168_v62  ;;  %473 = vmatpush.msra.mxu0 %v207_v26  ;;  %v198_v62 = vld [vmem:[%s1437_s1 + $0x410] sm:$0xff]  ;;  %v293_v24 = vld.sshfl [vmem:[#allocation1 + $0x20] sm:$0xff pattern:$0x73625140] }
  0x5b   :  { %492 = vmatpush.msra.mxu1 %v224_v27  ;;  %513 = vmatpush.msra.mxu2 %v239_v28  ;;  %v577_v26 = vld [vmem:[#allocation5 + $0x38] sm:$0xff] }
  0x5c   :  { %532 = vmatpush.msra.mxu3 %v256_v29  ;;  %425 = vmatmul.f32.vlgmr.msrb.gmra.mxu1 %v1170_v63  ;;  %v215_v63 = vld [vmem:[%s1437_s1 + $0x498] sm:$0xff]  ;;  %s758_s1 = smov [#allocation8]  }
  0x5d   :  { %474 = vmatpush.msra.mxu0 %v206_v30  ;;  %493 = vmatpush.msra.mxu1 %v223_v31  ;;  %v576_v29 = vld [vmem:[#allocation5 + $0x30] sm:$0xff]  ;;  %v575_v31 = vld [vmem:[#allocation5 + $0x28] sm:$0xff]  ;;  %s624_s17 = sshll.u32 %s758_s1, 4  ;;  %s625_s17 = int_to_ptr.vmem [resolvable:$true] %s624_s17 }
  0x5e   :  { %514 = vmatpush.msra.mxu2 %v238_v32  ;;  %533 = vmatpush.msra.mxu3 %v255_v33  ;;  %v574_v32 = vld [vmem:[#allocation5 + $0x20] sm:$0xff] }
  0x5f   :  { %475 = vmatpush.msra.mxu0 %v205_v34  ;;  %494 = vmatpush.msra.mxu1 %v222_v35  ;;  %v573_v34 = vld [vmem:[#allocation5 + $0x18] sm:$0xff] }
  0x60   :  { %515 = vmatpush.msra.mxu2 %v237_v36  ;;  %534 = vmatpush.msra.mxu3 %v254_v37  ;;  %v572_v37 = vld [vmem:[#allocation5 + $0x10] sm:$0xff] }
  0x61   :  { %476 = vmatpush.msra.mxu0 %v204_v38  ;;  %495 = vmatpush.msra.mxu1 %v221_v39  ;;  %v571_v39 = vld [vmem:[#allocation5 + $0x8] sm:$0xff] }
  0x62   :  { %516 = vmatpush.msra.mxu2 %v236_v40  ;;  %535 = vmatpush.msra.mxu3 %v253_v41  ;;  %v570_v41 = vld [vmem:[#allocation5] sm:$0xff] }
  0x63   :  { %477 = vmatpush.msra.mxu0 %v203_v42  ;;  %496 = vmatpush.msra.mxu1 %v220_v43 }
  0x64   :  { %517 = vmatpush.msra.mxu2 %v235_v44  ;;  %536 = vmatpush.msra.mxu3 %v252_v45 }
  0x65   :  { %478 = vmatpush.msra.mxu0 %v202_v46  ;;  %497 = vmatpush.msra.mxu1 %v219_v47 }
  0x66   :  { %518 = vmatpush.msra.mxu2 %v234_v48  ;;  %537 = vmatpush.msra.mxu3 %v251_v49 }
  0x67   :  { %479 = vmatpush.msra.mxu0 %v201_v50  ;;  %498 = vmatpush.msra.mxu1 %v218_v51 }
  0x68   :  { %519 = vmatpush.msra.mxu2 %v233_v52  ;;  %538 = vmatpush.msra.mxu3 %v250_v53 }
  0x69   :  { %480 = vmatpush.msra.mxu0 %v200_v54  ;;  %499 = vmatpush.msra.mxu1 %v217_v55 }
  0x6a   :  { %520 = vmatpush.msra.mxu2 %v232_v56  ;;  %539 = vmatpush.msra.mxu3 %v249_v57 }
  0x6b   :  { %481 = vmatpush.msra.mxu0 %v199_v58  ;;  %500 = vmatpush.msra.mxu1 %v216_v59 }
  0x6c   :  { %521 = vmatpush.msra.mxu2 %v231_v60  ;;  %540 = vmatpush.msra.mxu3 %v248_v61  ;;  %v646_v61 = vld [vmem:[#allocation7] ss:$0 sm:$0xff] }
  0x6d   :  { %482 = vmatpush.msra.mxu0 %v198_v62  ;;  %501 = vmatpush.msra.mxu1 %v215_v63 }
  0x6e   :  { %522 = vmatpush.msra.mxu2 %v230_v0  ;;  %541 = vmatpush.msra.mxu3 %v247_v1 }
  0x6f   :  { %483 = vmatpush.msra.mxu0 %v197_v2  ;;  %502 = vmatpush.msra.mxu1 %v214_v3 }
  0x70   :  { %523 = vmatpush.msra.mxu2 %v229_v4  ;;  %542 = vmatpush.msra.mxu3 %v246_v5 }
  0x71   :  { %484 = vmatpush.msra.mxu0 %v196_v6  ;;  %503 = vmatpush.msra.mxu1 %v213_v7 }
  0x72   :  { %524 = vmatpush.msra.mxu2 %v228_v8  ;;  %543 = vmatpush.msra.mxu3 %v245_v9 }
  0x73   :  { %485 = vmatmul.f32.vlgmr.msra.gmra.mxu0 %v289_v10  ;;  %525 = vmatmul.f32.vlgmr.msra.gmra.mxu2 %v291_v11 }
  0x74   :  { %557 = vmatpush.msrb.mxu0 %v267_v12  ;;  %504 = vmatpush.msra.mxu1 %v212_v13 }
  0x75   :  { %544 = vmatpush.msra.mxu3 %v244_v14  ;;  %505 = vmatmul.f32.vlgmr.msra.gmra.mxu1 %v290_v15 }
  0x76   :  { %545 = vmatmul.f32.vlgmr.msra.gmra.mxu3 %v292_v16  ;;  %558 = vmatpush.msrb.mxu0 %v266_v17 }
  0x77   :  { %593 = vmatpush.msrb.mxu1 %v577_v26 }
  0x78   :  { %559 = vmatpush.msrb.mxu0 %v265_v18 }
  0x79   :  { %594 = vmatpush.msrb.mxu1 %v576_v29 }
  0x7a   :  { %560 = vmatpush.msrb.mxu0 %v264_v19 }
  0x7b   :  { %595 = vmatpush.msrb.mxu1 %v575_v31 }
  0x7c   :  { %561 = vmatpush.msrb.mxu0 %v263_v20 }
  0x7d   :  { %596 = vmatpush.msrb.mxu1 %v574_v32 }
  0x7e   :  { %562 = vmatpush.msrb.mxu0 %v262_v21 }
  0x7f   :  { %597 = vmatpush.msrb.mxu1 %v573_v34 }
  0x80   :  { %563 = vmatpush.msrb.mxu0 %v261_v22 }
  0x81   :  { %598 = vmatpush.msrb.mxu1 %v572_v37 }
  0x82   :  { %564 = vmatpush.msrb.mxu0 %v260_v23 }
  0x83   :  { %637 = vmatmul.msk.f32.vlgmr.msrb.gmra.mxu0 %vm306_vm0, %v293_v24  ;;  %599 = vmatpush.msrb.mxu1 %v571_v39 }
  0x85   :  { %600 = vmatpush.msrb.mxu1 %v570_v41 }
  0xcc   :  { %v326_v27 = vpop.f32.mrf.mxu0 }
  0xcd   :  { %v327_v28 = vadd.f32 %v645_v25, %v326_v27 }
  0xcf   :  { %v346_v30 = vpop.f32.mrf.mxu1 }
  0xd0   :  { %v347_v33 = vadd.f32 %v346_v30, %v327_v28  ;;  %v366_v35 = vpop.f32.mrf.mxu2 }
  0xd2   :  { %v367_v36 = vadd.f32 %v366_v35, %v347_v33 }
  0xd3   :  { %v386_v38 = vpop.f32.mrf.mxu3 }
  0xd4   :  { %v387_v40 = vadd.f32 %v386_v38, %v367_v36 }
  0xd6   :  { %v406_v42 = vpop.f32.mrf.mxu0 }
  0xd7   :  { %v407_v43 = vadd.f32 %v406_v42, %v387_v40 }
  0xd9   :  { %v426_v44 = vpop.f32.mrf.mxu1 }
  0xda   :  { %v427_v45 = vadd.f32 %v426_v44, %v407_v43  ;;  %v446_v46 = vpop.f32.mrf.mxu2 }
  0xdc   :  { %v447_v47 = vadd.f32 %v446_v46, %v427_v45 }
  0xdd   :  { %v466_v48 = vpop.f32.mrf.mxu3 }
  0xde   :  { %v467_v50 = vadd.f32 %v466_v48, %v447_v47 }
  0xf0   :  { %v486_v49 = vpop.f32.mrf.mxu0 }
  0xf1   :  { %v487_v51 = vadd.f32 %v486_v49, %v467_v50 }
  0xf2   :  { %v506_v52 = vpop.f32.mrf.mxu1 }
  0xf3   :  { %v507_v54 = vadd.f32 %v506_v52, %v487_v51 }
  0xf6   :  { %v526_v53 = vpop.f32.mrf.mxu2 }
  0xf7   :  { %v527_v55 = vadd.f32 %v526_v53, %v507_v54 }
  0xf9   :  { %v546_v56 = vpop.f32.mrf.mxu3 }
  0xfa   :  { %v547_v57 = vadd.f32 %v546_v56, %v527_v55 }
 0x100   :  { %v566_v58 = vpop.f32.mrf.mxu0 }
 0x101   :  { %v567_v59 = vadd.f32 %v566_v58, %v547_v57 }
 0x103   :  { %v569_v60 = vmax.f32 %v567_v59, 0.0 }
 0x105   :  { %638 = vmatmul.msk.f32.vlgmr.msrb.gmra.mxu1 %vm306_vm0, %v569_v60 }
 0x182   :  { %v602_v62 = vpop.f32.mrf.mxu1 }
 0x183   :  { %v603_v63 = vadd.f32 %v646_v61, %v602_v62 }
 0x185   :  { %v606_v0 = vsel %vm605_vm1, %v603_v63, -inf }
 0x186   :  { %607 = vmax.xlane.f32.xlu0 %v606_v0 }
 0x1f9   :  { %v608_v1 = vpop.xlane.xlu0 %607 }
 0x1fa   :  { %v609_v2 = vsub.f32 %v603_v63, %v608_v1 }
 0x1fc   :  { %v610_v3 = vmul.f32 1.442695, %v609_v2 }
 0x1fe   :  { %647 = vpow2.f32 %v610_v3 }
 0x204   :  { %v648_v4 = vpop.eup %647 }
 0x205   :  { %v612_v5 = vsel %vm605_vm1, %v648_v4, 0.0 }
 0x206   :  { %613 = vadd.xlane.f32.xlu0 %v612_v5 }
 0x279   :  { %v614_v6 = vpop.xlane.xlu0 %613 }
 0x27a   :  { %649 = vlog2.f32 %v614_v6 }
 0x280   :  { %v650_v7 = vpop.eup %649 }
 0x281   :  { %v616_v8 = vmul.f32 0.6931472, %v650_v7 }
 0x283   :  { %v617_v9 = vsub.f32 %v609_v2, %v616_v8 }
 0x285   :  { %618 = vst [vmem:[#allocation8] sm:$0x3] %v617_v9 }
 0x286   :  { %629 = dma.vmem_to_hbm [thread:$0]  %s625_s17, 32, %s627_s20, [#allocation4]  }
 0x287   :  { %751 = dma.done.wait [#allocation4], 32  }
 0x288   :  { %752 = vsyncadd [#allocation4], 4294967264 }
 0x289   :  { %634 = vsyncpa [#allocation3], 1 }
 0x28a   :  { %635 = vsyncpa [#allocation6], 1 }
 0x28b   :  { %636 = vsyncpa [#allocation4], 1 }

// kernel: network_forward.3
= control target key start
LH: loop header
LB: loop body
LE: loop exit
PB: predicated region body
PF: predicated region fallthrough
CT: control target
= control target key end

     0   :  { %11 = vsyncpa [#allocation3], 0  ;;  %s3558_s0 = inlined_call_operand.vmem [shape: f32[26,28], index: 0, kind: input, shape index: {}]   ;;  %s3559_s1 = inlined_call_operand.vmem [shape: f32[26,28], index: 1, kind: input, shape index: {}]   ;;  %s3560_s2 = inlined_call_operand.vmem [shape: f32[26,28], index: 2, kind: input, shape index: {}]   ;;  %s3561_s3 = inlined_call_operand.vmem [shape: f32[26,28], index: 3, kind: input, shape index: {}]   ;;  %s3562_s4 = inlined_call_operand.hbm [shape: f32[6,28,416], index: 4, kind: input, shape index: {}]   ;;  %s3563_s5 = inlined_call_operand.hbm [shape: f32[1,416], index: 5, kind: input, shape index: {}]   ;;  %s3564_s6 = inlined_call_operand.vmem [shape: f32[26,416], index: 6, kind: output, shape index: {}]  }
   0x1   :  { %s25_s23 = sshll.u32 %s3562_s4, 4  ;;  %s26_s23 = int_to_ptr.hbm [resolvable:$true] %s25_s23 }
   0x2   :  { %12 = vsyncpa [#allocation5], 0  ;;  %s2162_s24 = smov [#allocation2]   ;;  %s39_s28 = sshll.u32 %s3563_s5, 4  ;;  %s40_s28 = int_to_ptr.hbm [resolvable:$true] %s39_s28 }
   0x3   :  { %s27_s25 = sshll.u32 %s2162_s24, 4  ;;  %s2163_s29 = smov 512   ;;  %s28_s25 = int_to_ptr.vmem [resolvable:$true] %s27_s25 }
   0x4   :  { %s2164_s30 = smov 32   ;;  %s2165_s7 = smov [#allocation4]  }
   0x5   :  { %33 = dma.hbm_to_vmem [thread:$0]  %s26_s23, 12288, %s28_s25, [#allocation3], %s2163_s29, %s2163_s29, %s2164_s30  }
   0x6   :  { %s41_s8 = sshll.u32 %s2165_s7, 4  ;;  %s42_s8 = int_to_ptr.vmem [resolvable:$true] %s41_s8 }
   0x7   :  { %44 = dma.hbm_to_vmem [thread:$0]  %s40_s28, 64, %s42_s8, [#allocation5]  }
   0x8   :  { %2158 = dma.done.wait [#allocation3], 12288  }
   0x9   :  { %2159 = vsyncadd [#allocation3], 4294955008 }
   0xa   :  { %2160 = dma.done.wait [#allocation5], 64  }
   0xb   :  { %2161 = vsyncadd [#allocation5], 4294967232  ;;  %vm115_vm0 = vcmask 1043456   ;;  %v2207_v0 = vld [vmem:[#allocation2 + $0xe0] sm:$0xf]  ;;  %v2221_v5 = vld [vmem:[#allocation2 + $0xc8] sm:$0xff] }
   0xc   :  { %v2209_v1 = vld [vmem:[#allocation2 + $0xe8] sm:$0xf]  ;;  %v2211_v2 = vld [vmem:[#allocation2 + $0xf0] sm:$0xf]  ;;  %1862 = vmatpush.msk.msra.mxu0 %vm115_vm0, %v2207_v0  ;;  %v2217_v3 = vld [vmem:[#allocation2 + $0xf8] sm:$0xf] }
   0xd   :  { %1867 = vmatpush.msk.msra.mxu1 %vm115_vm0, %v2209_v1  ;;  %v2219_v4 = vld [vmem:[#allocation2 + $0xc0] sm:$0xff]  ;;  %1872 = vmatpush.msk.msra.mxu2 %vm115_vm0, %v2211_v2  ;;  %v2227_v6 = vld [vmem:[#allocation2 + $0xd0] sm:$0xff]  ;;  %v2229_v7 = vld [vmem:[#allocation2 + $0xd8] sm:$0xff]  ;;  %vm102_vm1 = vcmask 228352   ;;  %vm1841_vm2 = vcmask 261120   ;;  %vm1854_vm3 = vcmask 254976  }
   0xe   :  { %1877 = vmatpush.msk.msra.mxu3 %vm115_vm0, %v2217_v3  ;;  %v2231_v8 = vld [vmem:[#allocation2 + $0xa0] sm:$0xff]  ;;  %141 = vmatpush.msra.mxu0 %v2219_v4  ;;  %v2235_v9 = vld [vmem:[#allocation2 + $0xa8] sm:$0xff]  ;;  %v2237_v10 = vld [vmem:[#allocation2 + $0xb0] sm:$0xff] }
   0xf   :  { %170 = vmatpush.msra.mxu1 %v2221_v5  ;;  %v2239_v11 = vld [vmem:[#allocation2 + $0xb8] sm:$0xff]  ;;  %199 = vmatpush.msra.mxu2 %v2227_v6  ;;  %v2243_v12 = vld [vmem:[#allocation2 + $0x80] sm:$0xff]  ;;  %v2245_v13 = vld [vmem:[#allocation2 + $0x88] sm:$0xff] }
  0x10   :  { %228 = vmatpush.msra.mxu3 %v2229_v7  ;;  %142 = vmatpush.msra.mxu0 %v2231_v8  ;;  %v2249_v14 = vld [vmem:[#allocation2 + $0x90] sm:$0xff]  ;;  %v2251_v15 = vld [vmem:[#allocation2 + $0x98] sm:$0xff]  ;;  %v2258_v16 = vld [vmem:[%s3559_s1] sm:$0xff] }
  0x11   :  { %171 = vmatpush.msra.mxu1 %v2235_v9  ;;  %200 = vmatpush.msra.mxu2 %v2237_v10  ;;  %v2264_v17 = vld [vmem:[#allocation2 + $0x70] sm:$0xf]  ;;  %v2266_v18 = vld [vmem:[#allocation2 + $0x78] sm:$0xf]  ;;  %v2272_v19 = vld [vmem:[#allocation2 + $0x60] sm:$0xf] }
  0x12   :  { %229 = vmatpush.msra.mxu3 %v2239_v11  ;;  %143 = vmatpush.msra.mxu0 %v2243_v12  ;;  %v2274_v20 = vld [vmem:[#allocation2 + $0x68] sm:$0xf]  ;;  %v2280_v21 = vld [vmem:[#allocation2 + $0x50] sm:$0xff]  ;;  %v2282_v22 = vld [vmem:[#allocation2 + $0x58] sm:$0xff] }
  0x13   :  { %172 = vmatpush.msra.mxu1 %v2245_v13  ;;  %201 = vmatpush.msra.mxu2 %v2249_v14  ;;  %v2288_v23 = vld [vmem:[#allocation2 + $0x40] sm:$0xff]  ;;  %v2290_v24 = vld [vmem:[#allocation2 + $0x48] sm:$0xff]  ;;  %v2296_v25 = vld [vmem:[#allocation2 + $0x30] sm:$0xff] }
  0x14   :  { %230 = vmatpush.msra.mxu3 %v2251_v15  ;;  %1863 = vmatmul.msk.f32.vlgmr.msra.gmra.mxu0 %vm102_vm1, %v2258_v16  ;;  %v2298_v26 = vld [vmem:[#allocation2 + $0x38] sm:$0xff]  ;;  %v2302_v27 = vld [vmem:[#allocation2 + $0x20] sm:$0xff]  ;;  %v2304_v28 = vld [vmem:[#allocation2 + $0x28] sm:$0xff] }
  0x15   :  { %1868 = vmatmul.msk.f32.vlgmr.msra.gmra.mxu1 %vm102_vm1, %v2258_v16  ;;  %1873 = vmatmul.msk.f32.vlgmr.msra.gmra.mxu2 %vm102_vm1, %v2258_v16  ;;  %v2309_v29 = vld [vmem:[%s3559_s1 + $0x8] sm:$0xff]  ;;  %v2317_v30 = vld [vmem:[#allocation2 + $0x10] sm:$0xff]  ;;  %v2319_v31 = vld [vmem:[#allocation2 + $0x18] sm:$0xff] }
  0x16   :  { %1878 = vmatmul.msk.f32.vlgmr.msra.gmra.mxu3 %vm102_vm1, %v2258_v16  ;;  %1892 = vmatpush.msk.msrb.mxu2 %vm115_vm0, %v2264_v17  ;;  %3630 = vst [vmem:[#allocation8_spill] sm:$0xff] %v2309_v29  ;;  %v2325_v32 = vld [vmem:[#allocation2] sm:$0xff]  ;;  %v2327_v33 = vld [vmem:[#allocation2 + $0x8] sm:$0xff]  ;;  %v2333_v34 = vld [vmem:[#allocation2 + $0x170] sm:$0xf] }
  0x17   :  { %1897 = vmatpush.msk.msrb.mxu3 %vm115_vm0, %v2266_v18  ;;  %1882 = vmatpush.msk.msrb.mxu0 %vm115_vm0, %v2272_v19  ;;  %v2335_v35 = vld [vmem:[#allocation2 + $0x178] sm:$0xf]  ;;  %v2339_v36 = vld [vmem:[#allocation2 + $0x160] sm:$0xf]  ;;  %v2341_v37 = vld [vmem:[#allocation2 + $0x168] sm:$0xf] }
  0x18   :  { %1887 = vmatpush.msk.msrb.mxu1 %vm115_vm0, %v2274_v20  ;;  %339 = vmatpush.msrb.mxu2 %v2280_v21  ;;  %v2345_v38 = vld [vmem:[#allocation2 + $0x150] sm:$0xff]  ;;  %v2347_v39 = vld [vmem:[#allocation2 + $0x158] sm:$0xff]  ;;  %v2353_v40 = vld [vmem:[#allocation2 + $0x140] sm:$0xff] }
  0x19   :  { %368 = vmatpush.msrb.mxu3 %v2282_v22  ;;  %281 = vmatpush.msrb.mxu0 %v2288_v23  ;;  %v2355_v41 = vld [vmem:[#allocation2 + $0x148] sm:$0xff]  ;;  %v2360_v42 = vld [vmem:[%s3559_s1 + $0x10] sm:$0xff]  ;;  %v2380_v44 = vld [vmem:[#allocation2 + $0x138] sm:$0xff] }
  0x1a   :  { %310 = vmatpush.msrb.mxu1 %v2290_v24  ;;  %340 = vmatpush.msrb.mxu2 %v2296_v25  ;;  %3631 = vst [vmem:[#allocation9_spill] sm:$0xff] %v2360_v42  ;;  %v2378_v43 = vld [vmem:[#allocation2 + $0x130] sm:$0xff]  ;;  %v2382_v45 = vld [vmem:[#allocation2 + $0x120] sm:$0xff]  ;;  %v2386_v46 = vld [vmem:[#allocation2 + $0x128] sm:$0xff] }
  0x1b   :  { %369 = vmatpush.msrb.mxu3 %v2298_v26  ;;  %282 = vmatpush.msrb.mxu0 %v2302_v27  ;;  %v2393_v47 = vld [vmem:[%s3559_s1 + $0x18] sm:$0x3]  ;;  %v2403_v48 = vld [vmem:[#allocation2 + $0x110] sm:$0xff]  ;;  %v2407_v50 = vld [vmem:[#allocation2 + $0x100] sm:$0xff] }
  0x1c   :  { %311 = vmatpush.msrb.mxu1 %v2304_v28  ;;  %1864 = vmatmul.msk.f32.gmra.mxu0 %vm102_vm1, %v2309_v29  ;;  %v2405_v49 = vld [vmem:[#allocation2 + $0x118] sm:$0xff]  ;;  %v2411_v51 = vld [vmem:[#allocation2 + $0x108] sm:$0xff]  ;;  %v2418_v52 = vld [vmem:[%s3558_s0] sm:$0xff] }
  0x1d   :  { %1869 = vmatmul.msk.f32.gmra.mxu1 %vm102_vm1, %v2309_v29  ;;  %1874 = vmatmul.msk.f32.gmra.mxu2 %vm102_vm1, %v2309_v29  ;;  %v2428_v53 = vld [vmem:[#allocation2 + $0x270] sm:$0xf]  ;;  %v2430_v54 = vld [vmem:[#allocation2 + $0x278] sm:$0xf]  ;;  %v2432_v55 = vld [vmem:[#allocation2 + $0x260] sm:$0xf] }
  0x1e   :  { %1879 = vmatmul.msk.f32.gmra.mxu3 %vm102_vm1, %v2309_v29  ;;  %341 = vmatpush.msrb.mxu2 %v2317_v30  ;;  %3632 = vst [vmem:[#allocation10_spill] sm:$0xff] %v2428_v53  ;;  %v2438_v56 = vld [vmem:[#allocation2 + $0x268] sm:$0xf]  ;;  %v2457_v58 = vld [vmem:[#allocation2 + $0x250] sm:$0xff]  ;;  %v2459_v59 = vld [vmem:[#allocation2 + $0x258] sm:$0xff] }
  0x1f   :  { %370 = vmatpush.msrb.mxu3 %v2319_v31  ;;  %283 = vmatpush.msrb.mxu0 %v2325_v32  ;;  %3633 = vst [vmem:[#allocation11_spill] sm:$0xff] %v2430_v54  ;;  %v2447_v57 = vld [vmem:[%s3558_s0 + $0x8] sm:$0xff]  ;;  %v2461_v60 = vld [vmem:[#allocation2 + $0x240] sm:$0xff]  ;;  %v2472_v62 = vld [vmem:[%s3558_s0 + $0x10] sm:$0xff] }
  0x20   :  { %312 = vmatpush.msrb.mxu1 %v2327_v33  ;;  %1912 = vmatpush.msk.msra.mxu2 %vm115_vm0, %v2333_v34  ;;  %3634 = vst [vmem:[#allocation12_spill] sm:$0xff] %v2432_v55  ;;  %v2465_v61 = vld [vmem:[#allocation2 + $0x248] sm:$0xff]  ;;  %v2482_v63 = vld [vmem:[#allocation2 + $0x230] sm:$0xff] }
  0x21   :  { %1917 = vmatpush.msk.msra.mxu3 %vm115_vm0, %v2335_v35  ;;  %1902 = vmatpush.msk.msra.mxu0 %vm115_vm0, %v2339_v36  ;;  %3635 = vst [vmem:[#allocation13_spill] sm:$0xff] %v2438_v56 }
  0x22   :  { %1907 = vmatpush.msk.msra.mxu1 %vm115_vm0, %v2341_v37  ;;  %496 = vmatpush.msra.mxu2 %v2345_v38  ;;  %3636 = vst [vmem:[#allocation14_spill] sm:$0xff] %v2457_v58 }
  0x23   :  { %525 = vmatpush.msra.mxu3 %v2347_v39  ;;  %438 = vmatpush.msra.mxu0 %v2353_v40  ;;  %3637 = vst [vmem:[#allocation15_spill] sm:$0xff] %v2459_v59 }
  0x24   :  { %467 = vmatpush.msra.mxu1 %v2355_v41  ;;  %1865 = vmatmul.msk.f32.gmra.mxu0 %vm102_vm1, %v2360_v42  ;;  %3638 = vst [vmem:[#allocation16_spill] sm:$0xff] %v2461_v60 }
  0x25   :  { %1870 = vmatmul.msk.f32.gmra.mxu1 %vm102_vm1, %v2360_v42  ;;  %1875 = vmatmul.msk.f32.gmra.mxu2 %vm102_vm1, %v2360_v42  ;;  %3639 = vst [vmem:[#allocation17_spill] sm:$0xff] %v2465_v61 }
  0x26   :  { %1880 = vmatmul.msk.f32.gmra.mxu3 %vm102_vm1, %v2360_v42  ;;  %497 = vmatpush.msra.mxu2 %v2378_v43  ;;  %3640 = vst [vmem:[#allocation18_spill] sm:$0xff] %v2482_v63 }
  0x27   :  { %526 = vmatpush.msra.mxu3 %v2380_v44  ;;  %439 = vmatpush.msra.mxu0 %v2382_v45 }
  0x28   :  { %468 = vmatpush.msra.mxu1 %v2386_v46  ;;  %498 = vmatpush.msra.mxu2 %v2403_v48 }
  0x29   :  { %527 = vmatpush.msra.mxu3 %v2405_v49  ;;  %440 = vmatpush.msra.mxu0 %v2407_v50 }
  0x2a   :  { %469 = vmatpush.msra.mxu1 %v2411_v51 }
  0x2c   :  { %1866 = vmatmul.msk.f32.gmra.mxu0 %vm102_vm1, %v2393_v47 }
  0x2d   :  { %1871 = vmatmul.msk.f32.gmra.mxu1 %vm102_vm1, %v2393_v47  ;;  %1876 = vmatmul.msk.f32.gmra.mxu2 %vm102_vm1, %v2393_v47 }
  0x2e   :  { %1881 = vmatmul.msk.f32.gmra.mxu3 %vm102_vm1, %v2393_v47 }
  0x34   :  { %1883 = vmatmul.msk.f32.vlgmr.msrb.gmra.mxu0 %vm102_vm1, %v2418_v52 }
  0x35   :  { %1888 = vmatmul.msk.f32.vlgmr.msrb.gmra.mxu1 %vm102_vm1, %v2418_v52  ;;  %1893 = vmatmul.msk.f32.vlgmr.msrb.gmra.mxu2 %vm102_vm1, %v2418_v52 }
  0x36   :  { %1898 = vmatmul.msk.f32.vlgmr.msrb.gmra.mxu3 %vm102_vm1, %v2418_v52  ;;  %1932 = vmatpush.msk.msrb.mxu2 %vm115_vm0, %v2428_v53  ;;  %v2601_v53 = vld [vmem:[%s3560_s2 + $0x18] sm:$0x3] }
  0x37   :  { %1937 = vmatpush.msk.msrb.mxu3 %vm115_vm0, %v2430_v54  ;;  %1922 = vmatpush.msk.msrb.mxu0 %vm115_vm0, %v2432_v55  ;;  %v2551_v55 = vld [vmem:[%s3560_s2 + $0x8] sm:$0xff]  ;;  %v2576_v54 = vld [vmem:[%s3560_s2 + $0x10] sm:$0xff]  ;;  %3660 = vst [vmem:[#allocation38_spill] sm:$0xff] %v2601_v53 }
  0x38   :  { %1927 = vmatpush.msk.msrb.mxu1 %vm115_vm0, %v2438_v56  ;;  %674 = vmatpush.msrb.mxu2 %v2457_v58  ;;  %v2497_v58 = vld [vmem:[%s3558_s0 + $0x18] sm:$0x3]  ;;  %v2522_v56 = vld [vmem:[%s3560_s2] sm:$0xff] }
  0x39   :  { %703 = vmatpush.msrb.mxu3 %v2459_v59  ;;  %616 = vmatpush.msrb.mxu0 %v2461_v60  ;;  %v2486_v60 = vld [vmem:[#allocation2 + $0x220] sm:$0xff]  ;;  %v2490_v59 = vld [vmem:[#allocation2 + $0x228] sm:$0xff] }
  0x3a   :  { %645 = vmatpush.msrb.mxu1 %v2465_v61  ;;  %v2484_v61 = vld [vmem:[#allocation2 + $0x238] sm:$0xff]  ;;  %3642 = vst [vmem:[#allocation20_spill] sm:$0xff] %v2486_v60  ;;  %675 = vmatpush.msrb.mxu2 %v2482_v63  ;;  %v2515_v63 = vld [vmem:[#allocation2 + $0x208] sm:$0xff] }
  0x3b   :  { %3641 = vst [vmem:[#allocation19_spill] sm:$0xff] %v2484_v61  ;;  %704 = vmatpush.msrb.mxu3 %v2484_v61  ;;  %617 = vmatpush.msrb.mxu0 %v2486_v60  ;;  %v2507_v60 = vld [vmem:[#allocation2 + $0x210] sm:$0xff]  ;;  %v2511_v61 = vld [vmem:[#allocation2 + $0x200] sm:$0xff] }
  0x3c   :  { %1884 = vmatmul.msk.f32.gmra.mxu0 %vm102_vm1, %v2447_v57  ;;  %3643 = vst [vmem:[#allocation21_spill] sm:$0xff] %v2490_v59  ;;  %646 = vmatpush.msrb.mxu1 %v2490_v59  ;;  %v2509_v59 = vld [vmem:[#allocation2 + $0x218] sm:$0xff] }
  0x3d   :  { %1889 = vmatmul.msk.f32.gmra.mxu1 %vm102_vm1, %v2447_v57  ;;  %1894 = vmatmul.msk.f32.gmra.mxu2 %vm102_vm1, %v2447_v57  ;;  %3644 = vst [vmem:[#allocation22_spill] sm:$0xff] %v2507_v60 }
  0x3e   :  { %1899 = vmatmul.msk.f32.gmra.mxu3 %vm102_vm1, %v2447_v57  ;;  %3645 = vst [vmem:[#allocation23_spill] sm:$0xff] %v2509_v59  ;;  %676 = vmatpush.msrb.mxu2 %v2507_v60  ;;  %v2542_v60 = vld [vmem:[#allocation2 + $0x1e8] sm:$0xf] }
  0x3f   :  { %3646 = vst [vmem:[#allocation24_spill] sm:$0xff] %v2511_v61  ;;  %705 = vmatpush.msrb.mxu3 %v2509_v59  ;;  %618 = vmatpush.msrb.mxu0 %v2511_v61  ;;  %v2532_v61 = vld [vmem:[#allocation2 + $0x1f0] sm:$0xf]  ;;  %v2536_v59 = vld [vmem:[#allocation2 + $0x1e0] sm:$0xf] }
  0x40   :  { %3647 = vst [vmem:[#allocation25_spill] sm:$0xff] %v2515_v63  ;;  %647 = vmatpush.msrb.mxu1 %v2515_v63  ;;  %v2534_v63 = vld [vmem:[#allocation2 + $0x1f8] sm:$0xf] }
  0x41   :  { %3648 = vst [vmem:[#allocation26_spill] sm:$0xff] %v2532_v61 }
  0x42   :  { %3649 = vst [vmem:[#allocation27_spill] sm:$0xff] %v2534_v63 }
  0x43   :  { %3650 = vst [vmem:[#allocation28_spill] sm:$0xff] %v2536_v59 }
  0x44   :  { %1885 = vmatmul.msk.f32.gmra.mxu0 %vm102_vm1, %v2472_v62  ;;  %3651 = vst [vmem:[#allocation29_spill] sm:$0xff] %v2542_v60 }
  0x45   :  { %1890 = vmatmul.msk.f32.gmra.mxu1 %vm102_vm1, %v2472_v62  ;;  %1895 = vmatmul.msk.f32.gmra.mxu2 %vm102_vm1, %v2472_v62 }
  0x46   :  { %1900 = vmatmul.msk.f32.gmra.mxu3 %vm102_vm1, %v2472_v62 }
  0x4c   :  { %1886 = vmatmul.msk.f32.gmra.mxu0 %vm102_vm1, %v2497_v58 }
  0x4d   :  { %1891 = vmatmul.msk.f32.gmra.mxu1 %vm102_vm1, %v2497_v58  ;;  %1896 = vmatmul.msk.f32.gmra.mxu2 %vm102_vm1, %v2497_v58 }
  0x4e   :  { %1901 = vmatmul.msk.f32.gmra.mxu3 %vm102_vm1, %v2497_v58 }
  0x54   :  { %1903 = vmatmul.msk.f32.vlgmr.msra.gmra.mxu0 %vm102_vm1, %v2522_v56 }
  0x55   :  { %1908 = vmatmul.msk.f32.vlgmr.msra.gmra.mxu1 %vm102_vm1, %v2522_v56  ;;  %1913 = vmatmul.msk.f32.vlgmr.msra.gmra.mxu2 %vm102_vm1, %v2522_v56 }
  0x56   :  { %1918 = vmatmul.msk.f32.vlgmr.msra.gmra.mxu3 %vm102_vm1, %v2522_v56  ;;  %1952 = vmatpush.msk.msra.mxu2 %vm115_vm0, %v2532_v61  ;;  %v2569_v61 = vld [vmem:[#allocation2 + $0x1c8] sm:$0xff] }
  0x57   :  { %1957 = vmatpush.msk.msra.mxu3 %vm115_vm0, %v2534_v63  ;;  %1942 = vmatpush.msk.msra.mxu0 %vm115_vm0, %v2536_v59  ;;  %v2561_v59 = vld [vmem:[#allocation2 + $0x1d0] sm:$0xff]  ;;  %v2565_v63 = vld [vmem:[#allocation2 + $0x1c0] sm:$0xff]  ;;  %3655 = vst [vmem:[#allocation33_spill] sm:$0xff] %v2569_v61 }
  0x58   :  { %1947 = vmatpush.msk.msra.mxu1 %vm115_vm0, %v2542_v60  ;;  %3652 = vst [vmem:[#allocation30_spill] sm:$0xff] %v2561_v59  ;;  %v2563_v60 = vld [vmem:[#allocation2 + $0x1d8] sm:$0xff]  ;;  %802 = vmatpush.msra.mxu2 %v2561_v59  ;;  %v2594_v59 = vld [vmem:[#allocation2 + $0x1a8] sm:$0xff] }
  0x59   :  { %3653 = vst [vmem:[#allocation31_spill] sm:$0xff] %v2563_v60  ;;  %831 = vmatpush.msra.mxu3 %v2563_v60  ;;  %744 = vmatpush.msra.mxu0 %v2565_v63  ;;  %v2590_v60 = vld [vmem:[#allocation2 + $0x1a0] sm:$0xff] }
  0x5a   :  { %3654 = vst [vmem:[#allocation32_spill] sm:$0xff] %v2565_v63  ;;  %773 = vmatpush.msra.mxu1 %v2569_v61  ;;  %v2586_v63 = vld [vmem:[#allocation2 + $0x1b0] sm:$0xff]  ;;  %v2588_v61 = vld [vmem:[#allocation2 + $0x1b8] sm:$0xff] }
  0x5b   :  { %3656 = vst [vmem:[#allocation34_spill] sm:$0xff] %v2586_v63  ;;  %803 = vmatpush.msra.mxu2 %v2586_v63  ;;  %832 = vmatpush.msra.mxu3 %v2588_v61  ;;  %v2619_v63 = vld [vmem:[#allocation2 + $0x188] sm:$0xff] }
  0x5c   :  { %1904 = vmatmul.msk.f32.gmra.mxu0 %vm102_vm1, %v2551_v55  ;;  %3657 = vst [vmem:[#allocation35_spill] sm:$0xff] %v2588_v61  ;;  %774 = vmatpush.msra.mxu1 %v2594_v59  ;;  %v2617_v61 = vld [vmem:[#allocation2 + $0x180] sm:$0xff] }
  0x5d   :  { %1909 = vmatmul.msk.f32.gmra.mxu1 %vm102_vm1, %v2551_v55  ;;  %1914 = vmatmul.msk.f32.gmra.mxu2 %vm102_vm1, %v2551_v55  ;;  %3658 = vst [vmem:[#allocation36_spill] sm:$0xff] %v2590_v60 }
  0x5e   :  { %1919 = vmatmul.msk.f32.gmra.mxu3 %vm102_vm1, %v2551_v55  ;;  %3659 = vst [vmem:[#allocation37_spill] sm:$0xff] %v2594_v59  ;;  %745 = vmatpush.msra.mxu0 %v2590_v60  ;;  %v2611_v60 = vld [vmem:[#allocation2 + $0x190] sm:$0xff]  ;;  %v2613_v59 = vld [vmem:[#allocation2 + $0x198] sm:$0xff] }
  0x5f   :  { %3661 = vst [vmem:[#allocation39_spill] sm:$0xff] %v2611_v60  ;;  %804 = vmatpush.msra.mxu2 %v2611_v60  ;;  %833 = vmatpush.msra.mxu3 %v2613_v59  ;;  %v2633_v60 = vld [vmem:[#allocation2 + $0x2f8] sm:$0xf] }
  0x60   :  { %3662 = vst [vmem:[#allocation40_spill] sm:$0xff] %v2613_v59  ;;  %746 = vmatpush.msra.mxu0 %v2617_v61  ;;  %775 = vmatpush.msra.mxu1 %v2619_v63  ;;  %v2631_v59 = vld [vmem:[#allocation2 + $0x2f0] sm:$0xf] }
  0x61   :  { %3663 = vst [vmem:[#allocation41_spill] sm:$0xff] %v2617_v61  ;;  %v2641_v61 = vld [vmem:[#allocation2 + $0x2e8] sm:$0xf] }
  0x62   :  { %3664 = vst [vmem:[#allocation42_spill] sm:$0xff] %v2619_v63  ;;  %v2639_v63 = vld [vmem:[#allocation2 + $0x2e0] sm:$0xf] }
  0x63   :  { %3665 = vst [vmem:[#allocation43_spill] sm:$0xff] %v2631_v59 }
  0x64   :  { %1905 = vmatmul.msk.f32.gmra.mxu0 %vm102_vm1, %v2576_v54  ;;  %3666 = vst [vmem:[#allocation44_spill] sm:$0xff] %v2633_v60 }
  0x65   :  { %1910 = vmatmul.msk.f32.gmra.mxu1 %vm102_vm1, %v2576_v54  ;;  %1915 = vmatmul.msk.f32.gmra.mxu2 %vm102_vm1, %v2576_v54  ;;  %3667 = vst [vmem:[#allocation45_spill] sm:$0xff] %v2639_v63 }
  0x66   :  { %1920 = vmatmul.msk.f32.gmra.mxu3 %vm102_vm1, %v2576_v54  ;;  %3668 = vst [vmem:[#allocation46_spill] sm:$0xff] %v2641_v61 }
  0x6c   :  { %1906 = vmatmul.msk.f32.gmra.mxu0 %vm102_vm1, %v2601_v53 }
  0x6d   :  { %1911 = vmatmul.msk.f32.gmra.mxu1 %vm102_vm1, %v2601_v53  ;;  %1916 = vmatmul.msk.f32.gmra.mxu2 %vm102_vm1, %v2601_v53 }
  0x6e   :  { %1921 = vmatmul.msk.f32.gmra.mxu3 %vm102_vm1, %v2601_v53 }
  0x74   :  { %1923 = vmatmul.msk.f32.vlgmr.msrb.gmra.mxu0 %vm102_vm1, %v2258_v16 }
  0x75   :  { %1928 = vmatmul.msk.f32.vlgmr.msrb.gmra.mxu1 %vm102_vm1, %v2258_v16  ;;  %1933 = vmatmul.msk.f32.vlgmr.msrb.gmra.mxu2 %vm102_vm1, %v2258_v16 }
  0x76   :  { %1938 = vmatmul.msk.f32.vlgmr.msrb.gmra.mxu3 %vm102_vm1, %v2258_v16  ;;  %1972 = vmatpush.msk.msrb.mxu2 %vm115_vm0, %v2631_v59  ;;  %v2657_v59 = vld [vmem:[#allocation2 + $0x2d8] sm:$0xff] }
  0x77   :  { %1977 = vmatpush.msk.msrb.mxu3 %vm115_vm0, %v2633_v60  ;;  %1962 = vmatpush.msk.msrb.mxu0 %vm115_vm0, %v2639_v63  ;;  %v2655_v60 = vld [vmem:[#allocation2 + $0x2d0] sm:$0xff]  ;;  %3670 = vst [vmem:[#allocation48_spill] sm:$0xff] %v2657_v59  ;;  %v2663_v63 = vld [vmem:[#allocation2 + $0x2c8] sm:$0xff] }
  0x78   :  { %1967 = vmatpush.msk.msrb.mxu1 %vm115_vm0, %v2641_v61  ;;  %3669 = vst [vmem:[#allocation47_spill] sm:$0xff] %v2655_v60  ;;  %947 = vmatpush.msrb.mxu2 %v2655_v60  ;;  %v2661_v61 = vld [vmem:[#allocation2 + $0x2c0] sm:$0xff]  ;;  %v2677_v60 = vld [vmem:[#allocation2 + $0x2b8] sm:$0xff] }
  0x79   :  { %976 = vmatpush.msrb.mxu3 %v2657_v59  ;;  %3671 = vst [vmem:[#allocation49_spill] sm:$0xff] %v2661_v61  ;;  %889 = vmatpush.msrb.mxu0 %v2661_v61  ;;  %v2675_v59 = vld [vmem:[#allocation2 + $0x2b0] sm:$0xff]  ;;  %v2683_v61 = vld [vmem:[#allocation2 + $0x2a8] sm:$0xff] }
  0x7a   :  { %3672 = vst [vmem:[#allocation50_spill] sm:$0xff] %v2663_v63  ;;  %918 = vmatpush.msrb.mxu1 %v2663_v63  ;;  %948 = vmatpush.msrb.mxu2 %v2675_v59  ;;  %v2681_v63 = vld [vmem:[#allocation2 + $0x2a0] sm:$0xff] }
  0x7b   :  { %3673 = vst [vmem:[#allocation51_spill] sm:$0xff] %v2675_v59  ;;  %977 = vmatpush.msrb.mxu3 %v2677_v60  ;;  %890 = vmatpush.msrb.mxu0 %v2681_v63  ;;  %v2697_v59 = vld [vmem:[#allocation2 + $0x298] sm:$0xff] }
  0x7c   :  { %1924 = vmatmul.msk.f32.gmra.mxu0 %vm102_vm1, %v2309_v29  ;;  %3674 = vst [vmem:[#allocation52_spill] sm:$0xff] %v2677_v60  ;;  %919 = vmatpush.msrb.mxu1 %v2683_v61  ;;  %v2695_v60 = vld [vmem:[#allocation2 + $0x290] sm:$0xff] }
  0x7d   :  { %1929 = vmatmul.msk.f32.gmra.mxu1 %vm102_vm1, %v2309_v29  ;;  %1934 = vmatmul.msk.f32.gmra.mxu2 %vm102_vm1, %v2309_v29  ;;  %3675 = vst [vmem:[#allocation53_spill] sm:$0xff] %v2681_v63 }
  0x7e   :  { %1939 = vmatmul.msk.f32.gmra.mxu3 %vm102_vm1, %v2309_v29  ;;  %3676 = vst [vmem:[#allocation54_spill] sm:$0xff] %v2683_v61  ;;  %949 = vmatpush.msrb.mxu2 %v2695_v60  ;;  %v2707_v29 = vld [vmem:[#allocation2 + $0x288] sm:$0xff] }
  0x7f   :  { %3677 = vst [vmem:[#allocation55_spill] sm:$0xff] %v2697_v59  ;;  %978 = vmatpush.msrb.mxu3 %v2697_v59  ;;  %920 = vmatpush.msrb.mxu1 %v2707_v29 }
  0x80   :  { %3679 = vst [vmem:[#allocation57_spill] sm:$0xff] %v2707_v29 }
  0x84   :  { %1925 = vmatmul.msk.f32.gmra.mxu0 %vm102_vm1, %v2360_v42 }
  0x85   :  { %1930 = vmatmul.msk.f32.gmra.mxu1 %vm102_vm1, %v2360_v42  ;;  %1935 = vmatmul.msk.f32.gmra.mxu2 %vm102_vm1, %v2360_v42 }
  0x86   :  { %1940 = vmatmul.msk.f32.gmra.mxu3 %vm102_vm1, %v2360_v42  ;;  %v2705_v42 = vld [vmem:[#allocation2 + $0x280] sm:$0xff] }
  0x87   :  { %3678 = vst [vmem:[#allocation56_spill] sm:$0xff] %v2705_v42  ;;  %891 = vmatpush.msrb.mxu0 %v2705_v42 }
  0x8c   :  { %1926 = vmatmul.msk.f32.gmra.mxu0 %vm102_vm1, %v2393_v47 }
  0x8d   :  { %1931 = vmatmul.msk.f32.gmra.mxu1 %vm102_vm1, %v2393_v47  ;;  %1936 = vmatmul.msk.f32.gmra.mxu2 %vm102_vm1, %v2393_v47 }
  0x8e   :  { %1941 = vmatmul.msk.f32.gmra.mxu3 %vm102_vm1, %v2393_v47 }
  0x91   :  { %v2701_v61 = vpop.f32.mrf.mxu0 }
  0x92   :  { %v2703_v63 = vpop.f32.mrf.mxu1 }
  0x94   :  { %1943 = vmatmul.msk.f32.vlgmr.msra.gmra.mxu0 %vm102_vm1, %v2418_v52 }
  0x95   :  { %1948 = vmatmul.msk.f32.vlgmr.msra.gmra.mxu1 %vm102_vm1, %v2418_v52  ;;  %1953 = vmatmul.msk.f32.vlgmr.msra.gmra.mxu2 %vm102_vm1, %v2418_v52 }
  0x96   :  { %1958 = vmatmul.msk.f32.vlgmr.msra.gmra.mxu3 %vm102_vm1, %v2418_v52  ;;  %1992 = vmatpush.msk.msra.mxu2 %vm115_vm0, %v2211_v2 }
  0x97   :  { %1997 = vmatpush.msk.msra.mxu3 %vm115_vm0, %v2217_v3  ;;  %1982 = vmatpush.msk.msra.mxu0 %vm115_vm0, %v2207_v0 }
  0x98   :  { %1987 = vmatpush.msk.msra.mxu1 %vm115_vm0, %v2209_v1  ;;  %v203_v29 = vpop.f32.mrf.mxu2  ;;  %1095 = vmatpush.msra.mxu2 %v2227_v6 }
  0x99   :  { %v232_v42 = vpop.f32.mrf.mxu3  ;;  %1124 = vmatpush.msra.mxu3 %v2229_v7  ;;  %v2729_v59 = vpop.f32.mrf.mxu0  ;;  %1037 = vmatpush.msra.mxu0 %v2219_v4 }
  0x9a   :  { %v2731_v52 = vpop.f32.mrf.mxu1  ;;  %1066 = vmatpush.msra.mxu1 %v2221_v5  ;;  %1096 = vmatpush.msra.mxu2 %v2237_v10 }
  0x9b   :  { %1125 = vmatpush.msra.mxu3 %v2239_v11  ;;  %1038 = vmatpush.msra.mxu0 %v2231_v8 }
  0x9c   :  { %1067 = vmatpush.msra.mxu1 %v2235_v9  ;;  %1944 = vmatmul.msk.f32.gmra.mxu0 %vm102_vm1, %v2447_v57 }
  0x9d   :  { %1949 = vmatmul.msk.f32.gmra.mxu1 %vm102_vm1, %v2447_v57  ;;  %1954 = vmatmul.msk.f32.gmra.mxu2 %vm102_vm1, %v2447_v57 }
  0x9e   :  { %1959 = vmatmul.msk.f32.gmra.mxu3 %vm102_vm1, %v2447_v57  ;;  %1097 = vmatpush.msra.mxu2 %v2249_v14 }
  0x9f   :  { %1126 = vmatpush.msra.mxu3 %v2251_v15  ;;  %1039 = vmatpush.msra.mxu0 %v2243_v12 }
  0xa0   :  { %1068 = vmatpush.msra.mxu1 %v2245_v13  ;;  %v206_v0 = vpop.f32.mrf.mxu2 }
  0xa1   :  { %v235_v1 = vpop.f32.mrf.mxu3  ;;  %v2751_v2 = vpop.f32.mrf.mxu0 }
  0xa2   :  { %v2753_v3 = vpop.f32.mrf.mxu1 }
  0xa4   :  { %1945 = vmatmul.msk.f32.gmra.mxu0 %vm102_vm1, %v2472_v62 }
  0xa5   :  { %1950 = vmatmul.msk.f32.gmra.mxu1 %vm102_vm1, %v2472_v62  ;;  %1955 = vmatmul.msk.f32.gmra.mxu2 %vm102_vm1, %v2472_v62 }
  0xa6   :  { %1960 = vmatmul.msk.f32.gmra.mxu3 %vm102_vm1, %v2472_v62 }
  0xa8   :  { %v209_v4 = vpop.f32.mrf.mxu2 }
  0xa9   :  { %v238_v5 = vpop.f32.mrf.mxu3  ;;  %v2763_v6 = vpop.f32.mrf.mxu0 }
  0xaa   :  { %v2765_v7 = vpop.f32.mrf.mxu1 }
  0xac   :  { %1946 = vmatmul.msk.f32.gmra.mxu0 %vm102_vm1, %v2497_v58 }
  0xad   :  { %1951 = vmatmul.msk.f32.gmra.mxu1 %vm102_vm1, %v2497_v58  ;;  %1956 = vmatmul.msk.f32.gmra.mxu2 %vm102_vm1, %v2497_v58 }
  0xae   :  { %1961 = vmatmul.msk.f32.gmra.mxu3 %vm102_vm1, %v2497_v58 }
  0xb0   :  { %v212_v8 = vpop.f32.mrf.mxu2 }
  0xb1   :  { %v241_v9 = vpop.f32.mrf.mxu3  ;;  %v2775_v10 = vpop.f32.mrf.mxu0 }
  0xb2   :  { %v2777_v11 = vpop.f32.mrf.mxu1 }
  0xb4   :  { %1963 = vmatmul.msk.f32.vlgmr.msrb.gmra.mxu0 %vm102_vm1, %v2522_v56 }
  0xb5   :  { %1968 = vmatmul.msk.f32.vlgmr.msrb.gmra.mxu1 %vm102_vm1, %v2522_v56  ;;  %1973 = vmatmul.msk.f32.vlgmr.msrb.gmra.mxu2 %vm102_vm1, %v2522_v56 }
  0xb6   :  { %1978 = vmatmul.msk.f32.vlgmr.msrb.gmra.mxu3 %vm102_vm1, %v2522_v56  ;;  %2012 = vmatpush.msk.msrb.mxu2 %vm115_vm0, %v2264_v17 }
  0xb7   :  { %2017 = vmatpush.msk.msrb.mxu3 %vm115_vm0, %v2266_v18  ;;  %2002 = vmatpush.msk.msrb.mxu0 %vm115_vm0, %v2272_v19 }
  0xb8   :  { %2007 = vmatpush.msk.msrb.mxu1 %vm115_vm0, %v2274_v20  ;;  %v343_v12 = vpop.f32.mrf.mxu2  ;;  %1211 = vmatpush.msrb.mxu2 %v2280_v21 }
  0xb9   :  { %v372_v13 = vpop.f32.mrf.mxu3  ;;  %1240 = vmatpush.msrb.mxu3 %v2282_v22  ;;  %v344_v14 = vadd.f32 %v343_v12, %v203_v29  ;;  %v2797_v57 = vpop.f32.mrf.mxu0  ;;  %1153 = vmatpush.msrb.mxu0 %v2288_v23 }
  0xba   :  { %v373_v15 = vadd.f32 %v372_v13, %v232_v42  ;;  %v2799_v17 = vpop.f32.mrf.mxu1  ;;  %1182 = vmatpush.msrb.mxu1 %v2290_v24  ;;  %1212 = vmatpush.msrb.mxu2 %v2296_v25  ;;  %v3686_v13 = vld [vmem:[#allocation10_spill] sm:$0xff] }
  0xbb   :  { %1241 = vmatpush.msrb.mxu3 %v2298_v26  ;;  %1154 = vmatpush.msrb.mxu0 %v2302_v27 }
  0xbc   :  { %1183 = vmatpush.msrb.mxu1 %v2304_v28  ;;  %1964 = vmatmul.msk.f32.gmra.mxu0 %vm102_vm1, %v2551_v55 }
  0xbd   :  { %1969 = vmatmul.msk.f32.gmra.mxu1 %vm102_vm1, %v2551_v55  ;;  %1974 = vmatmul.msk.f32.gmra.mxu2 %vm102_vm1, %v2551_v55 }
  0xbe   :  { %1979 = vmatmul.msk.f32.gmra.mxu3 %vm102_vm1, %v2551_v55  ;;  %1213 = vmatpush.msrb.mxu2 %v2317_v30 }
  0xbf   :  { %1242 = vmatpush.msrb.mxu3 %v2319_v31  ;;  %1155 = vmatpush.msrb.mxu0 %v2325_v32 }
  0xc0   :  { %1184 = vmatpush.msrb.mxu1 %v2327_v33  ;;  %v346_v18 = vpop.f32.mrf.mxu2 }
  0xc1   :  { %v375_v19 = vpop.f32.mrf.mxu3  ;;  %v347_v20 = vadd.f32 %v346_v18, %v206_v0  ;;  %v2819_v22 = vpop.f32.mrf.mxu0  ;;  %v3689_v18 = vld [vmem:[#allocation13_spill] sm:$0xff] }
  0xc2   :  { %v376_v21 = vadd.f32 %v375_v19, %v235_v1  ;;  %v2821_v23 = vpop.f32.mrf.mxu1 }
  0xc4   :  { %1965 = vmatmul.msk.f32.gmra.mxu0 %vm102_vm1, %v2576_v54 }
  0xc5   :  { %1970 = vmatmul.msk.f32.gmra.mxu1 %vm102_vm1, %v2576_v54  ;;  %1975 = vmatmul.msk.f32.gmra.mxu2 %vm102_vm1, %v2576_v54 }
  0xc6   :  { %1980 = vmatmul.msk.f32.gmra.mxu3 %vm102_vm1, %v2576_v54 }
  0xc8   :  { %v349_v24 = vpop.f32.mrf.mxu2 }
  0xc9   :  { %v378_v25 = vpop.f32.mrf.mxu3  ;;  %v350_v26 = vadd.f32 %v349_v24, %v209_v4  ;;  %v2831_v28 = vpop.f32.mrf.mxu0  ;;  %v3691_v24 = vld [vmem:[#allocation15_spill] sm:$0xff] }
  0xca   :  { %v379_v27 = vadd.f32 %v378_v25, %v238_v5  ;;  %v2833_v29 = vpop.f32.mrf.mxu1 }
  0xcc   :  { %1966 = vmatmul.msk.f32.gmra.mxu0 %vm102_vm1, %v2601_v53 }
  0xcd   :  { %1971 = vmatmul.msk.f32.gmra.mxu1 %vm102_vm1, %v2601_v53  ;;  %1976 = vmatmul.msk.f32.gmra.mxu2 %vm102_vm1, %v2601_v53 }
  0xce   :  { %1981 = vmatmul.msk.f32.gmra.mxu3 %vm102_vm1, %v2601_v53 }
  0xd0   :  { %v352_v30 = vpop.f32.mrf.mxu2 }
  0xd1   :  { %v381_v31 = vpop.f32.mrf.mxu3  ;;  %v353_v32 = vadd.f32 %v352_v30, %v212_v8  ;;  %v2843_v42 = vpop.f32.mrf.mxu0  ;;  %v3694_v30 = vld [vmem:[#allocation18_spill] sm:$0xff] }
  0xd2   :  { %v382_v33 = vadd.f32 %v381_v31, %v241_v9  ;;  %v2845_v58 = vpop.f32.mrf.mxu1  ;;  %v3695_v31 = vld [vmem:[#allocation19_spill] sm:$0xff] }
  0xd4   :  { %1983 = vmatmul.msk.f32.vlgmr.msra.gmra.mxu0 %vm102_vm1, %v2522_v56 }
  0xd5   :  { %1988 = vmatmul.msk.f32.vlgmr.msra.gmra.mxu1 %vm102_vm1, %v2522_v56  ;;  %1993 = vmatmul.msk.f32.vlgmr.msra.gmra.mxu2 %vm102_vm1, %v2522_v56 }
  0xd6   :  { %1998 = vmatmul.msk.f32.vlgmr.msra.gmra.mxu3 %vm102_vm1, %v2522_v56  ;;  %2032 = vmatpush.msk.msra.mxu2 %vm115_vm0, %v2333_v34 }
  0xd7   :  { %2037 = vmatpush.msk.msra.mxu3 %vm115_vm0, %v2335_v35  ;;  %2022 = vmatpush.msk.msra.mxu0 %vm115_vm0, %v2339_v36 }
  0xd8   :  { %2027 = vmatpush.msk.msra.mxu1 %vm115_vm0, %v2341_v37  ;;  %v500_v62 = vpop.f32.mrf.mxu2  ;;  %1339 = vmatpush.msra.mxu2 %v2345_v38 }
  0xd9   :  { %v529_v0 = vpop.f32.mrf.mxu3  ;;  %1368 = vmatpush.msra.mxu3 %v2347_v39  ;;  %v2865_v1 = vadd.f32 %v500_v62, %v344_v14  ;;  %v2869_v34 = vpop.f32.mrf.mxu0  ;;  %1281 = vmatpush.msra.mxu0 %v2353_v40  ;;  %v3687_v14 = vld [vmem:[#allocation11_spill] sm:$0xff]  ;;  %v3698_v62 = vld [vmem:[#allocation8_spill] sm:$0xff] }
  0xda   :  { %v2867_v4 = vadd.f32 %v529_v0, %v373_v15  ;;  %v2871_v5 = vpop.f32.mrf.mxu1  ;;  %1310 = vmatpush.msra.mxu1 %v2355_v41  ;;  %1340 = vmatpush.msra.mxu2 %v2378_v43  ;;  %v3688_v15 = vld [vmem:[#allocation12_spill] sm:$0xff]  ;;  %v3699_v0 = vld [vmem:[#allocation22_spill] sm:$0xff] }
  0xdb   :  { %1369 = vmatpush.msra.mxu3 %v2380_v44  ;;  %1282 = vmatpush.msra.mxu0 %v2382_v45 }
  0xdc   :  { %1311 = vmatpush.msra.mxu1 %v2386_v46  ;;  %1984 = vmatmul.msk.f32.gmra.mxu0 %vm102_vm1, %v2551_v55 }
  0xdd   :  { %1989 = vmatmul.msk.f32.gmra.mxu1 %vm102_vm1, %v2551_v55  ;;  %1994 = vmatmul.msk.f32.gmra.mxu2 %vm102_vm1, %v2551_v55 }
  0xde   :  { %1999 = vmatmul.msk.f32.gmra.mxu3 %vm102_vm1, %v2551_v55  ;;  %1341 = vmatpush.msra.mxu2 %v2403_v48 }
  0xdf   :  { %1370 = vmatpush.msra.mxu3 %v2405_v49  ;;  %1283 = vmatpush.msra.mxu0 %v2407_v50 }
  0xe0   :  { %1312 = vmatpush.msra.mxu1 %v2411_v51  ;;  %v503_v35 = vpop.f32.mrf.mxu2 }
  0xe1   :  { %v532_v36 = vpop.f32.mrf.mxu3  ;;  %v2891_v37 = vadd.f32 %v503_v35, %v347_v20  ;;  %v2895_v39 = vpop.f32.mrf.mxu0  ;;  %v3700_v35 = vld [vmem:[#allocation23_spill] sm:$0xff] }
  0xe2   :  { %v2893_v38 = vadd.f32 %v532_v36, %v376_v21  ;;  %v2897_v40 = vpop.f32.mrf.mxu1  ;;  %v3690_v21 = vld [vmem:[#allocation14_spill] sm:$0xff]  ;;  %v3701_v36 = vld [vmem:[#allocation24_spill] sm:$0xff] }
  0xe4   :  { %1985 = vmatmul.msk.f32.gmra.mxu0 %vm102_vm1, %v2576_v54 }
  0xe5   :  { %1990 = vmatmul.msk.f32.gmra.mxu1 %vm102_vm1, %v2576_v54  ;;  %1995 = vmatmul.msk.f32.gmra.mxu2 %vm102_vm1, %v2576_v54 }
  0xe6   :  { %2000 = vmatmul.msk.f32.gmra.mxu3 %vm102_vm1, %v2576_v54 }
  0xe8   :  { %v506_v41 = vpop.f32.mrf.mxu2 }
  0xe9   :  { %v535_v43 = vpop.f32.mrf.mxu3  ;;  %v2907_v44 = vadd.f32 %v506_v41, %v350_v26  ;;  %v2911_v46 = vpop.f32.mrf.mxu0  ;;  %v3692_v26 = vld [vmem:[#allocation16_spill] sm:$0xff]  ;;  %v3702_v41 = vld [vmem:[#allocation25_spill] sm:$0xff] }
  0xea   :  { %v2909_v45 = vadd.f32 %v535_v43, %v379_v27  ;;  %3682 = vst [vmem:[#allocation60_spill] sm:$0xff] %v2911_v46  ;;  %v2913_v48 = vpop.f32.mrf.mxu1  ;;  %v3693_v27 = vld [vmem:[#allocation17_spill] sm:$0xff] }
  0xeb   :  { %3680 = vst [vmem:[#allocation58_spill] sm:$0xff] %v2907_v44 }
  0xec   :  { %3681 = vst [vmem:[#allocation59_spill] sm:$0xff] %v2909_v45  ;;  %1986 = vmatmul.msk.f32.gmra.mxu0 %vm102_vm1, %v2601_v53 }
  0xed   :  { %3683 = vst [vmem:[#allocation61_spill] sm:$0xff] %v2913_v48  ;;  %1991 = vmatmul.msk.f32.gmra.mxu1 %vm102_vm1, %v2601_v53  ;;  %1996 = vmatmul.msk.f32.gmra.mxu2 %vm102_vm1, %v2601_v53 }
  0xee   :  { %2001 = vmatmul.msk.f32.gmra.mxu3 %vm102_vm1, %v2601_v53 }
  0xf0   :  { %v509_v49 = vpop.f32.mrf.mxu2 }
  0xf1   :  { %v538_v50 = vpop.f32.mrf.mxu3  ;;  %v2923_v51 = vadd.f32 %v509_v49, %v353_v32  ;;  %v2927_v9 = vpop.f32.mrf.mxu0  ;;  %v3696_v32 = vld [vmem:[#allocation20_spill] sm:$0xff] }
  0xf2   :  { %v2925_v8 = vadd.f32 %v538_v50, %v382_v33  ;;  %v2929_v12 = vpop.f32.mrf.mxu1  ;;  %v3697_v33 = vld [vmem:[#allocation21_spill] sm:$0xff] }
  0xf3   :  { %3684 = vst [vmem:[#allocation62_spill] sm:$0xff] %v2923_v51 }
  0xf4   :  { %3685 = vst [vmem:[#allocation63_spill] sm:$0xff] %v2925_v8  ;;  %2003 = vmatmul.msk.f32.vlgmr.msrb.gmra.mxu0 %vm102_vm1, %v2258_v16 }
  0xf5   :  { %2008 = vmatmul.msk.f32.vlgmr.msrb.gmra.mxu1 %vm102_vm1, %v2258_v16  ;;  %2013 = vmatmul.msk.f32.vlgmr.msrb.gmra.mxu2 %vm102_vm1, %v2258_v16 }
  0xf6   :  { %2018 = vmatmul.msk.f32.vlgmr.msrb.gmra.mxu3 %vm102_vm1, %v2258_v16  ;;  %2052 = vmatpush.msk.msrb.mxu2 %vm115_vm0, %v3686_v13 }
  0xf7   :  { %2057 = vmatpush.msk.msrb.mxu3 %vm115_vm0, %v3687_v14  ;;  %2042 = vmatpush.msk.msrb.mxu0 %vm115_vm0, %v3688_v15  ;;  %v3703_v14 = vld [vmem:[#allocation9_spill] sm:$0xff] }
  0xf8   :  { %2047 = vmatpush.msk.msrb.mxu1 %vm115_vm0, %v3689_v18  ;;  %v678_v19 = vpop.f32.mrf.mxu2  ;;  %1487 = vmatpush.msrb.mxu2 %v3690_v21 }
  0xf9   :  { %v707_v20 = vpop.f32.mrf.mxu3  ;;  %1516 = vmatpush.msrb.mxu3 %v3691_v24  ;;  %v2949_v25 = vpop.f32.mrf.mxu0  ;;  %1429 = vmatpush.msrb.mxu0 %v3692_v26 }
  0xfa   :  { %v2951_v16 = vpop.f32.mrf.mxu1  ;;  %1458 = vmatpush.msrb.mxu1 %v3693_v27  ;;  %1488 = vmatpush.msrb.mxu2 %v3694_v30 }
  0xfb   :  { %1517 = vmatpush.msrb.mxu3 %v3695_v31  ;;  %1430 = vmatpush.msrb.mxu0 %v3696_v32  ;;  %v3002_v32 = vld [vmem:[%s3561_s3] sm:$0xff] }
  0xfc   :  { %1459 = vmatpush.msrb.mxu1 %v3697_v33  ;;  %2004 = vmatmul.msk.f32.gmra.mxu0 %vm102_vm1, %v3698_v62  ;;  %3704 = vst [vmem:[#allocation10_spill] sm:$0xff] %v3002_v32  ;;  %v3706_v33 = vld [vmem:[#allocation27_spill] sm:$0xff] }
  0xfd   :  { %2009 = vmatmul.msk.f32.gmra.mxu1 %vm102_vm1, %v3698_v62  ;;  %2014 = vmatmul.msk.f32.gmra.mxu2 %vm102_vm1, %v3698_v62 }
  0xfe   :  { %2019 = vmatmul.msk.f32.gmra.mxu3 %vm102_vm1, %v3698_v62  ;;  %1489 = vmatpush.msrb.mxu2 %v3699_v0  ;;  %v3707_v62 = vld [vmem:[#allocation28_spill] sm:$0xff]  ;;  %v3708_v0 = vld [vmem:[#allocation29_spill] sm:$0xff] }
  0xff   :  { %1518 = vmatpush.msrb.mxu3 %v3700_v35  ;;  %1431 = vmatpush.msrb.mxu0 %v3701_v36 }
 0x100   :  { %1460 = vmatpush.msrb.mxu1 %v3702_v41  ;;  %v681_v43 = vpop.f32.mrf.mxu2  ;;  %v3709_v41 = vld [vmem:[#allocation30_spill] sm:$0xff] }
 0x101   :  { %v710_v49 = vpop.f32.mrf.mxu3  ;;  %v2971_v50 = vpop.f32.mrf.mxu0 }
 0x102   :  { %v2973_v13 = vpop.f32.mrf.mxu1 }
 0x104   :  { %2005 = vmatmul.msk.f32.gmra.mxu0 %vm102_vm1, %v3703_v14 }
 0x105   :  { %2010 = vmatmul.msk.f32.gmra.mxu1 %vm102_vm1, %v3703_v14  ;;  %2015 = vmatmul.msk.f32.gmra.mxu2 %vm102_vm1, %v3703_v14 }
 0x106   :  { %2020 = vmatmul.msk.f32.gmra.mxu3 %vm102_vm1, %v3703_v14  ;;  %v3710_v14 = vld [vmem:[#allocation31_spill] sm:$0xff] }
 0x108   :  { %v684_v15 = vpop.f32.mrf.mxu2 }
 0x109   :  { %v713_v18 = vpop.f32.mrf.mxu3  ;;  %v2983_v21 = vpop.f32.mrf.mxu0 }
 0x10a   :  { %v2985_v24 = vpop.f32.mrf.mxu1 }
 0x10c   :  { %2006 = vmatmul.msk.f32.gmra.mxu0 %vm102_vm1, %v2393_v47 }
 0x10d   :  { %2011 = vmatmul.msk.f32.gmra.mxu1 %vm102_vm1, %v2393_v47  ;;  %2016 = vmatmul.msk.f32.gmra.mxu2 %vm102_vm1, %v2393_v47 }
 0x10e   :  { %2021 = vmatmul.msk.f32.gmra.mxu3 %vm102_vm1, %v2393_v47  ;;  %v3705_v47 = vld [vmem:[#allocation26_spill] sm:$0xff] }
 0x110   :  { %v2995_v26 = vpop.f32.mrf.mxu2 }
 0x111   :  { %v2997_v27 = vpop.f32.mrf.mxu3  ;;  %v748_v30 = vpop.f32.mrf.mxu0 }
 0x112   :  { %v777_v31 = vpop.f32.mrf.mxu1 }
 0x114   :  { %2023 = vmatmul.msk.f32.vlgmr.msra.gmra.mxu0 %vm102_vm1, %v3002_v32 }
 0x115   :  { %2028 = vmatmul.msk.f32.vlgmr.msra.gmra.mxu1 %vm102_vm1, %v3002_v32  ;;  %2033 = vmatmul.msk.f32.vlgmr.msra.gmra.mxu2 %vm102_vm1, %v3002_v32 }
 0x116   :  { %2038 = vmatmul.msk.f32.vlgmr.msra.gmra.mxu3 %vm102_vm1, %v3002_v32  ;;  %2072 = vmatpush.msk.msra.mxu2 %vm115_vm0, %v3705_v47 }
 0x117   :  { %2077 = vmatpush.msk.msra.mxu3 %vm115_vm0, %v3706_v33  ;;  %2062 = vmatpush.msk.msra.mxu0 %vm115_vm0, %v3707_v62  ;;  %v3033_v33 = vld [vmem:[%s3561_s3 + $0x8] sm:$0xff] }
 0x118   :  { %2067 = vmatpush.msk.msra.mxu1 %vm115_vm0, %v3708_v0  ;;  %v806_v35 = vpop.f32.mrf.mxu2  ;;  %1603 = vmatpush.msra.mxu2 %v3709_v41  ;;  %3711 = vst [vmem:[#allocation11_spill] sm:$0xff] %v3033_v33  ;;  %v3712_v62 = vld [vmem:[#allocation32_spill] sm:$0xff]  ;;  %v3713_v0 = vld [vmem:[#allocation33_spill] sm:$0xff]  ;;  %v3714_v41 = vld [vmem:[#allocation34_spill] sm:$0xff] }
 0x119   :  { %v835_v36 = vpop.f32.mrf.mxu3  ;;  %1632 = vmatpush.msra.mxu3 %v3710_v14  ;;  %v3022_v8 = vadd.f32 %v806_v35, %v678_v19  ;;  %v3026_v47 = vpop.f32.mrf.mxu0  ;;  %1545 = vmatpush.msra.mxu0 %v3712_v62  ;;  %v3715_v14 = vld [vmem:[#allocation35_spill] sm:$0xff]  ;;  %v3716_v19 = vld [vmem:[#allocation36_spill] sm:$0xff]  ;;  %v3720_v62 = vld [vmem:[#allocation41_spill] sm:$0xff] }
 0x11a   :  { %v3024_v32 = vadd.f32 %v835_v36, %v707_v20  ;;  %v3028_v51 = vpop.f32.mrf.mxu1  ;;  %1574 = vmatpush.msra.mxu1 %v3713_v0  ;;  %1604 = vmatpush.msra.mxu2 %v3714_v41  ;;  %v3717_v20 = vld [vmem:[#allocation37_spill] sm:$0xff]  ;;  %v3718_v35 = vld [vmem:[#allocation39_spill] sm:$0xff]  ;;  %v3719_v36 = vld [vmem:[#allocation40_spill] sm:$0xff] }
 0x11b   :  { %1633 = vmatpush.msra.mxu3 %v3715_v14  ;;  %1546 = vmatpush.msra.mxu0 %v3716_v19  ;;  %v3721_v0 = vld [vmem:[#allocation42_spill] sm:$0xff] }
 0x11c   :  { %1575 = vmatpush.msra.mxu1 %v3717_v20  ;;  %2024 = vmatmul.msk.f32.gmra.mxu0 %vm102_vm1, %v3033_v33 }
 0x11d   :  { %2029 = vmatmul.msk.f32.gmra.mxu1 %vm102_vm1, %v3033_v33  ;;  %2034 = vmatmul.msk.f32.gmra.mxu2 %vm102_vm1, %v3033_v33 }
 0x11e   :  { %2039 = vmatmul.msk.f32.gmra.mxu3 %vm102_vm1, %v3033_v33  ;;  %1605 = vmatpush.msra.mxu2 %v3718_v35  ;;  %v3064_v35 = vld [vmem:[%s3561_s3 + $0x10] sm:$0xff] }
 0x11f   :  { %1634 = vmatpush.msra.mxu3 %v3719_v36  ;;  %1547 = vmatpush.msra.mxu0 %v3720_v62  ;;  %3722 = vst [vmem:[#allocation12_spill] sm:$0xff] %v3064_v35 }
 0x120   :  { %1576 = vmatpush.msra.mxu1 %v3721_v0  ;;  %v809_v41 = vpop.f32.mrf.mxu2 }
 0x121   :  { %v838_v14 = vpop.f32.mrf.mxu3  ;;  %v3053_v19 = vadd.f32 %v809_v41, %v681_v43  ;;  %v3057_v53 = vpop.f32.mrf.mxu0 }
 0x122   :  { %v3055_v20 = vadd.f32 %v838_v14, %v710_v49  ;;  %v3059_v45 = vpop.f32.mrf.mxu1  ;;  %v3085_v14 = vld [vmem:[%s3561_s3 + $0x18] sm:$0x3] }
 0x123   :  { %3724 = vst [vmem:[#allocation14_spill] sm:$0xff] %v3085_v14 }
 0x124   :  { %2025 = vmatmul.msk.f32.gmra.mxu0 %vm102_vm1, %v3064_v35 }
 0x125   :  { %2030 = vmatmul.msk.f32.gmra.mxu1 %vm102_vm1, %v3064_v35  ;;  %2035 = vmatmul.msk.f32.gmra.mxu2 %vm102_vm1, %v3064_v35 }
 0x126   :  { %2040 = vmatmul.msk.f32.gmra.mxu3 %vm102_vm1, %v3064_v35 }
 0x128   :  { %v812_v43 = vpop.f32.mrf.mxu2 }
 0x129   :  { %v841_v49 = vpop.f32.mrf.mxu3  ;;  %v3074_v36 = vadd.f32 %v812_v43, %v684_v15  ;;  %v3078_v0 = vpop.f32.mrf.mxu0  ;;  %v286_v15 = vadd.f32 %v2775_v10, %v2701_v61  ;;  %v749_v43 = vadd.f32 %v748_v30, %v2927_v9  ;;  %v781_v30 = vadd.f32 %v3028_v51, %v2951_v16  ;;  %v3732_v51 = vld [vmem:[#allocation50_spill] sm:$0xff] }
 0x12a   :  { %v3076_v62 = vadd.f32 %v841_v49, %v713_v18  ;;  %v3080_v41 = vpop.f32.mrf.mxu1  ;;  %v315_v18 = vadd.f32 %v2777_v11, %v2703_v63  ;;  %v778_v49 = vadd.f32 %v777_v31, %v2929_v12  ;;  %v3727_v12 = vld [vmem:[#allocation45_spill] sm:$0xff] }
 0x12c   :  { %3723 = vst [vmem:[#allocation13_spill] sm:$0xff] %v3076_v62  ;;  %2026 = vmatmul.msk.f32.gmra.mxu0 %vm102_vm1, %v3085_v14  ;;  %v3108_v62 = vadd.f32 %v2843_v42, %v286_v15  ;;  %v3111_v61 = vadd.f32 %v2845_v58, %v315_v18  ;;  %v3725_v42 = vld [vmem:[#allocation43_spill] sm:$0xff]  ;;  %v3726_v58 = vld [vmem:[#allocation44_spill] sm:$0xff] }
 0x12d   :  { %2031 = vmatmul.msk.f32.gmra.mxu1 %vm102_vm1, %v3085_v14  ;;  %2036 = vmatmul.msk.f32.gmra.mxu2 %vm102_vm1, %v3085_v14 }
 0x12e   :  { %2041 = vmatmul.msk.f32.gmra.mxu3 %vm102_vm1, %v3085_v14 }
 0x130   :  { %v815_v35 = vpop.f32.mrf.mxu2 }
 0x131   :  { %v844_v33 = vpop.f32.mrf.mxu3  ;;  %v3102_v44 = vadd.f32 %v815_v35, %v2995_v26  ;;  %v893_v46 = vpop.f32.mrf.mxu0  ;;  %v3728_v26 = vld [vmem:[#allocation46_spill] sm:$0xff]  ;;  %v3729_v35 = vld [vmem:[#allocation47_spill] sm:$0xff] }
 0x132   :  { %v3105_v48 = vadd.f32 %v844_v33, %v2997_v27  ;;  %v922_v14 = vpop.f32.mrf.mxu1  ;;  %v3113_v63 = vadd.f32 %v893_v46, %v749_v43  ;;  %v289_v46 = vadd.f32 %v2797_v57, %v2729_v59  ;;  %v318_v27 = vadd.f32 %v2799_v17, %v2731_v52  ;;  %v3730_v59 = vld [vmem:[#allocation48_spill] sm:$0xff] }
 0x133   :  { %v3115_v10 = vadd.f32 %v922_v14, %v778_v49  ;;  %v3735_v49 = vld [vmem:[#allocation53_spill] sm:$0xff] }
 0x134   :  { %v1008_v11 = vmax.f32 %v3108_v62, %v3113_v63  ;;  %2043 = vmatmul.msk.f32.vlgmr.msrb.gmra.mxu0 %vm102_vm1, %v2522_v56  ;;  %v3148_v57 = vadd.f32 %v2869_v34, %v289_v46  ;;  %v3159_v16 = vadd.f32 %v2871_v5, %v318_v27  ;;  %v3733_v34 = vld [vmem:[#allocation51_spill] sm:$0xff]  ;;  %v292_v27 = vadd.f32 %v2819_v22, %v2751_v2 }
 0x135   :  { %v1009_v9 = vmax.f32 %v3111_v61, %v3115_v10  ;;  %2048 = vmatmul.msk.f32.vlgmr.msrb.gmra.mxu1 %vm102_vm1, %v2522_v56  ;;  %2053 = vmatmul.msk.f32.vlgmr.msrb.gmra.mxu2 %vm102_vm1, %v2522_v56  ;;  %v3737_v46 = vld [vmem:[#allocation55_spill] sm:$0xff] }
 0x136   :  { %2058 = vmatmul.msk.f32.vlgmr.msrb.gmra.mxu3 %vm102_vm1, %v2522_v56  ;;  %2092 = vmatpush.msk.msrb.mxu2 %vm115_vm0, %v3725_v42  ;;  %v752_v56 = vadd.f32 %v3026_v47, %v2949_v25  ;;  %v3731_v47 = vld [vmem:[#allocation49_spill] sm:$0xff]  ;;  %v3736_v42 = vld [vmem:[#allocation54_spill] sm:$0xff]  ;;  %v3204_v2 = vadd.f32 %v2895_v39, %v292_v27 }
 0x137   :  { %2097 = vmatpush.msk.msrb.mxu3 %vm115_vm0, %v3726_v58  ;;  %2082 = vmatpush.msk.msrb.mxu0 %vm115_vm0, %v3727_v12  ;;  %v3738_v12 = vld [vmem:[#allocation56_spill] sm:$0xff] }
 0x138   :  { %2087 = vmatpush.msk.msrb.mxu1 %vm115_vm0, %v3728_v26  ;;  %v951_v31 = vpop.f32.mrf.mxu2  ;;  %1719 = vmatpush.msrb.mxu2 %v3729_v35  ;;  %v3739_v26 = vld [vmem:[#allocation57_spill] sm:$0xff] }
 0x139   :  { %v980_v33 = vpop.f32.mrf.mxu3  ;;  %1748 = vmatpush.msrb.mxu3 %v3730_v59  ;;  %v3151_v14 = vadd.f32 %v951_v31, %v3022_v8  ;;  %v896_v17 = vpop.f32.mrf.mxu0  ;;  %1661 = vmatpush.msrb.mxu0 %v3731_v47  ;;  %v3734_v8 = vld [vmem:[#allocation52_spill] sm:$0xff] }
 0x13a   :  { %v3154_v52 = vadd.f32 %v980_v33, %v3024_v32  ;;  %v925_v25 = vpop.f32.mrf.mxu1  ;;  %1690 = vmatpush.msrb.mxu1 %v3732_v51  ;;  %v3161_v15 = vadd.f32 %v896_v17, %v752_v56  ;;  %1720 = vmatpush.msrb.mxu2 %v3733_v34  ;;  %v321_v56 = vadd.f32 %v2821_v23, %v2753_v3  ;;  %v3740_v34 = vld [vmem:[#allocation13_spill] sm:$0xff] }
 0x13b   :  { %v3163_v18 = vadd.f32 %v925_v25, %v781_v30  ;;  %1749 = vmatpush.msrb.mxu3 %v3734_v8  ;;  %1662 = vmatpush.msrb.mxu0 %v3735_v49  ;;  %v755_v30 = vadd.f32 %v3057_v53, %v2971_v50 }
 0x13c   :  { %1691 = vmatpush.msrb.mxu1 %v3736_v42  ;;  %2044 = vmatmul.msk.f32.gmra.mxu0 %vm102_vm1, %v2551_v55  ;;  %v3207_v3 = vadd.f32 %v2897_v40, %v321_v56  ;;  %v295_v40 = vadd.f32 %v2831_v28, %v2763_v6  ;;  %v3741_v6 = vld [vmem:[#allocation60_spill] sm:$0xff]  ;;  %v3753_v62 = vmax.f32 %v2867_v4, %v3154_v52 }
 0x13d   :  { %2049 = vmatmul.msk.f32.gmra.mxu1 %vm102_vm1, %v2551_v55  ;;  %2054 = vmatmul.msk.f32.gmra.mxu2 %vm102_vm1, %v2551_v55  ;;  %v3754_v61 = vmax.f32 %v3148_v57, %v3161_v15 }
 0x13e   :  { %2059 = vmatmul.msk.f32.gmra.mxu3 %vm102_vm1, %v2551_v55  ;;  %1721 = vmatpush.msrb.mxu2 %v2695_v60  ;;  %v784_v55 = vadd.f32 %v3059_v45, %v2973_v13  ;;  %v324_v13 = vadd.f32 %v2833_v29, %v2765_v7  ;;  %v3244_v28 = vadd.f32 %v3741_v6, %v295_v40  ;;  %v3742_v7 = vld [vmem:[#allocation61_spill] sm:$0xff]  ;;  %v3747_v40 = vld [vmem:[#allocation63_spill] sm:$0xff] }
 0x13f   :  { %1750 = vmatpush.msrb.mxu3 %v3737_v46  ;;  %1663 = vmatpush.msrb.mxu0 %v3738_v12 }
 0x140   :  { %1692 = vmatpush.msrb.mxu1 %v3739_v26  ;;  %v954_v31 = vpop.f32.mrf.mxu2  ;;  %v3247_v29 = vadd.f32 %v3742_v7, %v324_v13  ;;  %v3745_v26 = vld [vmem:[#allocation38_spill] sm:$0xff] }
 0x141   :  { %v983_v60 = vpop.f32.mrf.mxu3  ;;  %v3198_v33 = vadd.f32 %v954_v31, %v3053_v19  ;;  %v899_v59 = vpop.f32.mrf.mxu0  ;;  %v758_v19 = vadd.f32 %v3078_v0, %v2983_v21  ;;  %v2108_v7 = vld [vmem:[%s3559_s1 + $0x10] sm:$0xff] }
 0x142   :  { %v3201_v35 = vadd.f32 %v983_v60, %v3055_v20  ;;  %v928_v17 = vpop.f32.mrf.mxu1  ;;  %v3209_v53 = vadd.f32 %v899_v59, %v755_v30  ;;  %v787_v20 = vadd.f32 %v3080_v41, %v2985_v24  ;;  %v3743_v24 = vld [vmem:[#allocation58_spill] sm:$0xff] }
 0x143   :  { %v3211_v22 = vadd.f32 %v928_v17, %v784_v55  ;;  %v3746_v59 = vld [vmem:[#allocation62_spill] sm:$0xff]  ;;  %v3756_v52 = vmax.f32 %v2891_v37, %v3198_v33 }
 0x144   :  { %2045 = vmatmul.msk.f32.gmra.mxu0 %vm102_vm1, %v2576_v54  ;;  %v3748_v41 = vld [vmem:[#allocation10_spill] sm:$0xff]  ;;  %v3757_v57 = vmax.f32 %v2893_v38, %v3201_v35 }
 0x145   :  { %2050 = vmatmul.msk.f32.gmra.mxu1 %vm102_vm1, %v2576_v54  ;;  %2055 = vmatmul.msk.f32.gmra.mxu2 %vm102_vm1, %v2576_v54 }
 0x146   :  { %2060 = vmatmul.msk.f32.gmra.mxu3 %vm102_vm1, %v2576_v54 }
 0x148   :  { %v957_v25 = vpop.f32.mrf.mxu2 }
 0x149   :  { %v986_v47 = vpop.f32.mrf.mxu3  ;;  %v3238_v51 = vadd.f32 %v957_v25, %v3074_v36  ;;  %v902_v54 = vpop.f32.mrf.mxu0  ;;  %v3744_v36 = vld [vmem:[#allocation59_spill] sm:$0xff] }
 0x14a   :  { %v3241_v8 = vadd.f32 %v986_v47, %v3740_v34  ;;  %v931_v49 = vpop.f32.mrf.mxu1  ;;  %v3249_v21 = vadd.f32 %v902_v54, %v758_v19  ;;  %v2106_v19 = vld [vmem:[%s3559_s1] sm:$0xff]  ;;  %v2107_v47 = vld [vmem:[%s3559_s1 + $0x8] sm:$0xff] }
 0x14b   :  { %v3251_v0 = vadd.f32 %v931_v49, %v787_v20  ;;  %v3760_v35 = vmax.f32 %v3743_v24, %v3238_v51 }
 0x14c   :  { %2046 = vmatmul.msk.f32.gmra.mxu0 %vm102_vm1, %v3745_v26 }
 0x14d   :  { %2051 = vmatmul.msk.f32.gmra.mxu1 %vm102_vm1, %v3745_v26  ;;  %2056 = vmatmul.msk.f32.gmra.mxu2 %vm102_vm1, %v3745_v26 }
 0x14e   :  { %2061 = vmatmul.msk.f32.gmra.mxu3 %vm102_vm1, %v3745_v26 }
 0x150   :  { %v960_v27 = vpop.f32.mrf.mxu2 }
 0x151   :  { %v989_v56 = vpop.f32.mrf.mxu3  ;;  %v3270_v30 = vadd.f32 %v960_v27, %v3102_v44  ;;  %v1041_v31 = vpop.f32.mrf.mxu0 }
 0x152   :  { %v3273_v55 = vadd.f32 %v989_v56, %v3105_v48  ;;  %v1070_v60 = vpop.f32.mrf.mxu1 }
 0x154   :  { %2063 = vmatmul.msk.f32.vlgmr.msra.gmra.mxu0 %vm102_vm1, %v2106_v19 }
 0x155   :  { %2068 = vmatmul.msk.f32.vlgmr.msra.gmra.mxu1 %vm102_vm1, %v2106_v19  ;;  %2073 = vmatmul.msk.f32.vlgmr.msra.gmra.mxu2 %vm102_vm1, %v2106_v19 }
 0x156   :  { %2078 = vmatmul.msk.f32.vlgmr.msra.gmra.mxu3 %vm102_vm1, %v2106_v19 }
 0x158   :  { %v1099_v44 = vpop.f32.mrf.mxu2 }
 0x159   :  { %v1128_v48 = vpop.f32.mrf.mxu3  ;;  %v1044_v20 = vpop.f32.mrf.mxu0 }
 0x15a   :  { %v1073_v25 = vpop.f32.mrf.mxu1 }
 0x15c   :  { %2064 = vmatmul.msk.f32.gmra.mxu0 %vm102_vm1, %v2107_v47 }
 0x15d   :  { %2069 = vmatmul.msk.f32.gmra.mxu1 %vm102_vm1, %v2107_v47  ;;  %2074 = vmatmul.msk.f32.gmra.mxu2 %vm102_vm1, %v2107_v47 }
 0x15e   :  { %2079 = vmatmul.msk.f32.gmra.mxu3 %vm102_vm1, %v2107_v47  ;;  %v2109_v47 = vld [vmem:[%s3559_s1 + $0x18] sm:$0x3] }
 0x160   :  { %v1102_v34 = vpop.f32.mrf.mxu2 }
 0x161   :  { %v1131_v54 = vpop.f32.mrf.mxu3  ;;  %v1047_v49 = vpop.f32.mrf.mxu0 }
 0x162   :  { %v1076_v6 = vpop.f32.mrf.mxu1 }
 0x164   :  { %2065 = vmatmul.msk.f32.gmra.mxu0 %vm102_vm1, %v2108_v7 }
 0x165   :  { %2070 = vmatmul.msk.f32.gmra.mxu1 %vm102_vm1, %v2108_v7  ;;  %2075 = vmatmul.msk.f32.gmra.mxu2 %vm102_vm1, %v2108_v7 }
 0x166   :  { %2080 = vmatmul.msk.f32.gmra.mxu3 %vm102_vm1, %v2108_v7 }
 0x168   :  { %v1105_v26 = vpop.f32.mrf.mxu2 }
 0x169   :  { %v1134_v27 = vpop.f32.mrf.mxu3  ;;  %v1050_v56 = vpop.f32.mrf.mxu0 }
 0x16a   :  { %v1079_v19 = vpop.f32.mrf.mxu1 }
 0x16c   :  { %2066 = vmatmul.msk.f32.gmra.mxu0 %vm102_vm1, %v2109_v47 }
 0x16d   :  { %2071 = vmatmul.msk.f32.gmra.mxu1 %vm102_vm1, %v2109_v47  ;;  %2076 = vmatmul.msk.f32.gmra.mxu2 %vm102_vm1, %v2109_v47 }
 0x16e   :  { %2081 = vmatmul.msk.f32.gmra.mxu3 %vm102_vm1, %v2109_v47 }
 0x170   :  { %v1108_v13 = vpop.f32.mrf.mxu2 }
 0x171   :  { %v1137_v17 = vpop.f32.mrf.mxu3  ;;  %v1157_v12 = vpop.f32.mrf.mxu0 }
 0x172   :  { %v1186_v7 = vpop.f32.mrf.mxu1  ;;  %v1158_v46 = vadd.f32 %v1157_v12, %v1041_v31 }
 0x173   :  { %v1187_v42 = vadd.f32 %v1186_v7, %v1070_v60  ;;  %v3749_v60 = vld [vmem:[#allocation11_spill] sm:$0xff] }
 0x174   :  { %2083 = vmatmul.msk.f32.vlgmr.msrb.gmra.mxu0 %vm102_vm1, %v3748_v41 }
 0x175   :  { %2088 = vmatmul.msk.f32.vlgmr.msrb.gmra.mxu1 %vm102_vm1, %v3748_v41  ;;  %2093 = vmatmul.msk.f32.vlgmr.msrb.gmra.mxu2 %vm102_vm1, %v3748_v41 }
 0x176   :  { %2098 = vmatmul.msk.f32.vlgmr.msrb.gmra.mxu3 %vm102_vm1, %v3748_v41 }
 0x178   :  { %v1215_v39 = vpop.f32.mrf.mxu2 }
 0x179   :  { %v1244_v47 = vpop.f32.mrf.mxu3  ;;  %v1216_v50 = vadd.f32 %v1215_v39, %v1099_v44  ;;  %v1160_v23 = vpop.f32.mrf.mxu0 }
 0x17a   :  { %v1245_v45 = vadd.f32 %v1244_v47, %v1128_v48  ;;  %v1189_v58 = vpop.f32.mrf.mxu1  ;;  %v1161_v12 = vadd.f32 %v1160_v23, %v1044_v20  ;;  %v3750_v20 = vld [vmem:[#allocation12_spill] sm:$0xff] }
 0x17b   :  { %v1190_v31 = vadd.f32 %v1189_v58, %v1073_v25 }
 0x17c   :  { %2084 = vmatmul.msk.f32.gmra.mxu0 %vm102_vm1, %v3749_v60 }
 0x17d   :  { %2089 = vmatmul.msk.f32.gmra.mxu1 %vm102_vm1, %v3749_v60  ;;  %2094 = vmatmul.msk.f32.gmra.mxu2 %vm102_vm1, %v3749_v60 }
 0x17e   :  { %2099 = vmatmul.msk.f32.gmra.mxu3 %vm102_vm1, %v3749_v60 }
 0x180   :  { %v1218_v41 = vpop.f32.mrf.mxu2 }
 0x181   :  { %v1247_v7 = vpop.f32.mrf.mxu3  ;;  %v1219_v39 = vadd.f32 %v1218_v41, %v1102_v34  ;;  %v1163_v48 = vpop.f32.mrf.mxu0 }
 0x182   :  { %v1248_v44 = vadd.f32 %v1247_v7, %v1131_v54  ;;  %v1192_v47 = vpop.f32.mrf.mxu1  ;;  %v1164_v23 = vadd.f32 %v1163_v48, %v1047_v49  ;;  %v3751_v48 = vld [vmem:[#allocation14_spill] sm:$0xff] }
 0x183   :  { %v1193_v58 = vadd.f32 %v1192_v47, %v1076_v6 }
 0x184   :  { %2085 = vmatmul.msk.f32.gmra.mxu0 %vm102_vm1, %v3750_v20 }
 0x185   :  { %2090 = vmatmul.msk.f32.gmra.mxu1 %vm102_vm1, %v3750_v20  ;;  %2095 = vmatmul.msk.f32.gmra.mxu2 %vm102_vm1, %v3750_v20 }
 0x186   :  { %2100 = vmatmul.msk.f32.gmra.mxu3 %vm102_vm1, %v3750_v20 }
 0x188   :  { %v1221_v25 = vpop.f32.mrf.mxu2 }
 0x189   :  { %v1250_v60 = vpop.f32.mrf.mxu3  ;;  %v1222_v34 = vadd.f32 %v1221_v25, %v1105_v26  ;;  %v1166_v41 = vpop.f32.mrf.mxu0 }
 0x18a   :  { %v1251_v54 = vadd.f32 %v1250_v60, %v1134_v27  ;;  %v1195_v7 = vpop.f32.mrf.mxu1  ;;  %v1167_v49 = vadd.f32 %v1166_v41, %v1050_v56 }
 0x18b   :  { %v1196_v6 = vadd.f32 %v1195_v7, %v1079_v19 }
 0x18c   :  { %2086 = vmatmul.msk.f32.gmra.mxu0 %vm102_vm1, %v3751_v48 }
 0x18d   :  { %2091 = vmatmul.msk.f32.gmra.mxu1 %vm102_vm1, %v3751_v48  ;;  %2096 = vmatmul.msk.f32.gmra.mxu2 %vm102_vm1, %v3751_v48 }
 0x18e   :  { %2101 = vmatmul.msk.f32.gmra.mxu3 %vm102_vm1, %v3751_v48 }
 0x190   :  { %v1224_v47 = vpop.f32.mrf.mxu2 }
 0x191   :  { %v1253_v20 = vpop.f32.mrf.mxu3  ;;  %v1225_v26 = vadd.f32 %v1224_v47, %v1108_v13  ;;  %v1285_v25 = vpop.f32.mrf.mxu0 }
 0x192   :  { %v1254_v27 = vadd.f32 %v1253_v20, %v1137_v17  ;;  %v1314_v60 = vpop.f32.mrf.mxu1  ;;  %v1384_v56 = vadd.f32 %v1285_v25, %v1158_v46 }
 0x193   :  { %v1385_v19 = vadd.f32 %v1314_v60, %v1187_v42  ;;  %v3752_v42 = vmax.f32 %v2865_v1, %v3151_v14 }
 0x194   :  { %v3342_v41 = vmax.f32 %v1008_v11, %v1384_v56  ;;  %v3755_v11 = vmax.f32 %v3159_v16, %v3163_v18  ;;  %v3758_v16 = vmax.f32 %v3204_v2, %v3209_v53  ;;  %v3761_v2 = vmax.f32 %v3744_v36, %v3241_v8 }
 0x195   :  { %v3347_v7 = vmax.f32 %v1009_v9, %v1385_v19  ;;  %v3764_v8 = vmax.f32 %v3746_v59, %v3270_v30 }
 0x198   :  { %v1343_v5 = vpop.f32.mrf.mxu2 }
 0x199   :  { %v1372_v48 = vpop.f32.mrf.mxu3  ;;  %v1386_v43 = vadd.f32 %v1343_v5, %v1216_v50  ;;  %v1288_v13 = vpop.f32.mrf.mxu0 }
 0x19a   :  { %v1387_v32 = vadd.f32 %v1372_v48, %v1245_v45  ;;  %v1317_v17 = vpop.f32.mrf.mxu1  ;;  %v1388_v47 = vadd.f32 %v1288_v13, %v1161_v12 }
 0x19b   :  { %v1389_v20 = vadd.f32 %v1317_v17, %v1190_v31  ;;  %v3352_v46 = vmax.f32 %v3752_v42, %v1386_v43  ;;  %v3759_v31 = vmax.f32 %v3207_v3, %v3211_v22  ;;  %v3762_v3 = vmax.f32 %v3244_v28, %v3249_v21 }
 0x19c   :  { %v3357_v63 = vmax.f32 %v3753_v62, %v1387_v32  ;;  %v3362_v10 = vmax.f32 %v3754_v61, %v1388_v47  ;;  %v3765_v28 = vmax.f32 %v3747_v40, %v3273_v55 }
 0x19d   :  { %v3367_v9 = vmax.f32 %v3755_v11, %v1389_v20 }
 0x1a0   :  { %v1346_v5 = vpop.f32.mrf.mxu2 }
 0x1a1   :  { %v1375_v45 = vpop.f32.mrf.mxu3  ;;  %v1390_v1 = vadd.f32 %v1346_v5, %v1219_v39  ;;  %v1291_v43 = vpop.f32.mrf.mxu0 }
 0x1a2   :  { %v1391_v14 = vadd.f32 %v1375_v45, %v1248_v44  ;;  %v1320_v50 = vpop.f32.mrf.mxu1  ;;  %v1392_v12 = vadd.f32 %v1291_v43, %v1164_v23 }
 0x1a3   :  { %v1393_v4 = vadd.f32 %v1320_v50, %v1193_v58  ;;  %v3372_v32 = vmax.f32 %v3756_v52, %v1390_v1 }
 0x1a4   :  { %v3377_v15 = vmax.f32 %v3757_v57, %v1391_v14  ;;  %v3382_v18 = vmax.f32 %v3758_v16, %v1392_v12 }
 0x1a5   :  { %v3387_v39 = vmax.f32 %v3759_v31, %v1393_v4 }
 0x1a8   :  { %v1349_v44 = vpop.f32.mrf.mxu2 }
 0x1a9   :  { %v1378_v23 = vpop.f32.mrf.mxu3  ;;  %v1394_v37 = vadd.f32 %v1349_v44, %v1222_v34  ;;  %v1294_v58 = vpop.f32.mrf.mxu0  ;;  %v3763_v34 = vmax.f32 %v3247_v29, %v3251_v0  ;;  %v1796_v44 = vld [vmem:[#allocation4] sm:$0xf] }
 0x1aa   :  { %v1395_v33 = vadd.f32 %v1378_v23, %v1251_v54  ;;  %v1323_v25 = vpop.f32.mrf.mxu1  ;;  %v1396_v60 = vadd.f32 %v1294_v58, %v1167_v49 }
 0x1ab   :  { %v1397_v38 = vadd.f32 %v1323_v25, %v1196_v6  ;;  %v3392_v56 = vmax.f32 %v3760_v35, %v1394_v37  ;;  %v3451_v35 = vperm.slane %v1796_v44, 0 }
 0x1ac   :  { %v3397_v53 = vmax.f32 %v3761_v2, %v1395_v33  ;;  %v3402_v22 = vmax.f32 %v3762_v3, %v1396_v60  ;;  %v3453_v3 = vperm.slane %v1796_v44, 1 }
 0x1ad   :  { %v3407_v54 = vmax.f32 %v3763_v34, %v1397_v38 }
 0x1b0   :  { %v1352_v49 = vpop.f32.mrf.mxu2 }
 0x1b1   :  { %v1381_v6 = vpop.f32.mrf.mxu3  ;;  %v1398_v51 = vadd.f32 %v1352_v49, %v1225_v26  ;;  %v1433_v19 = vpop.f32.mrf.mxu0 }
 0x1b2   :  { %v1399_v24 = vadd.f32 %v1381_v6, %v1254_v27  ;;  %v1462_v48 = vpop.f32.mrf.mxu1 }
 0x1b3   :  { %v3412_v36 = vmax.f32 %v3764_v8, %v1398_v51 }
 0x1b4   :  { %v3417_v21 = vmax.f32 %v3765_v28, %v1399_v24 }
 0x1b6   :  { %3766 = vst [vmem:[#allocation15_spill] sm:$0xff] %v3417_v21  ;;  %v3461_v21 = vperm.slane %v1796_v44, 3 }
 0x1b8   :  { %v1491_v13 = vpop.f32.mrf.mxu2 }
 0x1b9   :  { %v1520_v29 = vpop.f32.mrf.mxu3  ;;  %v1436_v0 = vpop.f32.mrf.mxu0 }
 0x1ba   :  { %v1465_v17 = vpop.f32.mrf.mxu1 }
 0x1c0   :  { %v3419_v47 = vpop.f32.mrf.mxu2 }
 0x1c1   :  { %v3421_v26 = vpop.f32.mrf.mxu3  ;;  %v3423_v27 = vpop.f32.mrf.mxu0 }
 0x1c2   :  { %v3425_v20 = vpop.f32.mrf.mxu1 }
 0x1c8   :  { %v3427_v30 = vpop.f32.mrf.mxu2 }
 0x1c9   :  { %v3429_v59 = vpop.f32.mrf.mxu3  ;;  %v3431_v42 = vpop.f32.mrf.mxu0 }
 0x1ca   :  { %v3433_v55 = vpop.f32.mrf.mxu1 }
 0x1d0   :  { %v3435_v40 = vpop.f32.mrf.mxu2 }
 0x1d1   :  { %v3437_v62 = vpop.f32.mrf.mxu3  ;;  %v1549_v61 = vpop.f32.mrf.mxu0 }
 0x1d2   :  { %v1578_v11 = vpop.f32.mrf.mxu1  ;;  %v1550_v23 = vadd.f32 %v1549_v61, %v1433_v19 }
 0x1d3   :  { %v1579_v37 = vadd.f32 %v1578_v11, %v1462_v48 }
 0x1d8   :  { %v1607_v5 = vpop.f32.mrf.mxu2 }
 0x1d9   :  { %v1636_v45 = vpop.f32.mrf.mxu3  ;;  %v1552_v1 = vpop.f32.mrf.mxu0  ;;  %v1608_v24 = vadd.f32 %v1607_v5, %v1491_v13 }
 0x1da   :  { %v1581_v14 = vpop.f32.mrf.mxu1  ;;  %v1637_v19 = vadd.f32 %v1636_v45, %v1520_v29  ;;  %v1553_v48 = vadd.f32 %v1552_v1, %v1436_v0 }
 0x1db   :  { %v1582_v8 = vadd.f32 %v1581_v14, %v1465_v17 }
 0x1e0   :  { %v1610_v43 = vpop.f32.mrf.mxu2 }
 0x1e1   :  { %v1639_v50 = vpop.f32.mrf.mxu3  ;;  %v1555_v12 = vpop.f32.mrf.mxu0 }
 0x1e2   :  { %v1584_v4 = vpop.f32.mrf.mxu1 }
 0x1e8   :  { %v3439_v52 = vpop.f32.mrf.mxu2 }
 0x1e9   :  { %v3441_v57 = vpop.f32.mrf.mxu3  ;;  %v3443_v16 = vpop.f32.mrf.mxu0 }
 0x1ea   :  { %v3445_v31 = vpop.f32.mrf.mxu1 }
 0x1f0   :  { %v3447_v33 = vpop.f32.mrf.mxu2 }
 0x1f1   :  { %v3449_v58 = vpop.f32.mrf.mxu3  ;;  %v1665_v25 = vpop.f32.mrf.mxu0 }
 0x1f2   :  { %v1694_v60 = vpop.f32.mrf.mxu1  ;;  %v1764_v38 = vadd.f32 %v1665_v25, %v1550_v23 }
 0x1f3   :  { %v1765_v2 = vadd.f32 %v1694_v60, %v1579_v37  ;;  %v3459_v37 = vperm.slane %v1796_v44, 2 }
 0x1f4   :  { %v1780_v34 = vmax.f32 %v3342_v41, %v1764_v38 }
 0x1f5   :  { %v1781_v49 = vmax.f32 %v3347_v7, %v1765_v2  ;;  %v1611_v2 = vadd.f32 %v1610_v43, %v3419_v47 }
 0x1f6   :  { %v1806_v6 = vadd.f32 %v3451_v35, %v1780_v34  ;;  %v1640_v34 = vadd.f32 %v1639_v50, %v3421_v26 }
 0x1f7   :  { %v1807_v51 = vadd.f32 %v3453_v3, %v1781_v49 }
 0x1f8   :  { %v1822_v28 = vmax.f32 %v1806_v6, 0.0  ;;  %v1723_v11 = vpop.f32.mrf.mxu2 }
 0x1f9   :  { %v1823_v61 = vmax.f32 %v1807_v51, 0.0  ;;  %v1752_v23 = vpop.f32.mrf.mxu3  ;;  %v1766_v25 = vadd.f32 %v1723_v11, %v1608_v24  ;;  %v1668_v41 = vpop.f32.mrf.mxu0 }
 0x1fa   :  { %v1767_v60 = vadd.f32 %v1752_v23, %v1637_v19  ;;  %v1697_v7 = vpop.f32.mrf.mxu1  ;;  %1838 = vst [vmem:[%s3564_s6] sm:$0xff] %v1822_v28  ;;  %v1768_v13 = vadd.f32 %v1668_v41, %v1553_v48 }
 0x1fb   :  { %v1769_v29 = vadd.f32 %v1697_v7, %v1582_v8  ;;  %1839 = vst [vmem:[%s3564_s6 + $0x8] sm:$0xff] %v1823_v61  ;;  %v1782_v0 = vmax.f32 %v3352_v46, %v1766_v25 }
 0x1fc   :  { %v1783_v17 = vmax.f32 %v3357_v63, %v1767_v60  ;;  %v1784_v5 = vmax.f32 %v3362_v10, %v1768_v13  ;;  %v1556_v63 = vadd.f32 %v1555_v12, %v3423_v27  ;;  %v1585_v10 = vadd.f32 %v1584_v4, %v3425_v20 }
 0x1fd   :  { %v1785_v45 = vmax.f32 %v3367_v9, %v1769_v29  ;;  %v1808_v1 = vadd.f32 %v3459_v37, %v1782_v0 }
 0x1fe   :  { %v1809_v14 = vadd.f32 %v3461_v21, %v1783_v17  ;;  %v1810_v44 = vadd.f32 %v3451_v35, %v1784_v5 }
 0x1ff   :  { %v1811_v38 = vadd.f32 %v3453_v3, %v1785_v45  ;;  %v1824_v46 = vmax.f32 %v1808_v1, 0.0 }
 0x200   :  { %v1825_v49 = vmax.f32 %v1809_v14, 0.0  ;;  %v1826_v9 = vmax.f32 %v1810_v44, 0.0  ;;  %v1726_v51 = vpop.f32.mrf.mxu2 }
 0x201   :  { %v1827_v6 = vmax.f32 %v1811_v38, 0.0  ;;  %v1755_v24 = vpop.f32.mrf.mxu3  ;;  %1840 = vst [vmem:[%s3564_s6 + $0x10] sm:$0xff] %v1824_v46  ;;  %v1770_v19 = vadd.f32 %v1726_v51, %v1611_v2  ;;  %v1671_v8 = vpop.f32.mrf.mxu0 }
 0x202   :  { %v1771_v48 = vadd.f32 %v1755_v24, %v1640_v34  ;;  %v1700_v47 = vpop.f32.mrf.mxu1  ;;  %1842 = vst.msk [vmem:[%s3564_s6 + $0x18] sm:$0xff] %vm1841_vm2, %v1825_v49  ;;  %v1772_v26 = vadd.f32 %v1671_v8, %v1556_v63 }
 0x203   :  { %v1773_v27 = vadd.f32 %v1700_v47, %v1585_v10  ;;  %1843 = vst [vmem:[%s3564_s6 + $0x20] sm:$0xff] %v1826_v9  ;;  %v1786_v20 = vmax.f32 %v3372_v32, %v1770_v19  ;;  %v1614_v32 = vadd.f32 %v3439_v52, %v3427_v30 }
 0x204   :  { %v1787_v43 = vmax.f32 %v3377_v15, %v1771_v48  ;;  %1844 = vst [vmem:[%s3564_s6 + $0x28] sm:$0xff] %v1827_v6  ;;  %v1788_v50 = vmax.f32 %v3382_v18, %v1772_v26  ;;  %v1643_v15 = vadd.f32 %v3441_v57, %v3429_v59  ;;  %v1559_v18 = vadd.f32 %v3443_v16, %v3431_v42 }
 0x205   :  { %v1789_v12 = vmax.f32 %v3387_v39, %v1773_v27  ;;  %v1812_v4 = vadd.f32 %v3459_v37, %v1786_v20  ;;  %v1588_v39 = vadd.f32 %v3445_v31, %v3433_v55 }
 0x206   :  { %v1813_v28 = vadd.f32 %v3461_v21, %v1787_v43  ;;  %v1814_v61 = vadd.f32 %v3451_v35, %v1788_v50 }
 0x207   :  { %v1815_v11 = vadd.f32 %v3453_v3, %v1789_v12  ;;  %v1828_v23 = vmax.f32 %v1812_v4, 0.0 }
 0x208   :  { %v1829_v25 = vmax.f32 %v1813_v28, 0.0  ;;  %v1830_v60 = vmax.f32 %v1814_v61, 0.0  ;;  %v1729_v7 = vpop.f32.mrf.mxu2 }
 0x209   :  { %v1831_v41 = vmax.f32 %v1815_v11, 0.0  ;;  %v1758_v13 = vpop.f32.mrf.mxu3  ;;  %1845 = vst [vmem:[%s3564_s6 + $0x30] sm:$0xff] %v1828_v23  ;;  %v1774_v30 = vadd.f32 %v1729_v7, %v1614_v32  ;;  %v1674_v29 = vpop.f32.mrf.mxu0 }
 0x20a   :  { %v1775_v52 = vadd.f32 %v1758_v13, %v1643_v15  ;;  %v1703_v59 = vpop.f32.mrf.mxu1  ;;  %1846 = vst.msk [vmem:[%s3564_s6 + $0x38] sm:$0xff] %vm1841_vm2, %v1829_v25  ;;  %v1776_v42 = vadd.f32 %v1674_v29, %v1559_v18 }
 0x20b   :  { %v1777_v57 = vadd.f32 %v1703_v59, %v1588_v39  ;;  %1847 = vst [vmem:[%s3564_s6 + $0x40] sm:$0xff] %v1830_v60  ;;  %v1790_v55 = vmax.f32 %v3392_v56, %v1774_v30  ;;  %v1617_v56 = vadd.f32 %v3447_v33, %v3435_v40 }
 0x20c   :  { %v1791_v16 = vmax.f32 %v3397_v53, %v1775_v52  ;;  %1848 = vst [vmem:[%s3564_s6 + $0x48] sm:$0xff] %v1831_v41  ;;  %v1792_v31 = vmax.f32 %v3402_v22, %v1776_v42  ;;  %v1646_v53 = vadd.f32 %v3449_v58, %v3437_v62  ;;  %v3767_v62 = vld [vmem:[#allocation15_spill] sm:$0xff] }
 0x20d   :  { %v1793_v0 = vmax.f32 %v3407_v54, %v1777_v57  ;;  %v1816_v17 = vadd.f32 %v3459_v37, %v1790_v55 }
 0x20e   :  { %v1817_v5 = vadd.f32 %v3461_v21, %v1791_v16  ;;  %v1818_v45 = vadd.f32 %v3451_v35, %v1792_v31 }
 0x20f   :  { %v1819_v1 = vadd.f32 %v3453_v3, %v1793_v0  ;;  %v1832_v14 = vmax.f32 %v1816_v17, 0.0 }
 0x210   :  { %v1833_v44 = vmax.f32 %v1817_v5, 0.0  ;;  %v1834_v38 = vmax.f32 %v1818_v45, 0.0  ;;  %v1732_v2 = vpop.f32.mrf.mxu2 }
 0x211   :  { %v1835_v22 = vmax.f32 %v1819_v1, 0.0  ;;  %v1761_v54 = vpop.f32.mrf.mxu3  ;;  %1849 = vst [vmem:[%s3564_s6 + $0x50] sm:$0xff] %v1832_v14  ;;  %v1778_v34 = vadd.f32 %v1732_v2, %v1617_v56 }
 0x212   :  { %v1779_v35 = vadd.f32 %v1761_v54, %v1646_v53  ;;  %1850 = vst.msk [vmem:[%s3564_s6 + $0x58] sm:$0xff] %vm1841_vm2, %v1833_v44 }
 0x213   :  { %1851 = vst [vmem:[%s3564_s6 + $0x60] sm:$0x3] %v1834_v38  ;;  %v1794_v40 = vmax.f32 %v3412_v36, %v1778_v34 }
 0x214   :  { %v1795_v33 = vmax.f32 %v3767_v62, %v1779_v35  ;;  %1852 = vst [vmem:[%s3564_s6 + $0x68] sm:$0x3] %v1835_v22 }
 0x215   :  { %v1820_v58 = vadd.f32 %v3459_v37, %v1794_v40 }
 0x216   :  { %v1821_v3 = vadd.f32 %v3461_v21, %v1795_v33 }
 0x217   :  { %v1836_v46 = vmax.f32 %v1820_v58, 0.0 }
 0x218   :  { %v1837_v49 = vmax.f32 %v1821_v3, 0.0 }
 0x219   :  { %1853 = vst [vmem:[%s3564_s6 + $0x70] sm:$0x3] %v1836_v46 }
 0x21a   :  { %1855 = vst.msk [vmem:[%s3564_s6 + $0x78] sm:$0x3] %vm1854_vm3, %v1837_v49 }
 0x21b   :  { %1860 = vsyncpa [#allocation3], 1 }
 0x21c   :  { %1861 = vsyncpa [#allocation5], 1 }

// kernel: network_forward.4
= control target key start
LH: loop header
LB: loop body
LE: loop exit
PB: predicated region body
PF: predicated region fallthrough
CT: control target
= control target key end

     0   :  { %11 = vsyncpa [#allocation3], 0  ;;  %s7078_s0 = inlined_call_operand.vmem [shape: f32[10,416], index: 0, kind: input, shape index: {}]   ;;  %s7079_s1 = inlined_call_operand.vmem [shape: f32[10,416], index: 1, kind: input, shape index: {}]   ;;  %s7080_s2 = inlined_call_operand.vmem [shape: f32[10,416], index: 2, kind: input, shape index: {}]   ;;  %s7081_s3 = inlined_call_operand.vmem [shape: f32[10,416], index: 3, kind: input, shape index: {}]   ;;  %s7082_s4 = inlined_call_operand.hbm [shape: f32[6,416,320], index: 4, kind: input, shape index: {}]   ;;  %s7083_s5 = inlined_call_operand.hbm [shape: f32[1,320], index: 5, kind: input, shape index: {}]   ;;  %s7084_s6 = inlined_call_operand.vmem [shape: f32[10,320], index: 6, kind: output, shape index: {}]  }
   0x1   :  { %s25_s23 = sshll.u32 %s7082_s4, 4  ;;  %s26_s23 = int_to_ptr.hbm [resolvable:$true] %s25_s23 }
   0x2   :  { %12 = vsyncpa [#allocation5], 0  ;;  %s5559_s24 = smov [#allocation2]   ;;  %s39_s28 = sshll.u32 %s7083_s5, 4  ;;  %s40_s28 = int_to_ptr.hbm [resolvable:$true] %s39_s28 }
   0x3   :  { %s27_s25 = sshll.u32 %s5559_s24, 4  ;;  %s5560_s29 = smov 384   ;;  %s28_s25 = int_to_ptr.vmem [resolvable:$true] %s27_s25 }
   0x4   :  { %s5561_s30 = smov 24   ;;  %s5562_s7 = smov [#allocation4]  }
   0x5   :  { %33 = dma.hbm_to_vmem [thread:$0]  %s26_s23, 119808, %s28_s25, [#allocation3], %s5560_s29, %s5560_s29, %s5561_s30  }
   0x6   :  { %s41_s8 = sshll.u32 %s5562_s7, 4  ;;  %s42_s8 = int_to_ptr.vmem [resolvable:$true] %s41_s8 }
   0x7   :  { %44 = dma.hbm_to_vmem [thread:$0]  %s40_s28, 48, %s42_s8, [#allocation5]  }
   0x8   :  { %5555 = dma.done.wait [#allocation3], 119808  }
   0x9   :  { %5556 = vsyncadd [#allocation3], 4294847488 }
   0xa   :  { %5557 = dma.done.wait [#allocation5], 48  }
   0xb   :  { %5558 = vsyncadd [#allocation5], 4294967248  ;;  %v287_v0 = vld [vmem:[#allocation2 + $0x648] sm:$0xff]  ;;  %v284_v4 = vld [vmem:[#allocation2 + $0x630] sm:$0xff]  ;;  %vm398_vm0 = vcmask 261120   ;;  %vm4427_vm1 = vcmask 523264  }
   0xc   :  { %v335_v1 = vld [vmem:[#allocation2 + $0x7c8] sm:$0xff]  ;;  %405 = vmatpush.msra.mxu0 %v287_v0  ;;  %v332_v5 = vld [vmem:[#allocation2 + $0x7b0] sm:$0xff]  ;;  %v281_v8 = vld [vmem:[#allocation2 + $0x618] sm:$0xff]  ;;  %vm4431_vm2 = vcmask 517120  }
   0xd   :  { %v383_v2 = vld [vmem:[#allocation2 + $0x948] sm:$0xff]  ;;  %428 = vmatpush.msra.mxu1 %v335_v1  ;;  %v380_v6 = vld [vmem:[#allocation2 + $0x930] sm:$0xff]  ;;  %v329_v9 = vld [vmem:[#allocation2 + $0x798] sm:$0xff] }
   0xe   :  { %v395_v3 = vld [vmem:[#allocation2 + $0x9a8] sm:$0xff]  ;;  %451 = vmatpush.msra.mxu2 %v383_v2  ;;  %v392_v7 = vld [vmem:[#allocation2 + $0x990] sm:$0xff]  ;;  %406 = vmatpush.msra.mxu0 %v284_v4  ;;  %v377_v10 = vld [vmem:[#allocation2 + $0x918] sm:$0xff] }
   0xf   :  { %486 = vmatpush.msra.mxu3 %v395_v3  ;;  %429 = vmatpush.msra.mxu1 %v332_v5  ;;  %v389_v11 = vld [vmem:[#allocation2 + $0x978] sm:$0xff]  ;;  %v278_v12 = vld [vmem:[#allocation2 + $0x600] sm:$0xff]  ;;  %v288_v16 = vld [vmem:[#allocation2 + $0x650] sm:$0xff] }
  0x10   :  { %452 = vmatpush.msra.mxu2 %v380_v6  ;;  %v326_v13 = vld [vmem:[#allocation2 + $0x780] sm:$0xff]  ;;  %407 = vmatpush.msra.mxu0 %v281_v8  ;;  %v275_v17 = vld [vmem:[#allocation2 + $0x5e8] sm:$0xff]  ;;  %v285_v20 = vld [vmem:[#allocation2 + $0x638] sm:$0xff] }
  0x11   :  { %487 = vmatpush.msra.mxu3 %v392_v7  ;;  %430 = vmatpush.msra.mxu1 %v329_v9  ;;  %v374_v14 = vld [vmem:[#allocation2 + $0x900] sm:$0xff]  ;;  %v323_v18 = vld [vmem:[#allocation2 + $0x768] sm:$0xff]  ;;  %v272_v21 = vld [vmem:[#allocation2 + $0x5d0] sm:$0xff] }
  0x12   :  { %v386_v15 = vld [vmem:[#allocation2 + $0x960] sm:$0xff]  ;;  %453 = vmatpush.msra.mxu2 %v377_v10  ;;  %408 = vmatpush.msra.mxu0 %v278_v12  ;;  %v371_v19 = vld [vmem:[#allocation2 + $0x8e8] sm:$0xff]  ;;  %v320_v22 = vld [vmem:[#allocation2 + $0x750] sm:$0xff] }
  0x13   :  { %488 = vmatpush.msra.mxu3 %v389_v11  ;;  %431 = vmatpush.msra.mxu1 %v326_v13  ;;  %v368_v23 = vld [vmem:[#allocation2 + $0x8d0] sm:$0xff]  ;;  %v282_v24 = vld [vmem:[#allocation2 + $0x620] sm:$0xff]  ;;  %v269_v25 = vld [vmem:[#allocation2 + $0x5b8] sm:$0xff] }
  0x14   :  { %454 = vmatpush.msra.mxu2 %v374_v14  ;;  %409 = vmatpush.msra.mxu0 %v275_v17  ;;  %v317_v26 = vld [vmem:[#allocation2 + $0x738] sm:$0xff]  ;;  %v279_v28 = vld [vmem:[#allocation2 + $0x608] sm:$0xff]  ;;  %v266_v29 = vld [vmem:[#allocation2 + $0x5a0] sm:$0xff] }
  0x15   :  { %489 = vmatpush.msra.mxu3 %v386_v15  ;;  %432 = vmatpush.msra.mxu1 %v323_v18  ;;  %v365_v27 = vld [vmem:[#allocation2 + $0x8b8] sm:$0xff]  ;;  %v314_v30 = vld [vmem:[#allocation2 + $0x720] sm:$0xff]  ;;  %v276_v32 = vld [vmem:[#allocation2 + $0x5f0] sm:$0xff] }
  0x16   :  { %455 = vmatpush.msra.mxu2 %v371_v19  ;;  %410 = vmatpush.msra.mxu0 %v272_v21  ;;  %v362_v31 = vld [vmem:[#allocation2 + $0x8a0] sm:$0xff]  ;;  %v263_v33 = vld [vmem:[#allocation2 + $0x588] sm:$0xff]  ;;  %v273_v36 = vld [vmem:[#allocation2 + $0x5d8] sm:$0xff] }
  0x17   :  { %497 = vmatpush.msrb.mxu3 %v288_v16  ;;  %433 = vmatpush.msra.mxu1 %v320_v22  ;;  %v311_v34 = vld [vmem:[#allocation2 + $0x708] sm:$0xff]  ;;  %v260_v37 = vld [vmem:[#allocation2 + $0x570] sm:$0xff]  ;;  %v270_v40 = vld [vmem:[#allocation2 + $0x5c0] sm:$0xff] }
  0x18   :  { %456 = vmatpush.msra.mxu2 %v368_v23  ;;  %411 = vmatpush.msra.mxu0 %v269_v25  ;;  %v359_v35 = vld [vmem:[#allocation2 + $0x888] sm:$0xff]  ;;  %v308_v38 = vld [vmem:[#allocation2 + $0x6f0] sm:$0xff]  ;;  %v257_v41 = vld [vmem:[#allocation2 + $0x558] sm:$0xff] }
  0x19   :  { %498 = vmatpush.msrb.mxu3 %v285_v20  ;;  %434 = vmatpush.msra.mxu1 %v317_v26  ;;  %v356_v39 = vld [vmem:[#allocation2 + $0x870] sm:$0xff]  ;;  %v305_v42 = vld [vmem:[#allocation2 + $0x6d8] sm:$0xff]  ;;  %v267_v44 = vld [vmem:[#allocation2 + $0x5a8] sm:$0xff] }
  0x1a   :  { %457 = vmatpush.msra.mxu2 %v365_v27  ;;  %412 = vmatpush.msra.mxu0 %v266_v29  ;;  %v353_v43 = vld [vmem:[#allocation2 + $0x858] sm:$0xff]  ;;  %v254_v45 = vld [vmem:[#allocation2 + $0x540] sm:$0xff]  ;;  %v264_v48 = vld [vmem:[#allocation2 + $0x590] sm:$0xff] }
  0x1b   :  { %499 = vmatpush.msrb.mxu3 %v282_v24  ;;  %435 = vmatpush.msra.mxu1 %v314_v30  ;;  %v302_v46 = vld [vmem:[#allocation2 + $0x6c0] sm:$0xff]  ;;  %v251_v49 = vld [vmem:[#allocation2 + $0x528] sm:$0xff]  ;;  %v261_v52 = vld [vmem:[#allocation2 + $0x578] sm:$0xff] }
  0x1c   :  { %458 = vmatpush.msra.mxu2 %v362_v31  ;;  %413 = vmatpush.msra.mxu0 %v263_v33  ;;  %v350_v47 = vld [vmem:[#allocation2 + $0x840] sm:$0xff]  ;;  %v299_v50 = vld [vmem:[#allocation2 + $0x6a8] sm:$0xff]  ;;  %v248_v53 = vld [vmem:[#allocation2 + $0x510] sm:$0xff] }
  0x1d   :  { %500 = vmatpush.msrb.mxu3 %v279_v28  ;;  %436 = vmatpush.msra.mxu1 %v311_v34  ;;  %v347_v51 = vld [vmem:[#allocation2 + $0x828] sm:$0xff]  ;;  %v296_v54 = vld [vmem:[#allocation2 + $0x690] sm:$0xff]  ;;  %v258_v56 = vld [vmem:[#allocation2 + $0x560] sm:$0xff] }
  0x1e   :  { %459 = vmatpush.msra.mxu2 %v359_v35  ;;  %414 = vmatpush.msra.mxu0 %v260_v37  ;;  %v344_v55 = vld [vmem:[#allocation2 + $0x810] sm:$0xff]  ;;  %v245_v57 = vld [vmem:[#allocation2 + $0x4f8] sm:$0xff]  ;;  %v255_v60 = vld [vmem:[#allocation2 + $0x548] sm:$0xff] }
  0x1f   :  { %501 = vmatpush.msrb.mxu3 %v276_v32  ;;  %437 = vmatpush.msra.mxu1 %v308_v38  ;;  %v293_v58 = vld [vmem:[#allocation2 + $0x678] sm:$0xff]  ;;  %v242_v61 = vld [vmem:[#allocation2 + $0x4e0] sm:$0xff]  ;;  %v252_v0 = vld [vmem:[#allocation2 + $0x530] sm:$0xff] }
  0x20   :  { %460 = vmatpush.msra.mxu2 %v356_v39  ;;  %415 = vmatpush.msra.mxu0 %v257_v41  ;;  %v341_v59 = vld [vmem:[#allocation2 + $0x7f8] sm:$0xff]  ;;  %v290_v62 = vld [vmem:[#allocation2 + $0x660] sm:$0xff]  ;;  %v336_v1 = vld [vmem:[#allocation2 + $0x7d0] sm:$0xff] }
  0x21   :  { %502 = vmatpush.msrb.mxu3 %v273_v36  ;;  %438 = vmatpush.msra.mxu1 %v305_v42  ;;  %v338_v63 = vld [vmem:[#allocation2 + $0x7e0] sm:$0xff]  ;;  %v384_v2 = vld [vmem:[#allocation2 + $0x950] sm:$0xff]  ;;  %v249_v4 = vld [vmem:[#allocation2 + $0x518] sm:$0xff] }
  0x22   :  { %461 = vmatpush.msra.mxu2 %v353_v43  ;;  %416 = vmatpush.msra.mxu0 %v254_v45  ;;  %v396_v3 = vld [vmem:[#allocation2 + $0x9b0] sm:$0xff]  ;;  %v333_v5 = vld [vmem:[#allocation2 + $0x7b8] sm:$0xff]  ;;  %v246_v8 = vld [vmem:[#allocation2 + $0x500] sm:$0xff] }
  0x23   :  { %503 = vmatpush.msrb.mxu3 %v270_v40  ;;  %439 = vmatpush.msra.mxu1 %v302_v46  ;;  %v381_v6 = vld [vmem:[#allocation2 + $0x938] sm:$0xff]  ;;  %v330_v9 = vld [vmem:[#allocation2 + $0x7a0] sm:$0xff]  ;;  %v5607_v12 = vld [vmem:[%s7079_s1 + $0x10] sm:$0xff] }
  0x24   :  { %462 = vmatpush.msra.mxu2 %v350_v47  ;;  %417 = vmatpush.msra.mxu0 %v251_v49  ;;  %v393_v7 = vld [vmem:[#allocation2 + $0x998] sm:$0xff]  ;;  %v378_v10 = vld [vmem:[#allocation2 + $0x920] sm:$0xff]  ;;  %v243_v13 = vld [vmem:[#allocation2 + $0x4e8] sm:$0xff] }
  0x25   :  { %504 = vmatpush.msrb.mxu3 %v267_v44  ;;  %440 = vmatpush.msra.mxu1 %v299_v50  ;;  %v390_v11 = vld [vmem:[#allocation2 + $0x980] sm:$0xff]  ;;  %v327_v14 = vld [vmem:[#allocation2 + $0x788] sm:$0xff]  ;;  %v5612_v17 = vld [vmem:[%s7079_s1 + $0x18] sm:$0xff] }
  0x26   :  { %463 = vmatpush.msra.mxu2 %v347_v51  ;;  %418 = vmatpush.msra.mxu0 %v248_v53  ;;  %v375_v15 = vld [vmem:[#allocation2 + $0x908] sm:$0xff]  ;;  %v289_v18 = vld [vmem:[#allocation2 + $0x658] sm:$0xff]  ;;  %v324_v20 = vld [vmem:[#allocation2 + $0x770] sm:$0xff] }
  0x27   :  { %505 = vmatpush.msrb.mxu3 %v264_v48  ;;  %441 = vmatpush.msra.mxu1 %v296_v54  ;;  %v387_v16 = vld [vmem:[#allocation2 + $0x968] sm:$0xff]  ;;  %v337_v19 = vld [vmem:[#allocation2 + $0x7d8] sm:$0xff]  ;;  %v372_v21 = vld [vmem:[#allocation2 + $0x8f0] sm:$0xff] }
  0x28   :  { %464 = vmatpush.msra.mxu2 %v344_v55  ;;  %419 = vmatpush.msra.mxu0 %v245_v57  ;;  %v5620_v22 = vld [vmem:[%s7079_s1] sm:$0xff]  ;;  %v5625_v23 = vld [vmem:[%s7079_s1 + $0x8] sm:$0xff]  ;;  %v321_v26 = vld [vmem:[#allocation2 + $0x758] sm:$0xff] }
  0x29   :  { %506 = vmatpush.msrb.mxu3 %v261_v52  ;;  %442 = vmatpush.msra.mxu1 %v293_v58  ;;  %v286_v24 = vld [vmem:[#allocation2 + $0x640] sm:$0xff]  ;;  %v369_v27 = vld [vmem:[#allocation2 + $0x8d8] sm:$0xff]  ;;  %v283_v28 = vld [vmem:[#allocation2 + $0x628] sm:$0xff] }
  0x2a   :  { %465 = vmatpush.msra.mxu2 %v341_v59  ;;  %420 = vmatpush.msra.mxu0 %v242_v61  ;;  %v334_v25 = vld [vmem:[#allocation2 + $0x7c0] sm:$0xff]  ;;  %v331_v29 = vld [vmem:[#allocation2 + $0x7a8] sm:$0xff]  ;;  %v280_v32 = vld [vmem:[#allocation2 + $0x610] sm:$0xff] }
  0x2b   :  { %507 = vmatpush.msrb.mxu3 %v258_v56  ;;  %443 = vmatpush.msra.mxu1 %v290_v62  ;;  %v318_v30 = vld [vmem:[#allocation2 + $0x740] sm:$0xff]  ;;  %v328_v33 = vld [vmem:[#allocation2 + $0x790] sm:$0xff]  ;;  %v315_v34 = vld [vmem:[#allocation2 + $0x728] sm:$0xff] }
  0x2c   :  { %466 = vmatpush.msra.mxu2 %v338_v63  ;;  %520 = vmatpush.msrb.mxu0 %v336_v1  ;;  %v366_v31 = vld [vmem:[#allocation2 + $0x8c0] sm:$0xff]  ;;  %v363_v35 = vld [vmem:[#allocation2 + $0x8a8] sm:$0xff]  ;;  %v277_v36 = vld [vmem:[#allocation2 + $0x5f8] sm:$0xff] }
  0x2d   :  { %508 = vmatpush.msrb.mxu3 %v255_v60  ;;  %543 = vmatpush.msrb.mxu1 %v384_v2  ;;  %v325_v37 = vld [vmem:[#allocation2 + $0x778] sm:$0xff]  ;;  %v312_v38 = vld [vmem:[#allocation2 + $0x710] sm:$0xff]  ;;  %v274_v40 = vld [vmem:[#allocation2 + $0x5e0] sm:$0xff] }
  0x2e   :  { %578 = vmatpush.msrb.mxu2 %v396_v3  ;;  %521 = vmatpush.msrb.mxu0 %v333_v5  ;;  %v360_v39 = vld [vmem:[#allocation2 + $0x890] sm:$0xff]  ;;  %v322_v41 = vld [vmem:[#allocation2 + $0x760] sm:$0xff]  ;;  %v309_v42 = vld [vmem:[#allocation2 + $0x6f8] sm:$0xff] }
  0x2f   :  { %509 = vmatpush.msrb.mxu3 %v252_v0  ;;  %544 = vmatpush.msrb.mxu1 %v381_v6  ;;  %v357_v43 = vld [vmem:[#allocation2 + $0x878] sm:$0xff]  ;;  %v271_v44 = vld [vmem:[#allocation2 + $0x5c8] sm:$0xff]  ;;  %v306_v46 = vld [vmem:[#allocation2 + $0x6e0] sm:$0xff] }
  0x30   :  { %579 = vmatpush.msrb.mxu2 %v393_v7  ;;  %522 = vmatpush.msrb.mxu0 %v330_v9  ;;  %v319_v45 = vld [vmem:[#allocation2 + $0x748] sm:$0xff]  ;;  %v354_v47 = vld [vmem:[#allocation2 + $0x860] sm:$0xff]  ;;  %v268_v48 = vld [vmem:[#allocation2 + $0x5b0] sm:$0xff] }
  0x31   :  { %510 = vmatpush.msrb.mxu3 %v249_v4  ;;  %545 = vmatpush.msrb.mxu1 %v378_v10  ;;  %v316_v49 = vld [vmem:[#allocation2 + $0x730] sm:$0xff]  ;;  %v303_v50 = vld [vmem:[#allocation2 + $0x6c8] sm:$0xff]  ;;  %v265_v52 = vld [vmem:[#allocation2 + $0x598] sm:$0xff] }
  0x32   :  { %580 = vmatpush.msrb.mxu2 %v390_v11  ;;  %523 = vmatpush.msrb.mxu0 %v327_v14  ;;  %v351_v51 = vld [vmem:[#allocation2 + $0x848] sm:$0xff]  ;;  %v313_v53 = vld [vmem:[#allocation2 + $0x718] sm:$0xff]  ;;  %v300_v54 = vld [vmem:[#allocation2 + $0x6b0] sm:$0xff] }
  0x33   :  { %511 = vmatpush.msrb.mxu3 %v246_v8  ;;  %467 = vmatmul.f32.vlgmr.msra.gmra.mxu2 %v5607_v12  ;;  %v348_v55 = vld [vmem:[#allocation2 + $0x830] sm:$0xff]  ;;  %v262_v56 = vld [vmem:[#allocation2 + $0x580] sm:$0xff]  ;;  %v297_v58 = vld [vmem:[#allocation2 + $0x698] sm:$0xff] }
  0x34   :  { %546 = vmatpush.msrb.mxu1 %v375_v15  ;;  %581 = vmatpush.msrb.mxu2 %v387_v16  ;;  %v310_v57 = vld [vmem:[#allocation2 + $0x700] sm:$0xff]  ;;  %v345_v59 = vld [vmem:[#allocation2 + $0x818] sm:$0xff]  ;;  %v259_v60 = vld [vmem:[#allocation2 + $0x568] sm:$0xff] }
  0x35   :  { %512 = vmatpush.msrb.mxu3 %v243_v13  ;;  %524 = vmatpush.msrb.mxu0 %v324_v20  ;;  %v307_v61 = vld [vmem:[#allocation2 + $0x6e8] sm:$0xff]  ;;  %v5632_v62 = vld [vmem:[%s7079_s1 + $0x30] sm:$0x3]  ;;  %v294_v63 = vld [vmem:[#allocation2 + $0x680] sm:$0xff] }
  0x36   :  { %4439 = vmatmul.msk.f32.vlgmr.msra.gmra.mxu3 %vm398_vm0, %v5612_v17  ;;  %612 = vmatpush.msra.mxu2 %v337_v19  ;;  %v342_v0 = vld [vmem:[#allocation2 + $0x800] sm:$0xff]  ;;  %v5637_v1 = vld [vmem:[%s7079_s1 + $0x38] sm:$0x3]  ;;  %v256_v2 = vld [vmem:[#allocation2 + $0x550] sm:$0xff] }
  0x37   :  { %589 = vmatpush.msra.mxu3 %v289_v18  ;;  %547 = vmatpush.msrb.mxu1 %v372_v21  ;;  %v304_v3 = vld [vmem:[#allocation2 + $0x6d0] sm:$0xff]  ;;  %v5643_v4 = vld [vmem:[%s7079_s1 + $0x28] sm:$0x3]  ;;  %v253_v7 = vld [vmem:[#allocation2 + $0x538] sm:$0xff] }
  0x38   :  { %421 = vmatmul.f32.vlgmr.msra.gmra.mxu0 %v5620_v22  ;;  %444 = vmatmul.f32.vlgmr.msra.gmra.mxu1 %v5625_v23  ;;  %v291_v5 = vld [vmem:[#allocation2 + $0x668] sm:$0xff]  ;;  %v301_v8 = vld [vmem:[#allocation2 + $0x6b8] sm:$0xff]  ;;  %v5651_v11 = vld [vmem:[%s7079_s1 + $0x20] sm:$0x3] }
  0x39   :  { %590 = vmatpush.msra.mxu3 %v286_v24  ;;  %613 = vmatpush.msra.mxu2 %v334_v25  ;;  %v339_v6 = vld [vmem:[#allocation2 + $0x7e8] sm:$0xff]  ;;  %v385_v9 = vld [vmem:[#allocation2 + $0x958] sm:$0xff]  ;;  %v250_v13 = vld [vmem:[#allocation2 + $0x520] sm:$0xff] }
  0x3a   :  { %525 = vmatpush.msrb.mxu0 %v321_v26  ;;  %548 = vmatpush.msrb.mxu1 %v369_v27  ;;  %v397_v10 = vld [vmem:[#allocation2 + $0x9b8] sm:$0xff]  ;;  %v298_v14 = vld [vmem:[#allocation2 + $0x6a0] sm:$0xff]  ;;  %v247_v18 = vld [vmem:[#allocation2 + $0x508] sm:$0xff] }
  0x3b   :  { %591 = vmatpush.msra.mxu3 %v283_v28  ;;  %614 = vmatpush.msra.mxu2 %v331_v29  ;;  %v382_v15 = vld [vmem:[#allocation2 + $0x940] sm:$0xff]  ;;  %v295_v19 = vld [vmem:[#allocation2 + $0x688] sm:$0xff]  ;;  %v292_v24 = vld [vmem:[#allocation2 + $0x670] sm:$0xff] }
  0x3c   :  { %526 = vmatpush.msrb.mxu0 %v318_v30  ;;  %549 = vmatpush.msrb.mxu1 %v366_v31  ;;  %v394_v16 = vld [vmem:[#allocation2 + $0x9a0] sm:$0xff]  ;;  %v379_v20 = vld [vmem:[#allocation2 + $0x928] sm:$0xff]  ;;  %v244_v25 = vld [vmem:[#allocation2 + $0x4f0] sm:$0xff] }
  0x3d   :  { %592 = vmatpush.msra.mxu3 %v280_v32  ;;  %615 = vmatpush.msra.mxu2 %v328_v33  ;;  %v391_v21 = vld [vmem:[#allocation2 + $0x988] sm:$0xff]  ;;  %v376_v26 = vld [vmem:[#allocation2 + $0x910] sm:$0xff]  ;;  %v373_v31 = vld [vmem:[#allocation2 + $0x8f8] sm:$0xff] }
  0x3e   :  { %527 = vmatpush.msrb.mxu0 %v315_v34  ;;  %550 = vmatpush.msrb.mxu1 %v363_v35  ;;  %v388_v27 = vld [vmem:[#allocation2 + $0x970] sm:$0xff]  ;;  %v130_v28 = vld [vmem:[#allocation2 + $0x168] sm:$0xff]  ;;  %v370_v35 = vld [vmem:[#allocation2 + $0x8e0] sm:$0xff] }
  0x3f   :  { %593 = vmatpush.msra.mxu3 %v277_v36  ;;  %616 = vmatpush.msra.mxu2 %v325_v37  ;;  %v178_v29 = vld [vmem:[#allocation2 + $0x2e8] sm:$0xff]  ;;  %v127_v32 = vld [vmem:[#allocation2 + $0x150] sm:$0xff]  ;;  %v124_v36 = vld [vmem:[#allocation2 + $0x138] sm:$0xff] }
  0x40   :  { %528 = vmatpush.msrb.mxu0 %v312_v38  ;;  %551 = vmatpush.msrb.mxu1 %v360_v39  ;;  %v226_v30 = vld [vmem:[#allocation2 + $0x468] sm:$0xff]  ;;  %v175_v33 = vld [vmem:[#allocation2 + $0x2d0] sm:$0xff]  ;;  %v172_v37 = vld [vmem:[#allocation2 + $0x2b8] sm:$0xff] }
  0x41   :  { %594 = vmatpush.msra.mxu3 %v274_v40  ;;  %617 = vmatpush.msra.mxu2 %v322_v41  ;;  %v223_v34 = vld [vmem:[#allocation2 + $0x450] sm:$0xff]  ;;  %v220_v38 = vld [vmem:[#allocation2 + $0x438] sm:$0xff]  ;;  %v367_v39 = vld [vmem:[#allocation2 + $0x8c8] sm:$0xff] }
  0x42   :  { %529 = vmatpush.msrb.mxu0 %v309_v42  ;;  %552 = vmatpush.msrb.mxu1 %v357_v43  ;;  %v121_v40 = vld [vmem:[#allocation2 + $0x120] sm:$0xff]  ;;  %v364_v43 = vld [vmem:[#allocation2 + $0x8b0] sm:$0xff] }
  0x43   :  { %595 = vmatpush.msra.mxu3 %v271_v44  ;;  %618 = vmatpush.msra.mxu2 %v319_v45  ;;  %v169_v41 = vld [vmem:[#allocation2 + $0x2a0] sm:$0xff]  ;;  %v118_v44 = vld [vmem:[#allocation2 + $0x108] sm:$0xff] }
  0x44   :  { %530 = vmatpush.msrb.mxu0 %v306_v46  ;;  %553 = vmatpush.msrb.mxu1 %v354_v47  ;;  %v217_v42 = vld [vmem:[#allocation2 + $0x420] sm:$0xff]  ;;  %v166_v45 = vld [vmem:[#allocation2 + $0x288] sm:$0xff]  ;;  %v361_v47 = vld [vmem:[#allocation2 + $0x898] sm:$0xff] }
  0x45   :  { %596 = vmatpush.msra.mxu3 %v268_v48  ;;  %619 = vmatpush.msra.mxu2 %v316_v49  ;;  %v214_v46 = vld [vmem:[#allocation2 + $0x408] sm:$0xff]  ;;  %v115_v48 = vld [vmem:[#allocation2 + $0xf0] sm:$0xff] }
  0x46   :  { %531 = vmatpush.msrb.mxu0 %v303_v50  ;;  %554 = vmatpush.msrb.mxu1 %v351_v51  ;;  %v163_v49 = vld [vmem:[#allocation2 + $0x270] sm:$0xff]  ;;  %v358_v51 = vld [vmem:[#allocation2 + $0x880] sm:$0xff] }
  0x47   :  { %597 = vmatpush.msra.mxu3 %v265_v52  ;;  %620 = vmatpush.msra.mxu2 %v313_v53  ;;  %v211_v50 = vld [vmem:[#allocation2 + $0x3f0] sm:$0xff]  ;;  %v112_v52 = vld [vmem:[#allocation2 + $0xd8] sm:$0xff] }
  0x48   :  { %532 = vmatpush.msrb.mxu0 %v300_v54  ;;  %555 = vmatpush.msrb.mxu1 %v348_v55  ;;  %v160_v53 = vld [vmem:[#allocation2 + $0x258] sm:$0xff]  ;;  %v355_v55 = vld [vmem:[#allocation2 + $0x868] sm:$0xff] }
  0x49   :  { %598 = vmatpush.msra.mxu3 %v262_v56  ;;  %621 = vmatpush.msra.mxu2 %v310_v57  ;;  %v208_v54 = vld [vmem:[#allocation2 + $0x3d8] sm:$0xff]  ;;  %v109_v56 = vld [vmem:[#allocation2 + $0xc0] sm:$0xff] }
  0x4a   :  { %533 = vmatpush.msrb.mxu0 %v297_v58  ;;  %556 = vmatpush.msrb.mxu1 %v345_v59  ;;  %v157_v57 = vld [vmem:[#allocation2 + $0x240] sm:$0xff]  ;;  %v352_v59 = vld [vmem:[#allocation2 + $0x850] sm:$0xff] }
  0x4b   :  { %599 = vmatpush.msra.mxu3 %v259_v60  ;;  %622 = vmatpush.msra.mxu2 %v307_v61  ;;  %v205_v58 = vld [vmem:[#allocation2 + $0x3c0] sm:$0xff]  ;;  %v106_v60 = vld [vmem:[#allocation2 + $0xa8] sm:$0xff] }
  0x4c   :  { %470 = vmatmul.f32.gmra.mxu2 %v5632_v62  ;;  %534 = vmatpush.msrb.mxu0 %v294_v63  ;;  %v154_v61 = vld [vmem:[#allocation2 + $0x228] sm:$0xff] }
  0x4d   :  { %557 = vmatpush.msrb.mxu1 %v342_v0  ;;  %4440 = vmatmul.msk.f32.gmra.mxu3 %vm398_vm0, %v5637_v1  ;;  %v202_v63 = vld [vmem:[#allocation2 + $0x3a8] sm:$0xff]  ;;  %v349_v0 = vld [vmem:[#allocation2 + $0x838] sm:$0xff] }
  0x4e   :  { %600 = vmatpush.msra.mxu3 %v256_v2  ;;  %623 = vmatpush.msra.mxu2 %v304_v3  ;;  %v103_v2 = vld [vmem:[#allocation2 + $0x90] sm:$0xff] }
  0x4f   :  { %447 = vmatmul.f32.gmra.mxu1 %v5643_v4  ;;  %535 = vmatpush.msrb.mxu0 %v291_v5  ;;  %v151_v3 = vld [vmem:[#allocation2 + $0x210] sm:$0xff] }
  0x50   :  { %558 = vmatpush.msrb.mxu1 %v339_v6  ;;  %601 = vmatpush.msra.mxu3 %v253_v7  ;;  %v199_v5 = vld [vmem:[#allocation2 + $0x390] sm:$0xff]  ;;  %v346_v6 = vld [vmem:[#allocation2 + $0x820] sm:$0xff]  ;;  %v100_v7 = vld [vmem:[#allocation2 + $0x78] sm:$0xff] }
  0x51   :  { %624 = vmatpush.msra.mxu2 %v301_v8  ;;  %635 = vmatpush.msra.mxu0 %v385_v9  ;;  %v148_v8 = vld [vmem:[#allocation2 + $0x1f8] sm:$0xff] }
  0x52   :  { %670 = vmatpush.msra.mxu1 %v397_v10  ;;  %424 = vmatmul.f32.gmra.mxu0 %v5651_v11  ;;  %v196_v9 = vld [vmem:[#allocation2 + $0x378] sm:$0xff]  ;;  %v343_v10 = vld [vmem:[#allocation2 + $0x808] sm:$0xff] }
  0x53   :  { %602 = vmatpush.msra.mxu3 %v250_v13  ;;  %625 = vmatpush.msra.mxu2 %v298_v14  ;;  %v145_v13 = vld [vmem:[#allocation2 + $0x1e0] sm:$0xff] }
  0x54   :  { %636 = vmatpush.msra.mxu0 %v382_v15  ;;  %671 = vmatpush.msra.mxu1 %v394_v16  ;;  %v193_v14 = vld [vmem:[#allocation2 + $0x360] sm:$0xff]  ;;  %v340_v15 = vld [vmem:[#allocation2 + $0x7f0] sm:$0xff]  ;;  %v94_v16 = vld [vmem:[#allocation2 + $0x48] sm:$0xff] }
  0x55   :  { %603 = vmatpush.msra.mxu3 %v247_v18  ;;  %626 = vmatpush.msra.mxu2 %v295_v19  ;;  %v142_v18 = vld [vmem:[#allocation2 + $0x1c8] sm:$0xff] }
  0x56   :  { %637 = vmatpush.msra.mxu0 %v379_v20  ;;  %672 = vmatpush.msra.mxu1 %v391_v21  ;;  %v190_v19 = vld [vmem:[#allocation2 + $0x348] sm:$0xff]  ;;  %v139_v21 = vld [vmem:[#allocation2 + $0x1b0] sm:$0xff] }
  0x57   :  { %513 = vmatmul.f32.vlgmr.msrb.gmra.mxu3 %v5620_v22  ;;  %627 = vmatpush.msra.mxu2 %v292_v24  ;;  %v238_v20 = vld [vmem:[#allocation2 + $0x4c8] sm:$0xff]  ;;  %v187_v24 = vld [vmem:[#allocation2 + $0x330] sm:$0xff] }
  0x58   :  { %604 = vmatpush.msra.mxu3 %v244_v25  ;;  %638 = vmatpush.msra.mxu0 %v376_v26  ;;  %v235_v25 = vld [vmem:[#allocation2 + $0x4b0] sm:$0xff]  ;;  %v88_v26 = vld [vmem:[#allocation2 + $0x18] sm:$0xff] }
  0x59   :  { %673 = vmatpush.msra.mxu1 %v388_v27  ;;  %4441 = vmatmul.msk.f32.vlgmr.msrb.gmra.mxu2 %vm398_vm0, %v5612_v17  ;;  %v136_v27 = vld [vmem:[#allocation2 + $0x198] sm:$0xff] }
  0x5a   :  { %559 = vmatmul.f32.vlgmr.msrb.gmra.mxu1 %v5607_v12  ;;  %687 = vmatpush.msrb.mxu3 %v130_v28  ;;  %v232_v28 = vld [vmem:[#allocation2 + $0x498] sm:$0xff] }
  0x5b   :  { %710 = vmatpush.msrb.mxu1 %v178_v29  ;;  %733 = vmatpush.msrb.mxu2 %v226_v30  ;;  %v133_v29 = vld [vmem:[#allocation2 + $0x180] sm:$0xff] }
  0x5c   :  { %639 = vmatpush.msra.mxu0 %v373_v31  ;;  %688 = vmatpush.msrb.mxu3 %v127_v32  ;;  %v181_v30 = vld [vmem:[#allocation2 + $0x300] sm:$0xff] }
  0x5d   :  { %711 = vmatpush.msrb.mxu1 %v175_v33  ;;  %734 = vmatpush.msrb.mxu2 %v223_v34  ;;  %v229_v31 = vld [vmem:[#allocation2 + $0x480] sm:$0xff]  ;;  %v131_v33 = vld [vmem:[#allocation2 + $0x170] sm:$0xff] }
  0x5e   :  { %640 = vmatpush.msra.mxu0 %v370_v35  ;;  %689 = vmatpush.msrb.mxu3 %v124_v36  ;;  %v5674_v32 = vld [vmem:[%s7078_s0] sm:$0xff]  ;;  %v179_v34 = vld [vmem:[#allocation2 + $0x2f0] sm:$0xff]  ;;  %v128_v35 = vld [vmem:[#allocation2 + $0x158] sm:$0xff] }
  0x5f   :  { %712 = vmatpush.msrb.mxu1 %v172_v37  ;;  %735 = vmatpush.msrb.mxu2 %v220_v38  ;;  %v176_v36 = vld [vmem:[#allocation2 + $0x2d8] sm:$0xff] }
  0x60   :  { %641 = vmatpush.msra.mxu0 %v367_v39  ;;  %690 = vmatpush.msrb.mxu3 %v121_v40  ;;  %v224_v37 = vld [vmem:[#allocation2 + $0x458] sm:$0xff]  ;;  %v5682_v39 = vld [vmem:[%s7078_s0 + $0x10] sm:$0xff]  ;;  %v125_v40 = vld [vmem:[#allocation2 + $0x140] sm:$0xff] }
  0x61   :  { %536 = vmatmul.f32.vlgmr.msrb.gmra.mxu0 %v5625_v23  ;;  %713 = vmatpush.msrb.mxu1 %v169_v41  ;;  %v236_v38 = vld [vmem:[#allocation2 + $0x4b8] sm:$0xff]  ;;  %v173_v41 = vld [vmem:[#allocation2 + $0x2c0] sm:$0xff] }
  0x62   :  { %736 = vmatpush.msrb.mxu2 %v217_v42  ;;  %516 = vmatmul.f32.gmra.mxu3 %v5651_v11  ;;  %v233_v42 = vld [vmem:[#allocation2 + $0x4a0] sm:$0xff] }
  0x63   :  { %642 = vmatpush.msra.mxu0 %v364_v43  ;;  %691 = vmatpush.msrb.mxu3 %v118_v44  ;;  %v122_v43 = vld [vmem:[#allocation2 + $0x128] sm:$0xff] }
  0x64   :  { %714 = vmatpush.msrb.mxu1 %v166_v45  ;;  %737 = vmatpush.msrb.mxu2 %v214_v46  ;;  %v170_v44 = vld [vmem:[#allocation2 + $0x2a8] sm:$0xff] }
  0x65   :  { %643 = vmatpush.msra.mxu0 %v361_v47  ;;  %692 = vmatpush.msrb.mxu3 %v115_v48  ;;  %v218_v45 = vld [vmem:[#allocation2 + $0x428] sm:$0xff]  ;;  %v132_v47 = vld [vmem:[#allocation2 + $0x178] sm:$0xff]  ;;  %v5689_v48 = vld [vmem:[%s7078_s0 + $0x20] sm:$0x3] }
  0x66   :  { %715 = vmatpush.msrb.mxu1 %v163_v49  ;;  %738 = vmatpush.msrb.mxu2 %v211_v50  ;;  %v230_v46 = vld [vmem:[#allocation2 + $0x488] sm:$0xff]  ;;  %v119_v49 = vld [vmem:[#allocation2 + $0x110] sm:$0xff] }
  0x67   :  { %4442 = vmatmul.msk.f32.gmra.mxu2 %vm398_vm0, %v5637_v1  ;;  %644 = vmatpush.msra.mxu0 %v358_v51  ;;  %v167_v50 = vld [vmem:[#allocation2 + $0x290] sm:$0xff] }
  0x68   :  { %693 = vmatpush.msrb.mxu3 %v112_v52  ;;  %716 = vmatpush.msrb.mxu1 %v160_v53  ;;  %v215_v51 = vld [vmem:[#allocation2 + $0x410] sm:$0xff]  ;;  %v129_v52 = vld [vmem:[#allocation2 + $0x160] sm:$0xff]  ;;  %v116_v53 = vld [vmem:[#allocation2 + $0xf8] sm:$0xff] }
  0x69   :  { %739 = vmatpush.msrb.mxu2 %v208_v54  ;;  %645 = vmatpush.msra.mxu0 %v355_v55  ;;  %v164_v54 = vld [vmem:[#allocation2 + $0x278] sm:$0xff] }
  0x6a   :  { %694 = vmatpush.msrb.mxu3 %v109_v56  ;;  %717 = vmatpush.msrb.mxu1 %v157_v57  ;;  %v212_v55 = vld [vmem:[#allocation2 + $0x3f8] sm:$0xff]  ;;  %v126_v56 = vld [vmem:[#allocation2 + $0x148] sm:$0xff] }
  0x6b   :  { %740 = vmatpush.msrb.mxu2 %v205_v58  ;;  %562 = vmatmul.f32.gmra.mxu1 %v5632_v62  ;;  %v5701_v57 = vld [vmem:[%s7078_s0 + $0x18] sm:$0xff]  ;;  %v5706_v58 = vld [vmem:[%s7078_s0 + $0x30] sm:$0x3] }
  0x6c   :  { %605 = vmatmul.f32.vlgmr.msra.gmra.mxu3 %v5620_v22  ;;  %646 = vmatpush.msra.mxu0 %v352_v59  ;;  %v97_v22 = vld [vmem:[#allocation2 + $0x60] sm:$0xff] }
  0x6d   :  { %695 = vmatpush.msrb.mxu3 %v106_v60  ;;  %718 = vmatpush.msrb.mxu1 %v154_v61  ;;  %v113_v59 = vld [vmem:[#allocation2 + $0xe0] sm:$0xff] }
  0x6e   :  { %741 = vmatpush.msrb.mxu2 %v202_v63  ;;  %647 = vmatpush.msra.mxu0 %v349_v0  ;;  %v161_v60 = vld [vmem:[#allocation2 + $0x260] sm:$0xff]  ;;  %v123_v63 = vld [vmem:[#allocation2 + $0x130] sm:$0xff]  ;;  %v110_v0 = vld [vmem:[#allocation2 + $0xc8] sm:$0xff] }
  0x6f   :  { %696 = vmatpush.msrb.mxu3 %v103_v2  ;;  %719 = vmatpush.msrb.mxu1 %v151_v3  ;;  %v209_v61 = vld [vmem:[#allocation2 + $0x3e0] sm:$0xff]  ;;  %v158_v2 = vld [vmem:[#allocation2 + $0x248] sm:$0xff] }
  0x70   :  { %742 = vmatpush.msrb.mxu2 %v199_v5  ;;  %539 = vmatmul.f32.gmra.mxu0 %v5643_v4  ;;  %v206_v3 = vld [vmem:[#allocation2 + $0x3c8] sm:$0xff]  ;;  %v120_v5 = vld [vmem:[#allocation2 + $0x118] sm:$0xff] }
  0x71   :  { %628 = vmatmul.f32.vlgmr.msra.gmra.mxu2 %v5625_v23  ;;  %648 = vmatpush.msra.mxu0 %v346_v6  ;;  %v91_v23 = vld [vmem:[#allocation2 + $0x30] sm:$0xff]  ;;  %v5714_v6 = vld [vmem:[%s7078_s0 + $0x28] sm:$0x3] }
  0x72   :  { %697 = vmatpush.msrb.mxu3 %v100_v7  ;;  %720 = vmatpush.msrb.mxu1 %v148_v8  ;;  %v107_v7 = vld [vmem:[#allocation2 + $0xb0] sm:$0xff] }
  0x73   :  { %743 = vmatpush.msrb.mxu2 %v196_v9  ;;  %649 = vmatpush.msra.mxu0 %v343_v10  ;;  %v155_v8 = vld [vmem:[#allocation2 + $0x230] sm:$0xff]  ;;  %v117_v10 = vld [vmem:[#allocation2 + $0x100] sm:$0xff] }
  0x74   :  { %698 = vmatpush.msrb.mxu3 %v97_v22  ;;  %721 = vmatpush.msrb.mxu1 %v145_v13  ;;  %v203_v9 = vld [vmem:[#allocation2 + $0x3b0] sm:$0xff]  ;;  %v104_v22 = vld [vmem:[#allocation2 + $0x98] sm:$0xff] }
  0x75   :  { %744 = vmatpush.msrb.mxu2 %v193_v14  ;;  %608 = vmatmul.f32.gmra.mxu3 %v5651_v11  ;;  %v184_v11 = vld [vmem:[#allocation2 + $0x318] sm:$0xff] }
  0x76   :  { %650 = vmatpush.msra.mxu0 %v340_v15  ;;  %4443 = vmatmul.msk.f32.vlgmr.msra.gmra.mxu1 %vm398_vm0, %v5612_v17  ;;  %v85_v17 = vld [vmem:[#allocation2] sm:$0xff]  ;;  %v152_v13 = vld [vmem:[#allocation2 + $0x218] sm:$0xff]  ;;  %v114_v15 = vld [vmem:[#allocation2 + $0xe8] sm:$0xff] }
  0x77   :  { %699 = vmatpush.msrb.mxu3 %v94_v16  ;;  %722 = vmatpush.msrb.mxu1 %v142_v18  ;;  %v200_v14 = vld [vmem:[#allocation2 + $0x398] sm:$0xff]  ;;  %v101_v18 = vld [vmem:[#allocation2 + $0x80] sm:$0xff] }
  0x78   :  { %745 = vmatpush.msrb.mxu2 %v190_v19  ;;  %768 = vmatpush.msrb.mxu0 %v238_v20  ;;  %v5720_v16 = vld [vmem:[%s7078_s0 + $0x38] sm:$0x3]  ;;  %v149_v19 = vld [vmem:[#allocation2 + $0x200] sm:$0xff] }
  0x79   :  { %700 = vmatpush.msrb.mxu3 %v91_v23  ;;  %723 = vmatpush.msrb.mxu1 %v139_v21  ;;  %v197_v20 = vld [vmem:[#allocation2 + $0x380] sm:$0xff]  ;;  %v111_v23 = vld [vmem:[#allocation2 + $0xd0] sm:$0xff]  ;;  %v98_v21 = vld [vmem:[#allocation2 + $0x68] sm:$0xff] }
  0x7a   :  { %746 = vmatpush.msrb.mxu2 %v187_v24  ;;  %769 = vmatpush.msrb.mxu0 %v235_v25  ;;  %v146_v24 = vld [vmem:[#allocation2 + $0x1e8] sm:$0xff] }
  0x7b   :  { %631 = vmatmul.f32.gmra.mxu2 %v5643_v4  ;;  %651 = vmatmul.f32.vlgmr.msra.gmra.mxu0 %v5607_v12  ;;  %v227_v12 = vld [vmem:[#allocation2 + $0x470] sm:$0xff]  ;;  %v194_v25 = vld [vmem:[#allocation2 + $0x368] sm:$0xff] }
  0x7c   :  { %701 = vmatpush.msrb.mxu3 %v88_v26  ;;  %724 = vmatpush.msrb.mxu1 %v136_v27  ;;  %v239_v4 = vld [vmem:[#allocation2 + $0x4d0] sm:$0xff]  ;;  %v108_v27 = vld [vmem:[#allocation2 + $0xb8] sm:$0xff] }
  0x7d   :  { %747 = vmatpush.msrb.mxu2 %v184_v11  ;;  %770 = vmatpush.msrb.mxu0 %v232_v28  ;;  %v95_v26 = vld [vmem:[#allocation2 + $0x50] sm:$0xff] }
  0x7e   :  { %702 = vmatpush.msrb.mxu3 %v85_v17  ;;  %725 = vmatpush.msrb.mxu1 %v133_v29  ;;  %v143_v11 = vld [vmem:[#allocation2 + $0x1d0] sm:$0xff]  ;;  %v92_v17 = vld [vmem:[#allocation2 + $0x38] sm:$0xff]  ;;  %v105_v29 = vld [vmem:[#allocation2 + $0xa0] sm:$0xff] }
  0x7f   :  { %748 = vmatpush.msrb.mxu2 %v181_v30  ;;  %771 = vmatpush.msrb.mxu0 %v229_v31  ;;  %v191_v28 = vld [vmem:[#allocation2 + $0x350] sm:$0xff]  ;;  %v140_v30 = vld [vmem:[#allocation2 + $0x1b8] sm:$0xff] }
  0x80   :  { %4444 = vmatmul.msk.f32.gmra.mxu1 %vm398_vm0, %v5637_v1  ;;  %703 = vmatmul.f32.vlgmr.msrb.gmra.mxu3 %v5674_v32  ;;  %v221_v1 = vld [vmem:[#allocation2 + $0x440] sm:$0xff]  ;;  %v188_v31 = vld [vmem:[#allocation2 + $0x338] sm:$0xff] }
  0x81   :  { %779 = vmatpush.msra.mxu3 %v131_v33  ;;  %802 = vmatpush.msra.mxu0 %v179_v34  ;;  %v89_v33 = vld [vmem:[#allocation2 + $0x20] sm:$0xff]  ;;  %v102_v34 = vld [vmem:[#allocation2 + $0x88] sm:$0xff] }
  0x82   :  { %825 = vmatpush.msra.mxu1 %v227_v12  ;;  %860 = vmatpush.msra.mxu2 %v239_v4  ;;  %v137_v12 = vld [vmem:[#allocation2 + $0x1a0] sm:$0xff] }
  0x83   :  { %780 = vmatpush.msra.mxu3 %v128_v35  ;;  %803 = vmatpush.msra.mxu0 %v176_v36  ;;  %v185_v4 = vld [vmem:[#allocation2 + $0x320] sm:$0xff]  ;;  %v86_v35 = vld [vmem:[#allocation2 + $0x8] sm:$0xff]  ;;  %v99_v36 = vld [vmem:[#allocation2 + $0x70] sm:$0xff] }
  0x84   :  { %826 = vmatpush.msra.mxu1 %v224_v37  ;;  %861 = vmatpush.msra.mxu2 %v236_v38  ;;  %v134_v37 = vld [vmem:[#allocation2 + $0x188] sm:$0xff] }
  0x85   :  { %654 = vmatmul.f32.gmra.mxu0 %v5632_v62  ;;  %749 = vmatmul.f32.vlgmr.msrb.gmra.mxu2 %v5682_v39  ;;  %v5694_v62 = vld [vmem:[%s7078_s0 + $0x8] sm:$0xff] }
  0x86   :  { %781 = vmatpush.msra.mxu3 %v125_v40  ;;  %804 = vmatpush.msra.mxu0 %v173_v41  ;;  %v182_v38 = vld [vmem:[#allocation2 + $0x308] sm:$0xff]  ;;  %v96_v40 = vld [vmem:[#allocation2 + $0x58] sm:$0xff] }
  0x87   :  { %827 = vmatpush.msra.mxu1 %v221_v1  ;;  %862 = vmatpush.msra.mxu2 %v233_v42  ;;  %v180_v41 = vld [vmem:[#allocation2 + $0x2f8] sm:$0xff] }
  0x88   :  { %782 = vmatpush.msra.mxu3 %v122_v43  ;;  %805 = vmatpush.msra.mxu0 %v170_v44  ;;  %v228_v1 = vld [vmem:[#allocation2 + $0x478] sm:$0xff]  ;;  %v93_v43 = vld [vmem:[#allocation2 + $0x40] sm:$0xff] }
  0x89   :  { %828 = vmatpush.msra.mxu1 %v218_v45  ;;  %863 = vmatpush.msra.mxu2 %v230_v46  ;;  %v240_v42 = vld [vmem:[#allocation2 + $0x4d8] sm:$0xff]  ;;  %v177_v44 = vld [vmem:[#allocation2 + $0x2e0] sm:$0xff] }
  0x8a   :  { %706 = vmatmul.f32.gmra.mxu3 %v5689_v48  ;;  %726 = vmatmul.f32.vlgmr.msrb.gmra.mxu1 %v5694_v62  ;;  %v225_v45 = vld [vmem:[#allocation2 + $0x460] sm:$0xff] }
  0x8b   :  { %871 = vmatpush.msrb.mxu2 %v132_v47  ;;  %783 = vmatpush.msra.mxu3 %v119_v49  ;;  %v237_v46 = vld [vmem:[#allocation2 + $0x4c0] sm:$0xff]  ;;  %v90_v47 = vld [vmem:[#allocation2 + $0x28] sm:$0xff] }
  0x8c   :  { %806 = vmatpush.msra.mxu0 %v167_v50  ;;  %829 = vmatpush.msra.mxu1 %v215_v51  ;;  %v174_v49 = vld [vmem:[#allocation2 + $0x2c8] sm:$0xff] }
  0x8d   :  { %872 = vmatpush.msrb.mxu2 %v129_v52  ;;  %784 = vmatpush.msra.mxu3 %v116_v53  ;;  %v222_v50 = vld [vmem:[#allocation2 + $0x448] sm:$0xff]  ;;  %v87_v52 = vld [vmem:[#allocation2 + $0x10] sm:$0xff] }
  0x8e   :  { %807 = vmatpush.msra.mxu0 %v164_v54  ;;  %830 = vmatpush.msra.mxu1 %v212_v55  ;;  %v234_v51 = vld [vmem:[#allocation2 + $0x4a8] sm:$0xff]  ;;  %v171_v53 = vld [vmem:[#allocation2 + $0x2b0] sm:$0xff] }
  0x8f   :  { %873 = vmatpush.msrb.mxu2 %v126_v56  ;;  %4445 = vmatmul.msk.f32.vlgmr.msrb.gmra.mxu0 %vm398_vm0, %v5701_v57  ;;  %v219_v54 = vld [vmem:[#allocation2 + $0x430] sm:$0xff]  ;;  %v1057_v56 = vld [vmem:[#allocation2 + $0xca8] sm:$0xff] }
  0x90   :  { %752 = vmatmul.f32.gmra.mxu2 %v5706_v58  ;;  %785 = vmatpush.msra.mxu3 %v113_v59  ;;  %v231_v55 = vld [vmem:[#allocation2 + $0x490] sm:$0xff]  ;;  %v1009_v59 = vld [vmem:[#allocation2 + $0xb28] sm:$0xff] }
  0x91   :  { %808 = vmatpush.msra.mxu0 %v161_v60  ;;  %831 = vmatpush.msra.mxu1 %v209_v61  ;;  %v168_v60 = vld [vmem:[#allocation2 + $0x298] sm:$0xff] }
  0x92   :  { %874 = vmatpush.msrb.mxu2 %v123_v63  ;;  %786 = vmatpush.msra.mxu3 %v110_v0  ;;  %v216_v61 = vld [vmem:[#allocation2 + $0x418] sm:$0xff]  ;;  %v1006_v63 = vld [vmem:[#allocation2 + $0xb10] sm:$0xff] }
  0x93   :  { %809 = vmatpush.msra.mxu0 %v158_v2  ;;  %832 = vmatpush.msra.mxu1 %v206_v3  ;;  %v1054_v0 = vld [vmem:[#allocation2 + $0xc90] sm:$0xff]  ;;  %v165_v2 = vld [vmem:[#allocation2 + $0x280] sm:$0xff] }
  0x94   :  { %875 = vmatpush.msrb.mxu2 %v120_v5  ;;  %729 = vmatmul.f32.gmra.mxu1 %v5714_v6  ;;  %v213_v3 = vld [vmem:[#allocation2 + $0x400] sm:$0xff]  ;;  %v1003_v5 = vld [vmem:[#allocation2 + $0xaf8] sm:$0xff] }
  0x95   :  { %787 = vmatpush.msra.mxu3 %v107_v7  ;;  %810 = vmatpush.msra.mxu0 %v155_v8  ;;  %v1051_v7 = vld [vmem:[#allocation2 + $0xc78] sm:$0xff]  ;;  %v210_v8 = vld [vmem:[#allocation2 + $0x3e8] sm:$0xff] }
  0x96   :  { %833 = vmatpush.msra.mxu1 %v203_v9  ;;  %876 = vmatpush.msrb.mxu2 %v117_v10  ;;  %v1000_v9 = vld [vmem:[#allocation2 + $0xae0] sm:$0xff] }
  0x97   :  { %788 = vmatpush.msra.mxu3 %v104_v22  ;;  %811 = vmatpush.msra.mxu0 %v152_v13  ;;  %v1048_v10 = vld [vmem:[#allocation2 + $0xc60] sm:$0xff]  ;;  %v159_v22 = vld [vmem:[#allocation2 + $0x250] sm:$0xff] }
  0x98   :  { %834 = vmatpush.msra.mxu1 %v200_v14  ;;  %877 = vmatpush.msrb.mxu2 %v114_v15  ;;  %v207_v13 = vld [vmem:[#allocation2 + $0x3d0] sm:$0xff]  ;;  %v997_v14 = vld [vmem:[#allocation2 + $0xac8] sm:$0xff] }
  0x99   :  { %4446 = vmatmul.msk.f32.gmra.mxu0 %vm398_vm0, %v5720_v16  ;;  %789 = vmatpush.msra.mxu3 %v101_v18  ;;  %v1045_v15 = vld [vmem:[#allocation2 + $0xc48] sm:$0xff]  ;;  %v156_v18 = vld [vmem:[#allocation2 + $0x238] sm:$0xff] }
  0x9a   :  { %812 = vmatpush.msra.mxu0 %v149_v19  ;;  %835 = vmatpush.msra.mxu1 %v197_v20  ;;  %v204_v19 = vld [vmem:[#allocation2 + $0x3b8] sm:$0xff]  ;;  %v994_v20 = vld [vmem:[#allocation2 + $0xab0] sm:$0xff] }
  0x9b   :  { %878 = vmatpush.msrb.mxu2 %v111_v23  ;;  %790 = vmatpush.msra.mxu3 %v98_v21  ;;  %v1042_v23 = vld [vmem:[#allocation2 + $0xc30] sm:$0xff]  ;;  %v153_v21 = vld [vmem:[#allocation2 + $0x220] sm:$0xff] }
  0x9c   :  { %813 = vmatpush.msra.mxu0 %v146_v24  ;;  %836 = vmatpush.msra.mxu1 %v194_v25  ;;  %v201_v24 = vld [vmem:[#allocation2 + $0x3a0] sm:$0xff]  ;;  %v991_v25 = vld [vmem:[#allocation2 + $0xa98] sm:$0xff] }
  0x9d   :  { %4447 = vmatmul.msk.f32.vlgmr.msra.gmra.mxu2 %vm398_vm0, %v5701_v57  ;;  %791 = vmatpush.msra.mxu3 %v95_v26  ;;  %v1039_v26 = vld [vmem:[#allocation2 + $0xc18] sm:$0xff] }
  0x9e   :  { %879 = vmatpush.msrb.mxu2 %v108_v27  ;;  %814 = vmatpush.msra.mxu0 %v143_v11  ;;  %v150_v27 = vld [vmem:[#allocation2 + $0x208] sm:$0xff] }
  0x9f   :  { %837 = vmatpush.msra.mxu1 %v191_v28  ;;  %792 = vmatpush.msra.mxu3 %v92_v17  ;;  %v198_v11 = vld [vmem:[#allocation2 + $0x388] sm:$0xff]  ;;  %v1036_v28 = vld [vmem:[#allocation2 + $0xc00] sm:$0xff]  ;;  %v147_v17 = vld [vmem:[#allocation2 + $0x1f0] sm:$0xff] }
  0xa0   :  { %880 = vmatpush.msrb.mxu2 %v105_v29  ;;  %815 = vmatpush.msra.mxu0 %v140_v30  ;;  %v195_v29 = vld [vmem:[#allocation2 + $0x370] sm:$0xff]  ;;  %v985_v30 = vld [vmem:[#allocation2 + $0xa68] sm:$0xff] }
  0xa1   :  { %838 = vmatpush.msra.mxu1 %v188_v31  ;;  %793 = vmatpush.msra.mxu3 %v89_v33  ;;  %v1033_v31 = vld [vmem:[#allocation2 + $0xbe8] sm:$0xff]  ;;  %v144_v33 = vld [vmem:[#allocation2 + $0x1d8] sm:$0xff] }
  0xa2   :  { %881 = vmatpush.msrb.mxu2 %v102_v34  ;;  %816 = vmatpush.msra.mxu0 %v137_v12  ;;  %v192_v34 = vld [vmem:[#allocation2 + $0x358] sm:$0xff]  ;;  %v982_v12 = vld [vmem:[#allocation2 + $0xa50] sm:$0xff] }
  0xa3   :  { %839 = vmatpush.msra.mxu1 %v185_v4  ;;  %794 = vmatpush.msra.mxu3 %v86_v35  ;;  %v1030_v4 = vld [vmem:[#allocation2 + $0xbd0] sm:$0xff]  ;;  %v141_v35 = vld [vmem:[#allocation2 + $0x1c0] sm:$0xff] }
  0xa4   :  { %882 = vmatpush.msrb.mxu2 %v99_v36  ;;  %817 = vmatpush.msra.mxu0 %v134_v37  ;;  %v189_v36 = vld [vmem:[#allocation2 + $0x340] sm:$0xff]  ;;  %v979_v37 = vld [vmem:[#allocation2 + $0xa38] sm:$0xff] }
  0xa5   :  { %840 = vmatpush.msra.mxu1 %v182_v38  ;;  %4448 = vmatmul.msk.f32.gmra.mxu2 %vm398_vm0, %v5720_v16  ;;  %v1027_v38 = vld [vmem:[#allocation2 + $0xbb8] sm:$0xff] }
  0xa6   :  { %795 = vmatmul.f32.vlgmr.msra.gmra.mxu3 %v5674_v32  ;;  %883 = vmatpush.msrb.mxu2 %v96_v40  ;;  %v138_v40 = vld [vmem:[#allocation2 + $0x1a8] sm:$0xff] }
  0xa7   :  { %894 = vmatpush.msrb.mxu3 %v180_v41  ;;  %917 = vmatpush.msrb.mxu0 %v228_v1  ;;  %v186_v41 = vld [vmem:[#allocation2 + $0x328] sm:$0xff]  ;;  %v976_v1 = vld [vmem:[#allocation2 + $0xa20] sm:$0xff] }
  0xa8   :  { %952 = vmatpush.msrb.mxu1 %v240_v42  ;;  %884 = vmatpush.msrb.mxu2 %v93_v43  ;;  %v1024_v42 = vld [vmem:[#allocation2 + $0xba0] sm:$0xff]  ;;  %v135_v43 = vld [vmem:[#allocation2 + $0x190] sm:$0xff] }
  0xa9   :  { %895 = vmatpush.msrb.mxu3 %v177_v44  ;;  %918 = vmatpush.msrb.mxu0 %v225_v45  ;;  %v183_v44 = vld [vmem:[#allocation2 + $0x310] sm:$0xff]  ;;  %v973_v45 = vld [vmem:[#allocation2 + $0xa08] sm:$0xff] }
  0xaa   :  { %953 = vmatpush.msrb.mxu1 %v237_v46  ;;  %885 = vmatpush.msrb.mxu2 %v90_v47  ;;  %v1021_v46 = vld [vmem:[#allocation2 + $0xb88] sm:$0xff] }
  0xab   :  { %896 = vmatpush.msrb.mxu3 %v174_v49  ;;  %919 = vmatpush.msrb.mxu0 %v222_v50  ;;  %v1105_v47 = vld [vmem:[#allocation2 + $0xe28] sm:$0xff]  ;;  %v970_v50 = vld [vmem:[#allocation2 + $0x9f0] sm:$0xff] }
  0xac   :  { %954 = vmatpush.msrb.mxu1 %v234_v51  ;;  %886 = vmatpush.msrb.mxu2 %v87_v52  ;;  %v1117_v49 = vld [vmem:[#allocation2 + $0xe88] sm:$0xff]  ;;  %v1018_v51 = vld [vmem:[#allocation2 + $0xb70] sm:$0xff] }
  0xad   :  { %897 = vmatpush.msrb.mxu3 %v171_v53  ;;  %920 = vmatpush.msrb.mxu0 %v219_v54  ;;  %v1102_v52 = vld [vmem:[#allocation2 + $0xe10] sm:$0xff]  ;;  %v967_v54 = vld [vmem:[#allocation2 + $0x9d8] sm:$0xff] }
  0xae   :  { %955 = vmatpush.msrb.mxu1 %v231_v55  ;;  %887 = vmatmul.f32.vlgmr.msrb.gmra.mxu2 %v5674_v32  ;;  %v162_v32 = vld [vmem:[#allocation2 + $0x268] sm:$0xff]  ;;  %v1114_v53 = vld [vmem:[#allocation2 + $0xe70] sm:$0xff]  ;;  %v1015_v55 = vld [vmem:[#allocation2 + $0xb58] sm:$0xff] }
  0xaf   :  { %841 = vmatmul.f32.vlgmr.msra.gmra.mxu1 %v5682_v39  ;;  %1149 = vmatpush.msra.mxu2 %v1057_v56  ;;  %v1099_v56 = vld [vmem:[#allocation2 + $0xdf8] sm:$0xff] }
  0xb0   :  { %1126 = vmatpush.msra.mxu1 %v1009_v59  ;;  %798 = vmatmul.f32.gmra.mxu3 %v5689_v48  ;;  %v1111_v59 = vld [vmem:[#allocation2 + $0xe58] sm:$0xff] }
  0xb1   :  { %818 = vmatmul.f32.vlgmr.msra.gmra.mxu0 %v5694_v62  ;;  %898 = vmatpush.msrb.mxu3 %v168_v60  ;;  %v964_v60 = vld [vmem:[#allocation2 + $0x9c0] sm:$0xff] }
  0xb2   :  { %921 = vmatpush.msrb.mxu0 %v216_v61  ;;  %1127 = vmatpush.msra.mxu1 %v1006_v63  ;;  %v1012_v61 = vld [vmem:[#allocation2 + $0xb40] sm:$0xff] }
  0xb3   :  { %1150 = vmatpush.msra.mxu2 %v1054_v0  ;;  %899 = vmatpush.msrb.mxu3 %v165_v2  ;;  %v1096_v63 = vld [vmem:[#allocation2 + $0xde0] sm:$0xff]  ;;  %v1058_v0 = vld [vmem:[#allocation2 + $0xcb0] sm:$0xff] }
  0xb4   :  { %922 = vmatpush.msrb.mxu0 %v213_v3  ;;  %1128 = vmatpush.msra.mxu1 %v1003_v5  ;;  %v1010_v2 = vld [vmem:[#allocation2 + $0xb30] sm:$0xff]  ;;  %v1055_v5 = vld [vmem:[#allocation2 + $0xc98] sm:$0xff] }
  0xb5   :  { %1151 = vmatpush.msra.mxu2 %v1051_v7  ;;  %900 = vmatpush.msrb.mxu3 %v162_v32  ;;  %v1106_v3 = vld [vmem:[#allocation2 + $0xe30] sm:$0xff]  ;;  %v1093_v7 = vld [vmem:[#allocation2 + $0xdc8] sm:$0xff]  ;;  %v1007_v32 = vld [vmem:[#allocation2 + $0xb18] sm:$0xff] }
  0xb6   :  { %923 = vmatpush.msrb.mxu0 %v210_v8  ;;  %1129 = vmatpush.msra.mxu1 %v1000_v9  ;;  %v1103_v8 = vld [vmem:[#allocation2 + $0xe18] sm:$0xff]  ;;  %v1052_v9 = vld [vmem:[#allocation2 + $0xc80] sm:$0xff] }
  0xb7   :  { %1152 = vmatpush.msra.mxu2 %v1048_v10  ;;  %901 = vmatpush.msrb.mxu3 %v159_v22  ;;  %v1090_v10 = vld [vmem:[#allocation2 + $0xdb0] sm:$0xff]  ;;  %v1004_v22 = vld [vmem:[#allocation2 + $0xb00] sm:$0xff] }
  0xb8   :  { %924 = vmatpush.msrb.mxu0 %v207_v13  ;;  %890 = vmatmul.f32.gmra.mxu2 %v5689_v48  ;;  %v988_v48 = vld [vmem:[#allocation2 + $0xa80] sm:$0xff] }
  0xb9   :  { %1130 = vmatpush.msra.mxu1 %v997_v14  ;;  %1153 = vmatpush.msra.mxu2 %v1045_v15  ;;  %v1100_v13 = vld [vmem:[#allocation2 + $0xe00] sm:$0xff]  ;;  %v1049_v14 = vld [vmem:[#allocation2 + $0xc68] sm:$0xff] }
  0xba   :  { %821 = vmatmul.f32.gmra.mxu0 %v5714_v6  ;;  %902 = vmatpush.msrb.mxu3 %v156_v18  ;;  %v1097_v15 = vld [vmem:[#allocation2 + $0xde8] sm:$0xff]  ;;  %v1046_v18 = vld [vmem:[#allocation2 + $0xc50] sm:$0xff] }
  0xbb   :  { %925 = vmatpush.msrb.mxu0 %v204_v19  ;;  %1131 = vmatpush.msra.mxu1 %v994_v20  ;;  %v1084_v19 = vld [vmem:[#allocation2 + $0xd80] sm:$0xff]  ;;  %v998_v20 = vld [vmem:[#allocation2 + $0xad0] sm:$0xff] }
  0xbc   :  { %1154 = vmatpush.msra.mxu2 %v1042_v23  ;;  %844 = vmatmul.f32.gmra.mxu1 %v5706_v58  ;;  %v1081_v23 = vld [vmem:[#allocation2 + $0xd68] sm:$0xff] }
  0xbd   :  { %903 = vmatpush.msrb.mxu3 %v153_v21  ;;  %926 = vmatpush.msrb.mxu0 %v201_v24  ;;  %v995_v21 = vld [vmem:[#allocation2 + $0xab8] sm:$0xff] }
  0xbe   :  { %1132 = vmatpush.msra.mxu1 %v991_v25  ;;  %1155 = vmatpush.msra.mxu2 %v1039_v26  ;;  %v1043_v24 = vld [vmem:[#allocation2 + $0xc38] sm:$0xff]  ;;  %v1078_v26 = vld [vmem:[#allocation2 + $0xd50] sm:$0xff] }
  0xbf   :  { %904 = vmatpush.msrb.mxu3 %v150_v27  ;;  %927 = vmatpush.msrb.mxu0 %v198_v11  ;;  %v1091_v25 = vld [vmem:[#allocation2 + $0xdb8] sm:$0xff]  ;;  %v992_v27 = vld [vmem:[#allocation2 + $0xaa0] sm:$0xff] }
  0xc0   :  { %1133 = vmatpush.msra.mxu1 %v988_v48  ;;  %1156 = vmatpush.msra.mxu2 %v1036_v28  ;;  %v1040_v11 = vld [vmem:[#allocation2 + $0xc20] sm:$0xff]  ;;  %v1075_v28 = vld [vmem:[#allocation2 + $0xd38] sm:$0xff] }
  0xc1   :  { %905 = vmatpush.msrb.mxu3 %v147_v17  ;;  %928 = vmatpush.msrb.mxu0 %v195_v29  ;;  %v1088_v48 = vld [vmem:[#allocation2 + $0xda0] sm:$0xff]  ;;  %v989_v17 = vld [vmem:[#allocation2 + $0xa88] sm:$0xff] }
  0xc2   :  { %1134 = vmatpush.msra.mxu1 %v985_v30  ;;  %1157 = vmatpush.msra.mxu2 %v1033_v31  ;;  %v1037_v29 = vld [vmem:[#allocation2 + $0xc08] sm:$0xff]  ;;  %v1072_v31 = vld [vmem:[#allocation2 + $0xd20] sm:$0xff] }
  0xc3   :  { %906 = vmatpush.msrb.mxu3 %v144_v33  ;;  %929 = vmatpush.msrb.mxu0 %v192_v34  ;;  %v1085_v30 = vld [vmem:[#allocation2 + $0xd88] sm:$0xff]  ;;  %v1034_v33 = vld [vmem:[#allocation2 + $0xbf0] sm:$0xff] }
  0xc4   :  { %1135 = vmatpush.msra.mxu1 %v982_v12  ;;  %1158 = vmatpush.msra.mxu2 %v1030_v4  ;;  %v1082_v34 = vld [vmem:[#allocation2 + $0xd70] sm:$0xff]  ;;  %v1069_v12 = vld [vmem:[#allocation2 + $0xd08] sm:$0xff]  ;;  %v983_v4 = vld [vmem:[#allocation2 + $0xa58] sm:$0xff] }
  0xc5   :  { %907 = vmatpush.msrb.mxu3 %v141_v35  ;;  %930 = vmatpush.msrb.mxu0 %v189_v36  ;;  %v1031_v35 = vld [vmem:[#allocation2 + $0xbd8] sm:$0xff]  ;;  %v1066_v36 = vld [vmem:[#allocation2 + $0xcf0] sm:$0xff] }
  0xc6   :  { %1136 = vmatpush.msra.mxu1 %v979_v37  ;;  %1159 = vmatpush.msra.mxu2 %v1027_v38  ;;  %v980_v37 = vld [vmem:[#allocation2 + $0xa40] sm:$0xff] }
  0xc7   :  { %908 = vmatpush.msrb.mxu3 %v138_v40  ;;  %931 = vmatpush.msrb.mxu0 %v186_v41  ;;  %v1028_v38 = vld [vmem:[#allocation2 + $0xbc0] sm:$0xff]  ;;  %v1063_v41 = vld [vmem:[#allocation2 + $0xcd8] sm:$0xff] }
  0xc8   :  { %1137 = vmatpush.msra.mxu1 %v976_v1  ;;  %1160 = vmatpush.msra.mxu2 %v1024_v42  ;;  %v1076_v40 = vld [vmem:[#allocation2 + $0xd40] sm:$0xff]  ;;  %v5747_v1 = vld [vmem:[%s7080_s2 + $0x8] sm:$0xff] }
  0xc9   :  { %909 = vmatpush.msrb.mxu3 %v135_v43  ;;  %932 = vmatpush.msrb.mxu0 %v183_v44  ;;  %v977_v42 = vld [vmem:[#allocation2 + $0xa28] sm:$0xff] }
  0xca   :  { %910 = vmatmul.f32.vlgmr.msrb.gmra.mxu3 %v5694_v62  ;;  %1138 = vmatpush.msra.mxu1 %v973_v45  ;;  %v1108_v62 = vld [vmem:[#allocation2 + $0xe40] sm:$0xff]  ;;  %v1025_v43 = vld [vmem:[#allocation2 + $0xba8] sm:$0xff] }
  0xcb   :  { %1161 = vmatpush.msra.mxu2 %v1021_v46  ;;  %1172 = vmatpush.msra.mxu3 %v1105_v47  ;;  %v1073_v44 = vld [vmem:[#allocation2 + $0xd28] sm:$0xff]  ;;  %v1060_v45 = vld [vmem:[#allocation2 + $0xcc0] sm:$0xff]  ;;  %v974_v46 = vld [vmem:[#allocation2 + $0xa10] sm:$0xff] }
  0xcc   :  { %1207 = vmatpush.msra.mxu0 %v1117_v49  ;;  %1139 = vmatpush.msra.mxu1 %v970_v50  ;;  %v5753_v47 = vld [vmem:[%s7080_s2 + $0x10] sm:$0xff] }
  0xcd   :  { %1162 = vmatpush.msra.mxu2 %v1018_v51  ;;  %1173 = vmatpush.msra.mxu3 %v1102_v52  ;;  %v1022_v49 = vld [vmem:[#allocation2 + $0xb90] sm:$0xff]  ;;  %v5758_v52 = vld [vmem:[%s7080_s2] sm:$0xff] }
  0xce   :  { %1208 = vmatpush.msra.mxu0 %v1114_v53  ;;  %1140 = vmatpush.msra.mxu1 %v967_v54  ;;  %v1070_v50 = vld [vmem:[#allocation2 + $0xd10] sm:$0xff]  ;;  %v5763_v53 = vld [vmem:[%s7080_s2 + $0x18] sm:$0xff] }
  0xcf   :  { %1163 = vmatpush.msra.mxu2 %v1015_v55  ;;  %1174 = vmatpush.msra.mxu3 %v1099_v56  ;;  %v1118_v51 = vld [vmem:[#allocation2 + $0xe90] sm:$0xff]  ;;  %v971_v54 = vld [vmem:[#allocation2 + $0x9f8] sm:$0xff] }
  0xd0   :  { %1209 = vmatpush.msra.mxu0 %v1111_v59  ;;  %1141 = vmatpush.msra.mxu1 %v964_v60  ;;  %v1019_v55 = vld [vmem:[#allocation2 + $0xb78] sm:$0xff]  ;;  %v968_v60 = vld [vmem:[#allocation2 + $0x9e0] sm:$0xff] }
  0xd1   :  { %1164 = vmatpush.msra.mxu2 %v1012_v61  ;;  %1175 = vmatpush.msra.mxu3 %v1096_v63  ;;  %v1067_v56 = vld [vmem:[#allocation2 + $0xcf8] sm:$0xff]  ;;  %v1016_v61 = vld [vmem:[#allocation2 + $0xb60] sm:$0xff] }
  0xd2   :  { %1210 = vmatpush.msra.mxu0 %v1108_v62  ;;  %4449 = vmatmul.msk.f32.vlgmr.msrb.gmra.mxu1 %vm398_vm0, %v5701_v57  ;;  %v1087_v57 = vld [vmem:[#allocation2 + $0xd98] sm:$0xff]  ;;  %v1064_v63 = vld [vmem:[#allocation2 + $0xce0] sm:$0xff] }
  0xd3   :  { %933 = vmatmul.f32.vlgmr.msrb.gmra.mxu0 %v5682_v39  ;;  %1241 = vmatpush.msrb.mxu1 %v1058_v0  ;;  %v1001_v39 = vld [vmem:[#allocation2 + $0xae8] sm:$0xff]  ;;  %v1115_v59 = vld [vmem:[#allocation2 + $0xe78] sm:$0xff]  ;;  %v1112_v62 = vld [vmem:[#allocation2 + $0xe60] sm:$0xff] }
  0xd4   :  { %1218 = vmatpush.msrb.mxu0 %v1010_v2  ;;  %1264 = vmatpush.msrb.mxu2 %v1106_v3  ;;  %v5772_v0 = vld [vmem:[%s7080_s2 + $0x28] sm:$0x3] }
  0xd5   :  { %913 = vmatmul.f32.gmra.mxu3 %v5714_v6  ;;  %1242 = vmatpush.msrb.mxu1 %v1055_v5  ;;  %v1094_v6 = vld [vmem:[#allocation2 + $0xdd0] sm:$0xff]  ;;  %v965_v2 = vld [vmem:[#allocation2 + $0x9c8] sm:$0xff] }
  0xd6   :  { %1176 = vmatpush.msra.mxu3 %v1093_v7  ;;  %1219 = vmatpush.msrb.mxu0 %v1007_v32  ;;  %v1013_v3 = vld [vmem:[#allocation2 + $0xb48] sm:$0xff]  ;;  %v1059_v32 = vld [vmem:[#allocation2 + $0xcb8] sm:$0xff] }
  0xd7   :  { %1265 = vmatpush.msrb.mxu2 %v1103_v8  ;;  %1243 = vmatpush.msrb.mxu1 %v1052_v9  ;;  %v1061_v5 = vld [vmem:[#allocation2 + $0xcc8] sm:$0xff]  ;;  %v1011_v8 = vld [vmem:[#allocation2 + $0xb38] sm:$0xff] }
  0xd8   :  { %1177 = vmatpush.msra.mxu3 %v1090_v10  ;;  %1220 = vmatpush.msrb.mxu0 %v1004_v22  ;;  %v1109_v7 = vld [vmem:[#allocation2 + $0xe48] sm:$0xff]  ;;  %v1107_v9 = vld [vmem:[#allocation2 + $0xe38] sm:$0xff]  ;;  %v5778_v22 = vld [vmem:[%s7080_s2 + $0x30] sm:$0x3] }
  0xd9   :  { %1266 = vmatpush.msrb.mxu2 %v1100_v13  ;;  %1244 = vmatpush.msrb.mxu1 %v1049_v14  ;;  %v1119_v10 = vld [vmem:[#allocation2 + $0xe98] sm:$0xff]  ;;  %v1008_v13 = vld [vmem:[#allocation2 + $0xb20] sm:$0xff] }
  0xda   :  { %1178 = vmatpush.msra.mxu3 %v1087_v57  ;;  %1221 = vmatpush.msrb.mxu0 %v1001_v39  ;;  %v1056_v14 = vld [vmem:[#allocation2 + $0xca0] sm:$0xff] }
  0xdb   :  { %1267 = vmatpush.msrb.mxu2 %v1097_v15  ;;  %1245 = vmatpush.msrb.mxu1 %v1046_v18  ;;  %v1104_v57 = vld [vmem:[#allocation2 + $0xe20] sm:$0xff]  ;;  %v5789_v18 = vld [vmem:[%s7080_s2 + $0x38] sm:$0x3] }
  0xdc   :  { %1179 = vmatpush.msra.mxu3 %v1084_v19  ;;  %1222 = vmatpush.msrb.mxu0 %v998_v20  ;;  %v1116_v39 = vld [vmem:[#allocation2 + $0xe80] sm:$0xff]  ;;  %v1005_v19 = vld [vmem:[#allocation2 + $0xb08] sm:$0xff] }
  0xdd   :  { %1268 = vmatpush.msrb.mxu2 %v1094_v6  ;;  %936 = vmatmul.f32.gmra.mxu0 %v5706_v58  ;;  %v986_v58 = vld [vmem:[#allocation2 + $0xa70] sm:$0xff]  ;;  %v5784_v15 = vld [vmem:[%s7080_s2 + $0x20] sm:$0x3]  ;;  %v1053_v20 = vld [vmem:[#allocation2 + $0xc88] sm:$0xff] }
  0xde   :  { %1180 = vmatpush.msra.mxu3 %v1081_v23  ;;  %1223 = vmatpush.msrb.mxu0 %v995_v21  ;;  %v1101_v6 = vld [vmem:[#allocation2 + $0xe08] sm:$0xff]  ;;  %v1002_v21 = vld [vmem:[#allocation2 + $0xaf0] sm:$0xff] }
  0xdf   :  { %1246 = vmatpush.msrb.mxu1 %v1043_v24  ;;  %1269 = vmatpush.msrb.mxu2 %v1091_v25  ;;  %v1113_v23 = vld [vmem:[#allocation2 + $0xe68] sm:$0xff]  ;;  %v1050_v24 = vld [vmem:[#allocation2 + $0xc70] sm:$0xff] }
  0xe0   :  { %4450 = vmatmul.msk.f32.gmra.mxu1 %vm398_vm0, %v5720_v16  ;;  %1181 = vmatpush.msra.mxu3 %v1078_v26  ;;  %v1079_v16 = vld [vmem:[#allocation2 + $0xd58] sm:$0xff]  ;;  %v1098_v25 = vld [vmem:[#allocation2 + $0xdf0] sm:$0xff] }
  0xe1   :  { %1224 = vmatpush.msrb.mxu0 %v992_v27  ;;  %1247 = vmatpush.msrb.mxu1 %v1040_v11  ;;  %v1110_v26 = vld [vmem:[#allocation2 + $0xe50] sm:$0xff]  ;;  %v999_v27 = vld [vmem:[#allocation2 + $0xad8] sm:$0xff]  ;;  %v1611_v11 = vld [vmem:[#allocation2 + $0x14e8] sm:$0xff] }
  0xe2   :  { %1270 = vmatpush.msrb.mxu2 %v1088_v48  ;;  %1182 = vmatpush.msra.mxu3 %v1075_v28  ;;  %v1047_v48 = vld [vmem:[#allocation2 + $0xc58] sm:$0xff] }
  0xe3   :  { %1225 = vmatpush.msrb.mxu0 %v989_v17  ;;  %1248 = vmatpush.msrb.mxu1 %v1037_v29  ;;  %v1095_v28 = vld [vmem:[#allocation2 + $0xdd8] sm:$0xff]  ;;  %v1608_v17 = vld [vmem:[#allocation2 + $0x14d0] sm:$0xff]  ;;  %v996_v29 = vld [vmem:[#allocation2 + $0xac0] sm:$0xff] }
  0xe4   :  { %1271 = vmatpush.msrb.mxu2 %v1085_v30  ;;  %1183 = vmatpush.msra.mxu3 %v1072_v31  ;;  %v1044_v30 = vld [vmem:[#allocation2 + $0xc40] sm:$0xff] }
  0xe5   :  { %1226 = vmatpush.msrb.mxu0 %v986_v58  ;;  %1249 = vmatpush.msrb.mxu1 %v1034_v33  ;;  %v1092_v31 = vld [vmem:[#allocation2 + $0xdc0] sm:$0xff]  ;;  %v1605_v58 = vld [vmem:[#allocation2 + $0x14b8] sm:$0xff]  ;;  %v993_v33 = vld [vmem:[#allocation2 + $0xaa8] sm:$0xff] }
  0xe6   :  { %1272 = vmatpush.msrb.mxu2 %v1082_v34  ;;  %1184 = vmatpush.msra.mxu3 %v1069_v12  ;;  %v1041_v34 = vld [vmem:[#allocation2 + $0xc28] sm:$0xff] }
  0xe7   :  { %1227 = vmatpush.msrb.mxu0 %v983_v4  ;;  %1250 = vmatpush.msrb.mxu1 %v1031_v35  ;;  %v1089_v12 = vld [vmem:[#allocation2 + $0xda8] sm:$0xff]  ;;  %v1602_v4 = vld [vmem:[#allocation2 + $0x14a0] sm:$0xff]  ;;  %v990_v35 = vld [vmem:[#allocation2 + $0xa90] sm:$0xff] }
  0xe8   :  { %1273 = vmatpush.msrb.mxu2 %v1079_v16  ;;  %1185 = vmatpush.msra.mxu3 %v1066_v36  ;;  %v1038_v16 = vld [vmem:[#allocation2 + $0xc10] sm:$0xff] }
  0xe9   :  { %1228 = vmatpush.msrb.mxu0 %v980_v37  ;;  %1251 = vmatpush.msrb.mxu1 %v1028_v38  ;;  %v1086_v36 = vld [vmem:[#allocation2 + $0xd90] sm:$0xff]  ;;  %v987_v37 = vld [vmem:[#allocation2 + $0xa78] sm:$0xff]  ;;  %v1599_v38 = vld [vmem:[#allocation2 + $0x1488] sm:$0xff] }
  0xea   :  { %1274 = vmatpush.msrb.mxu2 %v1076_v40  ;;  %1186 = vmatpush.msra.mxu3 %v1063_v41  ;;  %v1035_v40 = vld [vmem:[#allocation2 + $0xbf8] sm:$0xff] }
  0xeb   :  { %1165 = vmatmul.f32.vlgmr.msra.gmra.mxu2 %v5747_v1  ;;  %1229 = vmatpush.msrb.mxu0 %v977_v42  ;;  %v1083_v41 = vld [vmem:[#allocation2 + $0xd78] sm:$0xff]  ;;  %v1596_v42 = vld [vmem:[#allocation2 + $0x1470] sm:$0xff] }
  0xec   :  { %1252 = vmatpush.msrb.mxu1 %v1025_v43  ;;  %1275 = vmatpush.msrb.mxu2 %v1073_v44  ;;  %v984_v43 = vld [vmem:[#allocation2 + $0xa60] sm:$0xff] }
  0xed   :  { %1187 = vmatpush.msra.mxu3 %v1060_v45  ;;  %1230 = vmatpush.msrb.mxu0 %v974_v46  ;;  %v1032_v44 = vld [vmem:[#allocation2 + $0xbe0] sm:$0xff]  ;;  %v1593_v46 = vld [vmem:[#allocation2 + $0x1458] sm:$0xff] }
  0xee   :  { %1188 = vmatmul.f32.vlgmr.msra.gmra.mxu3 %v5753_v47  ;;  %1253 = vmatpush.msrb.mxu1 %v1022_v49  ;;  %v1080_v45 = vld [vmem:[#allocation2 + $0xd60] sm:$0xff]  ;;  %v981_v49 = vld [vmem:[#allocation2 + $0xa48] sm:$0xff] }
  0xef   :  { %1276 = vmatpush.msrb.mxu2 %v1070_v50  ;;  %1299 = vmatpush.msrb.mxu3 %v1118_v51  ;;  %v1029_v50 = vld [vmem:[#allocation2 + $0xbc8] sm:$0xff] }
  0xf0   :  { %1142 = vmatmul.f32.vlgmr.msra.gmra.mxu1 %v5758_v52  ;;  %4451 = vmatmul.msk.f32.vlgmr.msra.gmra.mxu0 %vm398_vm0, %v5763_v53  ;;  %v1077_v51 = vld [vmem:[#allocation2 + $0xd48] sm:$0xff] }
  0xf1   :  { %1231 = vmatpush.msrb.mxu0 %v971_v54  ;;  %1254 = vmatpush.msrb.mxu1 %v1019_v55  ;;  %v1590_v54 = vld [vmem:[#allocation2 + $0x1440] sm:$0xff]  ;;  %v978_v55 = vld [vmem:[#allocation2 + $0xa30] sm:$0xff] }
  0xf2   :  { %1277 = vmatpush.msrb.mxu2 %v1067_v56  ;;  %1300 = vmatpush.msrb.mxu3 %v1115_v59  ;;  %v1026_v56 = vld [vmem:[#allocation2 + $0xbb0] sm:$0xff] }
  0xf3   :  { %1232 = vmatpush.msrb.mxu0 %v968_v60  ;;  %1255 = vmatpush.msrb.mxu1 %v1016_v61  ;;  %v1074_v59 = vld [vmem:[#allocation2 + $0xd30] sm:$0xff]  ;;  %v1587_v60 = vld [vmem:[#allocation2 + $0x1428] sm:$0xff]  ;;  %v975_v61 = vld [vmem:[#allocation2 + $0xa18] sm:$0xff] }
  0xf4   :  { %1278 = vmatpush.msrb.mxu2 %v1064_v63  ;;  %1301 = vmatpush.msrb.mxu3 %v1112_v62  ;;  %v1023_v63 = vld [vmem:[#allocation2 + $0xb98] sm:$0xff] }
  0xf5   :  { %1168 = vmatmul.f32.gmra.mxu2 %v5772_v0  ;;  %1233 = vmatpush.msrb.mxu0 %v965_v2  ;;  %v1071_v62 = vld [vmem:[#allocation2 + $0xd18] sm:$0xff]  ;;  %v1584_v2 = vld [vmem:[#allocation2 + $0x1410] sm:$0xff] }
  0xf6   :  { %1256 = vmatpush.msrb.mxu1 %v1013_v3  ;;  %1279 = vmatpush.msrb.mxu2 %v1061_v5  ;;  %v972_v3 = vld [vmem:[#allocation2 + $0xa00] sm:$0xff] }
  0xf7   :  { %1302 = vmatpush.msrb.mxu3 %v1109_v7  ;;  %1333 = vmatpush.msra.mxu0 %v1059_v32  ;;  %v1020_v5 = vld [vmem:[#allocation2 + $0xb80] sm:$0xff]  ;;  %v1581_v32 = vld [vmem:[#allocation2 + $0x13f8] sm:$0xff] }
  0xf8   :  { %1356 = vmatpush.msra.mxu1 %v1107_v9  ;;  %1391 = vmatpush.msra.mxu2 %v1119_v10  ;;  %v1068_v7 = vld [vmem:[#allocation2 + $0xd00] sm:$0xff]  ;;  %v1017_v9 = vld [vmem:[#allocation2 + $0xb68] sm:$0xff] }
  0xf9   :  { %1310 = vmatpush.msra.mxu3 %v1011_v8  ;;  %1334 = vmatpush.msra.mxu0 %v1056_v14  ;;  %v969_v8 = vld [vmem:[#allocation2 + $0x9e8] sm:$0xff]  ;;  %v966_v14 = vld [vmem:[#allocation2 + $0x9d0] sm:$0xff] }
  0xfa   :  { %1191 = vmatmul.f32.gmra.mxu3 %v5778_v22  ;;  %1357 = vmatpush.msra.mxu1 %v1104_v57  ;;  %v1065_v10 = vld [vmem:[#allocation2 + $0xce8] sm:$0xff]  ;;  %v1014_v57 = vld [vmem:[#allocation2 + $0xb50] sm:$0xff] }
  0xfb   :  { %1311 = vmatpush.msra.mxu3 %v1008_v13  ;;  %1392 = vmatpush.msra.mxu2 %v1116_v39  ;;  %v1578_v13 = vld [vmem:[#allocation2 + $0x13e0] sm:$0xff]  ;;  %v1062_v39 = vld [vmem:[#allocation2 + $0xcd0] sm:$0xff] }
  0xfc   :  { %1145 = vmatmul.f32.gmra.mxu1 %v5784_v15  ;;  %4452 = vmatmul.msk.f32.gmra.mxu0 %vm398_vm0, %v5789_v18 }
  0xfd   :  { %1312 = vmatpush.msra.mxu3 %v1005_v19  ;;  %1335 = vmatpush.msra.mxu0 %v1053_v20  ;;  %v1575_v19 = vld [vmem:[#allocation2 + $0x13c8] sm:$0xff] }
  0xfe   :  { %1358 = vmatpush.msra.mxu1 %v1101_v6  ;;  %1393 = vmatpush.msra.mxu2 %v1113_v23  ;;  %v1659_v20 = vld [vmem:[#allocation2 + $0x1668] sm:$0xff] }
  0xff   :  { %1313 = vmatpush.msra.mxu3 %v1002_v21  ;;  %1336 = vmatpush.msra.mxu0 %v1050_v24  ;;  %v1707_v6 = vld [vmem:[#allocation2 + $0x17e8] sm:$0xff]  ;;  %v1572_v21 = vld [vmem:[#allocation2 + $0x13b0] sm:$0xff] }
 0x100   :  { %1359 = vmatpush.msra.mxu1 %v1098_v25  ;;  %1394 = vmatpush.msra.mxu2 %v1110_v26  ;;  %v1719_v23 = vld [vmem:[#allocation2 + $0x1848] sm:$0xff]  ;;  %v1656_v24 = vld [vmem:[#allocation2 + $0x1650] sm:$0xff] }
 0x101   :  { %1280 = vmatmul.f32.vlgmr.msrb.gmra.mxu2 %v5753_v47  ;;  %1314 = vmatpush.msra.mxu3 %v999_v27  ;;  %v1704_v25 = vld [vmem:[#allocation2 + $0x17d0] sm:$0xff]  ;;  %v1569_v27 = vld [vmem:[#allocation2 + $0x1398] sm:$0xff] }
 0x102   :  { %1722 = vmatpush.msrb.mxu2 %v1611_v11  ;;  %1337 = vmatpush.msra.mxu0 %v1047_v48  ;;  %v1716_v26 = vld [vmem:[#allocation2 + $0x1830] sm:$0xff]  ;;  %v1653_v11 = vld [vmem:[#allocation2 + $0x1638] sm:$0xff] }
 0x103   :  { %1360 = vmatpush.msra.mxu1 %v1095_v28  ;;  %4453 = vmatmul.msk.f32.vlgmr.msrb.gmra.mxu3 %vm398_vm0, %v5763_v53  ;;  %v1701_v48 = vld [vmem:[#allocation2 + $0x17b8] sm:$0xff] }
 0x104   :  { %1723 = vmatpush.msrb.mxu2 %v1608_v17  ;;  %1315 = vmatpush.msra.mxu3 %v996_v29  ;;  %v1713_v28 = vld [vmem:[#allocation2 + $0x1818] sm:$0xff]  ;;  %v1566_v17 = vld [vmem:[#allocation2 + $0x1380] sm:$0xff] }
 0x105   :  { %1338 = vmatpush.msra.mxu0 %v1044_v30  ;;  %1361 = vmatpush.msra.mxu1 %v1092_v31  ;;  %v1698_v29 = vld [vmem:[#allocation2 + $0x17a0] sm:$0xff]  ;;  %v1660_v31 = vld [vmem:[#allocation2 + $0x1670] sm:$0xff] }
 0x106   :  { %1234 = vmatmul.f32.vlgmr.msrb.gmra.mxu0 %v5758_v52  ;;  %1257 = vmatmul.f32.vlgmr.msrb.gmra.mxu1 %v5747_v1  ;;  %v1710_v30 = vld [vmem:[#allocation2 + $0x1800] sm:$0xff] }
 0x107   :  { %1724 = vmatpush.msrb.mxu2 %v1605_v58  ;;  %1316 = vmatpush.msra.mxu3 %v993_v33  ;;  %v1612_v58 = vld [vmem:[#allocation2 + $0x14f0] sm:$0xff]  ;;  %v1647_v33 = vld [vmem:[#allocation2 + $0x1608] sm:$0xff] }
 0x108   :  { %1339 = vmatpush.msra.mxu0 %v1041_v34  ;;  %1362 = vmatpush.msra.mxu1 %v1089_v12  ;;  %v1695_v34 = vld [vmem:[#allocation2 + $0x1788] sm:$0xff]  ;;  %v1609_v12 = vld [vmem:[#allocation2 + $0x14d8] sm:$0xff] }
 0x109   :  { %1725 = vmatpush.msrb.mxu2 %v1602_v4  ;;  %1317 = vmatpush.msra.mxu3 %v990_v35  ;;  %v1644_v4 = vld [vmem:[#allocation2 + $0x15f0] sm:$0xff] }
 0x10a   :  { %1340 = vmatpush.msra.mxu0 %v1038_v16  ;;  %1363 = vmatpush.msra.mxu1 %v1086_v36  ;;  %v1692_v35 = vld [vmem:[#allocation2 + $0x1770] sm:$0xff]  ;;  %v1654_v16 = vld [vmem:[#allocation2 + $0x1640] sm:$0xff]  ;;  %v1641_v36 = vld [vmem:[#allocation2 + $0x15d8] sm:$0xff] }
 0x10b   :  { %1283 = vmatmul.f32.gmra.mxu2 %v5778_v22  ;;  %1318 = vmatpush.msra.mxu3 %v987_v37  ;;  %v1689_v37 = vld [vmem:[#allocation2 + $0x1758] sm:$0xff] }
 0x10c   :  { %1726 = vmatpush.msrb.mxu2 %v1599_v38  ;;  %1341 = vmatpush.msra.mxu0 %v1035_v40  ;;  %v1603_v38 = vld [vmem:[#allocation2 + $0x14a8] sm:$0xff] }
 0x10d   :  { %1364 = vmatpush.msra.mxu1 %v1083_v41  ;;  %4454 = vmatmul.msk.f32.gmra.mxu3 %vm398_vm0, %v5789_v18  ;;  %v1651_v40 = vld [vmem:[#allocation2 + $0x1628] sm:$0xff]  ;;  %v1600_v41 = vld [vmem:[#allocation2 + $0x1490] sm:$0xff] }
 0x10e   :  { %1727 = vmatpush.msrb.mxu2 %v1596_v42  ;;  %1319 = vmatpush.msra.mxu3 %v984_v43  ;;  %v1648_v42 = vld [vmem:[#allocation2 + $0x1610] sm:$0xff]  ;;  %v1635_v43 = vld [vmem:[#allocation2 + $0x15a8] sm:$0xff] }
 0x10f   :  { %1342 = vmatpush.msra.mxu0 %v1032_v44  ;;  %1365 = vmatpush.msra.mxu1 %v1080_v45  ;;  %v1683_v44 = vld [vmem:[#allocation2 + $0x1728] sm:$0xff]  ;;  %v1597_v45 = vld [vmem:[#allocation2 + $0x1478] sm:$0xff] }
 0x110   :  { %1237 = vmatmul.f32.gmra.mxu0 %v5784_v15  ;;  %1260 = vmatmul.f32.gmra.mxu1 %v5772_v0 }
 0x111   :  { %1728 = vmatpush.msrb.mxu2 %v1593_v46  ;;  %1320 = vmatpush.msra.mxu3 %v981_v49  ;;  %v1645_v46 = vld [vmem:[#allocation2 + $0x15f8] sm:$0xff]  ;;  %v1680_v49 = vld [vmem:[#allocation2 + $0x1710] sm:$0xff] }
 0x112   :  { %1343 = vmatpush.msra.mxu0 %v1029_v50  ;;  %1366 = vmatpush.msra.mxu1 %v1077_v51  ;;  %v1594_v50 = vld [vmem:[#allocation2 + $0x1460] sm:$0xff] }
 0x113   :  { %1729 = vmatpush.msrb.mxu2 %v1590_v54  ;;  %1321 = vmatpush.msra.mxu3 %v978_v55  ;;  %v1642_v51 = vld [vmem:[#allocation2 + $0x15e0] sm:$0xff]  ;;  %v1629_v54 = vld [vmem:[#allocation2 + $0x1578] sm:$0xff]  ;;  %v1591_v55 = vld [vmem:[#allocation2 + $0x1448] sm:$0xff] }
 0x114   :  { %1344 = vmatpush.msra.mxu0 %v1026_v56  ;;  %1367 = vmatpush.msra.mxu1 %v1074_v59  ;;  %v1639_v56 = vld [vmem:[#allocation2 + $0x15c8] sm:$0xff]  ;;  %v1626_v59 = vld [vmem:[#allocation2 + $0x1560] sm:$0xff] }
 0x115   :  { %1730 = vmatpush.msrb.mxu2 %v1587_v60  ;;  %1322 = vmatpush.msra.mxu3 %v975_v61  ;;  %v1674_v60 = vld [vmem:[#allocation2 + $0x16e0] sm:$0xff]  ;;  %v1636_v61 = vld [vmem:[#allocation2 + $0x15b0] sm:$0xff] }
 0x116   :  { %1345 = vmatpush.msra.mxu0 %v1023_v63  ;;  %1368 = vmatpush.msra.mxu1 %v1071_v62  ;;  %v1623_v63 = vld [vmem:[#allocation2 + $0x1548] sm:$0xff] }
 0x117   :  { %1731 = vmatpush.msrb.mxu2 %v1584_v2  ;;  %1323 = vmatpush.msra.mxu3 %v972_v3  ;;  %v1671_v62 = vld [vmem:[#allocation2 + $0x16c8] sm:$0xff]  ;;  %v1585_v2 = vld [vmem:[#allocation2 + $0x1418] sm:$0xff] }
 0x118   :  { %1346 = vmatpush.msra.mxu0 %v1020_v5  ;;  %1369 = vmatpush.msra.mxu1 %v1068_v7  ;;  %v1633_v3 = vld [vmem:[#allocation2 + $0x1598] sm:$0xff]  ;;  %v1620_v5 = vld [vmem:[#allocation2 + $0x1530] sm:$0xff] }
 0x119   :  { %1732 = vmatpush.msrb.mxu2 %v1581_v32  ;;  %1324 = vmatpush.msra.mxu3 %v969_v8  ;;  %v1668_v7 = vld [vmem:[#allocation2 + $0x16b0] sm:$0xff]  ;;  %v1582_v32 = vld [vmem:[#allocation2 + $0x1400] sm:$0xff] }
 0x11a   :  { %1347 = vmatpush.msra.mxu0 %v1017_v9  ;;  %1370 = vmatpush.msra.mxu1 %v1065_v10  ;;  %v1630_v8 = vld [vmem:[#allocation2 + $0x1580] sm:$0xff]  ;;  %v1617_v9 = vld [vmem:[#allocation2 + $0x1518] sm:$0xff] }
 0x11b   :  { %1733 = vmatpush.msrb.mxu2 %v1578_v13  ;;  %1325 = vmatpush.msra.mxu3 %v966_v14  ;;  %v1665_v10 = vld [vmem:[#allocation2 + $0x1698] sm:$0xff]  ;;  %v1579_v13 = vld [vmem:[#allocation2 + $0x13e8] sm:$0xff] }
 0x11c   :  { %1348 = vmatpush.msra.mxu0 %v1014_v57  ;;  %1371 = vmatpush.msra.mxu1 %v1062_v39  ;;  %v1627_v14 = vld [vmem:[#allocation2 + $0x1568] sm:$0xff]  ;;  %v1614_v57 = vld [vmem:[#allocation2 + $0x1500] sm:$0xff] }
 0x11d   :  { %1326 = vmatmul.f32.vlgmr.msra.gmra.mxu3 %v5758_v52  ;;  %1734 = vmatpush.msrb.mxu2 %v1575_v19  ;;  %v1650_v52 = vld [vmem:[#allocation2 + $0x1620] sm:$0xff]  ;;  %v1576_v19 = vld [vmem:[#allocation2 + $0x13d0] sm:$0xff] }
 0x11e   :  { %1745 = vmatpush.msrb.mxu3 %v1659_v20  ;;  %1768 = vmatpush.msrb.mxu0 %v1707_v6  ;;  %v1662_v39 = vld [vmem:[#allocation2 + $0x1680] sm:$0xff]  ;;  %v1624_v20 = vld [vmem:[#allocation2 + $0x1550] sm:$0xff] }
 0x11f   :  { %1803 = vmatpush.msrb.mxu1 %v1719_v23  ;;  %1735 = vmatpush.msrb.mxu2 %v1572_v21  ;;  %v1708_v6 = vld [vmem:[#allocation2 + $0x17f0] sm:$0xff]  ;;  %v1573_v21 = vld [vmem:[#allocation2 + $0x13b8] sm:$0xff] }
 0x120   :  { %1746 = vmatpush.msrb.mxu3 %v1656_v24  ;;  %1769 = vmatpush.msrb.mxu0 %v1704_v25  ;;  %v1720_v23 = vld [vmem:[#allocation2 + $0x1850] sm:$0xff]  ;;  %v1621_v24 = vld [vmem:[#allocation2 + $0x1538] sm:$0xff] }
 0x121   :  { %1804 = vmatpush.msrb.mxu1 %v1716_v26  ;;  %4455 = vmatmul.msk.f32.vlgmr.msra.gmra.mxu2 %vm398_vm0, %v5763_v53  ;;  %v1657_v53 = vld [vmem:[#allocation2 + $0x1658] sm:$0xff] }
 0x122   :  { %1736 = vmatpush.msrb.mxu2 %v1569_v27  ;;  %1747 = vmatpush.msrb.mxu3 %v1653_v11  ;;  %v1705_v25 = vld [vmem:[#allocation2 + $0x17d8] sm:$0xff]  ;;  %v1570_v27 = vld [vmem:[#allocation2 + $0x13a0] sm:$0xff] }
 0x123   :  { %1770 = vmatpush.msrb.mxu0 %v1701_v48  ;;  %1805 = vmatpush.msrb.mxu1 %v1713_v28  ;;  %v1717_v26 = vld [vmem:[#allocation2 + $0x1838] sm:$0xff]  ;;  %v1618_v11 = vld [vmem:[#allocation2 + $0x1520] sm:$0xff] }
 0x124   :  { %1349 = vmatmul.f32.vlgmr.msra.gmra.mxu0 %v5747_v1  ;;  %1737 = vmatpush.msrb.mxu2 %v1566_v17  ;;  %v1606_v1 = vld [vmem:[#allocation2 + $0x14c0] sm:$0xff]  ;;  %v1567_v17 = vld [vmem:[#allocation2 + $0x1388] sm:$0xff] }
 0x125   :  { %1748 = vmatpush.msrb.mxu3 %v1650_v52  ;;  %1771 = vmatpush.msrb.mxu0 %v1698_v29  ;;  %v1702_v48 = vld [vmem:[#allocation2 + $0x17c0] sm:$0xff]  ;;  %v1615_v52 = vld [vmem:[#allocation2 + $0x1508] sm:$0xff] }
 0x126   :  { %1806 = vmatpush.msrb.mxu1 %v1710_v30  ;;  %1837 = vmatpush.msra.mxu2 %v1660_v31  ;;  %v1714_v28 = vld [vmem:[#allocation2 + $0x1820] sm:$0xff]  ;;  %v1699_v29 = vld [vmem:[#allocation2 + $0x17a8] sm:$0xff]  ;;  %v1613_v31 = vld [vmem:[#allocation2 + $0x14f8] sm:$0xff] }
 0x127   :  { %1372 = vmatmul.f32.vlgmr.msra.gmra.mxu1 %v5753_v47  ;;  %1329 = vmatmul.f32.gmra.mxu3 %v5784_v15  ;;  %v1638_v47 = vld [vmem:[#allocation2 + $0x15c0] sm:$0xff]  ;;  %v1711_v30 = vld [vmem:[#allocation2 + $0x1808] sm:$0xff] }
 0x128   :  { %1814 = vmatpush.msra.mxu1 %v1612_v58  ;;  %1749 = vmatpush.msrb.mxu3 %v1647_v33  ;;  %v1686_v15 = vld [vmem:[#allocation2 + $0x1740] sm:$0xff]  ;;  %v1661_v58 = vld [vmem:[#allocation2 + $0x1678] sm:$0xff] }
 0x129   :  { %1772 = vmatpush.msrb.mxu0 %v1695_v34  ;;  %1838 = vmatpush.msra.mxu2 %v1657_v53  ;;  %v1709_v33 = vld [vmem:[#allocation2 + $0x17f8] sm:$0xff]  ;;  %v5817_v34 = vld [vmem:[%s7079_s1] sm:$0xff]  ;;  %v5823_v53 = vld [vmem:[%s7079_s1 + $0x10] sm:$0xff] }
 0x12a   :  { %1815 = vmatpush.msra.mxu1 %v1609_v12  ;;  %1750 = vmatpush.msrb.mxu3 %v1644_v4  ;;  %v1610_v12 = vld [vmem:[#allocation2 + $0x14e0] sm:$0xff]  ;;  %v5829_v4 = vld [vmem:[%s7079_s1 + $0x18] sm:$0xff] }
 0x12b   :  { %1773 = vmatpush.msrb.mxu0 %v1692_v35  ;;  %1839 = vmatpush.msra.mxu2 %v1654_v16  ;;  %v1696_v35 = vld [vmem:[#allocation2 + $0x1790] sm:$0xff]  ;;  %v1658_v16 = vld [vmem:[#allocation2 + $0x1660] sm:$0xff] }
 0x12c   :  { %1816 = vmatpush.msra.mxu1 %v1606_v1  ;;  %4456 = vmatmul.msk.f32.gmra.mxu2 %vm398_vm0, %v5789_v18  ;;  %v1632_v18 = vld [vmem:[#allocation2 + $0x1590] sm:$0xff]  ;;  %v1706_v1 = vld [vmem:[#allocation2 + $0x17e0] sm:$0xff] }
 0x12d   :  { %1751 = vmatpush.msrb.mxu3 %v1641_v36  ;;  %1774 = vmatpush.msrb.mxu0 %v1689_v37  ;;  %v1607_v36 = vld [vmem:[#allocation2 + $0x14c8] sm:$0xff] }
 0x12e   :  { %1817 = vmatpush.msra.mxu1 %v1603_v38  ;;  %1840 = vmatpush.msra.mxu2 %v1651_v40  ;;  %v5836_v37 = vld [vmem:[%s7079_s1 + $0x8] sm:$0xff]  ;;  %v1693_v38 = vld [vmem:[#allocation2 + $0x1778] sm:$0xff] }
 0x12f   :  { %1352 = vmatmul.f32.gmra.mxu0 %v5772_v0  ;;  %1752 = vmatpush.msrb.mxu3 %v1638_v47  ;;  %v1677_v0 = vld [vmem:[#allocation2 + $0x16f8] sm:$0xff]  ;;  %v1655_v40 = vld [vmem:[#allocation2 + $0x1648] sm:$0xff] }
 0x130   :  { %1775 = vmatpush.msrb.mxu0 %v1686_v15  ;;  %1818 = vmatpush.msra.mxu1 %v1600_v41  ;;  %v1703_v47 = vld [vmem:[#allocation2 + $0x17c8] sm:$0xff]  ;;  %v1604_v15 = vld [vmem:[#allocation2 + $0x14b0] sm:$0xff]  ;;  %v1690_v41 = vld [vmem:[#allocation2 + $0x1760] sm:$0xff] }
 0x131   :  { %1841 = vmatpush.msra.mxu2 %v1648_v42  ;;  %1375 = vmatmul.f32.gmra.mxu1 %v5778_v22  ;;  %v1588_v22 = vld [vmem:[#allocation2 + $0x1430] sm:$0xff] }
 0x132   :  { %1753 = vmatpush.msrb.mxu3 %v1635_v43  ;;  %1776 = vmatpush.msrb.mxu0 %v1683_v44  ;;  %v1652_v42 = vld [vmem:[#allocation2 + $0x1630] sm:$0xff]  ;;  %v1601_v44 = vld [vmem:[#allocation2 + $0x1498] sm:$0xff] }
 0x133   :  { %1819 = vmatpush.msra.mxu1 %v1597_v45  ;;  %1842 = vmatpush.msra.mxu2 %v1645_v46  ;;  %v1700_v43 = vld [vmem:[#allocation2 + $0x17b0] sm:$0xff]  ;;  %v1687_v45 = vld [vmem:[#allocation2 + $0x1748] sm:$0xff]  ;;  %v1649_v46 = vld [vmem:[#allocation2 + $0x1618] sm:$0xff] }
 0x134   :  { %1754 = vmatpush.msrb.mxu3 %v1632_v18  ;;  %1777 = vmatpush.msrb.mxu0 %v1680_v49  ;;  %v1697_v18 = vld [vmem:[#allocation2 + $0x1798] sm:$0xff]  ;;  %v1598_v49 = vld [vmem:[#allocation2 + $0x1480] sm:$0xff] }
 0x135   :  { %1820 = vmatpush.msra.mxu1 %v1594_v50  ;;  %1843 = vmatpush.msra.mxu2 %v1642_v51  ;;  %v1684_v50 = vld [vmem:[#allocation2 + $0x1730] sm:$0xff]  ;;  %v1646_v51 = vld [vmem:[#allocation2 + $0x1600] sm:$0xff] }
 0x136   :  { %1755 = vmatpush.msrb.mxu3 %v1629_v54  ;;  %1778 = vmatpush.msrb.mxu0 %v1677_v0  ;;  %v1694_v54 = vld [vmem:[#allocation2 + $0x1780] sm:$0xff]  ;;  %v1595_v0 = vld [vmem:[#allocation2 + $0x1468] sm:$0xff] }
 0x137   :  { %1821 = vmatpush.msra.mxu1 %v1591_v55  ;;  %1844 = vmatpush.msra.mxu2 %v1639_v56  ;;  %v1681_v55 = vld [vmem:[#allocation2 + $0x1718] sm:$0xff]  ;;  %v1643_v56 = vld [vmem:[#allocation2 + $0x15e8] sm:$0xff] }
 0x138   :  { %1756 = vmatpush.msrb.mxu3 %v1626_v59  ;;  %1779 = vmatpush.msrb.mxu0 %v1674_v60  ;;  %v1691_v59 = vld [vmem:[#allocation2 + $0x1768] sm:$0xff]  ;;  %v1592_v60 = vld [vmem:[#allocation2 + $0x1450] sm:$0xff] }
 0x139   :  { %1822 = vmatpush.msra.mxu1 %v1588_v22  ;;  %1845 = vmatpush.msra.mxu2 %v1636_v61  ;;  %v1678_v22 = vld [vmem:[#allocation2 + $0x1700] sm:$0xff]  ;;  %v1640_v61 = vld [vmem:[#allocation2 + $0x15d0] sm:$0xff] }
 0x13a   :  { %1757 = vmatpush.msrb.mxu3 %v1623_v63  ;;  %1780 = vmatpush.msrb.mxu0 %v1671_v62  ;;  %v1688_v63 = vld [vmem:[#allocation2 + $0x1750] sm:$0xff]  ;;  %v1675_v62 = vld [vmem:[#allocation2 + $0x16e8] sm:$0xff] }
 0x13b   :  { %1823 = vmatpush.msra.mxu1 %v1585_v2  ;;  %1846 = vmatpush.msra.mxu2 %v1633_v3  ;;  %v1589_v2 = vld [vmem:[#allocation2 + $0x1438] sm:$0xff]  ;;  %v5842_v3 = vld [vmem:[%s7079_s1 + $0x20] sm:$0x3] }
 0x13c   :  { %1758 = vmatpush.msrb.mxu3 %v1620_v5  ;;  %1781 = vmatpush.msrb.mxu0 %v1668_v7  ;;  %v1637_v5 = vld [vmem:[#allocation2 + $0x15b8] sm:$0xff] }
 0x13d   :  { %1824 = vmatpush.msra.mxu1 %v1582_v32  ;;  %1847 = vmatpush.msra.mxu2 %v1630_v8  ;;  %v1685_v7 = vld [vmem:[#allocation2 + $0x1738] sm:$0xff]  ;;  %v1672_v32 = vld [vmem:[#allocation2 + $0x16d0] sm:$0xff]  ;;  %v1586_v8 = vld [vmem:[#allocation2 + $0x1420] sm:$0xff] }
 0x13e   :  { %1759 = vmatpush.msrb.mxu3 %v1617_v9  ;;  %1782 = vmatpush.msrb.mxu0 %v1665_v10  ;;  %v1634_v9 = vld [vmem:[#allocation2 + $0x15a0] sm:$0xff] }
 0x13f   :  { %1825 = vmatpush.msra.mxu1 %v1579_v13  ;;  %1848 = vmatpush.msra.mxu2 %v1627_v14  ;;  %v1682_v10 = vld [vmem:[#allocation2 + $0x1720] sm:$0xff]  ;;  %v1669_v13 = vld [vmem:[#allocation2 + $0x16b8] sm:$0xff]  ;;  %v1583_v14 = vld [vmem:[#allocation2 + $0x1408] sm:$0xff] }
 0x140   :  { %1760 = vmatpush.msrb.mxu3 %v1614_v57  ;;  %1783 = vmatpush.msrb.mxu0 %v1662_v39  ;;  %v1631_v57 = vld [vmem:[#allocation2 + $0x1588] sm:$0xff] }
 0x141   :  { %1826 = vmatpush.msra.mxu1 %v1576_v19  ;;  %1849 = vmatpush.msra.mxu2 %v1624_v20  ;;  %v1679_v39 = vld [vmem:[#allocation2 + $0x1708] sm:$0xff]  ;;  %v1666_v19 = vld [vmem:[#allocation2 + $0x16a0] sm:$0xff]  ;;  %v1580_v20 = vld [vmem:[#allocation2 + $0x13f0] sm:$0xff] }
 0x142   :  { %1860 = vmatpush.msra.mxu3 %v1708_v6  ;;  %1895 = vmatpush.msra.mxu0 %v1720_v23  ;;  %v1628_v6 = vld [vmem:[#allocation2 + $0x1570] sm:$0xff] }
 0x143   :  { %1827 = vmatpush.msra.mxu1 %v1573_v21  ;;  %1850 = vmatpush.msra.mxu2 %v1621_v24  ;;  %v1676_v23 = vld [vmem:[#allocation2 + $0x16f0] sm:$0xff]  ;;  %v5848_v21 = vld [vmem:[%s7079_s1 + $0x28] sm:$0x3] }
 0x144   :  { %1861 = vmatpush.msra.mxu3 %v1705_v25  ;;  %1896 = vmatpush.msra.mxu0 %v1717_v26  ;;  %v1663_v24 = vld [vmem:[#allocation2 + $0x1688] sm:$0xff]  ;;  %v1577_v25 = vld [vmem:[#allocation2 + $0x13d8] sm:$0xff] }
 0x145   :  { %1828 = vmatpush.msra.mxu1 %v1570_v27  ;;  %1851 = vmatpush.msra.mxu2 %v1618_v11  ;;  %v1625_v26 = vld [vmem:[#allocation2 + $0x1558] sm:$0xff]  ;;  %v5855_v11 = vld [vmem:[%s7079_s1 + $0x30] sm:$0x3] }
 0x146   :  { %1862 = vmatpush.msra.mxu3 %v1702_v48  ;;  %1897 = vmatpush.msra.mxu0 %v1714_v28  ;;  %v1673_v27 = vld [vmem:[#allocation2 + $0x16d8] sm:$0xff] }
 0x147   :  { %1829 = vmatpush.msra.mxu1 %v1567_v17  ;;  %1852 = vmatpush.msra.mxu2 %v1615_v52  ;;  %v5861_v48 = vld [vmem:[%s7079_s1 + $0x38] sm:$0x3]  ;;  %v1574_v17 = vld [vmem:[#allocation2 + $0x13c0] sm:$0xff] }
 0x148   :  { %1863 = vmatpush.msra.mxu3 %v1699_v29  ;;  %1898 = vmatpush.msra.mxu0 %v1711_v30  ;;  %v1721_v28 = vld [vmem:[#allocation2 + $0x1858] sm:$0xff]  ;;  %v1622_v52 = vld [vmem:[#allocation2 + $0x1540] sm:$0xff] }
 0x149   :  { %1738 = vmatmul.f32.vlgmr.msrb.gmra.mxu2 %v5817_v34  ;;  %1784 = vmatmul.f32.vlgmr.msrb.gmra.mxu0 %v5823_v53  ;;  %v1670_v29 = vld [vmem:[#allocation2 + $0x16c0] sm:$0xff] }
 0x14a   :  { %4457 = vmatmul.msk.f32.vlgmr.msrb.gmra.mxu1 %vm398_vm0, %v5829_v4  ;;  %1906 = vmatpush.msrb.mxu0 %v1613_v31  ;;  %v1718_v30 = vld [vmem:[#allocation2 + $0x1840] sm:$0xff]  ;;  %v1571_v31 = vld [vmem:[#allocation2 + $0x13a8] sm:$0xff] }
 0x14b   :  { %1929 = vmatpush.msrb.mxu1 %v1661_v58  ;;  %1952 = vmatpush.msrb.mxu2 %v1709_v33  ;;  %v1619_v58 = vld [vmem:[#allocation2 + $0x1528] sm:$0xff] }
 0x14c   :  { %1761 = vmatmul.f32.vlgmr.msrb.gmra.mxu3 %v5836_v37  ;;  %1907 = vmatpush.msrb.mxu0 %v1610_v12  ;;  %v1667_v33 = vld [vmem:[#allocation2 + $0x16a8] sm:$0xff] }
 0x14d   :  { %1864 = vmatpush.msra.mxu3 %v1696_v35  ;;  %1930 = vmatpush.msrb.mxu1 %v1658_v16  ;;  %v1715_v12 = vld [vmem:[#allocation2 + $0x1828] sm:$0xff]  ;;  %v1568_v35 = vld [vmem:[#allocation2 + $0x1390] sm:$0xff] }
 0x14e   :  { %1953 = vmatpush.msrb.mxu2 %v1706_v1  ;;  %1908 = vmatpush.msrb.mxu0 %v1607_v36  ;;  %v1616_v16 = vld [vmem:[#allocation2 + $0x1510] sm:$0xff] }
 0x14f   :  { %1865 = vmatpush.msra.mxu3 %v1693_v38  ;;  %1931 = vmatpush.msrb.mxu1 %v1655_v40  ;;  %v1664_v1 = vld [vmem:[#allocation2 + $0x1690] sm:$0xff]  ;;  %v1454_v38 = vld [vmem:[#allocation2 + $0x1008] sm:$0xff] }
 0x150   :  { %1954 = vmatpush.msrb.mxu2 %v1703_v47  ;;  %1909 = vmatpush.msrb.mxu0 %v1604_v15  ;;  %v1712_v36 = vld [vmem:[#allocation2 + $0x1810] sm:$0xff]  ;;  %v1502_v40 = vld [vmem:[#allocation2 + $0x1188] sm:$0xff] }
 0x151   :  { %1866 = vmatpush.msra.mxu3 %v1690_v41  ;;  %1932 = vmatpush.msrb.mxu1 %v1652_v42  ;;  %v1550_v47 = vld [vmem:[#allocation2 + $0x1308] sm:$0xff]  ;;  %v1451_v41 = vld [vmem:[#allocation2 + $0xff0] sm:$0xff] }
 0x152   :  { %1955 = vmatpush.msrb.mxu2 %v1700_v43  ;;  %1910 = vmatpush.msrb.mxu0 %v1601_v44  ;;  %v1562_v15 = vld [vmem:[#allocation2 + $0x1368] sm:$0xff]  ;;  %v1499_v42 = vld [vmem:[#allocation2 + $0x1170] sm:$0xff] }
 0x153   :  { %1867 = vmatpush.msra.mxu3 %v1687_v45  ;;  %1933 = vmatpush.msrb.mxu1 %v1649_v46  ;;  %v1547_v43 = vld [vmem:[#allocation2 + $0x12f0] sm:$0xff]  ;;  %v1448_v45 = vld [vmem:[#allocation2 + $0xfd8] sm:$0xff] }
 0x154   :  { %1956 = vmatpush.msrb.mxu2 %v1697_v18  ;;  %1911 = vmatpush.msrb.mxu0 %v1598_v49  ;;  %v1559_v44 = vld [vmem:[#allocation2 + $0x1350] sm:$0xff]  ;;  %v1496_v46 = vld [vmem:[#allocation2 + $0x1158] sm:$0xff] }
 0x155   :  { %1868 = vmatpush.msra.mxu3 %v1684_v50  ;;  %1934 = vmatpush.msrb.mxu1 %v1646_v51  ;;  %v1544_v18 = vld [vmem:[#allocation2 + $0x12d8] sm:$0xff]  ;;  %v1445_v50 = vld [vmem:[#allocation2 + $0xfc0] sm:$0xff] }
 0x156   :  { %1957 = vmatpush.msrb.mxu2 %v1694_v54  ;;  %1912 = vmatpush.msrb.mxu0 %v1595_v0  ;;  %v1556_v49 = vld [vmem:[#allocation2 + $0x1338] sm:$0xff]  ;;  %v1493_v51 = vld [vmem:[#allocation2 + $0x1140] sm:$0xff] }
 0x157   :  { %1869 = vmatpush.msra.mxu3 %v1681_v55  ;;  %1935 = vmatpush.msrb.mxu1 %v1643_v56  ;;  %v1541_v54 = vld [vmem:[#allocation2 + $0x12c0] sm:$0xff]  ;;  %v1455_v55 = vld [vmem:[#allocation2 + $0x1010] sm:$0xff]  ;;  %v1442_v56 = vld [vmem:[#allocation2 + $0xfa8] sm:$0xff] }
 0x158   :  { %1958 = vmatpush.msrb.mxu2 %v1691_v59  ;;  %1913 = vmatpush.msrb.mxu0 %v1592_v60  ;;  %v1553_v0 = vld [vmem:[#allocation2 + $0x1320] sm:$0xff]  ;;  %v1490_v59 = vld [vmem:[#allocation2 + $0x1128] sm:$0xff] }
 0x159   :  { %1741 = vmatmul.f32.gmra.mxu2 %v5842_v3  ;;  %1870 = vmatpush.msra.mxu3 %v1678_v22  ;;  %v1538_v60 = vld [vmem:[#allocation2 + $0x12a8] sm:$0xff]  ;;  %v1452_v22 = vld [vmem:[#allocation2 + $0xff8] sm:$0xff] }
 0x15a   :  { %1936 = vmatpush.msrb.mxu1 %v1640_v61  ;;  %1959 = vmatpush.msrb.mxu2 %v1688_v63  ;;  %v1439_v61 = vld [vmem:[#allocation2 + $0xf90] sm:$0xff] }
 0x15b   :  { %1871 = vmatpush.msra.mxu3 %v1675_v62  ;;  %1914 = vmatpush.msrb.mxu0 %v1589_v2  ;;  %v1487_v63 = vld [vmem:[#allocation2 + $0x1110] sm:$0xff]  ;;  %v1449_v2 = vld [vmem:[#allocation2 + $0xfe0] sm:$0xff] }
 0x15c   :  { %1937 = vmatpush.msrb.mxu1 %v1637_v5  ;;  %1960 = vmatpush.msrb.mxu2 %v1685_v7  ;;  %v1535_v62 = vld [vmem:[#allocation2 + $0x1290] sm:$0xff]  ;;  %v1484_v5 = vld [vmem:[#allocation2 + $0x10f8] sm:$0xff] }
 0x15d   :  { %1872 = vmatpush.msra.mxu3 %v1672_v32  ;;  %1915 = vmatpush.msrb.mxu0 %v1586_v8  ;;  %v1532_v7 = vld [vmem:[#allocation2 + $0x1278] sm:$0xff]  ;;  %v1446_v32 = vld [vmem:[#allocation2 + $0xfc8] sm:$0xff]  ;;  %v1433_v8 = vld [vmem:[#allocation2 + $0xf60] sm:$0xff] }
 0x15e   :  { %1938 = vmatpush.msrb.mxu1 %v1634_v9  ;;  %1961 = vmatpush.msrb.mxu2 %v1682_v10  ;;  %v1481_v9 = vld [vmem:[#allocation2 + $0x10e0] sm:$0xff] }
 0x15f   :  { %1873 = vmatpush.msra.mxu3 %v1669_v13  ;;  %1916 = vmatpush.msrb.mxu0 %v1583_v14  ;;  %v1529_v10 = vld [vmem:[#allocation2 + $0x1260] sm:$0xff]  ;;  %v1443_v13 = vld [vmem:[#allocation2 + $0xfb0] sm:$0xff]  ;;  %v1430_v14 = vld [vmem:[#allocation2 + $0xf48] sm:$0xff] }
 0x160   :  { %1939 = vmatpush.msrb.mxu1 %v1631_v57  ;;  %1962 = vmatpush.msrb.mxu2 %v1679_v39  ;;  %v1478_v57 = vld [vmem:[#allocation2 + $0x10c8] sm:$0xff] }
 0x161   :  { %1764 = vmatmul.f32.gmra.mxu3 %v5848_v21  ;;  %1853 = vmatmul.f32.vlgmr.msra.gmra.mxu2 %v5836_v37  ;;  %v1526_v39 = vld [vmem:[#allocation2 + $0x1248] sm:$0xff] }
 0x162   :  { %1874 = vmatpush.msra.mxu3 %v1666_v19  ;;  %1917 = vmatpush.msrb.mxu0 %v1580_v20  ;;  %v1440_v19 = vld [vmem:[#allocation2 + $0xf98] sm:$0xff]  ;;  %v1427_v20 = vld [vmem:[#allocation2 + $0xf30] sm:$0xff] }
 0x163   :  { %1940 = vmatpush.msrb.mxu1 %v1628_v6  ;;  %1963 = vmatpush.msrb.mxu2 %v1676_v23  ;;  %v1475_v6 = vld [vmem:[#allocation2 + $0x10b0] sm:$0xff] }
 0x164   :  { %1787 = vmatmul.f32.gmra.mxu0 %v5855_v11  ;;  %4458 = vmatmul.msk.f32.gmra.mxu1 %vm398_vm0, %v5861_v48  ;;  %v1523_v23 = vld [vmem:[#allocation2 + $0x1230] sm:$0xff] }
 0x165   :  { %1875 = vmatpush.msra.mxu3 %v1663_v24  ;;  %1918 = vmatpush.msrb.mxu0 %v1577_v25  ;;  %v1437_v24 = vld [vmem:[#allocation2 + $0xf80] sm:$0xff]  ;;  %v1424_v25 = vld [vmem:[#allocation2 + $0xf18] sm:$0xff] }
 0x166   :  { %1941 = vmatpush.msrb.mxu1 %v1625_v26  ;;  %1964 = vmatpush.msrb.mxu2 %v1673_v27  ;;  %v1472_v26 = vld [vmem:[#allocation2 + $0x1098] sm:$0xff] }
 0x167   :  { %1987 = vmatpush.msrb.mxu3 %v1721_v28  ;;  %1919 = vmatpush.msrb.mxu0 %v1574_v17  ;;  %v1520_v27 = vld [vmem:[#allocation2 + $0x1218] sm:$0xff]  ;;  %v1469_v28 = vld [vmem:[#allocation2 + $0x1080] sm:$0xff] }
 0x168   :  { %1942 = vmatpush.msrb.mxu1 %v1622_v52  ;;  %1965 = vmatpush.msrb.mxu2 %v1670_v29  ;;  %v1517_v17 = vld [vmem:[#allocation2 + $0x1200] sm:$0xff]  ;;  %v1431_v52 = vld [vmem:[#allocation2 + $0xf50] sm:$0xff]  ;;  %v5880_v29 = vpop.f32.mrf.mxu2 }
 0x169   :  { %1988 = vmatpush.msrb.mxu3 %v1718_v30  ;;  %1920 = vmatpush.msrb.mxu0 %v1571_v31  ;;  %v5885_v30 = vld [vmem:[%s7078_s0 + $0x18] sm:$0xff]  ;;  %v1514_v31 = vld [vmem:[#allocation2 + $0x11e8] sm:$0xff] }
 0x16a   :  { %1943 = vmatpush.msrb.mxu1 %v1619_v58  ;;  %1966 = vmatpush.msrb.mxu2 %v1667_v33  ;;  %v1428_v58 = vld [vmem:[#allocation2 + $0xf38] sm:$0xff]  ;;  %v1415_v33 = vld [vmem:[#allocation2 + $0xed0] sm:$0xff] }
 0x16b   :  { %1989 = vmatpush.msrb.mxu3 %v1715_v12  ;;  %1856 = vmatmul.f32.gmra.mxu2 %v5848_v21  ;;  %v1463_v12 = vld [vmem:[#allocation2 + $0x1050] sm:$0xff] }
 0x16c   :  { %1876 = vmatmul.f32.vlgmr.msra.gmra.mxu3 %v5823_v53  ;;  %1921 = vmatpush.msrb.mxu0 %v1568_v35  ;;  %v1511_v35 = vld [vmem:[#allocation2 + $0x11d0] sm:$0xff] }
 0x16d   :  { %1944 = vmatpush.msrb.mxu1 %v1616_v16  ;;  %1967 = vmatpush.msrb.mxu2 %v1664_v1  ;;  %v1425_v16 = vld [vmem:[#allocation2 + $0xf20] sm:$0xff]  ;;  %v1412_v1 = vld [vmem:[#allocation2 + $0xeb8] sm:$0xff] }
 0x16e   :  { %1990 = vmatpush.msrb.mxu3 %v1712_v36  ;;  %1830 = vmatmul.f32.vlgmr.msra.gmra.mxu1 %v5817_v34  ;;  %v1460_v36 = vld [vmem:[#allocation2 + $0x1038] sm:$0xff] }
 0x16f   :  { %4459 = vmatmul.msk.f32.vlgmr.msra.gmra.mxu0 %vm398_vm0, %v5829_v4  ;;  %2044 = vmatpush.msra.mxu1 %v1550_v47  ;;  %v1409_v47 = vld [vmem:[#allocation2 + $0xea0] sm:$0xff] }
 0x170   :  { %1998 = vmatpush.msra.mxu3 %v1454_v38  ;;  %2021 = vmatpush.msra.mxu0 %v1502_v40  ;;  %v1508_v38 = vld [vmem:[#allocation2 + $0x11b8] sm:$0xff]  ;;  %v1422_v40 = vld [vmem:[#allocation2 + $0xf08] sm:$0xff] }
 0x171   :  { %2079 = vmatpush.msra.mxu2 %v1562_v15  ;;  %2045 = vmatpush.msra.mxu1 %v1547_v43  ;;  %v1505_v15 = vld [vmem:[#allocation2 + $0x11a0] sm:$0xff]  ;;  %v1551_v43 = vld [vmem:[#allocation2 + $0x1310] sm:$0xff] }
 0x172   :  { %1999 = vmatpush.msra.mxu3 %v1451_v41  ;;  %2022 = vmatpush.msra.mxu0 %v1499_v42  ;;  %v1419_v41 = vld [vmem:[#allocation2 + $0xef0] sm:$0xff] }
 0x173   :  { %2080 = vmatpush.msra.mxu2 %v1559_v44  ;;  %2046 = vmatpush.msra.mxu1 %v1544_v18  ;;  %v1503_v42 = vld [vmem:[#allocation2 + $0x1190] sm:$0xff]  ;;  %v5892_v44 = vpop.f32.mrf.mxu2  ;;  %v5902_v18 = vpop.f32.mrf.mxu3 }
 0x174   :  { %2000 = vmatpush.msra.mxu3 %v1448_v45  ;;  %2023 = vmatpush.msra.mxu0 %v1496_v46  ;;  %v5897_v45 = vld [vmem:[%s7078_s0 + $0x38] sm:$0x3]  ;;  %v1563_v46 = vld [vmem:[#allocation2 + $0x1370] sm:$0xff] }
 0x175   :  { %2081 = vmatpush.msra.mxu2 %v1556_v49  ;;  %2047 = vmatpush.msra.mxu1 %v1541_v54  ;;  %v5907_v49 = vld [vmem:[%s7078_s0] sm:$0xff]  ;;  %v1560_v54 = vld [vmem:[#allocation2 + $0x1358] sm:$0xff] }
 0x176   :  { %2001 = vmatpush.msra.mxu3 %v1445_v50  ;;  %1968 = vmatmul.f32.vlgmr.msrb.gmra.mxu2 %v5823_v53  ;;  %v1436_v53 = vld [vmem:[#allocation2 + $0xf78] sm:$0xff] }
 0x177   :  { %2024 = vmatpush.msra.mxu0 %v1493_v51  ;;  %2082 = vmatpush.msra.mxu2 %v1553_v0  ;;  %v1500_v50 = vld [vmem:[#allocation2 + $0x1178] sm:$0xff]  ;;  %v1413_v0 = vld [vmem:[#allocation2 + $0xec0] sm:$0xff] }
 0x178   :  { %1879 = vmatmul.f32.gmra.mxu3 %v5855_v11  ;;  %2048 = vmatpush.msra.mxu1 %v1538_v60  ;;  %v1548_v51 = vld [vmem:[#allocation2 + $0x12f8] sm:$0xff]  ;;  %v1494_v60 = vld [vmem:[#allocation2 + $0x1148] sm:$0xff] }
 0x179   :  { %2090 = vmatpush.msrb.mxu2 %v1455_v55  ;;  %2002 = vmatpush.msra.mxu3 %v1442_v56  ;;  %v1545_v55 = vld [vmem:[#allocation2 + $0x12e0] sm:$0xff] }
 0x17a   :  { %2025 = vmatpush.msra.mxu0 %v1490_v59  ;;  %1833 = vmatmul.f32.gmra.mxu1 %v5842_v3  ;;  %v1557_v56 = vld [vmem:[#allocation2 + $0x1340] sm:$0xff]  ;;  %v1410_v59 = vld [vmem:[#allocation2 + $0xea8] sm:$0xff] }
 0x17b   :  { %2091 = vmatpush.msrb.mxu2 %v1452_v22  ;;  %4460 = vmatmul.msk.f32.gmra.mxu0 %vm398_vm0, %v5861_v48  ;;  %v1542_v22 = vld [vmem:[#allocation2 + $0x12c8] sm:$0xff] }
 0x17c   :  { %2003 = vmatpush.msra.mxu3 %v1439_v61  ;;  %2026 = vmatpush.msra.mxu0 %v1487_v63  ;;  %v1554_v61 = vld [vmem:[#allocation2 + $0x1328] sm:$0xff]  ;;  %v1456_v63 = vld [vmem:[#allocation2 + $0x1018] sm:$0xff] }
 0x17d   :  { %2049 = vmatpush.msra.mxu1 %v1535_v62  ;;  %2092 = vmatpush.msrb.mxu2 %v1449_v2  ;;  %v5910_v62 = vpop.f32.mrf.mxu1  ;;  %v5915_v2 = vld [vmem:[%s7078_s0 + $0x10] sm:$0xff] }
 0x17e   :  { %2004 = vmatpush.msra.mxu3 %v1436_v53  ;;  %2027 = vmatpush.msra.mxu0 %v1484_v5  ;;  %v1504_v53 = vld [vmem:[#allocation2 + $0x1198] sm:$0xff]  ;;  %v1491_v5 = vld [vmem:[#allocation2 + $0x1130] sm:$0xff] }
 0x17f   :  { %2050 = vmatpush.msra.mxu1 %v1532_v7  ;;  %2093 = vmatpush.msrb.mxu2 %v1446_v32  ;;  %v5918_v7 = vpop.f32.mrf.mxu2  ;;  %v1539_v32 = vld [vmem:[#allocation2 + $0x12b0] sm:$0xff] }
 0x180   :  { %1971 = vmatmul.f32.gmra.mxu2 %v5855_v11  ;;  %2005 = vmatpush.msra.mxu3 %v1433_v8  ;;  %v1434_v11 = vld [vmem:[#allocation2 + $0xf68] sm:$0xff]  ;;  %7085 = vst [vmem:[#allocation8_spill] sm:$0xff] %v5918_v7  ;;  %v1453_v8 = vld [vmem:[#allocation2 + $0x1000] sm:$0xff] }
 0x181   :  { %2028 = vmatpush.msra.mxu0 %v1481_v9  ;;  %2051 = vmatpush.msra.mxu1 %v1529_v10  ;;  %v5921_v9 = vpop.f32.mrf.mxu3  ;;  %v5926_v10 = vld [vmem:[%s7078_s0 + $0x20] sm:$0x3] }
 0x182   :  { %4461 = vmatmul.msk.f32.vlgmr.msrb.gmra.mxu3 %vm398_vm0, %v5829_v4  ;;  %2094 = vmatpush.msrb.mxu2 %v1443_v13  ;;  %v1421_v4 = vld [vmem:[#allocation2 + $0xf00] sm:$0xff] }
 0x183   :  { %2006 = vmatpush.msra.mxu3 %v1430_v14  ;;  %2029 = vmatpush.msra.mxu0 %v1478_v57  ;;  %v1501_v13 = vld [vmem:[#allocation2 + $0x1180] sm:$0xff]  ;;  %v1488_v14 = vld [vmem:[#allocation2 + $0x1118] sm:$0xff]  ;;  %v5929_v57 = vpop.f32.mrf.mxu0 }
 0x184   :  { %2052 = vmatpush.msra.mxu1 %v1526_v39  ;;  %2095 = vmatpush.msrb.mxu2 %v1440_v19  ;;  %v5934_v39 = vld [vmem:[%s7078_s0 + $0x8] sm:$0xff]  ;;  %v1536_v19 = vld [vmem:[#allocation2 + $0x1298] sm:$0xff]  ;;  %v4786_v7 = vld [vmem:[#allocation2 + $0x440] sm:$0xff] }
 0x185   :  { %1922 = vmatmul.f32.vlgmr.msrb.gmra.mxu0 %v5817_v34  ;;  %1945 = vmatmul.f32.vlgmr.msrb.gmra.mxu1 %v5836_v37  ;;  %v1418_v34 = vld [vmem:[#allocation2 + $0xee8] sm:$0xff] }
 0x186   :  { %2007 = vmatpush.msra.mxu3 %v1427_v20  ;;  %2030 = vmatpush.msra.mxu0 %v1475_v6  ;;  %v1466_v37 = vld [vmem:[#allocation2 + $0x1068] sm:$0xff] }
 0x187   :  { %2053 = vmatpush.msra.mxu1 %v1523_v23  ;;  %2096 = vmatpush.msrb.mxu2 %v1437_v24  ;;  %v1450_v20 = vld [vmem:[#allocation2 + $0xfe8] sm:$0xff]  ;;  %v1485_v23 = vld [vmem:[#allocation2 + $0x1100] sm:$0xff] }
 0x188   :  { %2008 = vmatpush.msra.mxu3 %v1424_v25  ;;  %2031 = vmatpush.msra.mxu0 %v1472_v26  ;;  %v1498_v6 = vld [vmem:[#allocation2 + $0x1168] sm:$0xff]  ;;  %v1533_v24 = vld [vmem:[#allocation2 + $0x1280] sm:$0xff]  ;;  %v1447_v25 = vld [vmem:[#allocation2 + $0xfd0] sm:$0xff] }
 0x189   :  { %2054 = vmatpush.msra.mxu1 %v1520_v27  ;;  %2097 = vmatpush.msrb.mxu2 %v1434_v11  ;;  %v1495_v26 = vld [vmem:[#allocation2 + $0x1150] sm:$0xff]  ;;  %v1482_v27 = vld [vmem:[#allocation2 + $0x10e8] sm:$0xff] }
 0x18a   :  { %2009 = vmatpush.msra.mxu3 %v1421_v4  ;;  %2032 = vmatpush.msra.mxu0 %v1469_v28  ;;  %v1530_v11 = vld [vmem:[#allocation2 + $0x1268] sm:$0xff]  ;;  %v1444_v4 = vld [vmem:[#allocation2 + $0xfb8] sm:$0xff]  ;;  %v5937_v28 = vpop.f32.mrf.mxu1 }
 0x18b   :  { %2055 = vmatpush.msra.mxu1 %v1517_v17  ;;  %4463 = vmatmul.msk.f32.vlgmr.msra.gmra.mxu2 %vm398_vm0, %v5885_v30  ;;  %v5942_v17 = vld [vmem:[%s7078_s0 + $0x30] sm:$0x3] }
 0x18c   :  { %4462 = vmatmul.msk.f32.gmra.mxu3 %vm398_vm0, %v5861_v48  ;;  %2098 = vmatpush.msrb.mxu2 %v1431_v52  ;;  %v1457_v48 = vld [vmem:[#allocation2 + $0x1020] sm:$0xff]  ;;  %v1492_v52 = vld [vmem:[#allocation2 + $0x1138] sm:$0xff] }
 0x18d   :  { %2010 = vmatpush.msra.mxu3 %v1418_v34  ;;  %2033 = vmatpush.msra.mxu0 %v1466_v37  ;;  %v1479_v34 = vld [vmem:[#allocation2 + $0x10d0] sm:$0xff] }
 0x18e   :  { %2056 = vmatpush.msra.mxu1 %v1514_v31  ;;  %2099 = vmatpush.msrb.mxu2 %v1428_v58  ;;  %v1527_v37 = vld [vmem:[#allocation2 + $0x1250] sm:$0xff]  ;;  %v5945_v31 = vpop.f32.mrf.mxu2  ;;  %v1441_v58 = vld [vmem:[#allocation2 + $0xfa0] sm:$0xff] }
 0x18f   :  { %2011 = vmatpush.msra.mxu3 %v1415_v33  ;;  %2034 = vmatpush.msra.mxu0 %v1463_v12  ;;  %7086 = vst [vmem:[#allocation9_spill] sm:$0xff] %v5945_v31  ;;  %v1489_v33 = vld [vmem:[#allocation2 + $0x1120] sm:$0xff]  ;;  %v5948_v12 = vpop.f32.mrf.mxu0  ;;  %v4781_v31 = vld [vmem:[#allocation2 + $0x1b8] sm:$0xff] }
 0x190   :  { %2057 = vmatpush.msra.mxu1 %v1511_v35  ;;  %2100 = vmatpush.msrb.mxu2 %v1425_v16  ;;  %v5953_v35 = vld [vmem:[%s7078_s0 + $0x28] sm:$0x3]  ;;  %v1476_v16 = vld [vmem:[#allocation2 + $0x10b8] sm:$0xff] }
 0x191   :  { %2012 = vmatpush.msra.mxu3 %v1412_v1  ;;  %2035 = vmatpush.msra.mxu0 %v1460_v36  ;;  %v1524_v1 = vld [vmem:[#allocation2 + $0x1238] sm:$0xff]  ;;  %v1438_v36 = vld [vmem:[#allocation2 + $0xf88] sm:$0xff] }
 0x192   :  { %2058 = vmatpush.msra.mxu1 %v1508_v38  ;;  %2101 = vmatpush.msrb.mxu2 %v1422_v40  ;;  %v1486_v38 = vld [vmem:[#allocation2 + $0x1108] sm:$0xff]  ;;  %v1473_v40 = vld [vmem:[#allocation2 + $0x10a0] sm:$0xff] }
 0x193   :  { %1948 = vmatmul.f32.gmra.mxu1 %v5848_v21  ;;  %2013 = vmatpush.msra.mxu3 %v1409_v47  ;;  %v1416_v21 = vld [vmem:[#allocation2 + $0xed8] sm:$0xff]  ;;  %v1521_v47 = vld [vmem:[#allocation2 + $0x1220] sm:$0xff] }
 0x194   :  { %2036 = vmatpush.msra.mxu0 %v1457_v48  ;;  %2059 = vmatpush.msra.mxu1 %v1505_v15  ;;  %v1435_v48 = vld [vmem:[#allocation2 + $0xf70] sm:$0xff] }
 0x195   :  { %4464 = vmatmul.msk.f32.gmra.mxu2 %vm398_vm0, %v5897_v45  ;;  %1925 = vmatmul.f32.gmra.mxu0 %v5842_v3  ;;  %v1497_v3 = vld [vmem:[#allocation2 + $0x1160] sm:$0xff]  ;;  %v1483_v15 = vld [vmem:[#allocation2 + $0x10f0] sm:$0xff] }
 0x196   :  { %2014 = vmatmul.f32.vlgmr.msra.gmra.mxu3 %v5907_v49  ;;  %2102 = vmatpush.msrb.mxu2 %v1419_v41  ;;  %v1470_v41 = vld [vmem:[#allocation2 + $0x1088] sm:$0xff] }
 0x197   :  { %2113 = vmatpush.msrb.mxu3 %v1503_v42  ;;  %2136 = vmatpush.msrb.mxu0 %v1551_v43  ;;  %v1518_v42 = vld [vmem:[#allocation2 + $0x1208] sm:$0xff]  ;;  %v5956_v43 = vpop.f32.mrf.mxu1 }
 0x198   :  { %2171 = vmatpush.msrb.mxu1 %v1563_v46  ;;  %2103 = vmatpush.msrb.mxu2 %v1416_v21  ;;  %7087 = vst [vmem:[#allocation10_spill] sm:$0xff] %v5956_v43  ;;  %v1480_v46 = vld [vmem:[#allocation2 + $0x10d8] sm:$0xff]  ;;  %v4806_v43 = vld [vmem:[#allocation2 + $0x130] sm:$0xff] }
 0x199   :  { %2114 = vmatpush.msrb.mxu3 %v1500_v50  ;;  %2137 = vmatpush.msrb.mxu0 %v1548_v51  ;;  %v1432_v21 = vld [vmem:[#allocation2 + $0xf58] sm:$0xff]  ;;  %v1467_v50 = vld [vmem:[#allocation2 + $0x1070] sm:$0xff] }
 0x19a   :  { %2172 = vmatpush.msrb.mxu1 %v1560_v54  ;;  %2104 = vmatpush.msrb.mxu2 %v1413_v0  ;;  %v1515_v51 = vld [vmem:[#allocation2 + $0x11f0] sm:$0xff]  ;;  %v1477_v54 = vld [vmem:[#allocation2 + $0x10c0] sm:$0xff] }
 0x19b   :  { %2115 = vmatpush.msrb.mxu3 %v1497_v3  ;;  %2138 = vmatpush.msrb.mxu0 %v1545_v55  ;;  %v1429_v0 = vld [vmem:[#allocation2 + $0xf40] sm:$0xff]  ;;  %v1464_v3 = vld [vmem:[#allocation2 + $0x1058] sm:$0xff] }
 0x19c   :  { %2173 = vmatpush.msrb.mxu1 %v1557_v56  ;;  %2105 = vmatpush.msrb.mxu2 %v1410_v59  ;;  %v1512_v55 = vld [vmem:[#allocation2 + $0x11d8] sm:$0xff]  ;;  %v1474_v56 = vld [vmem:[#allocation2 + $0x10a8] sm:$0xff] }
 0x19d   :  { %2060 = vmatmul.f32.vlgmr.msra.gmra.mxu1 %v5915_v2  ;;  %2116 = vmatpush.msrb.mxu3 %v1494_v60  ;;  %v1426_v59 = vld [vmem:[#allocation2 + $0xf28] sm:$0xff]  ;;  %v1461_v60 = vld [vmem:[#allocation2 + $0x1040] sm:$0xff] }
 0x19e   :  { %2139 = vmatpush.msrb.mxu0 %v1542_v22  ;;  %2174 = vmatpush.msrb.mxu1 %v1554_v61  ;;  %v1509_v22 = vld [vmem:[#allocation2 + $0x11c0] sm:$0xff]  ;;  %v1471_v61 = vld [vmem:[#allocation2 + $0x1090] sm:$0xff] }
 0x19f   :  { %2106 = vmatmul.f32.vlgmr.msrb.gmra.mxu2 %v5907_v49  ;;  %2017 = vmatmul.f32.gmra.mxu3 %v5926_v10 }
 0x1a0   :  { %2182 = vmatpush.msra.mxu1 %v1456_v63  ;;  %2205 = vmatpush.msra.mxu2 %v1504_v53  ;;  %v1423_v63 = vld [vmem:[#allocation2 + $0xf10] sm:$0xff]  ;;  %v1458_v53 = vld [vmem:[#allocation2 + $0x1028] sm:$0xff] }
 0x1a1   :  { %2037 = vmatmul.f32.vlgmr.msra.gmra.mxu0 %v5934_v39  ;;  %2117 = vmatpush.msrb.mxu3 %v1491_v5  ;;  %v1506_v5 = vld [vmem:[#allocation2 + $0x11a8] sm:$0xff] }
 0x1a2   :  { %2140 = vmatpush.msrb.mxu0 %v1539_v32  ;;  %2183 = vmatpush.msra.mxu1 %v1453_v8  ;;  %v1420_v32 = vld [vmem:[#allocation2 + $0xef8] sm:$0xff]  ;;  %v5960_v8 = vpop.f32.mrf.mxu1 }
 0x1a3   :  { %2206 = vmatpush.msra.mxu2 %v1501_v13  ;;  %2118 = vmatpush.msrb.mxu3 %v1488_v14  ;;  %7088 = vst [vmem:[#allocation11_spill] sm:$0xff] %v5960_v8  ;;  %v1468_v13 = vld [vmem:[#allocation2 + $0x1078] sm:$0xff]  ;;  %v4805_v8 = vld [vmem:[#allocation2 + $0x3e0] sm:$0xff] }
 0x1a4   :  { %2141 = vmatpush.msrb.mxu0 %v1536_v19  ;;  %2184 = vmatpush.msra.mxu1 %v1450_v20  ;;  %v1552_v14 = vld [vmem:[#allocation2 + $0x1318] sm:$0xff]  ;;  %v1417_v20 = vld [vmem:[#allocation2 + $0xee0] sm:$0xff] }
 0x1a5   :  { %2207 = vmatpush.msra.mxu2 %v1498_v6  ;;  %2119 = vmatpush.msrb.mxu3 %v1485_v23  ;;  %v1564_v19 = vld [vmem:[#allocation2 + $0x1378] sm:$0xff]  ;;  %v5964_v6 = vpop.f32.mrf.mxu3  ;;  %v1465_v23 = vld [vmem:[#allocation2 + $0x1060] sm:$0xff] }
 0x1a6   :  { %2142 = vmatpush.msrb.mxu0 %v1533_v24  ;;  %2185 = vmatpush.msra.mxu1 %v1447_v25  ;;  %7089 = vst [vmem:[#allocation12_spill] sm:$0xff] %v5964_v6  ;;  %v1549_v24 = vld [vmem:[#allocation2 + $0x1300] sm:$0xff] }
 0x1a7   :  { %2208 = vmatpush.msra.mxu2 %v1495_v26  ;;  %2063 = vmatmul.f32.gmra.mxu1 %v5942_v17  ;;  %v1561_v25 = vld [vmem:[#allocation2 + $0x1360] sm:$0xff]  ;;  %v1414_v26 = vld [vmem:[#allocation2 + $0xec8] sm:$0xff] }
 0x1a8   :  { %2120 = vmatpush.msrb.mxu3 %v1482_v27  ;;  %2143 = vmatpush.msrb.mxu0 %v1530_v11  ;;  %v1462_v27 = vld [vmem:[#allocation2 + $0x1048] sm:$0xff]  ;;  %v4959_v6 = vld [vmem:[#allocation2 + $0xac0] sm:$0xff] }
 0x1a9   :  { %2109 = vmatmul.f32.gmra.mxu2 %v5926_v10  ;;  %2186 = vmatpush.msra.mxu1 %v1444_v4  ;;  %v1546_v11 = vld [vmem:[#allocation2 + $0x12e8] sm:$0xff] }
 0x1aa   :  { %2209 = vmatpush.msra.mxu2 %v1492_v52  ;;  %2040 = vmatmul.f32.gmra.mxu0 %v5953_v35  ;;  %v1558_v4 = vld [vmem:[#allocation2 + $0x1348] sm:$0xff]  ;;  %v1411_v52 = vld [vmem:[#allocation2 + $0xeb0] sm:$0xff] }
 0x1ab   :  { %2121 = vmatpush.msrb.mxu3 %v1479_v34  ;;  %2144 = vmatpush.msrb.mxu0 %v1527_v37  ;;  %v1459_v34 = vld [vmem:[#allocation2 + $0x1030] sm:$0xff] }
 0x1ac   :  { %2187 = vmatpush.msra.mxu1 %v1441_v58  ;;  %2210 = vmatpush.msra.mxu2 %v1489_v33  ;;  %v1543_v37 = vld [vmem:[#allocation2 + $0x12d0] sm:$0xff]  ;;  %v2320_v33 = vld [vmem:[#allocation2 + $0x19c8] sm:$0xff] }
 0x1ad   :  { %2122 = vmatpush.msrb.mxu3 %v1476_v16  ;;  %2145 = vmatpush.msrb.mxu0 %v1524_v1  ;;  %v1555_v58 = vld [vmem:[#allocation2 + $0x1330] sm:$0xff]  ;;  %v2368_v16 = vld [vmem:[#allocation2 + $0x1b48] sm:$0xff]  ;;  %v5967_v1 = vpop.f32.mrf.mxu1 }
 0x1ae   :  { %2188 = vmatpush.msra.mxu1 %v1438_v36  ;;  %2211 = vmatpush.msra.mxu2 %v1486_v38  ;;  %7090 = vst [vmem:[#allocation13_spill] sm:$0xff] %v5967_v1  ;;  %v2416_v36 = vld [vmem:[#allocation2 + $0x1cc8] sm:$0xff]  ;;  %v5970_v38 = vpop.f32.mrf.mxu0  ;;  %v4612_v1 = vld [vmem:[#allocation2 + $0x710] sm:$0xff] }
 0x1af   :  { %2123 = vmatpush.msrb.mxu3 %v1473_v40  ;;  %2146 = vmatpush.msrb.mxu0 %v1521_v47  ;;  %7091 = vst [vmem:[#allocation14_spill] sm:$0xff] %v5970_v38  ;;  %v5972_v40 = vpop.f32.mrf.mxu2  ;;  %v1540_v47 = vld [vmem:[#allocation2 + $0x12b8] sm:$0xff]  ;;  %v4958_v38 = vld [vmem:[#allocation2 + $0xd70] sm:$0xff] }
 0x1b0   :  { %2189 = vmatpush.msra.mxu1 %v1435_v48  ;;  %2212 = vmatpush.msra.mxu2 %v1483_v15  ;;  %7092 = vst [vmem:[#allocation15_spill] sm:$0xff] %v5972_v40  ;;  %v2317_v48 = vld [vmem:[#allocation2 + $0x19b0] sm:$0xff]  ;;  %v4783_v40 = vld [vmem:[#allocation2 + $0x4b8] sm:$0xff] }
 0x1b1   :  { %2124 = vmatpush.msrb.mxu3 %v1470_v41  ;;  %2147 = vmatpush.msrb.mxu0 %v1518_v42  ;;  %v2365_v15 = vld [vmem:[#allocation2 + $0x1b30] sm:$0xff]  ;;  %v5976_v42 = vpop.f32.mrf.mxu3 }
 0x1b2   :  { %4465 = vmatmul.msk.f32.vlgmr.msrb.gmra.mxu1 %vm398_vm0, %v5885_v30  ;;  %2213 = vmatpush.msra.mxu2 %v1480_v46  ;;  %v2413_v41 = vld [vmem:[#allocation2 + $0x1cb0] sm:$0xff]  ;;  %7093 = vst [vmem:[#allocation16_spill] sm:$0xff] %v5976_v42  ;;  %v2314_v46 = vld [vmem:[#allocation2 + $0x1998] sm:$0xff] }
 0x1b3   :  { %2190 = vmatpush.msra.mxu1 %v1432_v21  ;;  %2125 = vmatpush.msrb.mxu3 %v1467_v50  ;;  %v2362_v21 = vld [vmem:[#allocation2 + $0x1b18] sm:$0xff] }
 0x1b4   :  { %2148 = vmatpush.msrb.mxu0 %v1515_v51  ;;  %2214 = vmatpush.msra.mxu2 %v1477_v54  ;;  %v2410_v50 = vld [vmem:[#allocation2 + $0x1c98] sm:$0xff]  ;;  %v2311_v51 = vld [vmem:[#allocation2 + $0x1980] sm:$0xff] }
 0x1b5   :  { %2191 = vmatpush.msra.mxu1 %v1429_v0  ;;  %2126 = vmatpush.msrb.mxu3 %v1464_v3  ;;  %v2359_v54 = vld [vmem:[#allocation2 + $0x1b00] sm:$0xff]  ;;  %v1531_v3 = vld [vmem:[#allocation2 + $0x1270] sm:$0xff] }
 0x1b6   :  { %2149 = vmatpush.msrb.mxu0 %v1512_v55  ;;  %2215 = vmatpush.msra.mxu2 %v1474_v56  ;;  %v2407_v0 = vld [vmem:[#allocation2 + $0x1c80] sm:$0xff]  ;;  %v2308_v55 = vld [vmem:[#allocation2 + $0x1968] sm:$0xff] }
 0x1b7   :  { %2192 = vmatpush.msra.mxu1 %v1426_v59  ;;  %2127 = vmatpush.msrb.mxu3 %v1461_v60  ;;  %v2356_v56 = vld [vmem:[#allocation2 + $0x1ae8] sm:$0xff]  ;;  %v5979_v60 = vpop.f32.mrf.mxu1 }
 0x1b8   :  { %2150 = vmatpush.msrb.mxu0 %v1509_v22  ;;  %2216 = vmatpush.msra.mxu2 %v1471_v61  ;;  %v2404_v59 = vld [vmem:[#allocation2 + $0x1c68] sm:$0xff]  ;;  %7094 = vst [vmem:[#allocation17_spill] sm:$0xff] %v5979_v60  ;;  %v1528_v22 = vld [vmem:[#allocation2 + $0x1258] sm:$0xff]  ;;  %v5982_v61 = vpop.f32.mrf.mxu2  ;;  %v4589_v60 = vld [vmem:[#allocation2 + $0x920] sm:$0xff] }
 0x1b9   :  { %2193 = vmatpush.msra.mxu1 %v1423_v63  ;;  %2128 = vmatpush.msrb.mxu3 %v1458_v53  ;;  %7095 = vst [vmem:[#allocation18_spill] sm:$0xff] %v5982_v61  ;;  %v2305_v63 = vld [vmem:[#allocation2 + $0x1950] sm:$0xff] }
 0x1ba   :  { %2151 = vmatpush.msrb.mxu0 %v1506_v5  ;;  %4466 = vmatmul.msk.f32.gmra.mxu1 %vm398_vm0, %v5897_v45  ;;  %v2353_v53 = vld [vmem:[#allocation2 + $0x1ad0] sm:$0xff] }
 0x1bb   :  { %2129 = vmatmul.f32.vlgmr.msrb.gmra.mxu3 %v5934_v39  ;;  %2194 = vmatpush.msra.mxu1 %v1420_v32  ;;  %v2401_v5 = vld [vmem:[#allocation2 + $0x1c50] sm:$0xff]  ;;  %v1525_v32 = vld [vmem:[#allocation2 + $0x1240] sm:$0xff] }
 0x1bc   :  { %2217 = vmatpush.msra.mxu2 %v1468_v13  ;;  %2228 = vmatpush.msra.mxu3 %v1552_v14  ;;  %v5985_v13 = vpop.f32.mrf.mxu0  ;;  %v2302_v14 = vld [vmem:[#allocation2 + $0x1938] sm:$0xff]  ;;  %v4688_v61 = vld [vmem:[#allocation2 + $0x550] sm:$0xff] }
 0x1bd   :  { %2263 = vmatpush.msra.mxu0 %v1564_v19  ;;  %2195 = vmatpush.msra.mxu1 %v1417_v20  ;;  %7096 = vst [vmem:[#allocation19_spill] sm:$0xff] %v5985_v13  ;;  %v2350_v19 = vld [vmem:[#allocation2 + $0x1ab8] sm:$0xff]  ;;  %v1522_v20 = vld [vmem:[#allocation2 + $0x1228] sm:$0xff]  ;;  %v4942_v13 = vld [vmem:[#allocation2 + $0xdd0] sm:$0xff] }
 0x1be   :  { %2218 = vmatpush.msra.mxu2 %v1465_v23  ;;  %2229 = vmatpush.msra.mxu3 %v1549_v24  ;;  %v2347_v23 = vld [vmem:[#allocation2 + $0x1aa0] sm:$0xff] }
 0x1bf   :  { %2264 = vmatpush.msra.mxu0 %v1561_v25  ;;  %2196 = vmatpush.msra.mxu1 %v1414_v26  ;;  %v2395_v24 = vld [vmem:[#allocation2 + $0x1c20] sm:$0xff]  ;;  %v1519_v25 = vld [vmem:[#allocation2 + $0x1210] sm:$0xff]  ;;  %v2296_v26 = vld [vmem:[#allocation2 + $0x1908] sm:$0xff] }
 0x1c0   :  { %2219 = vmatpush.msra.mxu2 %v1462_v27  ;;  %2230 = vmatpush.msra.mxu3 %v1546_v11  ;;  %v2344_v27 = vld [vmem:[#allocation2 + $0x1a88] sm:$0xff] }
 0x1c1   :  { %2265 = vmatpush.msra.mxu0 %v1558_v4  ;;  %2197 = vmatpush.msra.mxu1 %v1411_v52  ;;  %v2392_v11 = vld [vmem:[#allocation2 + $0x1c08] sm:$0xff]  ;;  %v1516_v4 = vld [vmem:[#allocation2 + $0x11f8] sm:$0xff]  ;;  %v2293_v52 = vld [vmem:[#allocation2 + $0x18f0] sm:$0xff] }
 0x1c2   :  { %2220 = vmatpush.msra.mxu2 %v1459_v34  ;;  %2231 = vmatpush.msra.mxu3 %v1543_v37  ;;  %v2341_v34 = vld [vmem:[#allocation2 + $0x1a70] sm:$0xff] }
 0x1c3   :  { %2266 = vmatpush.msra.mxu0 %v1555_v58  ;;  %2198 = vmatmul.f32.vlgmr.msra.gmra.mxu1 %v5907_v49  ;;  %v1537_v49 = vld [vmem:[#allocation2 + $0x12a0] sm:$0xff]  ;;  %v2389_v37 = vld [vmem:[#allocation2 + $0x1bf0] sm:$0xff] }
 0x1c4   :  { %2152 = vmatmul.f32.vlgmr.msrb.gmra.mxu0 %v5915_v2  ;;  %2221 = vmatmul.f32.vlgmr.msra.gmra.mxu2 %v5934_v39  ;;  %v1534_v39 = vld [vmem:[#allocation2 + $0x1288] sm:$0xff]  ;;  %v1513_v58 = vld [vmem:[#allocation2 + $0x11e0] sm:$0xff] }
 0x1c5   :  { %2431 = vmatpush.msrb.mxu0 %v2320_v33  ;;  %2454 = vmatpush.msrb.mxu1 %v2368_v16  ;;  %v2290_v33 = vld [vmem:[#allocation2 + $0x18d8] sm:$0xff] }
 0x1c6   :  { %2477 = vmatpush.msrb.mxu2 %v2416_v36  ;;  %2132 = vmatmul.f32.gmra.mxu3 %v5953_v35  ;;  %v2338_v16 = vld [vmem:[#allocation2 + $0x1a58] sm:$0xff] }
 0x1c7   :  { %2232 = vmatpush.msra.mxu3 %v1540_v47  ;;  %2432 = vmatpush.msrb.mxu0 %v2317_v48  ;;  %v2386_v36 = vld [vmem:[#allocation2 + $0x1bd8] sm:$0xff]  ;;  %v1510_v47 = vld [vmem:[#allocation2 + $0x11c8] sm:$0xff]  ;;  %v2287_v48 = vld [vmem:[#allocation2 + $0x18c0] sm:$0xff] }
 0x1c8   :  { %2455 = vmatpush.msrb.mxu1 %v2365_v15  ;;  %2478 = vmatpush.msrb.mxu2 %v2413_v41  ;;  %v2335_v15 = vld [vmem:[#allocation2 + $0x1a40] sm:$0xff] }
 0x1c9   :  { %2233 = vmatpush.msra.mxu3 %v1537_v49  ;;  %2433 = vmatpush.msrb.mxu0 %v2314_v46  ;;  %v2383_v41 = vld [vmem:[#allocation2 + $0x1bc0] sm:$0xff]  ;;  %v1507_v49 = vld [vmem:[#allocation2 + $0x11b0] sm:$0xff]  ;;  %v2284_v46 = vld [vmem:[#allocation2 + $0x18a8] sm:$0xff] }
 0x1ca   :  { %2456 = vmatpush.msrb.mxu1 %v2362_v21  ;;  %2479 = vmatpush.msrb.mxu2 %v2410_v50  ;;  %v2332_v21 = vld [vmem:[#allocation2 + $0x1a28] sm:$0xff] }
 0x1cb   :  { %2234 = vmatpush.msra.mxu3 %v1534_v39  ;;  %2434 = vmatpush.msrb.mxu0 %v2311_v51  ;;  %v2380_v50 = vld [vmem:[#allocation2 + $0x1ba8] sm:$0xff]  ;;  %v5988_v51 = vpop.f32.mrf.mxu3 }
 0x1cc   :  { %2457 = vmatpush.msrb.mxu1 %v2359_v54  ;;  %2480 = vmatpush.msrb.mxu2 %v2407_v0  ;;  %v2428_v39 = vld [vmem:[#allocation2 + $0x1d28] sm:$0xff]  ;;  %7097 = vst [vmem:[#allocation20_spill] sm:$0xff] %v5988_v51  ;;  %v2281_v54 = vld [vmem:[#allocation2 + $0x1890] sm:$0xff]  ;;  %v4785_v51 = vld [vmem:[#allocation2 + $0x1a0] sm:$0xff] }
 0x1cd   :  { %2235 = vmatpush.msra.mxu3 %v1531_v3  ;;  %2201 = vmatmul.f32.gmra.mxu1 %v5926_v10  ;;  %v2398_v10 = vld [vmem:[#allocation2 + $0x1c38] sm:$0xff]  ;;  %v2329_v0 = vld [vmem:[#allocation2 + $0x1a10] sm:$0xff] }
 0x1ce   :  { %2224 = vmatmul.f32.gmra.mxu2 %v5953_v35  ;;  %2435 = vmatpush.msrb.mxu0 %v2308_v55  ;;  %v2299_v35 = vld [vmem:[#allocation2 + $0x1920] sm:$0xff]  ;;  %v2377_v3 = vld [vmem:[#allocation2 + $0x1b90] sm:$0xff] }
 0x1cf   :  { %2458 = vmatpush.msrb.mxu1 %v2356_v56  ;;  %2481 = vmatpush.msrb.mxu2 %v2404_v59  ;;  %v2425_v55 = vld [vmem:[#allocation2 + $0x1d10] sm:$0xff]  ;;  %v5991_v56 = vpop.f32.mrf.mxu0  ;;  %v2278_v59 = vld [vmem:[#allocation2 + $0x1878] sm:$0xff] }
 0x1d0   :  { %2155 = vmatmul.f32.gmra.mxu0 %v5942_v17  ;;  %2236 = vmatpush.msra.mxu3 %v1528_v22  ;;  %7098 = vst [vmem:[#allocation21_spill] sm:$0xff] %v5991_v56  ;;  %v2326_v22 = vld [vmem:[#allocation2 + $0x19f8] sm:$0xff]  ;;  %v4698_v56 = vld [vmem:[#allocation2 + $0x820] sm:$0xff] }
 0x1d1   :  { %2436 = vmatpush.msrb.mxu0 %v2305_v63  ;;  %2459 = vmatpush.msrb.mxu1 %v2353_v53  ;;  %v2374_v63 = vld [vmem:[#allocation2 + $0x1b78] sm:$0xff] }
 0x1d2   :  { %2482 = vmatpush.msrb.mxu2 %v2401_v5  ;;  %2237 = vmatpush.msra.mxu3 %v1525_v32  ;;  %v2422_v53 = vld [vmem:[#allocation2 + $0x1cf8] sm:$0xff]  ;;  %v2323_v5 = vld [vmem:[#allocation2 + $0x19e0] sm:$0xff] }
 0x1d3   :  { %2437 = vmatpush.msrb.mxu0 %v2302_v14  ;;  %2460 = vmatpush.msrb.mxu1 %v2350_v19  ;;  %v2371_v32 = vld [vmem:[#allocation2 + $0x1b60] sm:$0xff]  ;;  %v2321_v19 = vld [vmem:[#allocation2 + $0x19d0] sm:$0xff] }
 0x1d4   :  { %2483 = vmatpush.msrb.mxu2 %v2398_v10  ;;  %2238 = vmatpush.msra.mxu3 %v1522_v20  ;;  %v2419_v14 = vld [vmem:[#allocation2 + $0x1ce0] sm:$0xff]  ;;  %v2369_v10 = vld [vmem:[#allocation2 + $0x1b50] sm:$0xff] }
 0x1d5   :  { %2438 = vmatpush.msrb.mxu0 %v2299_v35  ;;  %2461 = vmatpush.msrb.mxu1 %v2347_v23  ;;  %v2429_v20 = vld [vmem:[#allocation2 + $0x1d30] sm:$0xff]  ;;  %v2366_v35 = vld [vmem:[#allocation2 + $0x1b38] sm:$0xff] }
 0x1d6   :  { %2484 = vmatpush.msrb.mxu2 %v2395_v24  ;;  %2239 = vmatpush.msra.mxu3 %v1519_v25  ;;  %v2318_v23 = vld [vmem:[#allocation2 + $0x19b8] sm:$0xff]  ;;  %v5995_v25 = vpop.f32.mrf.mxu3 }
 0x1d7   :  { %2439 = vmatpush.msrb.mxu0 %v2296_v26  ;;  %2462 = vmatpush.msrb.mxu1 %v2344_v27  ;;  %v2414_v24 = vld [vmem:[#allocation2 + $0x1cb8] sm:$0xff]  ;;  %7099 = vst [vmem:[#allocation22_spill] sm:$0xff] %v5995_v25  ;;  %v2315_v27 = vld [vmem:[#allocation2 + $0x19a0] sm:$0xff]  ;;  %v4689_v25 = vld [vmem:[#allocation2 + $0x6d0] sm:$0xff] }
 0x1d8   :  { %2485 = vmatpush.msrb.mxu2 %v2392_v11  ;;  %2240 = vmatpush.msra.mxu3 %v1516_v4  ;;  %v2426_v26 = vld [vmem:[#allocation2 + $0x1d18] sm:$0xff]  ;;  %v2363_v11 = vld [vmem:[#allocation2 + $0x1b20] sm:$0xff] }
 0x1d9   :  { %2440 = vmatpush.msrb.mxu0 %v2293_v52  ;;  %2463 = vmatpush.msrb.mxu1 %v2341_v34  ;;  %v2411_v4 = vld [vmem:[#allocation2 + $0x1ca0] sm:$0xff]  ;;  %v5998_v34 = vpop.f32.mrf.mxu0 }
 0x1da   :  { %2486 = vmatpush.msrb.mxu2 %v2389_v37  ;;  %2241 = vmatpush.msra.mxu3 %v1513_v58  ;;  %v2423_v52 = vld [vmem:[#allocation2 + $0x1d00] sm:$0xff]  ;;  %7100 = vst [vmem:[#allocation23_spill] sm:$0xff] %v5998_v34  ;;  %v2312_v37 = vld [vmem:[#allocation2 + $0x1988] sm:$0xff] }
 0x1db   :  { %2441 = vmatpush.msrb.mxu0 %v2290_v33  ;;  %2464 = vmatpush.msrb.mxu1 %v2338_v16  ;;  %v2360_v58 = vld [vmem:[#allocation2 + $0x1b08] sm:$0xff] }
 0x1dc   :  { %2487 = vmatpush.msrb.mxu2 %v2386_v36  ;;  %2242 = vmatpush.msra.mxu3 %v1510_v47  ;;  %v2408_v33 = vld [vmem:[#allocation2 + $0x1c88] sm:$0xff]  ;;  %v2322_v36 = vld [vmem:[#allocation2 + $0x19d8] sm:$0xff]  ;;  %v2357_v47 = vld [vmem:[#allocation2 + $0x1af0] sm:$0xff] }
 0x1dd   :  { %2442 = vmatpush.msrb.mxu0 %v2287_v48  ;;  %2465 = vmatpush.msrb.mxu1 %v2335_v15  ;;  %v2420_v16 = vld [vmem:[#allocation2 + $0x1ce8] sm:$0xff]  ;;  %v2405_v48 = vld [vmem:[#allocation2 + $0x1c70] sm:$0xff]  ;;  %v6002_v15 = vpop.f32.mrf.mxu2 }
 0x1de   :  { %2488 = vmatpush.msrb.mxu2 %v2383_v41  ;;  %2243 = vmatpush.msra.mxu3 %v1507_v49  ;;  %v2319_v41 = vld [vmem:[#allocation2 + $0x19c0] sm:$0xff]  ;;  %v2306_v49 = vld [vmem:[#allocation2 + $0x1958] sm:$0xff] }
 0x1df   :  { %2244 = vmatmul.f32.vlgmr.msra.gmra.mxu3 %v5915_v2  ;;  %2443 = vmatpush.msrb.mxu0 %v2284_v46  ;;  %v2275_v2 = vld [vmem:[#allocation2 + $0x1860] sm:$0xff]  ;;  %v2354_v46 = vld [vmem:[#allocation2 + $0x1ad8] sm:$0xff] }
 0x1e0   :  { %2466 = vmatpush.msrb.mxu1 %v2332_v21  ;;  %2489 = vmatpush.msrb.mxu2 %v2380_v50  ;;  %v2402_v21 = vld [vmem:[#allocation2 + $0x1c58] sm:$0xff]  ;;  %v6010_v50 = vpop.f32.mrf.mxu3 }
 0x1e1   :  { %2512 = vmatpush.msrb.mxu3 %v2428_v39  ;;  %4467 = vmatmul.msk.f32.vlgmr.msra.gmra.mxu0 %vm398_vm0, %v5885_v30  ;;  %v2417_v30 = vld [vmem:[#allocation2 + $0x1cd0] sm:$0xff]  ;;  %v6015_v39 = vld [vmem:[%s7080_s2 + $0x18] sm:$0xff] }
 0x1e2   :  { %2444 = vmatpush.msrb.mxu0 %v2281_v54  ;;  %2467 = vmatpush.msrb.mxu1 %v2329_v0  ;;  %v2316_v54 = vld [vmem:[#allocation2 + $0x19a8] sm:$0xff]  ;;  %v2303_v0 = vld [vmem:[#allocation2 + $0x1940] sm:$0xff] }
 0x1e3   :  { %2490 = vmatpush.msrb.mxu2 %v2377_v3  ;;  %2513 = vmatpush.msrb.mxu3 %v2425_v55  ;;  %v2351_v3 = vld [vmem:[#allocation2 + $0x1ac0] sm:$0xff] }
 0x1e4   :  { %2445 = vmatpush.msrb.mxu0 %v2278_v59  ;;  %2468 = vmatpush.msrb.mxu1 %v2326_v22  ;;  %v2399_v55 = vld [vmem:[#allocation2 + $0x1c40] sm:$0xff]  ;;  %v6019_v59 = vpop.f32.mrf.mxu1  ;;  %v6021_v22 = vpop.f32.mrf.mxu0 }
 0x1e5   :  { %2491 = vmatpush.msrb.mxu2 %v2374_v63  ;;  %2514 = vmatpush.msrb.mxu3 %v2422_v53  ;;  %7101 = vst [vmem:[#allocation24_spill] sm:$0xff] %v6021_v22  ;;  %v6026_v63 = vld [vmem:[%s7080_s2] sm:$0xff]  ;;  %v6032_v53 = vld [vmem:[%s7080_s2 + $0x8] sm:$0xff] }
 0x1e6   :  { %2446 = vmatpush.msrb.mxu0 %v2275_v2  ;;  %2469 = vmatpush.msrb.mxu1 %v2323_v5  ;;  %v2313_v2 = vld [vmem:[#allocation2 + $0x1990] sm:$0xff]  ;;  %v2300_v5 = vld [vmem:[#allocation2 + $0x1928] sm:$0xff] }
 0x1e7   :  { %2492 = vmatpush.msrb.mxu2 %v2371_v32  ;;  %2515 = vmatpush.msrb.mxu3 %v2419_v14  ;;  %v2348_v32 = vld [vmem:[#allocation2 + $0x1aa8] sm:$0xff] }
 0x1e8   :  { %2546 = vmatpush.msra.mxu0 %v2369_v10  ;;  %2569 = vmatpush.msra.mxu1 %v2417_v30  ;;  %v2396_v14 = vld [vmem:[#allocation2 + $0x1c28] sm:$0xff]  ;;  %v2310_v10 = vld [vmem:[#allocation2 + $0x1978] sm:$0xff]  ;;  %v2345_v30 = vld [vmem:[#allocation2 + $0x1a90] sm:$0xff] }
 0x1e9   :  { %2523 = vmatpush.msra.mxu3 %v2321_v19  ;;  %2604 = vmatpush.msra.mxu2 %v2429_v20  ;;  %v2297_v19 = vld [vmem:[#allocation2 + $0x1910] sm:$0xff]  ;;  %v4986_v22 = vld [vmem:[#allocation2 + $0xcc8] sm:$0xff] }
 0x1ea   :  { %2247 = vmatmul.f32.gmra.mxu3 %v5942_v17  ;;  %2547 = vmatpush.msra.mxu0 %v2366_v35  ;;  %v2309_v17 = vld [vmem:[#allocation2 + $0x1970] sm:$0xff]  ;;  %v6035_v35 = vpop.f32.mrf.mxu2 }
 0x1eb   :  { %2524 = vmatpush.msra.mxu3 %v2318_v23  ;;  %2570 = vmatpush.msra.mxu1 %v2414_v24  ;;  %v2393_v20 = vld [vmem:[#allocation2 + $0x1c10] sm:$0xff]  ;;  %7102 = vst [vmem:[#allocation25_spill] sm:$0xff] %v6035_v35  ;;  %v2307_v24 = vld [vmem:[#allocation2 + $0x1960] sm:$0xff] }
 0x1ec   :  { %2605 = vmatpush.msra.mxu2 %v2426_v26  ;;  %4468 = vmatmul.msk.f32.gmra.mxu0 %vm398_vm0, %v5897_v45  ;;  %v6007_v45 = vld [vmem:[%s7080_s2 + $0x10] sm:$0xff]  ;;  %v2294_v26 = vld [vmem:[#allocation2 + $0x18f8] sm:$0xff]  ;;  %v4965_v35 = vld [vmem:[#allocation2 + $0xbc0] sm:$0xff] }
 0x1ed   :  { %2525 = vmatpush.msra.mxu3 %v2315_v27  ;;  %2548 = vmatpush.msra.mxu0 %v2363_v11  ;;  %v6040_v23 = vld [vmem:[%s7080_s2 + $0x30] sm:$0x3]  ;;  %v2342_v27 = vld [vmem:[#allocation2 + $0x1a78] sm:$0xff] }
 0x1ee   :  { %2571 = vmatpush.msra.mxu1 %v2411_v4  ;;  %2606 = vmatpush.msra.mxu2 %v2423_v52  ;;  %v2390_v11 = vld [vmem:[#allocation2 + $0x1bf8] sm:$0xff]  ;;  %v6043_v4 = vpop.f32.mrf.mxu3 }
 0x1ef   :  { %2526 = vmatpush.msra.mxu3 %v2312_v37  ;;  %2549 = vmatpush.msra.mxu0 %v2360_v58  ;;  %7103 = vst [vmem:[#allocation26_spill] sm:$0xff] %v6043_v4  ;;  %v6048_v52 = vld [vmem:[%s7080_s2 + $0x38] sm:$0x3]  ;;  %v2304_v37 = vld [vmem:[#allocation2 + $0x1948] sm:$0xff]  ;;  %v2291_v58 = vld [vmem:[#allocation2 + $0x18e0] sm:$0xff] }
 0x1f0   :  { %2572 = vmatpush.msra.mxu1 %v2408_v33  ;;  %2607 = vmatpush.msra.mxu2 %v2420_v16  ;;  %v2339_v33 = vld [vmem:[#allocation2 + $0x1a60] sm:$0xff] }
 0x1f1   :  { %2493 = vmatmul.f32.vlgmr.msrb.gmra.mxu2 %v6007_v45  ;;  %2527 = vmatpush.msra.mxu3 %v2309_v17  ;;  %v2387_v16 = vld [vmem:[#allocation2 + $0x1be0] sm:$0xff]  ;;  %v6052_v17 = vpop.f32.mrf.mxu1 }
 0x1f2   :  { %2615 = vmatpush.msrb.mxu2 %v2322_v36  ;;  %2550 = vmatpush.msra.mxu0 %v2357_v47  ;;  %7104 = vst [vmem:[#allocation27_spill] sm:$0xff] %v6052_v17  ;;  %v6054_v36 = vpop.f32.mrf.mxu0  ;;  %v6059_v47 = vld [vmem:[%s7080_s2 + $0x20] sm:$0x3] }
 0x1f3   :  { %2573 = vmatpush.msra.mxu1 %v2405_v48  ;;  %4469 = vmatmul.msk.f32.vlgmr.msrb.gmra.mxu3 %vm398_vm0, %v6015_v39  ;;  %7105 = vst [vmem:[#allocation28_spill] sm:$0xff] %v6054_v36  ;;  %v6065_v48 = vld [vmem:[%s7080_s2 + $0x28] sm:$0x3]  ;;  %v4941_v36 = vld [vmem:[#allocation2 + $0xc50] sm:$0xff]  ;;  %v4981_v17 = vld [vmem:[#allocation2 + $0xb60] sm:$0xff] }
 0x1f4   :  { %2616 = vmatpush.msrb.mxu2 %v2319_v41  ;;  %2528 = vmatpush.msra.mxu3 %v2306_v49  ;;  %v2301_v41 = vld [vmem:[#allocation2 + $0x1930] sm:$0xff]  ;;  %v2288_v49 = vld [vmem:[#allocation2 + $0x18c8] sm:$0xff]  ;;  %v5456_v4 = vld [vmem:[#allocation2 + $0x1b40] sm:$0xff] }
 0x1f5   :  { %2551 = vmatpush.msra.mxu0 %v2354_v46  ;;  %2574 = vmatpush.msra.mxu1 %v2402_v21  ;;  %v2336_v46 = vld [vmem:[#allocation2 + $0x1a48] sm:$0xff] }
 0x1f6   :  { %2447 = vmatmul.f32.vlgmr.msrb.gmra.mxu0 %v6026_v63  ;;  %2470 = vmatmul.f32.vlgmr.msrb.gmra.mxu1 %v6032_v53  ;;  %v2384_v21 = vld [vmem:[#allocation2 + $0x1bc8] sm:$0xff] }
 0x1f7   :  { %2617 = vmatpush.msrb.mxu2 %v2316_v54  ;;  %2529 = vmatpush.msra.mxu3 %v2303_v0  ;;  %v2298_v54 = vld [vmem:[#allocation2 + $0x1918] sm:$0xff]  ;;  %v2285_v0 = vld [vmem:[#allocation2 + $0x18b0] sm:$0xff] }
 0x1f8   :  { %2552 = vmatpush.msra.mxu0 %v2351_v3  ;;  %2575 = vmatpush.msra.mxu1 %v2399_v55  ;;  %v2333_v3 = vld [vmem:[#allocation2 + $0x1a30] sm:$0xff] }
 0x1f9   :  { %2618 = vmatpush.msrb.mxu2 %v2313_v2  ;;  %2530 = vmatpush.msra.mxu3 %v2300_v5  ;;  %v2381_v55 = vld [vmem:[#allocation2 + $0x1bb0] sm:$0xff]  ;;  %v2295_v2 = vld [vmem:[#allocation2 + $0x1900] sm:$0xff]  ;;  %v2282_v5 = vld [vmem:[#allocation2 + $0x1898] sm:$0xff] }
 0x1fa   :  { %2553 = vmatpush.msra.mxu0 %v2348_v32  ;;  %2576 = vmatpush.msra.mxu1 %v2396_v14  ;;  %v2330_v32 = vld [vmem:[#allocation2 + $0x1a18] sm:$0xff] }
 0x1fb   :  { %2496 = vmatmul.f32.gmra.mxu2 %v6040_v23  ;;  %2531 = vmatpush.msra.mxu3 %v2297_v19  ;;  %v2378_v14 = vld [vmem:[#allocation2 + $0x1b98] sm:$0xff]  ;;  %v2292_v19 = vld [vmem:[#allocation2 + $0x18e8] sm:$0xff] }
 0x1fc   :  { %2619 = vmatpush.msrb.mxu2 %v2310_v10  ;;  %2554 = vmatpush.msra.mxu0 %v2345_v30  ;;  %v2279_v10 = vld [vmem:[#allocation2 + $0x1880] sm:$0xff] }
 0x1fd   :  { %2577 = vmatpush.msra.mxu1 %v2393_v20  ;;  %4470 = vmatmul.msk.f32.gmra.mxu3 %vm398_vm0, %v6048_v52  ;;  %v2327_v30 = vld [vmem:[#allocation2 + $0x1a00] sm:$0xff] }
 0x1fe   :  { %2620 = vmatpush.msrb.mxu2 %v2307_v24  ;;  %2532 = vmatpush.msra.mxu3 %v2294_v26  ;;  %v2375_v20 = vld [vmem:[#allocation2 + $0x1b80] sm:$0xff]  ;;  %v2289_v24 = vld [vmem:[#allocation2 + $0x18d0] sm:$0xff]  ;;  %v2276_v26 = vld [vmem:[#allocation2 + $0x1868] sm:$0xff] }
 0x1ff   :  { %2555 = vmatpush.msra.mxu0 %v2342_v27  ;;  %2578 = vmatpush.msra.mxu1 %v2390_v11  ;;  %v2324_v27 = vld [vmem:[#allocation2 + $0x19e8] sm:$0xff] }
 0x200   :  { %2450 = vmatmul.f32.gmra.mxu0 %v6059_v47  ;;  %2473 = vmatmul.f32.gmra.mxu1 %v6065_v48  ;;  %v2372_v11 = vld [vmem:[#allocation2 + $0x1b68] sm:$0xff] }
 0x201   :  { %2621 = vmatpush.msrb.mxu2 %v2304_v37  ;;  %2533 = vmatpush.msra.mxu3 %v2291_v58  ;;  %v2286_v37 = vld [vmem:[#allocation2 + $0x18b8] sm:$0xff] }
 0x202   :  { %2556 = vmatpush.msra.mxu0 %v2339_v33  ;;  %2579 = vmatpush.msra.mxu1 %v2387_v16  ;;  %v2370_v58 = vld [vmem:[#allocation2 + $0x1b58] sm:$0xff]  ;;  %v6068_v16 = vpop.f32.mrf.mxu2 }
 0x203   :  { %2622 = vmatpush.msrb.mxu2 %v2301_v41  ;;  %2534 = vmatpush.msra.mxu3 %v2288_v49  ;;  %v2418_v33 = vld [vmem:[#allocation2 + $0x1cd8] sm:$0xff]  ;;  %7106 = vst [vmem:[#allocation29_spill] sm:$0xff] %v6068_v16  ;;  %v6070_v41 = vpop.f32.mrf.mxu3  ;;  %v4588_v16 = vld [vmem:[#allocation2 + $0x7a0] sm:$0xff] }
 0x204   :  { %2557 = vmatpush.msra.mxu0 %v2336_v46  ;;  %2580 = vmatpush.msra.mxu1 %v2384_v21  ;;  %7107 = vst [vmem:[#allocation30_spill] sm:$0xff] %v6070_v41  ;;  %v2430_v49 = vld [vmem:[#allocation2 + $0x1d38] sm:$0xff]  ;;  %v2283_v46 = vld [vmem:[#allocation2 + $0x18a0] sm:$0xff]  ;;  %v6072_v21 = vpop.f32.mrf.mxu0 }
 0x205   :  { %2623 = vmatpush.msrb.mxu2 %v2298_v54  ;;  %2535 = vmatpush.msra.mxu3 %v2285_v0  ;;  %7108 = vst [vmem:[#allocation31_spill] sm:$0xff] %v6072_v21  ;;  %v2367_v54 = vld [vmem:[#allocation2 + $0x1b40] sm:$0xff]  ;;  %v4684_v21 = vld [vmem:[#allocation2 + $0x568] sm:$0xff]  ;;  %v4782_v41 = vld [vmem:[#allocation2 + $0x458] sm:$0xff] }
 0x206   :  { %2558 = vmatpush.msra.mxu0 %v2333_v3  ;;  %2581 = vmatpush.msra.mxu1 %v2381_v55  ;;  %v2415_v0 = vld [vmem:[#allocation2 + $0x1cc0] sm:$0xff]  ;;  %v6075_v3 = vpop.f32.mrf.mxu1 }
 0x207   :  { %2624 = vmatpush.msrb.mxu2 %v2295_v2  ;;  %2536 = vmatpush.msra.mxu3 %v2282_v5  ;;  %7109 = vst [vmem:[#allocation32_spill] sm:$0xff] %v6075_v3  ;;  %v2427_v55 = vld [vmem:[#allocation2 + $0x1d20] sm:$0xff]  ;;  %v2280_v2 = vld [vmem:[#allocation2 + $0x1888] sm:$0xff] }
 0x208   :  { %2559 = vmatpush.msra.mxu0 %v2330_v32  ;;  %2582 = vmatpush.msra.mxu1 %v2378_v14  ;;  %v2364_v5 = vld [vmem:[#allocation2 + $0x1b28] sm:$0xff] }
 0x209   :  { %2625 = vmatpush.msrb.mxu2 %v2292_v19  ;;  %2537 = vmatpush.msra.mxu3 %v2279_v10  ;;  %v2412_v32 = vld [vmem:[#allocation2 + $0x1ca8] sm:$0xff]  ;;  %v2277_v19 = vld [vmem:[#allocation2 + $0x1870] sm:$0xff] }
 0x20a   :  { %2560 = vmatpush.msra.mxu0 %v2327_v30  ;;  %2583 = vmatpush.msra.mxu1 %v2375_v20  ;;  %v2424_v14 = vld [vmem:[#allocation2 + $0x1d08] sm:$0xff]  ;;  %v2361_v10 = vld [vmem:[#allocation2 + $0x1b10] sm:$0xff] }
 0x20b   :  { %2626 = vmatpush.msrb.mxu2 %v2289_v24  ;;  %2538 = vmatpush.msra.mxu3 %v2276_v26  ;;  %v2409_v30 = vld [vmem:[#allocation2 + $0x1c90] sm:$0xff]  ;;  %v2358_v24 = vld [vmem:[#allocation2 + $0x1af8] sm:$0xff]  ;;  %v6080_v26 = vpop.f32.mrf.mxu2  ;;  %v4669_v3 = vld [vmem:[#allocation2 + $0x748] sm:$0xff] }
 0x20c   :  { %2561 = vmatpush.msra.mxu0 %v2324_v27  ;;  %2584 = vmatpush.msra.mxu1 %v2372_v11  ;;  %v2421_v20 = vld [vmem:[#allocation2 + $0x1cf0] sm:$0xff]  ;;  %7110 = vst [vmem:[#allocation33_spill] sm:$0xff] %v6080_v26  ;;  %v6082_v27 = vpop.f32.mrf.mxu3  ;;  %v4539_v11 = vld [vmem:[#allocation2 + $0x7c8] sm:$0xff]  ;;  %v4573_v26 = vld [vmem:[#allocation2 + $0x918] sm:$0xff] }
 0x20d   :  { %2539 = vmatmul.f32.vlgmr.msra.gmra.mxu3 %v6026_v63  ;;  %2627 = vmatpush.msrb.mxu2 %v2286_v37  ;;  %7111 = vst [vmem:[#allocation34_spill] sm:$0xff] %v6082_v27  ;;  %v2406_v37 = vld [vmem:[#allocation2 + $0x1c78] sm:$0xff]  ;;  %v4700_v27 = vld [vmem:[#allocation2 + $0x508] sm:$0xff] }
 0x20e   :  { %2638 = vmatpush.msrb.mxu3 %v2370_v58  ;;  %2661 = vmatpush.msrb.mxu0 %v2418_v33  ;;  %v6084_v58 = vpop.f32.mrf.mxu0  ;;  %v2355_v33 = vld [vmem:[#allocation2 + $0x1ae0] sm:$0xff] }
 0x20f   :  { %2696 = vmatpush.msrb.mxu1 %v2430_v49  ;;  %2628 = vmatpush.msrb.mxu2 %v2283_v46  ;;  %7112 = vst [vmem:[#allocation35_spill] sm:$0xff] %v6084_v58  ;;  %v6088_v49 = vpop.f32.mrf.mxu1  ;;  %v4540_v46 = vld [vmem:[#allocation2 + $0x648] sm:$0xff]  ;;  %v4672_v58 = vld [vmem:[#allocation2 + $0x5b0] sm:$0xff] }
 0x210   :  { %2639 = vmatpush.msrb.mxu3 %v2367_v54  ;;  %2662 = vmatpush.msrb.mxu0 %v2415_v0  ;;  %7113 = vst [vmem:[#allocation36_spill] sm:$0xff] %v6088_v49  ;;  %v2403_v54 = vld [vmem:[#allocation2 + $0x1c60] sm:$0xff]  ;;  %v4541_v0 = vld [vmem:[#allocation2 + $0x7b0] sm:$0xff]  ;;  %v4592_v49 = vld [vmem:[#allocation2 + $0x788] sm:$0xff] }
 0x211   :  { %2697 = vmatpush.msrb.mxu1 %v2427_v55  ;;  %4471 = vmatmul.msk.f32.vlgmr.msra.gmra.mxu2 %vm398_vm0, %v6015_v39  ;;  %v4542_v55 = vld [vmem:[#allocation2 + $0x630] sm:$0xff] }
 0x212   :  { %2629 = vmatpush.msrb.mxu2 %v2280_v2  ;;  %2640 = vmatpush.msrb.mxu3 %v2364_v5  ;;  %v2352_v2 = vld [vmem:[#allocation2 + $0x1ac8] sm:$0xff] }
 0x213   :  { %2663 = vmatpush.msrb.mxu0 %v2412_v32  ;;  %2698 = vmatpush.msrb.mxu1 %v2424_v14  ;;  %v2400_v5 = vld [vmem:[#allocation2 + $0x1c48] sm:$0xff]  ;;  %v4543_v32 = vld [vmem:[#allocation2 + $0x798] sm:$0xff] }
 0x214   :  { %2562 = vmatmul.f32.vlgmr.msra.gmra.mxu0 %v6032_v53  ;;  %2630 = vmatpush.msrb.mxu2 %v2277_v19  ;;  %v4544_v14 = vld [vmem:[#allocation2 + $0x618] sm:$0xff]  ;;  %v2349_v19 = vld [vmem:[#allocation2 + $0x1ab0] sm:$0xff] }
 0x215   :  { %2641 = vmatpush.msrb.mxu3 %v2361_v10  ;;  %2664 = vmatpush.msrb.mxu0 %v2409_v30  ;;  %v2397_v10 = vld [vmem:[#allocation2 + $0x1c30] sm:$0xff]  ;;  %v6092_v30 = vpop.f32.mrf.mxu3 }
 0x216   :  { %2699 = vmatpush.msrb.mxu1 %v2421_v20  ;;  %2742 = vmatpush.msra.mxu2 %v4539_v11  ;;  %7114 = vst [vmem:[#allocation37_spill] sm:$0xff] %v6092_v30  ;;  %v4545_v20 = vld [vmem:[#allocation2 + $0x600] sm:$0xff]  ;;  %v6094_v11 = vpop.f32.mrf.mxu0  ;;  %v4591_v30 = vld [vmem:[#allocation2 + $0x608] sm:$0xff] }
 0x217   :  { %2585 = vmatmul.f32.vlgmr.msra.gmra.mxu1 %v6007_v45  ;;  %2542 = vmatmul.f32.gmra.mxu3 %v6059_v47  ;;  %7115 = vst [vmem:[#allocation38_spill] sm:$0xff] %v6094_v11 }
 0x218   :  { %2719 = vmatpush.msra.mxu1 %v4540_v46  ;;  %2642 = vmatpush.msrb.mxu3 %v2358_v24  ;;  %v4546_v24 = vld [vmem:[#allocation2 + $0x780] sm:$0xff]  ;;  %v6097_v46 = vpop.f32.mrf.mxu2 }
 0x219   :  { %2665 = vmatpush.msrb.mxu0 %v2406_v37  ;;  %2743 = vmatpush.msra.mxu2 %v4541_v0  ;;  %v2346_v37 = vld [vmem:[#allocation2 + $0x1a98] sm:$0xff]  ;;  %7116 = vst [vmem:[#allocation39_spill] sm:$0xff] %v6097_v46  ;;  %v4547_v0 = vld [vmem:[#allocation2 + $0x5e8] sm:$0xff] }
 0x21a   :  { %2720 = vmatpush.msra.mxu1 %v4542_v55  ;;  %2643 = vmatpush.msrb.mxu3 %v2355_v33  ;;  %v2394_v33 = vld [vmem:[#allocation2 + $0x1c18] sm:$0xff]  ;;  %v4548_v55 = vld [vmem:[#allocation2 + $0x768] sm:$0xff] }
 0x21b   :  { %2666 = vmatpush.msrb.mxu0 %v2403_v54  ;;  %2744 = vmatpush.msra.mxu2 %v4543_v32  ;;  %v6099_v54 = vpop.f32.mrf.mxu1  ;;  %v4549_v32 = vld [vmem:[#allocation2 + $0x5d0] sm:$0xff]  ;;  %v4606_v46 = vld [vmem:[#allocation2 + $0x858] sm:$0xff] }
 0x21c   :  { %2721 = vmatpush.msra.mxu1 %v4544_v14  ;;  %4472 = vmatmul.msk.f32.gmra.mxu2 %vm398_vm0, %v6048_v52  ;;  %7117 = vst [vmem:[#allocation40_spill] sm:$0xff] %v6099_v54  ;;  %v4550_v14 = vld [vmem:[#allocation2 + $0x750] sm:$0xff]  ;;  %v4553_v54 = vld [vmem:[#allocation2 + $0x5a0] sm:$0xff] }
 0x21d   :  { %2644 = vmatpush.msrb.mxu3 %v2352_v2  ;;  %2667 = vmatpush.msrb.mxu0 %v2400_v5  ;;  %v2343_v2 = vld [vmem:[#allocation2 + $0x1a80] sm:$0xff]  ;;  %v6102_v11 = vpop.f32.mrf.mxu3 }
 0x21e   :  { %2722 = vmatpush.msra.mxu1 %v4545_v20  ;;  %2745 = vmatpush.msra.mxu2 %v4546_v24  ;;  %v2391_v5 = vld [vmem:[#allocation2 + $0x1c00] sm:$0xff]  ;;  %v2388_v20 = vld [vmem:[#allocation2 + $0x1be8] sm:$0xff]  ;;  %v4551_v24 = vld [vmem:[#allocation2 + $0x5b8] sm:$0xff]  ;;  %7118 = vst [vmem:[#allocation41_spill] sm:$0xff] %v6102_v11 }
 0x21f   :  { %2565 = vmatmul.f32.gmra.mxu0 %v6065_v48  ;;  %2645 = vmatpush.msrb.mxu3 %v2349_v19  ;;  %v2340_v19 = vld [vmem:[#allocation2 + $0x1a68] sm:$0xff]  ;;  %v2373_v11 = vld [vmem:[#allocation2 + $0x1b70] sm:$0xff] }
 0x220   :  { %2668 = vmatpush.msrb.mxu0 %v2397_v10  ;;  %2723 = vmatpush.msra.mxu1 %v4547_v0  ;;  %v4552_v10 = vld [vmem:[#allocation2 + $0x738] sm:$0xff]  ;;  %v2337_v0 = vld [vmem:[#allocation2 + $0x1a50] sm:$0xff] }
 0x221   :  { %2746 = vmatpush.msra.mxu2 %v4548_v55  ;;  %2588 = vmatmul.f32.gmra.mxu1 %v6040_v23  ;;  %v2385_v55 = vld [vmem:[#allocation2 + $0x1bd0] sm:$0xff] }
 0x222   :  { %2646 = vmatpush.msrb.mxu3 %v2346_v37  ;;  %2669 = vmatpush.msrb.mxu0 %v2394_v33  ;;  %v4554_v37 = vld [vmem:[#allocation2 + $0x720] sm:$0xff]  ;;  %v2334_v33 = vld [vmem:[#allocation2 + $0x1a38] sm:$0xff] }
 0x223   :  { %2724 = vmatpush.msra.mxu1 %v4549_v32  ;;  %2747 = vmatpush.msra.mxu2 %v4550_v14  ;;  %v2382_v32 = vld [vmem:[#allocation2 + $0x1bb8] sm:$0xff]  ;;  %v4556_v14 = vld [vmem:[#allocation2 + $0x708] sm:$0xff] }
 0x224   :  { %2647 = vmatpush.msrb.mxu3 %v2343_v2  ;;  %2670 = vmatpush.msrb.mxu0 %v2391_v5  ;;  %v6104_v2 = vpop.f32.mrf.mxu0  ;;  %v4555_v5 = vld [vmem:[#allocation2 + $0x588] sm:$0xff] }
 0x225   :  { %2725 = vmatpush.msra.mxu1 %v4551_v24  ;;  %2748 = vmatpush.msra.mxu2 %v4552_v10  ;;  %7119 = vst [vmem:[#allocation42_spill] sm:$0xff] %v6104_v2  ;;  %v2331_v24 = vld [vmem:[#allocation2 + $0x1a20] sm:$0xff]  ;;  %v4559_v2 = vld [vmem:[#allocation2 + $0x558] sm:$0xff] }
 0x226   :  { %2648 = vmatpush.msrb.mxu3 %v2340_v19  ;;  %2671 = vmatpush.msrb.mxu0 %v2388_v20  ;;  %v2379_v10 = vld [vmem:[#allocation2 + $0x1ba0] sm:$0xff]  ;;  %v6106_v19 = vpop.f32.mrf.mxu2  ;;  %v6108_v20 = vpop.f32.mrf.mxu1 }
 0x227   :  { %2726 = vmatpush.msra.mxu1 %v4553_v54  ;;  %2749 = vmatpush.msra.mxu2 %v4554_v37  ;;  %7120 = vst [vmem:[#allocation43_spill] sm:$0xff] %v6106_v19  ;;  %v4557_v54 = vld [vmem:[#allocation2 + $0x570] sm:$0xff]  ;;  %v4561_v19 = vld [vmem:[#allocation2 + $0x540] sm:$0xff] }
 0x228   :  { %2649 = vmatpush.msrb.mxu3 %v2337_v0  ;;  %2672 = vmatpush.msrb.mxu0 %v2385_v55  ;;  %7121 = vst [vmem:[#allocation44_spill] sm:$0xff] %v6108_v20  ;;  %v4558_v37 = vld [vmem:[#allocation2 + $0x6f0] sm:$0xff]  ;;  %v2328_v0 = vld [vmem:[#allocation2 + $0x1a08] sm:$0xff]  ;;  %v4572_v20 = vld [vmem:[#allocation2 + $0x678] sm:$0xff] }
 0x229   :  { %2727 = vmatpush.msra.mxu1 %v4555_v5  ;;  %2750 = vmatpush.msra.mxu2 %v4556_v14  ;;  %v2376_v55 = vld [vmem:[#allocation2 + $0x1b88] sm:$0xff]  ;;  %v4560_v5 = vld [vmem:[#allocation2 + $0x6d8] sm:$0xff]  ;;  %v2325_v14 = vld [vmem:[#allocation2 + $0x19f0] sm:$0xff] }
 0x22a   :  { %2650 = vmatpush.msrb.mxu3 %v2334_v33  ;;  %2673 = vmatpush.msrb.mxu0 %v2382_v32  ;;  %v4562_v33 = vld [vmem:[#allocation2 + $0x6c0] sm:$0xff]  ;;  %v6110_v32 = vpop.f32.mrf.mxu3 }
 0x22b   :  { %2728 = vmatpush.msra.mxu1 %v4557_v54  ;;  %2751 = vmatpush.msra.mxu2 %v4558_v37  ;;  %v4564_v37 = vld [vmem:[#allocation2 + $0x6a8] sm:$0xff] }
 0x22c   :  { %2651 = vmatpush.msrb.mxu3 %v2331_v24  ;;  %2674 = vmatpush.msrb.mxu0 %v2379_v10  ;;  %v6112_v54 = vpop.f32.mrf.mxu0  ;;  %v4563_v10 = vld [vmem:[#allocation2 + $0x528] sm:$0xff] }
 0x22d   :  { %2729 = vmatpush.msra.mxu1 %v4559_v2  ;;  %2752 = vmatpush.msra.mxu2 %v4560_v5  ;;  %7122 = vst [vmem:[#allocation45_spill] sm:$0xff] %v6112_v54  ;;  %v4569_v5 = vld [vmem:[#allocation2 + $0x930] sm:$0xff] }
 0x22e   :  { %2652 = vmatpush.msrb.mxu3 %v2328_v0  ;;  %2675 = vmatpush.msrb.mxu0 %v2376_v55  ;;  %v6116_v2 = vpop.f32.mrf.mxu1  ;;  %v6118_v24 = vpop.f32.mrf.mxu2  ;;  %v4566_v0 = vld [vmem:[#allocation2 + $0x9a8] sm:$0xff]  ;;  %v4567_v55 = vld [vmem:[#allocation2 + $0x510] sm:$0xff] }
 0x22f   :  { %2730 = vmatpush.msra.mxu1 %v4561_v19  ;;  %2753 = vmatpush.msra.mxu2 %v4562_v33  ;;  %v4565_v19 = vld [vmem:[#allocation2 + $0x948] sm:$0xff]  ;;  %v4571_v33 = vld [vmem:[#allocation2 + $0x4f8] sm:$0xff] }
 0x230   :  { %2653 = vmatpush.msrb.mxu3 %v2325_v14  ;;  %2676 = vmatpush.msrb.mxu0 %v2373_v11  ;;  %v4568_v11 = vld [vmem:[#allocation2 + $0x690] sm:$0xff] }
 0x231   :  { %2631 = vmatmul.f32.vlgmr.msrb.gmra.mxu2 %v6026_v63  ;;  %2654 = vmatmul.f32.vlgmr.msrb.gmra.mxu3 %v6032_v53  ;;  %v4570_v14 = vld [vmem:[#allocation2 + $0x990] sm:$0xff] }
 0x232   :  { %2731 = vmatpush.msra.mxu1 %v4563_v10  ;;  %2754 = vmatpush.msra.mxu2 %v4564_v37  ;;  %v4574_v10 = vld [vmem:[#allocation2 + $0x978] sm:$0xff]  ;;  %v4575_v37 = vld [vmem:[#allocation2 + $0x4e0] sm:$0xff] }
 0x233   :  { %2765 = vmatpush.msra.mxu3 %v4565_v19  ;;  %2800 = vmatpush.msra.mxu0 %v4566_v0  ;;  %v4576_v19 = vld [vmem:[#allocation2 + $0x660] sm:$0xff] }
 0x234   :  { %2732 = vmatpush.msra.mxu1 %v4567_v55  ;;  %2755 = vmatpush.msra.mxu2 %v4568_v11  ;;  %v4577_v0 = vld [vmem:[#allocation2 + $0x900] sm:$0xff]  ;;  %v6120_v11 = vpop.f32.mrf.mxu3 }
 0x235   :  { %2766 = vmatpush.msra.mxu3 %v4569_v5  ;;  %2801 = vmatpush.msra.mxu0 %v4570_v14  ;;  %v4578_v55 = vld [vmem:[#allocation2 + $0x960] sm:$0xff]  ;;  %7123 = vst [vmem:[#allocation46_spill] sm:$0xff] %v6120_v11  ;;  %v4580_v5 = vld [vmem:[#allocation2 + $0x7d0] sm:$0xff] }
 0x236   :  { %2733 = vmatpush.msra.mxu1 %v4571_v33  ;;  %2756 = vmatpush.msra.mxu2 %v4572_v20  ;;  %v6125_v20 = vpop.f32.mrf.mxu0  ;;  %v6127_v14 = vpop.f32.mrf.mxu1  ;;  %v4967_v11 = vld [vmem:[#allocation2 + $0xa90] sm:$0xff] }
 0x237   :  { %2767 = vmatpush.msra.mxu3 %v4573_v26  ;;  %2802 = vmatpush.msra.mxu0 %v4574_v10  ;;  %7124 = vst [vmem:[#allocation47_spill] sm:$0xff] %v6125_v20  ;;  %v4579_v26 = vld [vmem:[#allocation2 + $0x650] sm:$0xff]  ;;  %v6129_v33 = vpop.f32.mrf.mxu2 }
 0x238   :  { %2734 = vmatpush.msra.mxu1 %v4575_v37  ;;  %2757 = vmatpush.msra.mxu2 %v4576_v19  ;;  %7125 = vst [vmem:[#allocation48_spill] sm:$0xff] %v6127_v14  ;;  %v4581_v10 = vld [vmem:[#allocation2 + $0x950] sm:$0xff]  ;;  %v4582_v37 = vld [vmem:[#allocation2 + $0x8e8] sm:$0xff]  ;;  %v4583_v19 = vld [vmem:[#allocation2 + $0x638] sm:$0xff] }
 0x239   :  { %2768 = vmatpush.msra.mxu3 %v4577_v0  ;;  %2803 = vmatpush.msra.mxu0 %v4578_v55  ;;  %7126 = vst [vmem:[#allocation49_spill] sm:$0xff] %v6129_v33  ;;  %v4584_v0 = vld [vmem:[#allocation2 + $0x7b8] sm:$0xff]  ;;  %v4957_v20 = vld [vmem:[#allocation2 + $0xbf0] sm:$0xff]  ;;  %v5149_v33 = vld [vmem:[#allocation2 + $0x1828] sm:$0xff] }
 0x23a   :  { %2677 = vmatmul.f32.vlgmr.msrb.gmra.mxu0 %v6007_v45  ;;  %4473 = vmatmul.msk.f32.vlgmr.msrb.gmra.mxu1 %vm398_vm0, %v6015_v39  ;;  %v4585_v55 = vld [vmem:[#allocation2 + $0x938] sm:$0xff] }
 0x23b   :  { %2811 = vmatpush.msrb.mxu0 %v4579_v26  ;;  %2834 = vmatpush.msrb.mxu1 %v4580_v5  ;;  %v4586_v26 = vld [vmem:[#allocation2 + $0x8d0] sm:$0xff]  ;;  %v4587_v5 = vld [vmem:[#allocation2 + $0x620] sm:$0xff] }
 0x23c   :  { %2857 = vmatpush.msrb.mxu2 %v4581_v10  ;;  %2657 = vmatmul.f32.gmra.mxu3 %v6065_v48  ;;  %v4590_v10 = vld [vmem:[#allocation2 + $0x8b8] sm:$0xff] }
 0x23d   :  { %2634 = vmatmul.f32.gmra.mxu2 %v6059_v47  ;;  %2769 = vmatpush.msra.mxu3 %v4582_v37  ;;  %v4593_v37 = vld [vmem:[#allocation2 + $0x908] sm:$0xff] }
 0x23e   :  { %2812 = vmatpush.msrb.mxu0 %v4583_v19  ;;  %2835 = vmatpush.msrb.mxu1 %v4584_v0  ;;  %v4594_v19 = vld [vmem:[#allocation2 + $0x8a0] sm:$0xff]  ;;  %v6133_v0 = vpop.f32.mrf.mxu3 }
 0x23f   :  { %2858 = vmatpush.msrb.mxu2 %v4585_v55  ;;  %2770 = vmatpush.msra.mxu3 %v4586_v26  ;;  %7127 = vst [vmem:[#allocation50_spill] sm:$0xff] %v6133_v0  ;;  %v4595_v55 = vld [vmem:[#allocation2 + $0x5f0] sm:$0xff]  ;;  %v4605_v0 = vld [vmem:[#allocation2 + $0x8c0] sm:$0xff] }
 0x240   :  { %2813 = vmatpush.msrb.mxu0 %v4587_v5  ;;  %2836 = vmatpush.msrb.mxu1 %v4588_v16  ;;  %v4596_v26 = vld [vmem:[#allocation2 + $0x770] sm:$0xff]  ;;  %v6135_v5 = vpop.f32.mrf.mxu0 }
 0x241   :  { %2859 = vmatpush.msrb.mxu2 %v4589_v60  ;;  %2771 = vmatpush.msra.mxu3 %v4590_v10  ;;  %7128 = vst [vmem:[#allocation51_spill] sm:$0xff] %v6135_v5  ;;  %v4597_v16 = vld [vmem:[#allocation2 + $0x8f0] sm:$0xff]  ;;  %v6138_v60 = vpop.f32.mrf.mxu1  ;;  %v4599_v10 = vld [vmem:[#allocation2 + $0x5d8] sm:$0xff] }
 0x242   :  { %2814 = vmatpush.msrb.mxu0 %v4591_v30  ;;  %2837 = vmatpush.msrb.mxu1 %v4592_v49  ;;  %7129 = vst [vmem:[#allocation52_spill] sm:$0xff] %v6138_v60  ;;  %v6140_v30 = vpop.f32.mrf.mxu2  ;;  %v4598_v49 = vld [vmem:[#allocation2 + $0x888] sm:$0xff]  ;;  %v4679_v60 = vld [vmem:[#allocation2 + $0xf0] sm:$0xff]  ;;  %v4683_v5 = vld [vmem:[#allocation2 + $0xd8] sm:$0xff] }
 0x243   :  { %2860 = vmatpush.msrb.mxu2 %v4593_v37  ;;  %2772 = vmatpush.msra.mxu3 %v4594_v19  ;;  %7130 = vst [vmem:[#allocation53_spill] sm:$0xff] %v6140_v30  ;;  %v4600_v37 = vld [vmem:[#allocation2 + $0x758] sm:$0xff]  ;;  %v4611_v30 = vld [vmem:[#allocation2 + $0x590] sm:$0xff] }
 0x244   :  { %2815 = vmatpush.msrb.mxu0 %v4595_v55  ;;  %2838 = vmatpush.msrb.mxu1 %v4596_v26  ;;  %v4601_v19 = vld [vmem:[#allocation2 + $0x8d8] sm:$0xff]  ;;  %v4602_v55 = vld [vmem:[#allocation2 + $0x870] sm:$0xff]  ;;  %v4603_v26 = vld [vmem:[#allocation2 + $0x5c0] sm:$0xff] }
 0x245   :  { %2861 = vmatpush.msrb.mxu2 %v4597_v16  ;;  %2680 = vmatmul.f32.gmra.mxu0 %v6040_v23  ;;  %v4604_v16 = vld [vmem:[#allocation2 + $0x740] sm:$0xff] }
 0x246   :  { %2773 = vmatpush.msra.mxu3 %v4598_v49  ;;  %2816 = vmatpush.msrb.mxu0 %v4599_v10  ;;  %v4607_v49 = vld [vmem:[#allocation2 + $0x5a8] sm:$0xff] }
 0x247   :  { %2839 = vmatpush.msrb.mxu1 %v4600_v37  ;;  %2862 = vmatpush.msrb.mxu2 %v4601_v19  ;;  %v4608_v10 = vld [vmem:[#allocation2 + $0x728] sm:$0xff]  ;;  %v4610_v19 = vld [vmem:[#allocation2 + $0x840] sm:$0xff] }
 0x248   :  { %4474 = vmatmul.msk.f32.gmra.mxu1 %vm398_vm0, %v6048_v52  ;;  %2774 = vmatpush.msra.mxu3 %v4602_v55  ;;  %v4609_v37 = vld [vmem:[#allocation2 + $0x8a8] sm:$0xff]  ;;  %v6144_v55 = vpop.f32.mrf.mxu3 }
 0x249   :  { %2817 = vmatpush.msrb.mxu0 %v4603_v26  ;;  %2840 = vmatpush.msrb.mxu1 %v4604_v16  ;;  %7131 = vst [vmem:[#allocation54_spill] sm:$0xff] %v6144_v55  ;;  %v4613_v26 = vld [vmem:[#allocation2 + $0x890] sm:$0xff]  ;;  %v4614_v16 = vld [vmem:[#allocation2 + $0x828] sm:$0xff]  ;;  %v4620_v55 = vld [vmem:[#allocation2 + $0x6e0] sm:$0xff] }
 0x24a   :  { %2863 = vmatpush.msrb.mxu2 %v4605_v0  ;;  %2775 = vmatpush.msra.mxu3 %v4606_v46  ;;  %v6146_v0 = vpop.f32.mrf.mxu0  ;;  %v4615_v46 = vld [vmem:[#allocation2 + $0x578] sm:$0xff] }
 0x24b   :  { %2818 = vmatpush.msrb.mxu0 %v4607_v49  ;;  %2841 = vmatpush.msrb.mxu1 %v4608_v10  ;;  %7132 = vst [vmem:[#allocation55_spill] sm:$0xff] %v6146_v0  ;;  %v4616_v49 = vld [vmem:[#allocation2 + $0x6f8] sm:$0xff]  ;;  %v6148_v10 = vpop.f32.mrf.mxu1 }
 0x24c   :  { %2864 = vmatpush.msrb.mxu2 %v4609_v37  ;;  %2776 = vmatpush.msra.mxu3 %v4610_v19  ;;  %7133 = vst [vmem:[#allocation56_spill] sm:$0xff] %v6148_v10  ;;  %v6150_v37 = vpop.f32.mrf.mxu2  ;;  %v4617_v19 = vld [vmem:[#allocation2 + $0x878] sm:$0xff]  ;;  %v4625_v10 = vld [vmem:[#allocation2 + $0x848] sm:$0xff] }
 0x24d   :  { %2819 = vmatpush.msrb.mxu0 %v4611_v30  ;;  %2842 = vmatpush.msrb.mxu1 %v4612_v1  ;;  %7134 = vst [vmem:[#allocation57_spill] sm:$0xff] %v6150_v37  ;;  %v4618_v30 = vld [vmem:[#allocation2 + $0x810] sm:$0xff]  ;;  %v4619_v1 = vld [vmem:[#allocation2 + $0x560] sm:$0xff]  ;;  %v4631_v0 = vld [vmem:[#allocation2 + $0x518] sm:$0xff] }
 0x24e   :  { %2865 = vmatpush.msrb.mxu2 %v4613_v26  ;;  %2777 = vmatpush.msra.mxu3 %v4614_v16  ;;  %v4621_v26 = vld [vmem:[#allocation2 + $0x860] sm:$0xff]  ;;  %v4622_v16 = vld [vmem:[#allocation2 + $0x7f8] sm:$0xff] }
 0x24f   :  { %2820 = vmatpush.msrb.mxu0 %v4615_v46  ;;  %2843 = vmatpush.msrb.mxu1 %v4616_v49  ;;  %v4623_v46 = vld [vmem:[#allocation2 + $0x548] sm:$0xff]  ;;  %v4626_v37 = vld [vmem:[#allocation2 + $0x7e0] sm:$0xff] }
 0x250   :  { %2866 = vmatpush.msrb.mxu2 %v4617_v19  ;;  %2778 = vmatpush.msra.mxu3 %v4618_v30  ;;  %v4624_v49 = vld [vmem:[#allocation2 + $0x6c8] sm:$0xff]  ;;  %v4627_v19 = vld [vmem:[#allocation2 + $0x530] sm:$0xff]  ;;  %v6153_v30 = vpop.f32.mrf.mxu3 }
 0x251   :  { %2821 = vmatpush.msrb.mxu0 %v4619_v1  ;;  %2844 = vmatpush.msrb.mxu1 %v4620_v55  ;;  %7135 = vst [vmem:[#allocation58_spill] sm:$0xff] %v6153_v30  ;;  %v4628_v1 = vld [vmem:[#allocation2 + $0x6b0] sm:$0xff]  ;;  %v4635_v30 = vld [vmem:[#allocation2 + $0x500] sm:$0xff] }
 0x252   :  { %2867 = vmatpush.msrb.mxu2 %v4621_v26  ;;  %2779 = vmatpush.msra.mxu3 %v4622_v16  ;;  %v4629_v55 = vld [vmem:[#allocation2 + $0x830] sm:$0xff]  ;;  %v6155_v26 = vpop.f32.mrf.mxu0 }
 0x253   :  { %2758 = vmatmul.f32.vlgmr.msra.gmra.mxu2 %v6032_v53  ;;  %2822 = vmatpush.msrb.mxu0 %v4623_v46  ;;  %7136 = vst [vmem:[#allocation59_spill] sm:$0xff] %v6155_v26  ;;  %v4630_v16 = vld [vmem:[#allocation2 + $0x9b0] sm:$0xff]  ;;  %v6157_v46 = vpop.f32.mrf.mxu1  ;;  %v4638_v26 = vld [vmem:[#allocation2 + $0x980] sm:$0xff] }
 0x254   :  { %2845 = vmatpush.msrb.mxu1 %v4624_v49  ;;  %2868 = vmatpush.msrb.mxu2 %v4625_v10  ;;  %7137 = vst [vmem:[#allocation60_spill] sm:$0xff] %v6157_v46  ;;  %v6159_v49 = vpop.f32.mrf.mxu2  ;;  %v4632_v10 = vld [vmem:[#allocation2 + $0x698] sm:$0xff]  ;;  %v4649_v46 = vld [vmem:[#allocation2 + $0x940] sm:$0xff] }
 0x255   :  { %2780 = vmatpush.msra.mxu3 %v4626_v37  ;;  %2823 = vmatpush.msrb.mxu0 %v4627_v19  ;;  %7138 = vst [vmem:[#allocation61_spill] sm:$0xff] %v6159_v49  ;;  %v4633_v37 = vld [vmem:[#allocation2 + $0x818] sm:$0xff]  ;;  %v4641_v49 = vld [vmem:[#allocation2 + $0x7e8] sm:$0xff] }
 0x256   :  { %2846 = vmatpush.msrb.mxu1 %v4628_v1  ;;  %2869 = vmatpush.msrb.mxu2 %v4629_v55  ;;  %v4634_v19 = vld [vmem:[#allocation2 + $0x998] sm:$0xff]  ;;  %v4636_v1 = vld [vmem:[#allocation2 + $0x680] sm:$0xff] }
 0x257   :  { %2892 = vmatpush.msrb.mxu3 %v4630_v16  ;;  %2824 = vmatpush.msrb.mxu0 %v4631_v0  ;;  %v4637_v55 = vld [vmem:[#allocation2 + $0x800] sm:$0xff]  ;;  %v4639_v0 = vld [vmem:[#allocation2 + $0x4e8] sm:$0xff] }
 0x258   :  { %2847 = vmatpush.msrb.mxu1 %v4632_v10  ;;  %2870 = vmatpush.msrb.mxu2 %v4633_v37  ;;  %v4640_v16 = vld [vmem:[#allocation2 + $0x668] sm:$0xff]  ;;  %v4644_v37 = vld [vmem:[#allocation2 + $0x7d8] sm:$0xff] }
 0x259   :  { %2893 = vmatpush.msrb.mxu3 %v4634_v19  ;;  %2825 = vmatpush.msrb.mxu0 %v4635_v30  ;;  %v4642_v10 = vld [vmem:[#allocation2 + $0x968] sm:$0xff]  ;;  %v4643_v30 = vld [vmem:[#allocation2 + $0x658] sm:$0xff] }
 0x25a   :  { %2848 = vmatpush.msrb.mxu1 %v4636_v1  ;;  %2871 = vmatpush.msrb.mxu2 %v4637_v55  ;;  %v4645_v19 = vld [vmem:[#allocation2 + $0x958] sm:$0xff]  ;;  %v6168_v1 = vpop.f32.mrf.mxu0  ;;  %v4647_v55 = vld [vmem:[#allocation2 + $0x640] sm:$0xff] }
 0x25b   :  { %2894 = vmatpush.msrb.mxu3 %v4638_v26  ;;  %2761 = vmatmul.f32.gmra.mxu2 %v6065_v48  ;;  %v6166_v26 = vpop.f32.mrf.mxu3  ;;  %7140 = vst [vmem:[#allocation63_spill] sm:$0xff] %v6168_v1  ;;  %v4654_v1 = vld [vmem:[#allocation2 + $0x988] sm:$0xff] }
 0x25c   :  { %2826 = vmatpush.msrb.mxu0 %v4639_v0  ;;  %2849 = vmatpush.msrb.mxu1 %v4640_v16  ;;  %7139 = vst [vmem:[#allocation62_spill] sm:$0xff] %v6166_v26  ;;  %v6170_v0 = vpop.f32.mrf.mxu1  ;;  %v6172_v16 = vpop.f32.mrf.mxu2  ;;  %v4651_v26 = vld [vmem:[#allocation2 + $0x628] sm:$0xff] }
 0x25d   :  { %2872 = vmatpush.msrb.mxu2 %v4641_v49  ;;  %2895 = vmatpush.msrb.mxu3 %v4642_v10  ;;  %v4646_v49 = vld [vmem:[#allocation2 + $0x9b8] sm:$0xff]  ;;  %7141 = vst [vmem:[#allocation64_spill] sm:$0xff] %v6170_v0  ;;  %v4648_v10 = vld [vmem:[#allocation2 + $0x7c0] sm:$0xff]  ;;  %v4668_v0 = vld [vmem:[#allocation2 + $0x5c8] sm:$0xff] }
 0x25e   :  { %2735 = vmatmul.f32.vlgmr.msra.gmra.mxu1 %v6026_v63  ;;  %2781 = vmatmul.f32.vlgmr.msra.gmra.mxu3 %v6007_v45  ;;  %7142 = vst [vmem:[#allocation65_spill] sm:$0xff] %v6172_v16  ;;  %v4657_v16 = vld [vmem:[#allocation2 + $0x910] sm:$0xff] }
 0x25f   :  { %4475 = vmatmul.msk.f32.vlgmr.msra.gmra.mxu0 %vm398_vm0, %v6015_v39  ;;  %2903 = vmatpush.msra.mxu3 %v4643_v30  ;;  %v4650_v30 = vld [vmem:[#allocation2 + $0x9a0] sm:$0xff] }
 0x260   :  { %2926 = vmatpush.msra.mxu0 %v4644_v37  ;;  %2949 = vmatpush.msra.mxu1 %v4645_v19  ;;  %v4652_v37 = vld [vmem:[#allocation2 + $0x7a8] sm:$0xff] }
 0x261   :  { %2984 = vmatpush.msra.mxu2 %v4646_v49  ;;  %2904 = vmatpush.msra.mxu3 %v4647_v55  ;;  %v4653_v19 = vld [vmem:[#allocation2 + $0x928] sm:$0xff]  ;;  %v4655_v49 = vld [vmem:[#allocation2 + $0x610] sm:$0xff] }
 0x262   :  { %2927 = vmatpush.msra.mxu0 %v4648_v10  ;;  %2950 = vmatpush.msra.mxu1 %v4649_v46  ;;  %v4656_v55 = vld [vmem:[#allocation2 + $0x790] sm:$0xff] }
 0x263   :  { %2985 = vmatpush.msra.mxu2 %v4650_v30  ;;  %2905 = vmatpush.msra.mxu3 %v4651_v26  ;;  %v4658_v10 = vld [vmem:[#allocation2 + $0x970] sm:$0xff]  ;;  %v6175_v46 = vpop.f32.mrf.mxu3  ;;  %v4659_v30 = vld [vmem:[#allocation2 + $0x168] sm:$0xff]  ;;  %v6178_v26 = vpop.f32.mrf.mxu0 }
 0x264   :  { %2928 = vmatpush.msra.mxu0 %v4652_v37  ;;  %2951 = vmatpush.msra.mxu1 %v4653_v19  ;;  %v4660_v37 = vld [vmem:[#allocation2 + $0x5f8] sm:$0xff]  ;;  %v6180_v19 = vpop.f32.mrf.mxu2 }
 0x265   :  { %2986 = vmatpush.msra.mxu2 %v4654_v1  ;;  %2906 = vmatpush.msra.mxu3 %v4655_v49  ;;  %v4661_v1 = vld [vmem:[#allocation2 + $0x778] sm:$0xff]  ;;  %v6182_v49 = vpop.f32.mrf.mxu1 }
 0x266   :  { %2873 = vmatmul.f32.vlgmr.msrb.gmra.mxu2 %v6007_v45  ;;  %2929 = vmatpush.msra.mxu0 %v4656_v55  ;;  %v4662_v55 = vld [vmem:[#allocation2 + $0x8f8] sm:$0xff] }
 0x267   :  { %2952 = vmatpush.msra.mxu1 %v4657_v16  ;;  %2987 = vmatpush.msra.mxu2 %v4658_v10  ;;  %v4663_v16 = vld [vmem:[#allocation2 + $0x150] sm:$0xff]  ;;  %v4664_v10 = vld [vmem:[#allocation2 + $0x5e0] sm:$0xff] }
 0x268   :  { %2784 = vmatmul.f32.gmra.mxu3 %v6040_v23  ;;  %2930 = vmatpush.msra.mxu0 %v4661_v1  ;;  %v4667_v1 = vld [vmem:[#allocation2 + $0x138] sm:$0xff] }
 0x269   :  { %2995 = vmatpush.msrb.mxu2 %v4659_v30  ;;  %2907 = vmatpush.msra.mxu3 %v4660_v37  ;;  %v4665_v30 = vld [vmem:[#allocation2 + $0x760] sm:$0xff] }
 0x26a   :  { %2953 = vmatpush.msra.mxu1 %v4662_v55  ;;  %4476 = vmatmul.msk.f32.gmra.mxu0 %vm398_vm0, %v6048_v52  ;;  %v4666_v37 = vld [vmem:[#allocation2 + $0x8e0] sm:$0xff]  ;;  %v4670_v55 = vld [vmem:[#allocation2 + $0x8c8] sm:$0xff] }
 0x26b   :  { %2996 = vmatpush.msrb.mxu2 %v4663_v16  ;;  %2738 = vmatmul.f32.gmra.mxu1 %v6059_v47  ;;  %v4671_v16 = vld [vmem:[#allocation2 + $0x120] sm:$0xff]  ;;  %v6187_v34 = vpop.f32.mrf.mxu3 }
 0x26c   :  { %2908 = vmatpush.msra.mxu3 %v4664_v10  ;;  %2931 = vmatpush.msra.mxu0 %v4665_v30  ;;  %v6190_v10 = vpop.f32.mrf.mxu0  ;;  %v4673_v30 = vld [vmem:[#allocation2 + $0x730] sm:$0xff] }
 0x26d   :  { %2954 = vmatpush.msra.mxu1 %v4666_v37  ;;  %2997 = vmatpush.msrb.mxu2 %v4667_v1  ;;  %v4674_v37 = vld [vmem:[#allocation2 + $0x8b0] sm:$0xff]  ;;  %v6192_v1 = vpop.f32.mrf.mxu2 }
 0x26e   :  { %2909 = vmatpush.msra.mxu3 %v4668_v0  ;;  %2932 = vmatpush.msra.mxu0 %v4669_v3  ;;  %v6194_v0 = vpop.f32.mrf.mxu1  ;;  %v4675_v3 = vld [vmem:[#allocation2 + $0x108] sm:$0xff] }
 0x26f   :  { %2955 = vmatpush.msra.mxu1 %v4670_v55  ;;  %2998 = vmatpush.msrb.mxu2 %v4671_v16  ;;  %v4676_v55 = vld [vmem:[#allocation2 + $0x598] sm:$0xff] }
 0x270   :  { %2876 = vmatmul.f32.gmra.mxu2 %v6040_v23  ;;  %2910 = vmatpush.msra.mxu3 %v4672_v58  ;;  %v4677_v16 = vld [vmem:[#allocation2 + $0x718] sm:$0xff] }
 0x271   :  { %2933 = vmatpush.msra.mxu0 %v4673_v30  ;;  %2956 = vmatpush.msra.mxu1 %v4674_v37  ;;  %v4678_v58 = vld [vmem:[#allocation2 + $0x898] sm:$0xff]  ;;  %v4680_v30 = vld [vmem:[#allocation2 + $0x580] sm:$0xff] }
 0x272   :  { %2999 = vmatpush.msrb.mxu2 %v4675_v3  ;;  %4477 = vmatmul.msk.f32.vlgmr.msrb.gmra.mxu3 %vm398_vm0, %v6015_v39  ;;  %v4681_v37 = vld [vmem:[#allocation2 + $0x700] sm:$0xff] }
 0x273   :  { %2911 = vmatpush.msra.mxu3 %v4676_v55  ;;  %2934 = vmatpush.msra.mxu0 %v4677_v16  ;;  %v4682_v3 = vld [vmem:[#allocation2 + $0x880] sm:$0xff]  ;;  %v4685_v55 = vld [vmem:[#allocation2 + $0x6e8] sm:$0xff] }
 0x274   :  { %2957 = vmatpush.msra.mxu1 %v4678_v58  ;;  %3000 = vmatpush.msrb.mxu2 %v4679_v60  ;;  %v4686_v16 = vld [vmem:[#allocation2 + $0x868] sm:$0xff]  ;;  %v4687_v58 = vld [vmem:[#allocation2 + $0xc0] sm:$0xff]  ;;  %v6200_v60 = vpop.f32.mrf.mxu3 }
 0x275   :  { %2827 = vmatmul.f32.vlgmr.msrb.gmra.mxu0 %v6026_v63  ;;  %2850 = vmatmul.f32.vlgmr.msrb.gmra.mxu1 %v6032_v53  ;;  %7143 = vst [vmem:[#allocation66_spill] sm:$0xff] %v6200_v60  ;;  %v4804_v60 = vld [vmem:[#allocation2 + $0x448] sm:$0xff] }
 0x276   :  { %2912 = vmatpush.msra.mxu3 %v4680_v30  ;;  %2935 = vmatpush.msra.mxu0 %v4681_v37  ;;  %v6202_v30 = vpop.f32.mrf.mxu0  ;;  %v4690_v37 = vld [vmem:[#allocation2 + $0x850] sm:$0xff] }
 0x277   :  { %2958 = vmatpush.msra.mxu1 %v4682_v3  ;;  %3001 = vmatpush.msrb.mxu2 %v4683_v5  ;;  %7144 = vst [vmem:[#allocation67_spill] sm:$0xff] %v6202_v30  ;;  %v6208_v5 = vpop.f32.mrf.mxu1  ;;  %v4691_v3 = vld [vmem:[#allocation2 + $0xa8] sm:$0xff] }
 0x278   :  { %2913 = vmatpush.msra.mxu3 %v4684_v21  ;;  %2936 = vmatpush.msra.mxu0 %v4685_v55  ;;  %v6206_v21 = vpop.f32.mrf.mxu2  ;;  %7146 = vst [vmem:[#allocation69_spill] sm:$0xff] %v6208_v5  ;;  %v4692_v55 = vld [vmem:[#allocation2 + $0x538] sm:$0xff]  ;;  %v4701_v30 = vld [vmem:[#allocation2 + $0x688] sm:$0xff]  ;;  %v4872_v5 = vld [vmem:[#allocation2 + $0xc60] sm:$0xff] }
 0x279   :  { %2959 = vmatpush.msra.mxu1 %v4686_v16  ;;  %3002 = vmatpush.msrb.mxu2 %v4687_v58  ;;  %7145 = vst [vmem:[#allocation68_spill] sm:$0xff] %v6206_v21  ;;  %v4693_v16 = vld [vmem:[#allocation2 + $0x6b8] sm:$0xff]  ;;  %v4696_v58 = vld [vmem:[#allocation2 + $0x520] sm:$0xff]  ;;  %v4819_v21 = vld [vmem:[#allocation2 + $0xe8] sm:$0xff] }
 0x27a   :  { %2914 = vmatpush.msra.mxu3 %v4688_v61  ;;  %2937 = vmatpush.msra.mxu0 %v4689_v25  ;;  %v4694_v61 = vld [vmem:[#allocation2 + $0x838] sm:$0xff]  ;;  %v4695_v25 = vld [vmem:[#allocation2 + $0x90] sm:$0xff] }
 0x27b   :  { %2960 = vmatpush.msra.mxu1 %v4690_v37  ;;  %4479 = vmatmul.msk.f32.vlgmr.msra.gmra.mxu2 %vm398_vm0, %v6015_v39  ;;  %v4697_v37 = vld [vmem:[#allocation2 + $0x6a0] sm:$0xff]  ;;  %v4699_v39 = vld [vmem:[#allocation2 + $0x78] sm:$0xff] }
 0x27c   :  { %3003 = vmatpush.msrb.mxu2 %v4691_v3  ;;  %2915 = vmatpush.msra.mxu3 %v4692_v55  ;;  %v4702_v3 = vld [vmem:[#allocation2 + $0x808] sm:$0xff]  ;;  %v4703_v55 = vld [vmem:[#allocation2 + $0x60] sm:$0xff] }
 0x27d   :  { %2938 = vmatpush.msra.mxu0 %v4693_v16  ;;  %2961 = vmatpush.msra.mxu1 %v4694_v61  ;;  %v4704_v16 = vld [vmem:[#allocation2 + $0x4f0] sm:$0xff] }
 0x27e   :  { %3004 = vmatpush.msrb.mxu2 %v4695_v25  ;;  %2916 = vmatpush.msra.mxu3 %v4696_v58  ;;  %v4705_v61 = vld [vmem:[#allocation2 + $0x670] sm:$0xff]  ;;  %v6211_v25 = vpop.f32.mrf.mxu3 }
 0x27f   :  { %2939 = vmatpush.msra.mxu0 %v4697_v37  ;;  %2962 = vmatpush.msra.mxu1 %v4698_v56  ;;  %7147 = vst [vmem:[#allocation70_spill] sm:$0xff] %v6211_v25  ;;  %v4706_v58 = vld [vmem:[#allocation2 + $0x7f0] sm:$0xff]  ;;  %v6215_v56 = vpop.f32.mrf.mxu0  ;;  %v4717_v25 = vld [vmem:[#allocation2 + $0x438] sm:$0xff] }
 0x280   :  { %3005 = vmatpush.msrb.mxu2 %v4699_v39  ;;  %2917 = vmatpush.msra.mxu3 %v4700_v27  ;;  %7148 = vst [vmem:[#allocation71_spill] sm:$0xff] %v6215_v56  ;;  %v4707_v27 = vld [vmem:[#allocation2 + $0x48] sm:$0xff]  ;;  %v6217_v37 = vpop.f32.mrf.mxu2  ;;  %v6219_v39 = vpop.f32.mrf.mxu1  ;;  %v4716_v56 = vld [vmem:[#allocation2 + $0x2b8] sm:$0xff] }
 0x281   :  { %2940 = vmatpush.msra.mxu0 %v4701_v30  ;;  %2963 = vmatpush.msra.mxu1 %v4702_v3  ;;  %v4708_v30 = vld [vmem:[#allocation2 + $0x2e8] sm:$0xff]  ;;  %7149 = vst [vmem:[#allocation72_spill] sm:$0xff] %v6217_v37  ;;  %v4766_v37 = vld [vmem:[#allocation2 + $0x80] sm:$0xff] }
 0x282   :  { %2853 = vmatmul.f32.gmra.mxu1 %v6065_v48  ;;  %3006 = vmatpush.msrb.mxu2 %v4703_v55  ;;  %7150 = vst [vmem:[#allocation73_spill] sm:$0xff] %v6219_v39  ;;  %v4709_v3 = vld [vmem:[#allocation2 + $0x468] sm:$0xff]  ;;  %v4767_v39 = vld [vmem:[#allocation2 + $0x200] sm:$0xff] }
 0x283   :  { %2918 = vmatpush.msra.mxu3 %v4704_v16  ;;  %2941 = vmatpush.msra.mxu0 %v4705_v61  ;;  %v4710_v55 = vld [vmem:[#allocation2 + $0x4c8] sm:$0xff]  ;;  %v4711_v16 = vld [vmem:[#allocation2 + $0x30] sm:$0xff] }
 0x284   :  { %2964 = vmatpush.msra.mxu1 %v4706_v58  ;;  %4480 = vmatmul.msk.f32.gmra.mxu2 %vm398_vm0, %v6048_v52  ;;  %v4712_v61 = vld [vmem:[#allocation2 + $0x2d0] sm:$0xff] }
 0x285   :  { %3007 = vmatpush.msrb.mxu2 %v4707_v27  ;;  %3018 = vmatpush.msrb.mxu3 %v4708_v30  ;;  %v4713_v58 = vld [vmem:[#allocation2 + $0x450] sm:$0xff]  ;;  %v4715_v30 = vld [vmem:[#allocation2 + $0x18] sm:$0xff] }
 0x286   :  { %3041 = vmatpush.msrb.mxu0 %v4709_v3  ;;  %3076 = vmatpush.msrb.mxu1 %v4710_v55  ;;  %v4714_v27 = vld [vmem:[#allocation2 + $0x4b0] sm:$0xff]  ;;  %v4718_v3 = vld [vmem:[#allocation2 + $0x498] sm:$0xff]  ;;  %v4719_v55 = vld [vmem:[#allocation2] sm:$0xff] }
 0x287   :  { %4478 = vmatmul.msk.f32.gmra.mxu3 %vm398_vm0, %v6048_v52  ;;  %3008 = vmatpush.msrb.mxu2 %v4711_v16  ;;  %v4720_v52 = vld [vmem:[#allocation2 + $0x2a0] sm:$0xff] }
 0x288   :  { %3019 = vmatpush.msrb.mxu3 %v4712_v61  ;;  %3042 = vmatpush.msrb.mxu0 %v4713_v58  ;;  %v4721_v16 = vld [vmem:[#allocation2 + $0x420] sm:$0xff]  ;;  %v6224_v58 = vpop.f32.mrf.mxu3 }
 0x289   :  { %3077 = vmatpush.msrb.mxu1 %v4714_v27  ;;  %3009 = vmatpush.msrb.mxu2 %v4715_v30  ;;  %v4722_v61 = vld [vmem:[#allocation2 + $0x480] sm:$0xff]  ;;  %7151 = vst [vmem:[#allocation74_spill] sm:$0xff] %v6224_v58  ;;  %v6232_v27 = vpop.f32.mrf.mxu0  ;;  %v6235_v30 = vpop.f32.mrf.mxu2  ;;  %v4731_v58 = vld [vmem:[#allocation2 + $0x270] sm:$0xff] }
 0x28a   :  { %3020 = vmatpush.msrb.mxu3 %v4716_v56  ;;  %3043 = vmatpush.msrb.mxu0 %v4717_v25  ;;  %v6229_v56 = vld [vmem:[%s7079_s1] sm:$0xff]  ;;  %v4724_v25 = vld [vmem:[#allocation2 + $0x170] sm:$0xff]  ;;  %7152 = vst [vmem:[#allocation75_spill] sm:$0xff] %v6232_v27 }
 0x28b   :  { %3078 = vmatpush.msrb.mxu1 %v4718_v3  ;;  %3010 = vmatpush.msrb.mxu2 %v4719_v55  ;;  %7153 = vst [vmem:[#allocation76_spill] sm:$0xff] %v6235_v30  ;;  %v6237_v3 = vpop.f32.mrf.mxu1  ;;  %v4726_v55 = vld [vmem:[#allocation2 + $0x288] sm:$0xff]  ;;  %v4733_v27 = vld [vmem:[#allocation2 + $0x2c0] sm:$0xff]  ;;  %v4734_v30 = vld [vmem:[#allocation2 + $0x3d8] sm:$0xff] }
 0x28c   :  { %2965 = vmatmul.f32.vlgmr.msra.gmra.mxu1 %v6007_v45  ;;  %3021 = vmatpush.msrb.mxu3 %v4720_v52  ;;  %v4725_v45 = vld [vmem:[#allocation2 + $0x2f0] sm:$0xff]  ;;  %7154 = vst [vmem:[#allocation77_spill] sm:$0xff] %v6237_v3  ;;  %v4727_v52 = vld [vmem:[#allocation2 + $0x408] sm:$0xff]  ;;  %v4735_v3 = vld [vmem:[#allocation2 + $0x258] sm:$0xff] }
 0x28d   :  { %3044 = vmatpush.msrb.mxu0 %v4721_v16  ;;  %3079 = vmatpush.msrb.mxu1 %v4722_v61  ;;  %v4728_v16 = vld [vmem:[#allocation2 + $0x158] sm:$0xff] }
 0x28e   :  { %3011 = vmatmul.f32.vlgmr.msrb.gmra.mxu2 %v6229_v56  ;;  %2830 = vmatmul.f32.gmra.mxu0 %v6059_v47  ;;  %v4729_v61 = vld [vmem:[#allocation2 + $0x2d8] sm:$0xff] }
 0x28f   :  { %3087 = vmatpush.msra.mxu1 %v4724_v25  ;;  %3110 = vmatpush.msra.mxu2 %v4725_v45  ;;  %v4730_v25 = vld [vmem:[#allocation2 + $0x3f0] sm:$0xff]  ;;  %v4732_v45 = vld [vmem:[#allocation2 + $0x140] sm:$0xff] }
 0x290   :  { %3022 = vmatpush.msrb.mxu3 %v4726_v55  ;;  %3045 = vmatpush.msrb.mxu0 %v4727_v52  ;;  %v4736_v55 = vld [vmem:[#allocation2 + $0x128] sm:$0xff] }
 0x291   :  { %3088 = vmatpush.msra.mxu1 %v4728_v16  ;;  %3111 = vmatpush.msra.mxu2 %v4729_v61  ;;  %v4737_v52 = vld [vmem:[#allocation2 + $0x2a8] sm:$0xff]  ;;  %v6241_v16 = vpop.f32.mrf.mxu0  ;;  %v4739_v61 = vld [vmem:[#allocation2 + $0x3c0] sm:$0xff] }
 0x292   :  { %2919 = vmatmul.f32.vlgmr.msra.gmra.mxu3 %v6026_v63  ;;  %3046 = vmatpush.msrb.mxu0 %v4730_v25  ;;  %7155 = vst [vmem:[#allocation78_spill] sm:$0xff] %v6241_v16  ;;  %v4738_v63 = vld [vmem:[#allocation2 + $0x240] sm:$0xff]  ;;  %v6245_v25 = vpop.f32.mrf.mxu3  ;;  %v4764_v16 = vld [vmem:[#allocation2 + $0x1b0] sm:$0xff] }
 0x293   :  { %3023 = vmatpush.msrb.mxu3 %v4731_v58  ;;  %3089 = vmatpush.msra.mxu1 %v4732_v45  ;;  %v6243_v58 = vpop.f32.mrf.mxu1  ;;  %7157 = vst [vmem:[#allocation80_spill] sm:$0xff] %v6245_v25  ;;  %v4743_v45 = vld [vmem:[#allocation2 + $0x228] sm:$0xff]  ;;  %v4748_v25 = vld [vmem:[#allocation2 + $0x390] sm:$0xff] }
 0x294   :  { %3112 = vmatpush.msra.mxu2 %v4733_v27  ;;  %3047 = vmatpush.msrb.mxu0 %v4734_v30  ;;  %7156 = vst [vmem:[#allocation79_spill] sm:$0xff] %v6243_v58  ;;  %v6250_v27 = vld [vmem:[%s7079_s1 + $0x20] sm:$0x3]  ;;  %v4741_v30 = vld [vmem:[#allocation2 + $0x110] sm:$0xff] }
 0x295   :  { %3024 = vmatpush.msrb.mxu3 %v4735_v3  ;;  %3090 = vmatpush.msra.mxu1 %v4736_v55  ;;  %v6254_v3 = vpop.f32.mrf.mxu2  ;;  %v4744_v55 = vld [vmem:[#allocation2 + $0x3a8] sm:$0xff]  ;;  %v4749_v58 = vld [vmem:[#allocation2 + $0xe0] sm:$0xff] }
 0x296   :  { %3113 = vmatpush.msra.mxu2 %v4737_v52  ;;  %2968 = vmatmul.f32.gmra.mxu1 %v6040_v23  ;;  %v4742_v23 = vld [vmem:[#allocation2 + $0x290] sm:$0xff]  ;;  %7158 = vst [vmem:[#allocation81_spill] sm:$0xff] %v6254_v3  ;;  %v4745_v52 = vld [vmem:[#allocation2 + $0xf8] sm:$0xff]  ;;  %v4753_v3 = vld [vmem:[#allocation2 + $0xc8] sm:$0xff] }
 0x297   :  { %3025 = vmatpush.msrb.mxu3 %v4738_v63  ;;  %3048 = vmatpush.msrb.mxu0 %v4739_v61  ;;  %v4746_v63 = vld [vmem:[#allocation2 + $0x278] sm:$0xff]  ;;  %v4747_v61 = vld [vmem:[#allocation2 + $0x210] sm:$0xff] }
 0x298   :  { %3014 = vmatmul.f32.gmra.mxu2 %v6250_v27  ;;  %3091 = vmatpush.msra.mxu1 %v4741_v30  ;;  %v4750_v30 = vld [vmem:[#allocation2 + $0x260] sm:$0xff] }
 0x299   :  { %3114 = vmatpush.msra.mxu2 %v4742_v23  ;;  %2942 = vmatmul.f32.vlgmr.msra.gmra.mxu0 %v6032_v53  ;;  %v4751_v23 = vld [vmem:[#allocation2 + $0x1f8] sm:$0xff] }
 0x29a   :  { %3026 = vmatpush.msrb.mxu3 %v4743_v45  ;;  %3049 = vmatpush.msrb.mxu0 %v4744_v55  ;;  %v4752_v53 = vld [vmem:[#allocation2 + $0x378] sm:$0xff]  ;;  %v4754_v45 = vld [vmem:[#allocation2 + $0x248] sm:$0xff]  ;;  %v4755_v55 = vld [vmem:[#allocation2 + $0x1e0] sm:$0xff] }
 0x29b   :  { %3092 = vmatpush.msra.mxu1 %v4745_v52  ;;  %3115 = vmatpush.msra.mxu2 %v4746_v63  ;;  %v4756_v52 = vld [vmem:[#allocation2 + $0x360] sm:$0xff]  ;;  %v6256_v63 = vpop.f32.mrf.mxu0 }
 0x29c   :  { %3027 = vmatpush.msrb.mxu3 %v4747_v61  ;;  %3050 = vmatpush.msrb.mxu0 %v4748_v25  ;;  %v6266_v25 = vpop.f32.mrf.mxu3  ;;  %v4758_v61 = vld [vmem:[#allocation2 + $0xb0] sm:$0xff] }
 0x29d   :  { %3093 = vmatpush.msra.mxu1 %v4749_v58  ;;  %3116 = vmatpush.msra.mxu2 %v4750_v30  ;;  %v6261_v58 = vld [vmem:[%s7079_s1 + $0x18] sm:$0xff]  ;;  %v4759_v30 = vld [vmem:[#allocation2 + $0x230] sm:$0xff] }
 0x29e   :  { %3028 = vmatpush.msrb.mxu3 %v4751_v23  ;;  %3051 = vmatpush.msrb.mxu0 %v4752_v53  ;;  %v4760_v23 = vld [vmem:[#allocation2 + $0x1c8] sm:$0xff] }
 0x29f   :  { %3094 = vmatpush.msra.mxu1 %v4753_v3  ;;  %3117 = vmatpush.msra.mxu2 %v4754_v45  ;;  %v6268_v3 = vpop.f32.mrf.mxu1  ;;  %v4761_v53 = vld [vmem:[#allocation2 + $0x348] sm:$0xff]  ;;  %v6270_v45 = vpop.f32.mrf.mxu2 }
 0x2a0   :  { %3029 = vmatpush.msrb.mxu3 %v4755_v55  ;;  %3052 = vmatpush.msrb.mxu0 %v4756_v52  ;;  %7159 = vst [vmem:[#allocation82_spill] sm:$0xff] %v6270_v45  ;;  %v4762_v55 = vld [vmem:[#allocation2 + $0x98] sm:$0xff] }
 0x2a1   :  { %4481 = vmatmul.msk.f32.vlgmr.msrb.gmra.mxu1 %vm398_vm0, %v6261_v58  ;;  %2922 = vmatmul.f32.gmra.mxu3 %v6059_v47  ;;  %v4763_v52 = vld [vmem:[#allocation2 + $0x218] sm:$0xff]  ;;  %v4765_v47 = vld [vmem:[#allocation2 + $0x330] sm:$0xff] }
 0x2a2   :  { %3095 = vmatpush.msra.mxu1 %v4758_v61  ;;  %3118 = vmatpush.msra.mxu2 %v4759_v30  ;;  %v4768_v61 = vld [vmem:[#allocation2 + $0x198] sm:$0xff] }
 0x2a3   :  { %3030 = vmatpush.msrb.mxu3 %v4760_v23  ;;  %3053 = vmatpush.msrb.mxu0 %v4761_v53  ;;  %v4769_v30 = vld [vmem:[#allocation2 + $0x318] sm:$0xff]  ;;  %v4770_v23 = vld [vmem:[#allocation2 + $0x68] sm:$0xff] }
 0x2a4   :  { %3096 = vmatpush.msra.mxu1 %v4762_v55  ;;  %3119 = vmatpush.msra.mxu2 %v4763_v52  ;;  %v4771_v53 = vld [vmem:[#allocation2 + $0x1e8] sm:$0xff]  ;;  %v4772_v55 = vld [vmem:[#allocation2 + $0x180] sm:$0xff]  ;;  %v5164_v45 = vld [vmem:[#allocation2 + $0x1158] sm:$0xff] }
 0x2a5   :  { %3031 = vmatpush.msrb.mxu3 %v4764_v16  ;;  %3054 = vmatpush.msrb.mxu0 %v4765_v47  ;;  %v4773_v52 = vld [vmem:[#allocation2 + $0x300] sm:$0xff]  ;;  %v4776_v16 = vld [vmem:[#allocation2 + $0x50] sm:$0xff]  ;;  %v6288_v47 = vpop.f32.mrf.mxu3 }
 0x2a6   :  { %3097 = vmatpush.msra.mxu1 %v4766_v37  ;;  %3120 = vmatpush.msra.mxu2 %v4767_v39  ;;  %v6276_v37 = vld [vmem:[%s7079_s1 + $0x38] sm:$0x3]  ;;  %v6280_v39 = vpop.f32.mrf.mxu0 }
 0x2a7   :  { %3032 = vmatpush.msrb.mxu3 %v4768_v61  ;;  %3055 = vmatpush.msrb.mxu0 %v4769_v30  ;;  %7160 = vst [vmem:[#allocation83_spill] sm:$0xff] %v6280_v39  ;;  %v6290_v61 = vpop.f32.mrf.mxu1  ;;  %v4777_v30 = vld [vmem:[#allocation2 + $0x1d0] sm:$0xff] }
 0x2a8   :  { %2945 = vmatmul.f32.gmra.mxu0 %v6065_v48  ;;  %3098 = vmatpush.msra.mxu1 %v4770_v23  ;;  %v6285_v48 = vld [vmem:[%s7079_s1 + $0x8] sm:$0xff]  ;;  %7161 = vst [vmem:[#allocation84_spill] sm:$0xff] %v6290_v61  ;;  %v4778_v23 = vld [vmem:[#allocation2 + $0x470] sm:$0xff]  ;;  %v4966_v61 = vld [vmem:[#allocation2 + $0xd40] sm:$0xff] }
 0x2a9   :  { %3121 = vmatpush.msra.mxu2 %v4771_v53  ;;  %3033 = vmatpush.msrb.mxu3 %v4772_v55  ;;  %v4779_v53 = vld [vmem:[#allocation2 + $0x4d0] sm:$0xff]  ;;  %v4780_v55 = vld [vmem:[#allocation2 + $0x38] sm:$0xff] }
 0x2aa   :  { %3056 = vmatpush.msrb.mxu0 %v4773_v52  ;;  %4482 = vmatmul.msk.f32.gmra.mxu1 %vm398_vm0, %v6276_v37  ;;  %v6292_v52 = vpop.f32.mrf.mxu2 }
 0x2ab   :  { %3034 = vmatmul.f32.vlgmr.msrb.gmra.mxu3 %v6285_v48  ;;  %3099 = vmatpush.msra.mxu1 %v4776_v16  ;;  %7162 = vst [vmem:[#allocation85_spill] sm:$0xff] %v6292_v52  ;;  %v4784_v16 = vld [vmem:[#allocation2 + $0x20] sm:$0xff] }
 0x2ac   :  { %3122 = vmatpush.msra.mxu2 %v4777_v30  ;;  %3133 = vmatpush.msra.mxu3 %v4778_v23  ;;  %v4787_v30 = vld [vmem:[#allocation2 + $0x4a0] sm:$0xff]  ;;  %v4788_v23 = vld [vmem:[#allocation2 + $0x8] sm:$0xff] }
 0x2ad   :  { %3168 = vmatpush.msra.mxu0 %v4779_v53  ;;  %3100 = vmatpush.msra.mxu1 %v4780_v55  ;;  %v6297_v53 = vld [vmem:[%s7079_s1 + $0x10] sm:$0xff]  ;;  %v4793_v55 = vld [vmem:[#allocation2 + $0x178] sm:$0xff] }
 0x2ae   :  { %3123 = vmatpush.msra.mxu2 %v4781_v31  ;;  %3134 = vmatpush.msra.mxu3 %v4782_v41  ;;  %v4790_v31 = vld [vmem:[#allocation2 + $0x188] sm:$0xff] }
 0x2af   :  { %3169 = vmatpush.msra.mxu0 %v4783_v40  ;;  %3101 = vmatpush.msra.mxu1 %v4784_v16  ;;  %v6300_v40 = vpop.f32.mrf.mxu0  ;;  %v4791_v41 = vld [vmem:[#allocation2 + $0x428] sm:$0xff]  ;;  %v4794_v16 = vld [vmem:[#allocation2 + $0x2f8] sm:$0xff] }
 0x2b0   :  { %3124 = vmatpush.msra.mxu2 %v4785_v51  ;;  %3135 = vmatpush.msra.mxu3 %v4786_v7  ;;  %7163 = vst [vmem:[#allocation86_spill] sm:$0xff] %v6300_v40  ;;  %v4792_v51 = vld [vmem:[#allocation2 + $0x488] sm:$0xff]  ;;  %v6302_v7 = vpop.f32.mrf.mxu3 }
 0x2b1   :  { %3170 = vmatpush.msra.mxu0 %v4787_v30  ;;  %3102 = vmatpush.msra.mxu1 %v4788_v23  ;;  %7164 = vst [vmem:[#allocation87_spill] sm:$0xff] %v6302_v7  ;;  %v6306_v30 = vpop.f32.mrf.mxu1  ;;  %v4795_v23 = vld [vmem:[#allocation2 + $0x478] sm:$0xff]  ;;  %v4803_v7 = vld [vmem:[#allocation2 + $0x2c8] sm:$0xff] }
 0x2b2   :  { %3057 = vmatmul.f32.vlgmr.msrb.gmra.mxu0 %v6297_v53  ;;  %3125 = vmatpush.msra.mxu2 %v4790_v31  ;;  %7165 = vst [vmem:[#allocation88_spill] sm:$0xff] %v6306_v30  ;;  %v6311_v31 = vld [vmem:[%s7079_s1 + $0x28] sm:$0x3]  ;;  %v6314_v40 = vpop.f32.mrf.mxu2  ;;  %v4801_v30 = vld [vmem:[#allocation2 + $0x3f8] sm:$0xff] }
 0x2b3   :  { %3136 = vmatpush.msra.mxu3 %v4791_v41  ;;  %3171 = vmatpush.msra.mxu0 %v4792_v51  ;;  %v4797_v41 = vld [vmem:[#allocation2 + $0x410] sm:$0xff]  ;;  %v4798_v51 = vld [vmem:[#allocation2 + $0x160] sm:$0xff]  ;;  %7166 = vst [vmem:[#allocation89_spill] sm:$0xff] %v6314_v40 }
 0x2b4   :  { %3103 = vmatmul.f32.vlgmr.msra.gmra.mxu1 %v6229_v56  ;;  %3126 = vmatmul.f32.vlgmr.msra.gmra.mxu2 %v6285_v48 }
 0x2b5   :  { %3179 = vmatpush.msrb.mxu0 %v4793_v55  ;;  %3202 = vmatpush.msrb.mxu1 %v4794_v16  ;;  %v4799_v55 = vld [vmem:[#allocation2 + $0x2e0] sm:$0xff] }
 0x2b6   :  { %3225 = vmatpush.msrb.mxu2 %v4795_v23  ;;  %3037 = vmatmul.f32.gmra.mxu3 %v6311_v31  ;;  %v4800_v16 = vld [vmem:[#allocation2 + $0x460] sm:$0xff]  ;;  %v4802_v23 = vld [vmem:[#allocation2 + $0x148] sm:$0xff] }
 0x2b7   :  { %3137 = vmatpush.msra.mxu3 %v4797_v41  ;;  %3180 = vmatpush.msrb.mxu0 %v4798_v51  ;;  %v4807_v41 = vld [vmem:[#allocation2 + $0x2b0] sm:$0xff]  ;;  %v6316_v40 = vpop.f32.mrf.mxu0 }
 0x2b8   :  { %3203 = vmatpush.msrb.mxu1 %v4799_v55  ;;  %3226 = vmatpush.msrb.mxu2 %v4800_v16  ;;  %v4808_v51 = vld [vmem:[#allocation2 + $0x430] sm:$0xff]  ;;  %7167 = vst [vmem:[#allocation90_spill] sm:$0xff] %v6316_v40  ;;  %v4813_v16 = vld [vmem:[#allocation2 + $0x418] sm:$0xff]  ;;  %v4817_v40 = vld [vmem:[#allocation2 + $0x400] sm:$0xff] }
 0x2b9   :  { %3138 = vmatpush.msra.mxu3 %v4801_v30  ;;  %3181 = vmatpush.msrb.mxu0 %v4802_v23  ;;  %v6321_v30 = vld [vmem:[%s7079_s1 + $0x30] sm:$0x3]  ;;  %v6328_v55 = vpop.f32.mrf.mxu1 }
 0x2ba   :  { %3204 = vmatpush.msrb.mxu1 %v4803_v7  ;;  %3227 = vmatpush.msrb.mxu2 %v4804_v60  ;;  %v4810_v7 = vld [vmem:[#allocation2 + $0x3c8] sm:$0xff]  ;;  %v6324_v60 = vpop.f32.mrf.mxu3  ;;  %7169 = vst [vmem:[#allocation92_spill] sm:$0xff] %v6328_v55  ;;  %v4814_v23 = vld [vmem:[#allocation2 + $0x3b0] sm:$0xff]  ;;  %v4822_v55 = vld [vmem:[#allocation2 + $0x380] sm:$0xff] }
 0x2bb   :  { %3139 = vmatpush.msra.mxu3 %v4805_v8  ;;  %3182 = vmatpush.msrb.mxu0 %v4806_v43  ;;  %7168 = vst [vmem:[#allocation91_spill] sm:$0xff] %v6324_v60  ;;  %v4811_v43 = vld [vmem:[#allocation2 + $0x118] sm:$0xff] }
 0x2bc   :  { %3205 = vmatpush.msrb.mxu1 %v4807_v41  ;;  %3228 = vmatpush.msrb.mxu2 %v4808_v51  ;;  %v4812_v8 = vld [vmem:[#allocation2 + $0x298] sm:$0xff]  ;;  %v4815_v41 = vld [vmem:[#allocation2 + $0x100] sm:$0xff] }
 0x2bd   :  { %3060 = vmatmul.f32.gmra.mxu0 %v6321_v30  ;;  %3140 = vmatpush.msra.mxu3 %v4810_v7  ;;  %v4816_v51 = vld [vmem:[#allocation2 + $0x280] sm:$0xff]  ;;  %v6330_v7 = vpop.f32.mrf.mxu2  ;;  %v4818_v60 = vld [vmem:[#allocation2 + $0x398] sm:$0xff] }
 0x2be   :  { %3106 = vmatmul.f32.gmra.mxu1 %v6250_v27  ;;  %3129 = vmatmul.f32.gmra.mxu2 %v6311_v31  ;;  %7170 = vst [vmem:[#allocation93_spill] sm:$0xff] %v6330_v7  ;;  %v4825_v7 = vld [vmem:[#allocation2 + $0x3d0] sm:$0xff] }
 0x2bf   :  { %3183 = vmatpush.msrb.mxu0 %v4811_v43  ;;  %3206 = vmatpush.msrb.mxu1 %v4812_v8  ;;  %v4820_v43 = vld [vmem:[#allocation2 + $0x268] sm:$0xff] }
 0x2c0   :  { %3229 = vmatpush.msrb.mxu2 %v4813_v16  ;;  %3141 = vmatpush.msra.mxu3 %v4814_v23  ;;  %v4821_v8 = vld [vmem:[#allocation2 + $0x3e8] sm:$0xff]  ;;  %v6332_v16 = vpop.f32.mrf.mxu0  ;;  %v4823_v23 = vld [vmem:[#allocation2 + $0xd0] sm:$0xff] }
 0x2c1   :  { %3184 = vmatpush.msrb.mxu0 %v4815_v41  ;;  %3207 = vmatpush.msrb.mxu1 %v4816_v51  ;;  %7171 = vst [vmem:[#allocation94_spill] sm:$0xff] %v6332_v16  ;;  %v4824_v41 = vld [vmem:[#allocation2 + $0x250] sm:$0xff]  ;;  %v4834_v16 = vld [vmem:[#allocation2 + $0x338] sm:$0xff] }
 0x2c2   :  { %3230 = vmatpush.msrb.mxu2 %v4817_v40  ;;  %3142 = vmatpush.msra.mxu3 %v4818_v60  ;;  %v6334_v51 = vpop.f32.mrf.mxu3  ;;  %v4826_v40 = vld [vmem:[#allocation2 + $0x368] sm:$0xff]  ;;  %v4828_v60 = vld [vmem:[#allocation2 + $0xb8] sm:$0xff] }
 0x2c3   :  { %3185 = vmatpush.msrb.mxu0 %v4819_v21  ;;  %3208 = vmatpush.msrb.mxu1 %v4820_v43  ;;  %7172 = vst [vmem:[#allocation95_spill] sm:$0xff] %v6334_v51  ;;  %v4827_v21 = vld [vmem:[#allocation2 + $0x238] sm:$0xff]  ;;  %v4830_v43 = vld [vmem:[#allocation2 + $0x350] sm:$0xff]  ;;  %v4835_v51 = vld [vmem:[#allocation2 + $0x208] sm:$0xff] }
 0x2c4   :  { %3231 = vmatpush.msrb.mxu2 %v4821_v8  ;;  %3143 = vmatpush.msra.mxu3 %v4822_v55  ;;  %v4829_v55 = vld [vmem:[#allocation2 + $0x3b8] sm:$0xff]  ;;  %v4831_v8 = vld [vmem:[#allocation2 + $0x220] sm:$0xff] }
 0x2c5   :  { %3186 = vmatpush.msrb.mxu0 %v4823_v23  ;;  %3209 = vmatpush.msrb.mxu1 %v4824_v41  ;;  %v6338_v23 = vpop.f32.mrf.mxu1  ;;  %v6340_v41 = vpop.f32.mrf.mxu2 }
 0x2c6   :  { %3232 = vmatpush.msrb.mxu2 %v4825_v7  ;;  %3144 = vmatpush.msra.mxu3 %v4826_v40  ;;  %7173 = vst [vmem:[#allocation96_spill] sm:$0xff] %v6338_v23  ;;  %v4832_v7 = vld [vmem:[#allocation2 + $0xa0] sm:$0xff]  ;;  %v4841_v23 = vld [vmem:[#allocation2 + $0x370] sm:$0xff] }
 0x2c7   :  { %4483 = vmatmul.msk.f32.vlgmr.msra.gmra.mxu0 %vm398_vm0, %v6261_v58  ;;  %3210 = vmatpush.msrb.mxu1 %v4827_v21  ;;  %7174 = vst [vmem:[#allocation97_spill] sm:$0xff] %v6340_v41  ;;  %v4833_v40 = vld [vmem:[#allocation2 + $0x3a0] sm:$0xff]  ;;  %v4836_v21 = vld [vmem:[#allocation2 + $0x88] sm:$0xff] }
 0x2c8   :  { %3187 = vmatpush.msrb.mxu0 %v4828_v60  ;;  %3233 = vmatpush.msrb.mxu2 %v4829_v55  ;;  %v4837_v60 = vld [vmem:[#allocation2 + $0x388] sm:$0xff]  ;;  %v4838_v55 = vld [vmem:[#allocation2 + $0x320] sm:$0xff]  ;;  %v6342_v41 = vpop.f32.mrf.mxu0 }
 0x2c9   :  { %3145 = vmatpush.msra.mxu3 %v4830_v43  ;;  %3211 = vmatpush.msrb.mxu1 %v4831_v8  ;;  %v4839_v43 = vld [vmem:[#allocation2 + $0x1f0] sm:$0xff]  ;;  %7175 = vst [vmem:[#allocation98_spill] sm:$0xff] %v6342_v41  ;;  %v4850_v41 = vld [vmem:[#allocation2 + $0x4c0] sm:$0xff] }
 0x2ca   :  { %3188 = vmatpush.msrb.mxu0 %v4832_v7  ;;  %3234 = vmatpush.msrb.mxu2 %v4833_v40  ;;  %v4840_v8 = vld [vmem:[#allocation2 + $0x70] sm:$0xff]  ;;  %v4842_v7 = vld [vmem:[#allocation2 + $0x308] sm:$0xff]  ;;  %v4844_v40 = vld [vmem:[#allocation2 + $0x1d8] sm:$0xff] }
 0x2cb   :  { %3146 = vmatpush.msra.mxu3 %v4834_v16  ;;  %3212 = vmatpush.msrb.mxu1 %v4835_v51  ;;  %v6346_v16 = vpop.f32.mrf.mxu3  ;;  %v4843_v51 = vld [vmem:[#allocation2 + $0x58] sm:$0xff] }
 0x2cc   :  { %3189 = vmatpush.msrb.mxu0 %v4836_v21  ;;  %3235 = vmatpush.msrb.mxu2 %v4837_v60  ;;  %7176 = vst [vmem:[#allocation99_spill] sm:$0xff] %v6346_v16  ;;  %v4845_v21 = vld [vmem:[#allocation2 + $0x358] sm:$0xff]  ;;  %v4851_v16 = vld [vmem:[#allocation2 + $0x28] sm:$0xff] }
 0x2cd   :  { %3147 = vmatpush.msra.mxu3 %v4838_v55  ;;  %3213 = vmatpush.msrb.mxu1 %v4839_v43  ;;  %v4846_v60 = vld [vmem:[#allocation2 + $0x4d8] sm:$0xff]  ;;  %v4848_v55 = vld [vmem:[#allocation2 + $0x1c0] sm:$0xff] }
 0x2ce   :  { %3190 = vmatpush.msrb.mxu0 %v4840_v8  ;;  %3236 = vmatpush.msrb.mxu2 %v4841_v23  ;;  %v4847_v23 = vld [vmem:[#allocation2 + $0x40] sm:$0xff]  ;;  %v6349_v8 = vpop.f32.mrf.mxu1 }
 0x2cf   :  { %3148 = vmatpush.msra.mxu3 %v4842_v7  ;;  %4484 = vmatmul.msk.f32.gmra.mxu0 %vm398_vm0, %v6276_v37  ;;  %v4849_v43 = vld [vmem:[#allocation2 + $0x340] sm:$0xff]  ;;  %7177 = vst [vmem:[#allocation100_spill] sm:$0xff] %v6349_v8  ;;  %v6351_v7 = vpop.f32.mrf.mxu2 }
 0x2d0   :  { %3149 = vmatmul.f32.vlgmr.msra.gmra.mxu3 %v6297_v53  ;;  %3191 = vmatpush.msrb.mxu0 %v4843_v51  ;;  %7178 = vst [vmem:[#allocation101_spill] sm:$0xff] %v6351_v7  ;;  %v4852_v51 = vld [vmem:[#allocation2 + $0x1a8] sm:$0xff]  ;;  %v6354_v7 = vpop.f32.mrf.mxu0  ;;  %v4871_v8 = vld [vmem:[#allocation2 + $0xae0] sm:$0xff] }
 0x2d1   :  { %3214 = vmatpush.msrb.mxu1 %v4844_v40  ;;  %3237 = vmatpush.msrb.mxu2 %v4845_v21  ;;  %v4853_v40 = vld [vmem:[#allocation2 + $0x328] sm:$0xff] }
 0x2d2   :  { %3260 = vmatpush.msrb.mxu3 %v4846_v60  ;;  %3192 = vmatpush.msrb.mxu0 %v4847_v23  ;;  %v4854_v21 = vld [vmem:[#allocation2 + $0x4a8] sm:$0xff]  ;;  %v4855_v60 = vld [vmem:[#allocation2 + $0x10] sm:$0xff] }
 0x2d3   :  { %3215 = vmatpush.msrb.mxu1 %v4848_v55  ;;  %3238 = vmatpush.msrb.mxu2 %v4849_v43  ;;  %v4856_v23 = vld [vmem:[#allocation2 + $0x190] sm:$0xff] }
 0x2d4   :  { %3261 = vmatpush.msrb.mxu3 %v4850_v41  ;;  %3193 = vmatpush.msrb.mxu0 %v4851_v16  ;;  %v4857_v55 = vld [vmem:[#allocation2 + $0x310] sm:$0xff]  ;;  %v4859_v41 = vld [vmem:[#allocation2 + $0xb28] sm:$0xff]  ;;  %v6357_v16 = vpop.f32.mrf.mxu3 }
 0x2d5   :  { %3216 = vmatpush.msrb.mxu1 %v4852_v51  ;;  %3239 = vmatpush.msrb.mxu2 %v4853_v40  ;;  %v4858_v43 = vld [vmem:[#allocation2 + $0x490] sm:$0xff]  ;;  %7179 = vst [vmem:[#allocation102_spill] sm:$0xff] %v6357_v16  ;;  %v4860_v51 = vld [vmem:[#allocation2 + $0xca8] sm:$0xff] }
 0x2d6   :  { %3262 = vmatpush.msrb.mxu3 %v4854_v21  ;;  %3194 = vmatpush.msrb.mxu0 %v4855_v60  ;;  %v4861_v40 = vld [vmem:[#allocation2 + $0xe28] sm:$0xff]  ;;  %v6360_v60 = vpop.f32.mrf.mxu1  ;;  %v5478_v16 = vld [vmem:[#allocation2 + $0x1930] sm:$0xff] }
 0x2d7   :  { %3217 = vmatpush.msrb.mxu1 %v4856_v23  ;;  %3240 = vmatpush.msrb.mxu2 %v4857_v55  ;;  %v4862_v21 = vld [vmem:[#allocation2 + $0xe88] sm:$0xff]  ;;  %v6362_v23 = vpop.f32.mrf.mxu2  ;;  %v4865_v55 = vld [vmem:[#allocation2 + $0xe10] sm:$0xff] }
 0x2d8   :  { %3263 = vmatpush.msrb.mxu3 %v4858_v43  ;;  %3195 = vmatmul.f32.vlgmr.msrb.gmra.mxu0 %v6229_v56  ;;  %v4863_v56 = vld [vmem:[#allocation2 + $0xb10] sm:$0xff] }
 0x2d9   :  { %3241 = vmatmul.f32.vlgmr.msrb.gmra.mxu2 %v6297_v53  ;;  %3300 = vmatpush.msra.mxu0 %v4860_v51  ;;  %v4864_v53 = vld [vmem:[#allocation2 + $0xc90] sm:$0xff]  ;;  %v4868_v51 = vld [vmem:[#allocation2 + $0xc78] sm:$0xff] }
 0x2da   :  { %3277 = vmatpush.msra.mxu3 %v4859_v41  ;;  %3323 = vmatpush.msra.mxu1 %v4861_v40  ;;  %v4866_v43 = vld [vmem:[#allocation2 + $0xe70] sm:$0xff]  ;;  %v4867_v41 = vld [vmem:[#allocation2 + $0xaf8] sm:$0xff] }
 0x2db   :  { %3358 = vmatpush.msra.mxu2 %v4862_v21  ;;  %3152 = vmatmul.f32.gmra.mxu3 %v6321_v30  ;;  %v4869_v40 = vld [vmem:[#allocation2 + $0xdf8] sm:$0xff] }
 0x2dc   :  { %3218 = vmatmul.f32.vlgmr.msrb.gmra.mxu1 %v6285_v48  ;;  %3278 = vmatpush.msra.mxu3 %v4863_v56  ;;  %v4870_v21 = vld [vmem:[#allocation2 + $0xe58] sm:$0xff]  ;;  %v4873_v48 = vld [vmem:[#allocation2 + $0xde0] sm:$0xff] }
 0x2dd   :  { %3301 = vmatpush.msra.mxu0 %v4864_v53  ;;  %3324 = vmatpush.msra.mxu1 %v4865_v55  ;;  %v4874_v56 = vld [vmem:[#allocation2 + $0xe40] sm:$0xff]  ;;  %v6366_v53 = vpop.f32.mrf.mxu0  ;;  %v4875_v55 = vld [vmem:[#allocation2 + $0xb30] sm:$0xff] }
 0x2de   :  { %3359 = vmatpush.msra.mxu2 %v4866_v43  ;;  %3279 = vmatpush.msra.mxu3 %v4867_v41  ;;  %7180 = vst [vmem:[#allocation103_spill] sm:$0xff] %v6366_v53  ;;  %v4876_v43 = vld [vmem:[#allocation2 + $0xac8] sm:$0xff]  ;;  %v6368_v41 = vpop.f32.mrf.mxu3  ;;  %v5343_v53 = vld [vmem:[#allocation2 + $0xeb0] sm:$0xff] }
 0x2df   :  { %3302 = vmatpush.msra.mxu0 %v4868_v51  ;;  %3325 = vmatpush.msra.mxu1 %v4869_v40  ;;  %7181 = vst [vmem:[#allocation104_spill] sm:$0xff] %v6368_v41  ;;  %v4877_v51 = vld [vmem:[#allocation2 + $0xc48] sm:$0xff]  ;;  %v4879_v40 = vld [vmem:[#allocation2 + $0xb18] sm:$0xff] }
 0x2e0   :  { %3360 = vmatpush.msra.mxu2 %v4870_v21  ;;  %3280 = vmatpush.msra.mxu3 %v4871_v8  ;;  %v4878_v8 = vld [vmem:[#allocation2 + $0xdc8] sm:$0xff]  ;;  %v4880_v21 = vld [vmem:[#allocation2 + $0xab0] sm:$0xff]  ;;  %v4961_v41 = vld [vmem:[#allocation2 + $0xbd8] sm:$0xff] }
 0x2e1   :  { %3303 = vmatpush.msra.mxu0 %v4872_v5  ;;  %3326 = vmatpush.msra.mxu1 %v4873_v48  ;;  %v6373_v5 = vpop.f32.mrf.mxu1  ;;  %v4881_v48 = vld [vmem:[#allocation2 + $0xc30] sm:$0xff] }
 0x2e2   :  { %3361 = vmatpush.msra.mxu2 %v4874_v56  ;;  %3198 = vmatmul.f32.gmra.mxu0 %v6250_v27  ;;  %7182 = vst [vmem:[#allocation105_spill] sm:$0xff] %v6373_v5  ;;  %v6375_v27 = vpop.f32.mrf.mxu2  ;;  %v4883_v56 = vld [vmem:[#allocation2 + $0xb00] sm:$0xff]  ;;  %v5312_v5 = vld [vmem:[#allocation2 + $0xf70] sm:$0xff] }
 0x2e3   :  { %3281 = vmatpush.msra.mxu3 %v4876_v43  ;;  %3244 = vmatmul.f32.gmra.mxu2 %v6321_v30  ;;  %7183 = vst [vmem:[#allocation106_spill] sm:$0xff] %v6375_v27  ;;  %v4882_v30 = vld [vmem:[#allocation2 + $0xdb0] sm:$0xff]  ;;  %v4885_v43 = vld [vmem:[#allocation2 + $0xc18] sm:$0xff] }
 0x2e4   :  { %3369 = vmatpush.msrb.mxu2 %v4875_v55  ;;  %3304 = vmatpush.msra.mxu0 %v4877_v51  ;;  %v4884_v55 = vld [vmem:[#allocation2 + $0xa98] sm:$0xff]  ;;  %v4887_v51 = vld [vmem:[#allocation2 + $0xae8] sm:$0xff] }
 0x2e5   :  { %3327 = vmatpush.msra.mxu1 %v4878_v8  ;;  %4485 = vmatmul.msk.f32.vlgmr.msrb.gmra.mxu3 %vm398_vm0, %v6261_v58  ;;  %v4886_v58 = vld [vmem:[#allocation2 + $0xd98] sm:$0xff]  ;;  %v6378_v8 = vpop.f32.mrf.mxu0 }
 0x2e6   :  { %3370 = vmatpush.msrb.mxu2 %v4879_v40  ;;  %3221 = vmatmul.f32.gmra.mxu1 %v6311_v31  ;;  %7184 = vst [vmem:[#allocation107_spill] sm:$0xff] %v6378_v8  ;;  %v4888_v40 = vld [vmem:[#allocation2 + $0xa80] sm:$0xff]  ;;  %v4978_v27 = vld [vmem:[#allocation2 + $0xcf8] sm:$0xff] }
 0x2e7   :  { %3282 = vmatpush.msra.mxu3 %v4880_v21  ;;  %3305 = vmatpush.msra.mxu0 %v4881_v48  ;;  %v4889_v31 = vld [vmem:[#allocation2 + $0xc00] sm:$0xff]  ;;  %v6380_v21 = vpop.f32.mrf.mxu3 }
 0x2e8   :  { %3328 = vmatpush.msra.mxu1 %v4882_v30  ;;  %3371 = vmatpush.msrb.mxu2 %v4883_v56  ;;  %7185 = vst [vmem:[#allocation108_spill] sm:$0xff] %v6380_v21  ;;  %v4890_v48 = vld [vmem:[#allocation2 + $0xd80] sm:$0xff]  ;;  %v4891_v30 = vld [vmem:[#allocation2 + $0xad0] sm:$0xff]  ;;  %v4892_v56 = vld [vmem:[#allocation2 + $0xa68] sm:$0xff] }
 0x2e9   :  { %3283 = vmatpush.msra.mxu3 %v4884_v55  ;;  %3306 = vmatpush.msra.mxu0 %v4885_v43  ;;  %v4893_v55 = vld [vmem:[#allocation2 + $0xbe8] sm:$0xff]  ;;  %v6382_v43 = vpop.f32.mrf.mxu1  ;;  %v4904_v8 = vld [vmem:[#allocation2 + $0xa20] sm:$0xff]  ;;  %v4940_v21 = vld [vmem:[#allocation2 + $0xb38] sm:$0xff] }
 0x2ea   :  { %3329 = vmatpush.msra.mxu1 %v4886_v58  ;;  %3372 = vmatpush.msrb.mxu2 %v4887_v51  ;;  %7186 = vst [vmem:[#allocation109_spill] sm:$0xff] %v6382_v43  ;;  %v6384_v58 = vpop.f32.mrf.mxu2  ;;  %v4894_v51 = vld [vmem:[#allocation2 + $0xd68] sm:$0xff]  ;;  %v4901_v43 = vld [vmem:[#allocation2 + $0xbb8] sm:$0xff] }
 0x2eb   :  { %3284 = vmatpush.msra.mxu3 %v4888_v40  ;;  %3307 = vmatpush.msra.mxu0 %v4889_v31  ;;  %7187 = vst [vmem:[#allocation110_spill] sm:$0xff] %v6384_v58  ;;  %v4895_v40 = vld [vmem:[#allocation2 + $0xab8] sm:$0xff]  ;;  %v4896_v31 = vld [vmem:[#allocation2 + $0xa50] sm:$0xff] }
 0x2ec   :  { %3330 = vmatpush.msra.mxu1 %v4890_v48  ;;  %3373 = vmatpush.msrb.mxu2 %v4891_v30  ;;  %v4897_v48 = vld [vmem:[#allocation2 + $0xbd0] sm:$0xff]  ;;  %v4902_v58 = vld [vmem:[#allocation2 + $0xd38] sm:$0xff] }
 0x2ed   :  { %3285 = vmatpush.msra.mxu3 %v4892_v56  ;;  %3308 = vmatpush.msra.mxu0 %v4893_v55  ;;  %v4898_v30 = vld [vmem:[#allocation2 + $0xd50] sm:$0xff]  ;;  %v4899_v56 = vld [vmem:[#allocation2 + $0xaa0] sm:$0xff]  ;;  %v4900_v55 = vld [vmem:[#allocation2 + $0xa38] sm:$0xff] }
 0x2ee   :  { %3331 = vmatpush.msra.mxu1 %v4894_v51  ;;  %4486 = vmatmul.msk.f32.gmra.mxu3 %vm398_vm0, %v6276_v37  ;;  %v4903_v51 = vld [vmem:[#allocation2 + $0xa88] sm:$0xff]  ;;  %v4905_v37 = vld [vmem:[#allocation2 + $0xba0] sm:$0xff] }
 0x2ef   :  { %3374 = vmatpush.msrb.mxu2 %v4895_v40  ;;  %3286 = vmatpush.msra.mxu3 %v4896_v31  ;;  %v4906_v40 = vld [vmem:[#allocation2 + $0xd20] sm:$0xff]  ;;  %v6388_v31 = vpop.f32.mrf.mxu0 }
 0x2f0   :  { %3309 = vmatpush.msra.mxu0 %v4897_v48  ;;  %3332 = vmatpush.msra.mxu1 %v4898_v30  ;;  %7188 = vst [vmem:[#allocation111_spill] sm:$0xff] %v6388_v31  ;;  %v4907_v48 = vld [vmem:[#allocation2 + $0xa70] sm:$0xff]  ;;  %v4908_v30 = vld [vmem:[#allocation2 + $0xa08] sm:$0xff] }
 0x2f1   :  { %3375 = vmatpush.msrb.mxu2 %v4899_v56  ;;  %3287 = vmatpush.msra.mxu3 %v4900_v55  ;;  %v6390_v56 = vpop.f32.mrf.mxu3  ;;  %v4909_v55 = vld [vmem:[#allocation2 + $0xb88] sm:$0xff]  ;;  %v4914_v31 = vld [vmem:[#allocation2 + $0xcf0] sm:$0xff] }
 0x2f2   :  { %3310 = vmatpush.msra.mxu0 %v4901_v43  ;;  %3333 = vmatpush.msra.mxu1 %v4902_v58  ;;  %7189 = vst [vmem:[#allocation112_spill] sm:$0xff] %v6390_v56  ;;  %v4910_v43 = vld [vmem:[#allocation2 + $0xd08] sm:$0xff]  ;;  %v4911_v58 = vld [vmem:[#allocation2 + $0xa58] sm:$0xff] }
 0x2f3   :  { %3376 = vmatpush.msrb.mxu2 %v4903_v51  ;;  %3288 = vmatpush.msra.mxu3 %v4904_v8  ;;  %v4912_v51 = vld [vmem:[#allocation2 + $0x9f0] sm:$0xff]  ;;  %v6392_v8 = vpop.f32.mrf.mxu1  ;;  %v4917_v56 = vld [vmem:[#allocation2 + $0xb58] sm:$0xff] }
 0x2f4   :  { %3311 = vmatpush.msra.mxu0 %v4905_v37  ;;  %3334 = vmatpush.msra.mxu1 %v4906_v40  ;;  %7190 = vst [vmem:[#allocation113_spill] sm:$0xff] %v6392_v8  ;;  %v6394_v37 = vpop.f32.mrf.mxu2  ;;  %v4913_v40 = vld [vmem:[#allocation2 + $0xb70] sm:$0xff] }
 0x2f5   :  { %3377 = vmatpush.msrb.mxu2 %v4907_v48  ;;  %3289 = vmatpush.msra.mxu3 %v4908_v30  ;;  %7191 = vst [vmem:[#allocation114_spill] sm:$0xff] %v6394_v37  ;;  %v4915_v48 = vld [vmem:[#allocation2 + $0xa40] sm:$0xff]  ;;  %v4916_v30 = vld [vmem:[#allocation2 + $0x9d8] sm:$0xff]  ;;  %v4925_v37 = vld [vmem:[#allocation2 + $0xe30] sm:$0xff] }
 0x2f6   :  { %3312 = vmatpush.msra.mxu0 %v4909_v55  ;;  %3335 = vmatpush.msra.mxu1 %v4910_v43  ;;  %v4918_v55 = vld [vmem:[#allocation2 + $0xcd8] sm:$0xff]  ;;  %v6399_v43 = vld [vmem:[%s7081_s3] sm:$0xff] }
 0x2f7   :  { %3378 = vmatpush.msrb.mxu2 %v4911_v58  ;;  %3290 = vmatpush.msra.mxu3 %v4912_v51  ;;  %v4919_v58 = vld [vmem:[#allocation2 + $0xa28] sm:$0xff]  ;;  %v4920_v51 = vld [vmem:[#allocation2 + $0x9c0] sm:$0xff] }
 0x2f8   :  { %3313 = vmatpush.msra.mxu0 %v4913_v40  ;;  %3336 = vmatpush.msra.mxu1 %v4914_v31  ;;  %v4921_v40 = vld [vmem:[#allocation2 + $0xb40] sm:$0xff] }
 0x2f9   :  { %3379 = vmatpush.msrb.mxu2 %v4915_v48  ;;  %3291 = vmatpush.msra.mxu3 %v4916_v30  ;;  %v4922_v31 = vld [vmem:[#allocation2 + $0xcc0] sm:$0xff]  ;;  %v6401_v48 = vpop.f32.mrf.mxu0  ;;  %v6404_v30 = vpop.f32.mrf.mxu3 }
 0x2fa   :  { %3314 = vmatpush.msra.mxu0 %v4917_v56  ;;  %3337 = vmatpush.msra.mxu1 %v4918_v55  ;;  %7192 = vst [vmem:[#allocation115_spill] sm:$0xff] %v6401_v48  ;;  %v4923_v56 = vld [vmem:[#allocation2 + $0xa10] sm:$0xff] }
 0x2fb   :  { %3380 = vmatpush.msrb.mxu2 %v4919_v58  ;;  %3292 = vmatpush.msra.mxu3 %v4920_v51  ;;  %7193 = vst [vmem:[#allocation116_spill] sm:$0xff] %v6404_v30  ;;  %v4924_v55 = vld [vmem:[#allocation2 + $0xcb0] sm:$0xff]  ;;  %v6409_v58 = vld [vmem:[%s7081_s3 + $0x18] sm:$0xff]  ;;  %v6413_v48 = vpop.f32.mrf.mxu1 }
 0x2fc   :  { %3315 = vmatpush.msra.mxu0 %v4921_v40  ;;  %3338 = vmatpush.msra.mxu1 %v4922_v31  ;;  %v4926_v51 = vld [vmem:[#allocation2 + $0xe90] sm:$0xff]  ;;  %v4927_v40 = vld [vmem:[#allocation2 + $0x9f8] sm:$0xff]  ;;  %v6411_v31 = vpop.f32.mrf.mxu2  ;;  %7195 = vst [vmem:[#allocation118_spill] sm:$0xff] %v6413_v48  ;;  %v4934_v48 = vld [vmem:[#allocation2 + $0xe60] sm:$0xff] }
 0x2fd   :  { %3293 = vmatmul.f32.vlgmr.msra.gmra.mxu3 %v6399_v43  ;;  %3381 = vmatpush.msrb.mxu2 %v4923_v56  ;;  %7194 = vst [vmem:[#allocation117_spill] sm:$0xff] %v6411_v31  ;;  %v4928_v56 = vld [vmem:[#allocation2 + $0xc98] sm:$0xff]  ;;  %v4933_v31 = vld [vmem:[#allocation2 + $0xe00] sm:$0xff] }
 0x2fe   :  { %3392 = vmatpush.msrb.mxu3 %v4924_v55  ;;  %3415 = vmatpush.msrb.mxu0 %v4925_v37  ;;  %v4929_v30 = vld [vmem:[#allocation2 + $0xe18] sm:$0xff]  ;;  %v6420_v37 = vld [vmem:[%s7081_s3 + $0x8] sm:$0xff] }
 0x2ff   :  { %3450 = vmatpush.msrb.mxu1 %v4926_v51  ;;  %3382 = vmatpush.msrb.mxu2 %v4927_v40  ;;  %v4930_v55 = vld [vmem:[#allocation2 + $0xe78] sm:$0xff]  ;;  %v4931_v51 = vld [vmem:[#allocation2 + $0x9e0] sm:$0xff] }
 0x300   :  { %3393 = vmatpush.msrb.mxu3 %v4928_v56  ;;  %3416 = vmatpush.msrb.mxu0 %v4929_v30  ;;  %v4932_v40 = vld [vmem:[#allocation2 + $0xc80] sm:$0xff]  ;;  %v4935_v30 = vld [vmem:[#allocation2 + $0x9c8] sm:$0xff]  ;;  %v6426_v56 = vld [vmem:[%s7081_s3 + $0x10] sm:$0xff] }
 0x301   :  { %3451 = vmatpush.msrb.mxu1 %v4930_v55  ;;  %4487 = vmatmul.msk.f32.vlgmr.msra.gmra.mxu2 %vm398_vm0, %v6409_v58  ;;  %v6431_v55 = vld [vmem:[%s7081_s3 + $0x20] sm:$0x3]  ;;  %v6433_v8 = vpop.f32.mrf.mxu0 }
 0x302   :  { %3383 = vmatpush.msrb.mxu2 %v4931_v51  ;;  %3394 = vmatpush.msrb.mxu3 %v4932_v40  ;;  %v4936_v51 = vld [vmem:[#allocation2 + $0xc68] sm:$0xff]  ;;  %7196 = vst [vmem:[#allocation119_spill] sm:$0xff] %v6433_v8  ;;  %v4944_v8 = vld [vmem:[#allocation2 + $0xb20] sm:$0xff] }
 0x303   :  { %3417 = vmatpush.msrb.mxu0 %v4933_v31  ;;  %3452 = vmatpush.msrb.mxu1 %v4934_v48  ;;  %v4937_v40 = vld [vmem:[#allocation2 + $0xde8] sm:$0xff]  ;;  %v4939_v48 = vld [vmem:[#allocation2 + $0xcb8] sm:$0xff] }
 0x304   :  { %3316 = vmatmul.f32.vlgmr.msra.gmra.mxu0 %v6420_v37  ;;  %3384 = vmatpush.msrb.mxu2 %v4935_v30  ;;  %v4938_v31 = vld [vmem:[#allocation2 + $0xe48] sm:$0xff]  ;;  %v6437_v30 = vpop.f32.mrf.mxu3 }
 0x305   :  { %3395 = vmatpush.msrb.mxu3 %v4936_v51  ;;  %3418 = vmatpush.msrb.mxu0 %v4937_v40  ;;  %7197 = vst [vmem:[#allocation120_spill] sm:$0xff] %v6437_v30  ;;  %v4943_v51 = vld [vmem:[#allocation2 + $0xca0] sm:$0xff]  ;;  %v6442_v40 = vld [vmem:[%s7081_s3 + $0x38] sm:$0x3] }
 0x306   :  { %3453 = vmatpush.msrb.mxu1 %v4938_v31  ;;  %3484 = vmatpush.msra.mxu2 %v4939_v48  ;;  %v6444_v31 = vpop.f32.mrf.mxu2  ;;  %v6446_v48 = vpop.f32.mrf.mxu1  ;;  %v4945_v30 = vld [vmem:[#allocation2 + $0xc38] sm:$0xff] }
 0x307   :  { %3339 = vmatmul.f32.vlgmr.msra.gmra.mxu1 %v6426_v56  ;;  %3296 = vmatmul.f32.gmra.mxu3 %v6431_v55  ;;  %7198 = vst [vmem:[#allocation121_spill] sm:$0xff] %v6444_v31  ;;  %v4949_v31 = vld [vmem:[#allocation2 + $0xc20] sm:$0xff] }
 0x308   :  { %3461 = vmatpush.msra.mxu1 %v4940_v21  ;;  %3396 = vmatpush.msrb.mxu3 %v4941_v36  ;;  %7199 = vst [vmem:[#allocation122_spill] sm:$0xff] %v6446_v48  ;;  %v4946_v21 = vld [vmem:[#allocation2 + $0xdb8] sm:$0xff]  ;;  %v4947_v36 = vld [vmem:[#allocation2 + $0xc88] sm:$0xff]  ;;  %v4950_v48 = vld [vmem:[#allocation2 + $0xda0] sm:$0xff] }
 0x309   :  { %3419 = vmatpush.msrb.mxu0 %v4942_v13  ;;  %3485 = vmatpush.msra.mxu2 %v4943_v51  ;;  %v4948_v13 = vld [vmem:[#allocation2 + $0xb08] sm:$0xff] }
 0x30a   :  { %3462 = vmatpush.msra.mxu1 %v4944_v8  ;;  %3397 = vmatpush.msrb.mxu3 %v4945_v30  ;;  %v6453_v51 = vld [vmem:[%s7081_s3 + $0x28] sm:$0x3]  ;;  %v4951_v8 = vld [vmem:[#allocation2 + $0xaf0] sm:$0xff] }
 0x30b   :  { %3420 = vmatpush.msrb.mxu0 %v4946_v21  ;;  %3486 = vmatpush.msra.mxu2 %v4947_v36  ;;  %v4952_v30 = vld [vmem:[#allocation2 + $0xc70] sm:$0xff]  ;;  %v6460_v36 = vpop.f32.mrf.mxu0 }
 0x30c   :  { %3463 = vmatpush.msra.mxu1 %v4948_v13  ;;  %4488 = vmatmul.msk.f32.gmra.mxu2 %vm398_vm0, %v6442_v40  ;;  %v6458_v21 = vld [vmem:[%s7081_s3 + $0x30] sm:$0x3]  ;;  %v4953_v13 = vld [vmem:[#allocation2 + $0xc08] sm:$0xff]  ;;  %v6463_v42 = vpop.f32.mrf.mxu3 }
 0x30d   :  { %3398 = vmatpush.msrb.mxu3 %v4949_v31  ;;  %3421 = vmatpush.msrb.mxu0 %v4950_v48  ;;  %v4954_v31 = vld [vmem:[#allocation2 + $0xd88] sm:$0xff]  ;;  %v4955_v48 = vld [vmem:[#allocation2 + $0xad8] sm:$0xff] }
 0x30e   :  { %3464 = vmatpush.msra.mxu1 %v4951_v8  ;;  %3487 = vmatpush.msra.mxu2 %v4952_v30  ;;  %v4956_v8 = vld [vmem:[#allocation2 + $0xc58] sm:$0xff]  ;;  %v6466_v30 = vpop.f32.mrf.mxu2  ;;  %v6468_v52 = vpop.f32.mrf.mxu1 }
 0x30f   :  { %3319 = vmatmul.f32.gmra.mxu0 %v6453_v51  ;;  %3399 = vmatpush.msrb.mxu3 %v4953_v13  ;;  %v4960_v13 = vld [vmem:[#allocation2 + $0xc40] sm:$0xff] }
 0x310   :  { %3422 = vmatpush.msrb.mxu0 %v4954_v31  ;;  %3465 = vmatpush.msra.mxu1 %v4955_v48  ;;  %v4962_v31 = vld [vmem:[#allocation2 + $0xd58] sm:$0xff]  ;;  %v4963_v48 = vld [vmem:[#allocation2 + $0xaa8] sm:$0xff] }
 0x311   :  { %3488 = vmatpush.msra.mxu2 %v4956_v8  ;;  %3342 = vmatmul.f32.gmra.mxu1 %v6458_v21  ;;  %v4964_v8 = vld [vmem:[#allocation2 + $0xc28] sm:$0xff] }
 0x312   :  { %3400 = vmatpush.msrb.mxu3 %v4957_v20  ;;  %3423 = vmatpush.msrb.mxu0 %v4958_v38  ;;  %v4968_v20 = vld [vmem:[#allocation2 + $0xc10] sm:$0xff]  ;;  %v4969_v38 = vld [vmem:[#allocation2 + $0xba8] sm:$0xff] }
 0x313   :  { %3466 = vmatpush.msra.mxu1 %v4959_v6  ;;  %3489 = vmatpush.msra.mxu2 %v4960_v13  ;;  %v4970_v6 = vld [vmem:[#allocation2 + $0xd28] sm:$0xff]  ;;  %v6470_v13 = vpop.f32.mrf.mxu0 }
 0x314   :  { %3401 = vmatpush.msrb.mxu3 %v4961_v41  ;;  %3424 = vmatpush.msrb.mxu0 %v4962_v31  ;;  %7200 = vst [vmem:[#allocation123_spill] sm:$0xff] %v6470_v13  ;;  %v4971_v41 = vld [vmem:[#allocation2 + $0xa78] sm:$0xff]  ;;  %v5168_v13 = vld [vmem:[#allocation2 + $0x1140] sm:$0xff] }
 0x315   :  { %3467 = vmatpush.msra.mxu1 %v4963_v48  ;;  %3490 = vmatpush.msra.mxu2 %v4964_v8  ;;  %v4972_v31 = vld [vmem:[#allocation2 + $0xbf8] sm:$0xff]  ;;  %v6472_v48 = vpop.f32.mrf.mxu3  ;;  %v4973_v8 = vld [vmem:[#allocation2 + $0xb90] sm:$0xff] }
 0x316   :  { %3402 = vmatpush.msrb.mxu3 %v4965_v35  ;;  %3425 = vmatpush.msrb.mxu0 %v4966_v61  ;;  %v4974_v35 = vld [vmem:[#allocation2 + $0xd10] sm:$0xff]  ;;  %v4975_v61 = vld [vmem:[#allocation2 + $0xa60] sm:$0xff] }
 0x317   :  { %3468 = vmatpush.msra.mxu1 %v4967_v11  ;;  %3491 = vmatpush.msra.mxu2 %v4968_v20  ;;  %v4976_v11 = vld [vmem:[#allocation2 + $0xbe0] sm:$0xff]  ;;  %v6474_v20 = vpop.f32.mrf.mxu2 }
 0x318   :  { %3403 = vmatpush.msrb.mxu3 %v4969_v38  ;;  %3426 = vmatpush.msrb.mxu0 %v4970_v6  ;;  %v6476_v38 = vpop.f32.mrf.mxu1  ;;  %v4977_v6 = vld [vmem:[#allocation2 + $0xb78] sm:$0xff] }
 0x319   :  { %3469 = vmatpush.msra.mxu1 %v4971_v41  ;;  %3492 = vmatpush.msra.mxu2 %v4972_v31  ;;  %v4979_v41 = vld [vmem:[#allocation2 + $0xa48] sm:$0xff] }
 0x31a   :  { %3404 = vmatpush.msrb.mxu3 %v4973_v8  ;;  %3427 = vmatpush.msrb.mxu0 %v4974_v35  ;;  %v4980_v31 = vld [vmem:[#allocation2 + $0xbc8] sm:$0xff]  ;;  %v4982_v8 = vld [vmem:[#allocation2 + $0xce0] sm:$0xff]  ;;  %v4983_v35 = vld [vmem:[#allocation2 + $0xa30] sm:$0xff] }
 0x31b   :  { %3470 = vmatpush.msra.mxu1 %v4975_v61  ;;  %3493 = vmatpush.msra.mxu2 %v4976_v11  ;;  %v4984_v61 = vld [vmem:[#allocation2 + $0xbb0] sm:$0xff]  ;;  %v4985_v11 = vld [vmem:[#allocation2 + $0xb48] sm:$0xff] }
 0x31c   :  { %3405 = vmatpush.msrb.mxu3 %v4977_v6  ;;  %3428 = vmatpush.msrb.mxu0 %v4978_v27  ;;  %v4987_v27 = vld [vmem:[#allocation2 + $0xa18] sm:$0xff] }
 0x31d   :  { %3471 = vmatpush.msra.mxu1 %v4979_v41  ;;  %3494 = vmatpush.msra.mxu2 %v4980_v31  ;;  %v4988_v6 = vld [vmem:[#allocation2 + $0xb98] sm:$0xff]  ;;  %v6480_v41 = vpop.f32.mrf.mxu0 }
 0x31e   :  { %3406 = vmatpush.msrb.mxu3 %v4981_v17  ;;  %3429 = vmatpush.msrb.mxu0 %v4982_v8  ;;  %7201 = vst [vmem:[#allocation124_spill] sm:$0xff] %v6480_v41  ;;  %v4989_v17 = vld [vmem:[#allocation2 + $0xe38] sm:$0xff]  ;;  %v6482_v8 = vpop.f32.mrf.mxu3  ;;  %v4996_v41 = vld [vmem:[#allocation2 + $0xb68] sm:$0xff] }
 0x31f   :  { %3472 = vmatpush.msra.mxu1 %v4983_v35  ;;  %3495 = vmatpush.msra.mxu2 %v4984_v61  ;;  %v4990_v31 = vld [vmem:[#allocation2 + $0xe98] sm:$0xff]  ;;  %7202 = vst [vmem:[#allocation125_spill] sm:$0xff] %v6482_v8  ;;  %v4991_v35 = vld [vmem:[#allocation2 + $0xa00] sm:$0xff]  ;;  %v6484_v39 = vpop.f32.mrf.mxu2  ;;  %v4999_v8 = vld [vmem:[#allocation2 + $0x9d0] sm:$0xff] }
 0x320   :  { %3407 = vmatpush.msrb.mxu3 %v4985_v11  ;;  %3430 = vmatpush.msrb.mxu0 %v4986_v22  ;;  %v4992_v61 = vld [vmem:[#allocation2 + $0xb80] sm:$0xff]  ;;  %7203 = vst [vmem:[#allocation126_spill] sm:$0xff] %v6484_v39  ;;  %v5013_v39 = vld [vmem:[#allocation2 + $0x17b8] sm:$0xff] }
 0x321   :  { %3385 = vmatmul.f32.vlgmr.msrb.gmra.mxu2 %v6399_v43  ;;  %3408 = vmatmul.f32.vlgmr.msrb.gmra.mxu3 %v6420_v37  ;;  %v4993_v22 = vld [vmem:[#allocation2 + $0xe20] sm:$0xff] }
 0x322   :  { %3473 = vmatpush.msra.mxu1 %v4987_v27  ;;  %3496 = vmatpush.msra.mxu2 %v4988_v6  ;;  %v4994_v11 = vld [vmem:[#allocation2 + $0xe80] sm:$0xff]  ;;  %v6486_v27 = vpop.f32.mrf.mxu1  ;;  %v4995_v6 = vld [vmem:[#allocation2 + $0x9e8] sm:$0xff] }
 0x323   :  { %3507 = vmatpush.msra.mxu3 %v4989_v17  ;;  %3542 = vmatpush.msra.mxu0 %v4990_v31  ;;  %7204 = vst [vmem:[#allocation127_spill] sm:$0xff] %v6486_v27  ;;  %v4997_v17 = vld [vmem:[#allocation2 + $0xe08] sm:$0xff] }
 0x324   :  { %3474 = vmatpush.msra.mxu1 %v4991_v35  ;;  %3497 = vmatpush.msra.mxu2 %v4992_v61  ;;  %v4998_v31 = vld [vmem:[#allocation2 + $0xe68] sm:$0xff]  ;;  %v5000_v35 = vld [vmem:[#allocation2 + $0xb50] sm:$0xff] }
 0x325   :  { %3508 = vmatpush.msra.mxu3 %v4993_v22  ;;  %3543 = vmatpush.msra.mxu0 %v4994_v11  ;;  %v5001_v61 = vld [vmem:[#allocation2 + $0xdf0] sm:$0xff]  ;;  %v6491_v11 = vpop.f32.mrf.mxu0  ;;  %v5014_v27 = vld [vmem:[#allocation2 + $0xda8] sm:$0xff] }
 0x326   :  { %3475 = vmatpush.msra.mxu1 %v4995_v6  ;;  %3498 = vmatpush.msra.mxu2 %v4996_v41  ;;  %v5002_v22 = vld [vmem:[#allocation2 + $0xe50] sm:$0xff]  ;;  %7205 = vst [vmem:[#allocation128_spill] sm:$0xff] %v6491_v11  ;;  %v5003_v41 = vld [vmem:[#allocation2 + $0x14e8] sm:$0xff] }
 0x327   :  { %3509 = vmatpush.msra.mxu3 %v4997_v17  ;;  %3544 = vmatpush.msra.mxu0 %v4998_v31  ;;  %v5004_v6 = vld [vmem:[#allocation2 + $0x1668] sm:$0xff]  ;;  %v6493_v17 = vpop.f32.mrf.mxu3  ;;  %v5006_v31 = vld [vmem:[#allocation2 + $0xdd8] sm:$0xff]  ;;  %v5009_v11 = vld [vmem:[#allocation2 + $0x17d0] sm:$0xff] }
 0x328   :  { %3476 = vmatpush.msra.mxu1 %v4999_v8  ;;  %3499 = vmatpush.msra.mxu2 %v5000_v35  ;;  %7206 = vst [vmem:[#allocation129_spill] sm:$0xff] %v6493_v17  ;;  %v5005_v8 = vld [vmem:[#allocation2 + $0x17e8] sm:$0xff]  ;;  %v5011_v17 = vld [vmem:[#allocation2 + $0x14b8] sm:$0xff] }
 0x329   :  { %3510 = vmatpush.msra.mxu3 %v5001_v61  ;;  %3545 = vmatpush.msra.mxu0 %v5002_v22  ;;  %v5007_v61 = vld [vmem:[#allocation2 + $0x14d0] sm:$0xff] }
 0x32a   :  { %3431 = vmatmul.f32.vlgmr.msrb.gmra.mxu0 %v6426_v56  ;;  %4489 = vmatmul.msk.f32.vlgmr.msrb.gmra.mxu1 %vm398_vm0, %v6409_v58  ;;  %v6497_v35 = vpop.f32.mrf.mxu1  ;;  %v5008_v22 = vld [vmem:[#allocation2 + $0x1650] sm:$0xff] }
 0x32b   :  { %3565 = vmatpush.msrb.mxu0 %v5003_v41  ;;  %3588 = vmatpush.msrb.mxu1 %v5004_v6  ;;  %7207 = vst [vmem:[#allocation130_spill] sm:$0xff] %v6497_v35  ;;  %v5010_v41 = vld [vmem:[#allocation2 + $0xdc0] sm:$0xff]  ;;  %v6499_v6 = vpop.f32.mrf.mxu2 }
 0x32c   :  { %3611 = vmatpush.msrb.mxu2 %v5005_v8  ;;  %3411 = vmatmul.f32.gmra.mxu3 %v6453_v51  ;;  %7208 = vst [vmem:[#allocation131_spill] sm:$0xff] %v6499_v6  ;;  %v5012_v8 = vld [vmem:[#allocation2 + $0x1638] sm:$0xff]  ;;  %v5016_v35 = vld [vmem:[#allocation2 + $0x1620] sm:$0xff] }
 0x32d   :  { %3388 = vmatmul.f32.gmra.mxu2 %v6431_v55  ;;  %3511 = vmatpush.msra.mxu3 %v5006_v31  ;;  %v5015_v31 = vld [vmem:[#allocation2 + $0x14a0] sm:$0xff]  ;;  %v6501_v6 = vpop.f32.mrf.mxu0 }
 0x32e   :  { %3566 = vmatpush.msrb.mxu0 %v5007_v61  ;;  %3589 = vmatpush.msrb.mxu1 %v5008_v22  ;;  %v5017_v61 = vld [vmem:[#allocation2 + $0x17a0] sm:$0xff]  ;;  %v5018_v22 = vld [vmem:[#allocation2 + $0xd90] sm:$0xff]  ;;  %7209 = vst [vmem:[#allocation132_spill] sm:$0xff] %v6501_v6 }
 0x32f   :  { %3612 = vmatpush.msrb.mxu2 %v5009_v11  ;;  %3512 = vmatpush.msra.mxu3 %v5010_v41  ;;  %v5019_v11 = vld [vmem:[#allocation2 + $0x1488] sm:$0xff]  ;;  %v5034_v6 = vld [vmem:[#allocation2 + $0xd30] sm:$0xff] }
 0x330   :  { %3567 = vmatpush.msrb.mxu0 %v5011_v17  ;;  %3590 = vmatpush.msrb.mxu1 %v5012_v8  ;;  %v5020_v41 = vld [vmem:[#allocation2 + $0x1608] sm:$0xff]  ;;  %v5023_v8 = vld [vmem:[#allocation2 + $0x1470] sm:$0xff] }
 0x331   :  { %3613 = vmatpush.msrb.mxu2 %v5013_v39  ;;  %3513 = vmatpush.msra.mxu3 %v5014_v27  ;;  %v5021_v17 = vld [vmem:[#allocation2 + $0x1788] sm:$0xff]  ;;  %v6504_v39 = vpop.f32.mrf.mxu3  ;;  %v5022_v27 = vld [vmem:[#allocation2 + $0xd78] sm:$0xff] }
 0x332   :  { %3568 = vmatpush.msrb.mxu0 %v5015_v31  ;;  %3591 = vmatpush.msrb.mxu1 %v5016_v35  ;;  %7210 = vst [vmem:[#allocation133_spill] sm:$0xff] %v6504_v39  ;;  %v5024_v35 = vld [vmem:[#allocation2 + $0x15f0] sm:$0xff] }
 0x333   :  { %3614 = vmatpush.msrb.mxu2 %v5017_v61  ;;  %3514 = vmatpush.msra.mxu3 %v5018_v22  ;;  %v5025_v31 = vld [vmem:[#allocation2 + $0x1770] sm:$0xff]  ;;  %v6506_v61 = vpop.f32.mrf.mxu1  ;;  %v5026_v22 = vld [vmem:[#allocation2 + $0xd60] sm:$0xff] }
 0x334   :  { %3569 = vmatpush.msrb.mxu0 %v5019_v11  ;;  %3592 = vmatpush.msrb.mxu1 %v5020_v41  ;;  %7211 = vst [vmem:[#allocation134_spill] sm:$0xff] %v6506_v61  ;;  %v5027_v11 = vld [vmem:[#allocation2 + $0x1458] sm:$0xff]  ;;  %v5033_v61 = vld [vmem:[#allocation2 + $0x1740] sm:$0xff] }
 0x335   :  { %3615 = vmatpush.msrb.mxu2 %v5021_v17  ;;  %3434 = vmatmul.f32.gmra.mxu0 %v6458_v21  ;;  %v5028_v41 = vld [vmem:[#allocation2 + $0x15d8] sm:$0xff]  ;;  %v6510_v17 = vpop.f32.mrf.mxu2  ;;  %v6512_v39 = vpop.f32.mrf.mxu0 }
 0x336   :  { %3515 = vmatpush.msra.mxu3 %v5022_v27  ;;  %3570 = vmatpush.msrb.mxu0 %v5023_v8  ;;  %7212 = vst [vmem:[#allocation135_spill] sm:$0xff] %v6510_v17  ;;  %v5029_v27 = vld [vmem:[#allocation2 + $0x1758] sm:$0xff]  ;;  %v5030_v8 = vld [vmem:[#allocation2 + $0xd48] sm:$0xff] }
 0x337   :  { %3593 = vmatpush.msrb.mxu1 %v5024_v35  ;;  %3616 = vmatpush.msrb.mxu2 %v5025_v31  ;;  %v5031_v35 = vld [vmem:[#allocation2 + $0x1440] sm:$0xff]  ;;  %7213 = vst [vmem:[#allocation136_spill] sm:$0xff] %v6512_v39  ;;  %v5037_v17 = vld [vmem:[#allocation2 + $0x1728] sm:$0xff]  ;;  %v5044_v39 = vld [vmem:[#allocation2 + $0x1578] sm:$0xff] }
 0x338   :  { %4490 = vmatmul.msk.f32.gmra.mxu1 %vm398_vm0, %v6442_v40  ;;  %3516 = vmatpush.msra.mxu3 %v5026_v22  ;;  %v5032_v31 = vld [vmem:[#allocation2 + $0x15c0] sm:$0xff]  ;;  %v5035_v22 = vld [vmem:[#allocation2 + $0x1428] sm:$0xff] }
 0x339   :  { %3571 = vmatpush.msrb.mxu0 %v5027_v11  ;;  %3594 = vmatpush.msrb.mxu1 %v5028_v41  ;;  %v5036_v11 = vld [vmem:[#allocation2 + $0x15a8] sm:$0xff]  ;;  %v6514_v41 = vpop.f32.mrf.mxu3 }
 0x33a   :  { %3617 = vmatpush.msrb.mxu2 %v5029_v27  ;;  %3517 = vmatpush.msra.mxu3 %v5030_v8  ;;  %7214 = vst [vmem:[#allocation137_spill] sm:$0xff] %v6514_v41  ;;  %v5038_v27 = vld [vmem:[#allocation2 + $0xd18] sm:$0xff]  ;;  %v5039_v8 = vld [vmem:[#allocation2 + $0x1410] sm:$0xff]  ;;  %v5046_v41 = vld [vmem:[#allocation2 + $0xce8] sm:$0xff] }
 0x33b   :  { %3572 = vmatpush.msrb.mxu0 %v5031_v35  ;;  %3595 = vmatpush.msrb.mxu1 %v5032_v31  ;;  %v5040_v35 = vld [vmem:[#allocation2 + $0x1590] sm:$0xff] }
 0x33c   :  { %3618 = vmatpush.msrb.mxu2 %v5033_v61  ;;  %3518 = vmatpush.msra.mxu3 %v5034_v6  ;;  %v5041_v31 = vld [vmem:[#allocation2 + $0x1710] sm:$0xff]  ;;  %v5042_v61 = vld [vmem:[#allocation2 + $0xd00] sm:$0xff]  ;;  %v5043_v6 = vld [vmem:[#allocation2 + $0x13f8] sm:$0xff] }
 0x33d   :  { %3573 = vmatpush.msrb.mxu0 %v5035_v22  ;;  %3596 = vmatpush.msrb.mxu1 %v5036_v11  ;;  %v6516_v22 = vpop.f32.mrf.mxu1  ;;  %v5045_v11 = vld [vmem:[#allocation2 + $0x16f8] sm:$0xff] }
 0x33e   :  { %3619 = vmatpush.msrb.mxu2 %v5037_v17  ;;  %3519 = vmatpush.msra.mxu3 %v5038_v27  ;;  %7215 = vst [vmem:[#allocation138_spill] sm:$0xff] %v6516_v22  ;;  %v5047_v17 = vld [vmem:[#allocation2 + $0x13e0] sm:$0xff]  ;;  %v6519_v27 = vpop.f32.mrf.mxu2  ;;  %v5091_v22 = vld [vmem:[#allocation2 + $0x1778] sm:$0xff] }
 0x33f   :  { %3574 = vmatpush.msrb.mxu0 %v5039_v8  ;;  %3597 = vmatpush.msrb.mxu1 %v5040_v35  ;;  %7216 = vst [vmem:[#allocation139_spill] sm:$0xff] %v6519_v27  ;;  %v5048_v8 = vld [vmem:[#allocation2 + $0x1560] sm:$0xff] }
 0x340   :  { %3620 = vmatpush.msrb.mxu2 %v5041_v31  ;;  %3520 = vmatpush.msra.mxu3 %v5042_v61  ;;  %v5049_v35 = vld [vmem:[#allocation2 + $0x16e0] sm:$0xff]  ;;  %v5050_v31 = vld [vmem:[#allocation2 + $0xcd0] sm:$0xff]  ;;  %v5051_v61 = vld [vmem:[#allocation2 + $0x13c8] sm:$0xff] }
 0x341   :  { %3575 = vmatpush.msrb.mxu0 %v5043_v6  ;;  %3598 = vmatpush.msrb.mxu1 %v5044_v39  ;;  %v5052_v39 = vld [vmem:[#allocation2 + $0x1548] sm:$0xff]  ;;  %v6522_v6 = vpop.f32.mrf.mxu0 }
 0x342   :  { %3621 = vmatpush.msrb.mxu2 %v5045_v11  ;;  %3521 = vmatpush.msra.mxu3 %v5046_v41  ;;  %7217 = vst [vmem:[#allocation140_spill] sm:$0xff] %v6522_v6  ;;  %v5053_v41 = vld [vmem:[#allocation2 + $0x16c8] sm:$0xff]  ;;  %v6524_v11 = vpop.f32.mrf.mxu3 }
 0x343   :  { %3500 = vmatmul.f32.vlgmr.msra.gmra.mxu2 %v6420_v37  ;;  %3576 = vmatpush.msrb.mxu0 %v5047_v17  ;;  %v5054_v37 = vld [vmem:[#allocation2 + $0x1848] sm:$0xff]  ;;  %v5055_v17 = vld [vmem:[#allocation2 + $0x13b0] sm:$0xff] }
 0x344   :  { %3599 = vmatpush.msrb.mxu1 %v5048_v8  ;;  %3622 = vmatpush.msrb.mxu2 %v5049_v35  ;;  %v5056_v8 = vld [vmem:[#allocation2 + $0x1530] sm:$0xff]  ;;  %v5458_v6 = vld [vmem:[#allocation2 + $0x1bc8] sm:$0xff] }
 0x345   :  { %3522 = vmatpush.msra.mxu3 %v5050_v31  ;;  %3577 = vmatpush.msrb.mxu0 %v5051_v61  ;;  %v5057_v35 = vld [vmem:[#allocation2 + $0x16b0] sm:$0xff]  ;;  %v5060_v61 = vld [vmem:[#allocation2 + $0x1518] sm:$0xff] }
 0x346   :  { %3523 = vmatmul.f32.vlgmr.msra.gmra.mxu3 %v6426_v56  ;;  %3600 = vmatpush.msrb.mxu1 %v5052_v39  ;;  %v5058_v31 = vld [vmem:[#allocation2 + $0x1830] sm:$0xff]  ;;  %v5059_v56 = vld [vmem:[#allocation2 + $0x1398] sm:$0xff] }
 0x347   :  { %3623 = vmatpush.msrb.mxu2 %v5053_v41  ;;  %3646 = vmatpush.msrb.mxu3 %v5054_v37  ;;  %v5061_v39 = vld [vmem:[#allocation2 + $0x1698] sm:$0xff]  ;;  %v6527_v41 = vpop.f32.mrf.mxu1 }
 0x348   :  { %3578 = vmatpush.msrb.mxu0 %v5055_v17  ;;  %3601 = vmatpush.msrb.mxu1 %v5056_v8  ;;  %7218 = vst [vmem:[#allocation141_spill] sm:$0xff] %v6527_v41  ;;  %v5062_v37 = vld [vmem:[#allocation2 + $0x1818] sm:$0xff]  ;;  %v5063_v17 = vld [vmem:[#allocation2 + $0x1380] sm:$0xff] }
 0x349   :  { %3624 = vmatpush.msrb.mxu2 %v5057_v35  ;;  %3647 = vmatpush.msrb.mxu3 %v5058_v31  ;;  %v5064_v8 = vld [vmem:[#allocation2 + $0x1500] sm:$0xff]  ;;  %v6530_v35 = vpop.f32.mrf.mxu2 }
 0x34a   :  { %3477 = vmatmul.f32.vlgmr.msra.gmra.mxu1 %v6399_v43  ;;  %3579 = vmatpush.msrb.mxu0 %v5059_v56  ;;  %v5065_v31 = vld [vmem:[#allocation2 + $0x1680] sm:$0xff]  ;;  %v5067_v56 = vld [vmem:[#allocation2 + $0x14f0] sm:$0xff] }
 0x34b   :  { %3602 = vmatpush.msrb.mxu1 %v5060_v61  ;;  %3625 = vmatpush.msrb.mxu2 %v5061_v39  ;;  %v5066_v43 = vld [vmem:[#allocation2 + $0x1800] sm:$0xff]  ;;  %v5068_v61 = vld [vmem:[#allocation2 + $0x1670] sm:$0xff] }
 0x34c   :  { %3648 = vmatpush.msrb.mxu3 %v5062_v37  ;;  %3503 = vmatmul.f32.gmra.mxu2 %v6453_v51  ;;  %v5069_v39 = vld [vmem:[#allocation2 + $0x17f0] sm:$0xff]  ;;  %v6534_v37 = vpop.f32.mrf.mxu0 }
 0x34d   :  { %3580 = vmatpush.msrb.mxu0 %v5063_v17  ;;  %3603 = vmatpush.msrb.mxu1 %v5064_v8  ;;  %v5070_v51 = vld [vmem:[#allocation2 + $0x1850] sm:$0xff]  ;;  %7219 = vst [vmem:[#allocation142_spill] sm:$0xff] %v6534_v37  ;;  %v6537_v17 = vpop.f32.mrf.mxu3  ;;  %v5071_v8 = vld [vmem:[#allocation2 + $0x14d8] sm:$0xff]  ;;  %v5116_v37 = vld [vmem:[#allocation2 + $0x13e8] sm:$0xff] }
 0x34e   :  { %3626 = vmatpush.msrb.mxu2 %v5065_v31  ;;  %3649 = vmatpush.msrb.mxu3 %v5066_v43  ;;  %7220 = vst [vmem:[#allocation143_spill] sm:$0xff] %v6537_v17  ;;  %v5072_v31 = vld [vmem:[#allocation2 + $0x1658] sm:$0xff] }
 0x34f   :  { %4491 = vmatmul.msk.f32.vlgmr.msra.gmra.mxu0 %vm398_vm0, %v6409_v58  ;;  %3703 = vmatpush.msra.mxu1 %v5069_v39  ;;  %v5073_v43 = vld [vmem:[#allocation2 + $0x17d8] sm:$0xff]  ;;  %v5077_v39 = vld [vmem:[#allocation2 + $0x17c0] sm:$0xff]  ;;  %v6539_v27 = vpop.f32.mrf.mxu1 }
 0x350   :  { %3657 = vmatpush.msra.mxu3 %v5067_v56  ;;  %3680 = vmatpush.msra.mxu0 %v5068_v61  ;;  %v5074_v58 = vld [vmem:[#allocation2 + $0x1838] sm:$0xff]  ;;  %v5075_v56 = vld [vmem:[#allocation2 + $0x14c0] sm:$0xff]  ;;  %7221 = vst [vmem:[#allocation144_spill] sm:$0xff] %v6539_v27 }
 0x351   :  { %3738 = vmatpush.msra.mxu2 %v5070_v51  ;;  %3526 = vmatmul.f32.gmra.mxu3 %v6458_v21  ;;  %v5076_v61 = vld [vmem:[#allocation2 + $0x1640] sm:$0xff]  ;;  %v5079_v21 = vld [vmem:[#allocation2 + $0x14a8] sm:$0xff] }
 0x352   :  { %3658 = vmatpush.msra.mxu3 %v5071_v8  ;;  %3681 = vmatpush.msra.mxu0 %v5072_v31  ;;  %v5078_v51 = vld [vmem:[#allocation2 + $0x1820] sm:$0xff]  ;;  %v5080_v8 = vld [vmem:[#allocation2 + $0x1628] sm:$0xff] }
 0x353   :  { %3704 = vmatpush.msra.mxu1 %v5073_v43  ;;  %3739 = vmatpush.msra.mxu2 %v5074_v58  ;;  %v5081_v31 = vld [vmem:[#allocation2 + $0x17a8] sm:$0xff]  ;;  %v6542_v43 = vpop.f32.mrf.mxu2 }
 0x354   :  { %3659 = vmatpush.msra.mxu3 %v5075_v56  ;;  %3682 = vmatpush.msra.mxu0 %v5076_v61  ;;  %7222 = vst [vmem:[#allocation145_spill] sm:$0xff] %v6542_v43  ;;  %v5082_v58 = vld [vmem:[#allocation2 + $0x1808] sm:$0xff]  ;;  %v5083_v56 = vld [vmem:[#allocation2 + $0x1490] sm:$0xff]  ;;  %v5140_v43 = vld [vmem:[#allocation2 + $0x1858] sm:$0xff] }
 0x355   :  { %3705 = vmatpush.msra.mxu1 %v5077_v39  ;;  %3740 = vmatpush.msra.mxu2 %v5078_v51  ;;  %v6547_v61 = vld [vmem:[%s7080_s2 + $0x10] sm:$0xff]  ;;  %v5086_v39 = vld [vmem:[#allocation2 + $0x14f8] sm:$0xff] }
 0x356   :  { %3480 = vmatmul.f32.gmra.mxu1 %v6431_v55  ;;  %3660 = vmatpush.msra.mxu3 %v5079_v21  ;;  %v5085_v55 = vld [vmem:[#allocation2 + $0x1610] sm:$0xff]  ;;  %v6550_v21 = vpop.f32.mrf.mxu3 }
 0x357   :  { %3683 = vmatpush.msra.mxu0 %v5080_v8  ;;  %3706 = vmatpush.msra.mxu1 %v5081_v31  ;;  %v5087_v51 = vld [vmem:[#allocation2 + $0x1790] sm:$0xff]  ;;  %7223 = vst [vmem:[#allocation146_spill] sm:$0xff] %v6550_v21  ;;  %v6552_v8 = vpop.f32.mrf.mxu0  ;;  %v5088_v31 = vld [vmem:[#allocation2 + $0x1478] sm:$0xff]  ;;  %v5095_v21 = vld [vmem:[#allocation2 + $0x1760] sm:$0xff]  ;;  %v6556_v27 = vpop.f32.mrf.mxu1 }
 0x358   :  { %3741 = vmatpush.msra.mxu2 %v5082_v58  ;;  %3661 = vmatpush.msra.mxu3 %v5083_v56  ;;  %7224 = vst [vmem:[#allocation147_spill] sm:$0xff] %v6552_v8  ;;  %v5089_v58 = vld [vmem:[#allocation2 + $0x14e0] sm:$0xff]  ;;  %v5090_v56 = vld [vmem:[#allocation2 + $0x15f8] sm:$0xff]  ;;  %v5096_v8 = vld [vmem:[#allocation2 + $0x1448] sm:$0xff] }
 0x359   :  { %3627 = vmatmul.f32.vlgmr.msrb.gmra.mxu2 %v6547_v61  ;;  %3684 = vmatpush.msra.mxu0 %v5085_v55  ;;  %v5092_v55 = vld [vmem:[#allocation2 + $0x1460] sm:$0xff]  ;;  %7225 = vst [vmem:[#allocation148_spill] sm:$0xff] %v6556_v27  ;;  %v5115_v27 = vld [vmem:[#allocation2 + $0x1450] sm:$0xff] }
 0x35a   :  { %3749 = vmatpush.msrb.mxu2 %v5086_v39  ;;  %3707 = vmatpush.msra.mxu1 %v5087_v51  ;;  %v5093_v39 = vld [vmem:[#allocation2 + $0x14c8] sm:$0xff]  ;;  %v5094_v51 = vld [vmem:[#allocation2 + $0x15e0] sm:$0xff] }
 0x35b   :  { %4492 = vmatmul.msk.f32.gmra.mxu0 %vm398_vm0, %v6442_v40  ;;  %3662 = vmatpush.msra.mxu3 %v5088_v31  ;;  %v6558_v40 = vpop.f32.mrf.mxu2  ;;  %v5097_v31 = vld [vmem:[#allocation2 + $0x14b0] sm:$0xff] }
 0x35c   :  { %3750 = vmatpush.msrb.mxu2 %v5089_v58  ;;  %3685 = vmatpush.msra.mxu0 %v5090_v56  ;;  %7226 = vst [vmem:[#allocation149_spill] sm:$0xff] %v6558_v40  ;;  %v5098_v58 = vld [vmem:[#allocation2 + $0x15c8] sm:$0xff]  ;;  %v5112_v40 = vld [vmem:[#allocation2 + $0x1400] sm:$0xff] }
 0x35d   :  { %3708 = vmatpush.msra.mxu1 %v5091_v22  ;;  %3663 = vmatpush.msra.mxu3 %v5092_v55  ;;  %v5099_v56 = vld [vmem:[#allocation2 + $0x1748] sm:$0xff]  ;;  %v6563_v22 = vld [vmem:[%s7080_s2 + $0x18] sm:$0xff]  ;;  %v5103_v55 = vld [vmem:[#allocation2 + $0x15b0] sm:$0xff] }
 0x35e   :  { %3751 = vmatpush.msrb.mxu2 %v5093_v39  ;;  %3686 = vmatpush.msra.mxu0 %v5094_v51  ;;  %v5104_v39 = vld [vmem:[#allocation2 + $0x1730] sm:$0xff]  ;;  %v5105_v51 = vld [vmem:[#allocation2 + $0x1480] sm:$0xff] }
 0x35f   :  { %3709 = vmatpush.msra.mxu1 %v5095_v21  ;;  %3664 = vmatpush.msra.mxu3 %v5096_v8  ;;  %v5101_v21 = vld [vmem:[#allocation2 + $0x1498] sm:$0xff]  ;;  %v5102_v8 = vld [vmem:[#allocation2 + $0x1430] sm:$0xff]  ;;  %v6583_v17 = vpop.f32.mrf.mxu1 }
 0x360   :  { %3752 = vmatpush.msrb.mxu2 %v5097_v31  ;;  %3687 = vmatpush.msra.mxu0 %v5098_v58  ;;  %v6570_v31 = vld [vmem:[%s7080_s2] sm:$0xff]  ;;  %v6573_v58 = vpop.f32.mrf.mxu3  ;;  %7229 = vst [vmem:[#allocation152_spill] sm:$0xff] %v6583_v17  ;;  %v5126_v17 = vld [vmem:[#allocation2 + $0x16b8] sm:$0xff] }
 0x361   :  { %3710 = vmatpush.msra.mxu1 %v5099_v56  ;;  %4493 = vmatmul.msk.f32.vlgmr.msrb.gmra.mxu3 %vm398_vm0, %v6563_v22  ;;  %7227 = vst [vmem:[#allocation150_spill] sm:$0xff] %v6573_v58  ;;  %v6575_v56 = vpop.f32.mrf.mxu0  ;;  %v5113_v58 = vld [vmem:[#allocation2 + $0x1580] sm:$0xff] }
 0x362   :  { %3753 = vmatpush.msrb.mxu2 %v5101_v21  ;;  %3665 = vmatpush.msra.mxu3 %v5102_v8  ;;  %7228 = vst [vmem:[#allocation151_spill] sm:$0xff] %v6575_v56  ;;  %v6580_v21 = vld [vmem:[%s7080_s2 + $0x8] sm:$0xff]  ;;  %v5108_v8 = vld [vmem:[#allocation2 + $0x1418] sm:$0xff]  ;;  %v5114_v56 = vld [vmem:[#allocation2 + $0x1700] sm:$0xff] }
 0x363   :  { %3688 = vmatpush.msra.mxu0 %v5103_v55  ;;  %3711 = vmatpush.msra.mxu1 %v5104_v39  ;;  %v5109_v55 = vld [vmem:[#allocation2 + $0x1598] sm:$0xff]  ;;  %v6585_v41 = vpop.f32.mrf.mxu2 }
 0x364   :  { %3754 = vmatpush.msrb.mxu2 %v5105_v51  ;;  %3581 = vmatmul.f32.vlgmr.msrb.gmra.mxu0 %v6570_v31  ;;  %v5110_v39 = vld [vmem:[#allocation2 + $0x1718] sm:$0xff]  ;;  %v5111_v51 = vld [vmem:[#allocation2 + $0x1468] sm:$0xff]  ;;  %7230 = vst [vmem:[#allocation153_spill] sm:$0xff] %v6585_v41 }
 0x365   :  { %3604 = vmatmul.f32.vlgmr.msrb.gmra.mxu1 %v6580_v21  ;;  %3666 = vmatpush.msra.mxu3 %v5108_v8  ;;  %v5117_v8 = vld [vmem:[#allocation2 + $0x1568] sm:$0xff] }
 0x366   :  { %3689 = vmatpush.msra.mxu0 %v5109_v55  ;;  %3712 = vmatpush.msra.mxu1 %v5110_v39  ;;  %v5118_v55 = vld [vmem:[#allocation2 + $0x16e8] sm:$0xff]  ;;  %v5119_v39 = vld [vmem:[#allocation2 + $0x1438] sm:$0xff] }
 0x367   :  { %3755 = vmatpush.msrb.mxu2 %v5111_v51  ;;  %3667 = vmatpush.msra.mxu3 %v5112_v40  ;;  %v5120_v51 = vld [vmem:[#allocation2 + $0x13d0] sm:$0xff] }
 0x368   :  { %3690 = vmatpush.msra.mxu0 %v5113_v58  ;;  %3713 = vmatpush.msra.mxu1 %v5114_v56  ;;  %v5121_v40 = vld [vmem:[#allocation2 + $0x1550] sm:$0xff]  ;;  %v5123_v56 = vld [vmem:[#allocation2 + $0x1420] sm:$0xff]  ;;  %v6587_v41 = vpop.f32.mrf.mxu3 }
 0x369   :  { %3756 = vmatpush.msrb.mxu2 %v5115_v27  ;;  %3668 = vmatpush.msra.mxu3 %v5116_v37  ;;  %v5122_v58 = vld [vmem:[#allocation2 + $0x16d0] sm:$0xff]  ;;  %v5124_v27 = vld [vmem:[#allocation2 + $0x13b8] sm:$0xff]  ;;  %7231 = vst [vmem:[#allocation154_spill] sm:$0xff] %v6587_v41 }
 0x36a   :  { %3691 = vmatpush.msra.mxu0 %v5117_v8  ;;  %3714 = vmatpush.msra.mxu1 %v5118_v55  ;;  %v5125_v37 = vld [vmem:[#allocation2 + $0x1538] sm:$0xff]  ;;  %v6589_v8 = vpop.f32.mrf.mxu0  ;;  %v5127_v55 = vld [vmem:[#allocation2 + $0x1408] sm:$0xff] }
 0x36b   :  { %3757 = vmatpush.msrb.mxu2 %v5119_v39  ;;  %3669 = vmatpush.msra.mxu3 %v5120_v51  ;;  %7232 = vst [vmem:[#allocation155_spill] sm:$0xff] %v6589_v8  ;;  %v5128_v39 = vld [vmem:[#allocation2 + $0x13a0] sm:$0xff]  ;;  %v5138_v41 = vld [vmem:[#allocation2 + $0x1678] sm:$0xff] }
 0x36c   :  { %3692 = vmatpush.msra.mxu0 %v5121_v40  ;;  %3715 = vmatpush.msra.mxu1 %v5122_v58  ;;  %v5129_v51 = vld [vmem:[#allocation2 + $0x1520] sm:$0xff]  ;;  %v6594_v58 = vld [vmem:[%s7080_s2 + $0x28] sm:$0x3]  ;;  %v5139_v8 = vld [vmem:[#allocation2 + $0x17f8] sm:$0xff] }
 0x36d   :  { %3758 = vmatpush.msrb.mxu2 %v5123_v56  ;;  %3670 = vmatpush.msra.mxu3 %v5124_v27  ;;  %v5130_v40 = vld [vmem:[#allocation2 + $0x16a0] sm:$0xff]  ;;  %v6603_v56 = vpop.f32.mrf.mxu1  ;;  %v5133_v27 = vld [vmem:[#allocation2 + $0x13f0] sm:$0xff] }
 0x36e   :  { %3693 = vmatpush.msra.mxu0 %v5125_v37  ;;  %3716 = vmatpush.msra.mxu1 %v5126_v17  ;;  %v6600_v17 = vld [vmem:[%s7080_s2 + $0x30] sm:$0x3]  ;;  %7233 = vst [vmem:[#allocation156_spill] sm:$0xff] %v6603_v56  ;;  %v5134_v37 = vld [vmem:[#allocation2 + $0x1388] sm:$0xff] }
 0x36f   :  { %3759 = vmatpush.msrb.mxu2 %v5127_v55  ;;  %3671 = vmatpush.msra.mxu3 %v5128_v39  ;;  %v6605_v55 = vpop.f32.mrf.mxu2  ;;  %v5135_v39 = vld [vmem:[#allocation2 + $0x1508] sm:$0xff] }
 0x370   :  { %3694 = vmatpush.msra.mxu0 %v5129_v51  ;;  %3717 = vmatpush.msra.mxu1 %v5130_v40  ;;  %7234 = vst [vmem:[#allocation157_spill] sm:$0xff] %v6605_v55  ;;  %v5136_v51 = vld [vmem:[#allocation2 + $0x1688] sm:$0xff]  ;;  %v5137_v40 = vld [vmem:[#allocation2 + $0x13d8] sm:$0xff] }
 0x371   :  { %3607 = vmatmul.f32.gmra.mxu1 %v6594_v58  ;;  %3630 = vmatmul.f32.gmra.mxu2 %v6600_v17  ;;  %v5147_v55 = vld [vmem:[#allocation2 + $0x1648] sm:$0xff] }
 0x372   :  { %3760 = vmatpush.msrb.mxu2 %v5133_v27  ;;  %3672 = vmatpush.msra.mxu3 %v5134_v37  ;;  %v6610_v27 = vld [vmem:[%s7080_s2 + $0x38] sm:$0x3]  ;;  %v5142_v37 = vld [vmem:[#allocation2 + $0x13c0] sm:$0xff]  ;;  %v5148_v56 = vld [vmem:[#allocation2 + $0x17c8] sm:$0xff] }
 0x373   :  { %3695 = vmatpush.msra.mxu0 %v5135_v39  ;;  %3718 = vmatpush.msra.mxu1 %v5136_v51  ;;  %v5143_v39 = vld [vmem:[#allocation2 + $0x1660] sm:$0xff] }
 0x374   :  { %3761 = vmatpush.msrb.mxu2 %v5137_v40  ;;  %3772 = vmatpush.msrb.mxu3 %v5138_v41  ;;  %v5144_v51 = vld [vmem:[#allocation2 + $0x17e0] sm:$0xff]  ;;  %v5146_v41 = vld [vmem:[#allocation2 + $0x13a8] sm:$0xff] }
 0x375   :  { %3795 = vmatpush.msrb.mxu0 %v5139_v8  ;;  %3830 = vmatpush.msrb.mxu1 %v5140_v43  ;;  %v5145_v40 = vld [vmem:[#allocation2 + $0x1840] sm:$0xff]  ;;  %v6614_v8 = vpop.f32.mrf.mxu3  ;;  %v6616_v43 = vpop.f32.mrf.mxu0 }
 0x376   :  { %4494 = vmatmul.msk.f32.gmra.mxu3 %vm398_vm0, %v6610_v27  ;;  %3762 = vmatpush.msrb.mxu2 %v5142_v37  ;;  %7235 = vst [vmem:[#allocation158_spill] sm:$0xff] %v6614_v8  ;;  %v5150_v37 = vld [vmem:[#allocation2 + $0x1390] sm:$0xff]  ;;  %v6628_v8 = vld [vmem:[%s7080_s2 + $0x20] sm:$0x3] }
 0x377   :  { %3773 = vmatpush.msrb.mxu3 %v5143_v39  ;;  %3796 = vmatpush.msrb.mxu0 %v5144_v51  ;;  %7236 = vst [vmem:[#allocation159_spill] sm:$0xff] %v6616_v43  ;;  %v6621_v39 = vpop.f32.mrf.mxu1  ;;  %v5151_v51 = vld [vmem:[#allocation2 + $0x1630] sm:$0xff]  ;;  %v5163_v43 = vld [vmem:[#allocation2 + $0xfd8] sm:$0xff] }
 0x378   :  { %3831 = vmatpush.msrb.mxu1 %v5145_v40  ;;  %3763 = vmatpush.msrb.mxu2 %v5146_v41  ;;  %7237 = vst [vmem:[#allocation160_spill] sm:$0xff] %v6621_v39  ;;  %v5152_v40 = vld [vmem:[#allocation2 + $0x17b0] sm:$0xff]  ;;  %v6623_v41 = vpop.f32.mrf.mxu2  ;;  %v5162_v39 = vld [vmem:[#allocation2 + $0x1600] sm:$0xff] }
 0x379   :  { %3774 = vmatpush.msrb.mxu3 %v5147_v55  ;;  %3797 = vmatpush.msrb.mxu0 %v5148_v56  ;;  %7238 = vst [vmem:[#allocation161_spill] sm:$0xff] %v6623_v41  ;;  %v5153_v55 = vld [vmem:[#allocation2 + $0x1810] sm:$0xff]  ;;  %v5154_v56 = vld [vmem:[#allocation2 + $0x1188] sm:$0xff] }
 0x37a   :  { %3832 = vmatpush.msrb.mxu1 %v5149_v33  ;;  %4495 = vmatmul.msk.f32.vlgmr.msra.gmra.mxu2 %vm398_vm0, %v6563_v22  ;;  %v5155_v33 = vld [vmem:[#allocation2 + $0x1008] sm:$0xff]  ;;  %v5160_v41 = vld [vmem:[#allocation2 + $0x1170] sm:$0xff] }
 0x37b   :  { %3719 = vmatmul.f32.vlgmr.msra.gmra.mxu1 %v6547_v61  ;;  %3764 = vmatpush.msrb.mxu2 %v5150_v37  ;;  %v5157_v37 = vld [vmem:[#allocation2 + $0x1618] sm:$0xff] }
 0x37c   :  { %3775 = vmatpush.msrb.mxu3 %v5151_v51  ;;  %3798 = vmatpush.msrb.mxu0 %v5152_v40  ;;  %v5158_v51 = vld [vmem:[#allocation2 + $0x1798] sm:$0xff]  ;;  %v5159_v40 = vld [vmem:[#allocation2 + $0xff0] sm:$0xff] }
 0x37d   :  { %3833 = vmatpush.msrb.mxu1 %v5153_v55  ;;  %3864 = vmatpush.msra.mxu2 %v5154_v56  ;;  %v5161_v56 = vld [vmem:[#allocation2 + $0x1780] sm:$0xff] }
 0x37e   :  { %3584 = vmatmul.f32.gmra.mxu0 %v6628_v8  ;;  %3776 = vmatpush.msrb.mxu3 %v5157_v37  ;;  %v5165_v37 = vld [vmem:[#allocation2 + $0x1768] sm:$0xff] }
 0x37f   :  { %3841 = vmatpush.msra.mxu1 %v5155_v33  ;;  %3799 = vmatpush.msrb.mxu0 %v5158_v51  ;;  %v5166_v51 = vld [vmem:[#allocation2 + $0x15e8] sm:$0xff] }
 0x380   :  { %3865 = vmatpush.msra.mxu2 %v5160_v41  ;;  %v3294_v55 = vpop.f32.mrf.mxu3  ;;  %3673 = vmatmul.f32.vlgmr.msra.gmra.mxu3 %v6570_v31 }
 0x381   :  { %3842 = vmatpush.msra.mxu1 %v5159_v40  ;;  %3800 = vmatpush.msrb.mxu0 %v5161_v56  ;;  %v3317_v33 = vpop.f32.mrf.mxu0  ;;  %v5167_v40 = vld [vmem:[#allocation2 + $0xfc0] sm:$0xff] }
 0x382   :  { %3777 = vmatpush.msrb.mxu3 %v5162_v39  ;;  %v3318_v14 = vadd.f32 %v3317_v33, %v3294_v55  ;;  %3866 = vmatpush.msra.mxu2 %v5164_v45  ;;  %v5170_v39 = vld [vmem:[#allocation2 + $0x1750] sm:$0xff]  ;;  %v5171_v45 = vld [vmem:[#allocation2 + $0xfa8] sm:$0xff] }
 0x383   :  { %3843 = vmatpush.msra.mxu1 %v5163_v43  ;;  %3801 = vmatpush.msrb.mxu0 %v5165_v37  ;;  %v5169_v43 = vld [vmem:[#allocation2 + $0x15d0] sm:$0xff]  ;;  %v5172_v33 = vld [vmem:[#allocation2 + $0x1128] sm:$0xff]  ;;  %v5173_v37 = vld [vmem:[#allocation2 + $0x15b8] sm:$0xff] }
 0x384   :  { %3778 = vmatpush.msrb.mxu3 %v5166_v51  ;;  %v3340_v41 = vpop.f32.mrf.mxu1  ;;  %v3363_v54 = vpop.f32.mrf.mxu2  ;;  %3867 = vmatpush.msra.mxu2 %v5168_v13  ;;  %v5174_v13 = vld [vmem:[#allocation2 + $0x1738] sm:$0xff]  ;;  %v5176_v51 = vld [vmem:[#allocation2 + $0x1110] sm:$0xff] }
 0x385   :  { %3844 = vmatpush.msra.mxu1 %v5167_v40  ;;  %v3341_v56 = vadd.f32 %v3340_v41, %v3318_v14  ;;  %4496 = vmatmul.msk.f32.gmra.mxu2 %vm398_vm0, %v6610_v27  ;;  %v5175_v14 = vld [vmem:[#allocation2 + $0xf90] sm:$0xff]  ;;  %v5177_v41 = vld [vmem:[#allocation2 + $0x15a0] sm:$0xff] }
 0x386   :  { %3722 = vmatmul.f32.gmra.mxu1 %v6600_v17  ;;  %3779 = vmatpush.msrb.mxu3 %v5169_v43  ;;  %v5178_v43 = vld [vmem:[#allocation2 + $0x1720] sm:$0xff] }
 0x387   :  { %3802 = vmatpush.msrb.mxu0 %v5170_v39  ;;  %3845 = vmatpush.msra.mxu1 %v5171_v45  ;;  %v6635_v55 = vadd.f32 %v3363_v54, %v3341_v56  ;;  %v5179_v39 = vld [vmem:[#allocation2 + $0xf78] sm:$0xff]  ;;  %v5181_v45 = vld [vmem:[#allocation2 + $0x1588] sm:$0xff] }
 0x388   :  { %3868 = vmatpush.msra.mxu2 %v5172_v33  ;;  %3696 = vmatmul.f32.vlgmr.msra.gmra.mxu0 %v6580_v21  ;;  %v5180_v54 = vld [vmem:[#allocation2 + $0x10f8] sm:$0xff]  ;;  %v5182_v33 = vld [vmem:[#allocation2 + $0x1708] sm:$0xff] }
 0x389   :  { %7239 = vst [vmem:[#allocation162_spill] sm:$0xff] %v6635_v55  ;;  %3780 = vmatpush.msrb.mxu3 %v5173_v37  ;;  %3803 = vmatpush.msrb.mxu0 %v5174_v13  ;;  %v5183_v13 = vld [vmem:[#allocation2 + $0xf60] sm:$0xff] }
 0x38a   :  { %3846 = vmatpush.msra.mxu1 %v5175_v14  ;;  %3869 = vmatpush.msra.mxu2 %v5176_v51  ;;  %v3297_v40 = vpop.f32.mrf.mxu3  ;;  %v5184_v14 = vld [vmem:[#allocation2 + $0x10e0] sm:$0xff] }
 0x38b   :  { %3781 = vmatpush.msrb.mxu3 %v5177_v41  ;;  %3804 = vmatpush.msrb.mxu0 %v5178_v43  ;;  %v5185_v41 = vld [vmem:[#allocation2 + $0x1570] sm:$0xff] }
 0x38c   :  { %3847 = vmatpush.msra.mxu1 %v5179_v39  ;;  %3870 = vmatpush.msra.mxu2 %v5180_v54  ;;  %v3320_v56 = vpop.f32.mrf.mxu0  ;;  %v5186_v39 = vld [vmem:[#allocation2 + $0x16f0] sm:$0xff]  ;;  %v5187_v54 = vld [vmem:[#allocation2 + $0xf48] sm:$0xff] }
 0x38d   :  { %3782 = vmatpush.msrb.mxu3 %v5181_v45  ;;  %3805 = vmatpush.msrb.mxu0 %v5182_v33  ;;  %v3321_v37 = vadd.f32 %v3320_v56, %v3297_v40  ;;  %v5188_v45 = vld [vmem:[#allocation2 + $0x10c8] sm:$0xff]  ;;  %v5189_v56 = vld [vmem:[#allocation2 + $0x1558] sm:$0xff] }
 0x38e   :  { %3848 = vmatpush.msra.mxu1 %v5183_v13  ;;  %3871 = vmatpush.msra.mxu2 %v5184_v14  ;;  %v3343_v51 = vpop.f32.mrf.mxu1  ;;  %v5190_v33 = vld [vmem:[#allocation2 + $0x16d8] sm:$0xff]  ;;  %v5192_v13 = vld [vmem:[#allocation2 + $0x10b0] sm:$0xff]  ;;  %v5194_v14 = vld [vmem:[#allocation2 + $0x16c0] sm:$0xff] }
 0x38f   :  { %3765 = vmatmul.f32.vlgmr.msrb.gmra.mxu2 %v6570_v31  ;;  %3783 = vmatpush.msrb.mxu3 %v5185_v41  ;;  %v3344_v43 = vadd.f32 %v3343_v51, %v3321_v37  ;;  %v3366_v55 = vpop.f32.mrf.mxu2  ;;  %v5191_v31 = vld [vmem:[#allocation2 + $0xf30] sm:$0xff]  ;;  %v5193_v37 = vld [vmem:[#allocation2 + $0x1540] sm:$0xff]  ;;  %v5195_v51 = vld [vmem:[#allocation2 + $0xf18] sm:$0xff] }
 0x390   :  { %3806 = vmatpush.msrb.mxu0 %v5186_v39  ;;  %4497 = vmatmul.msk.f32.vlgmr.msrb.gmra.mxu1 %vm398_vm0, %v6563_v22  ;;  %v5196_v22 = vld [vmem:[#allocation2 + $0x1098] sm:$0xff]  ;;  %v5197_v41 = vld [vmem:[#allocation2 + $0x1528] sm:$0xff]  ;;  %v5200_v39 = vld [vmem:[#allocation2 + $0x1080] sm:$0xff] }
 0x391   :  { %3849 = vmatpush.msra.mxu1 %v5187_v54  ;;  %3872 = vmatpush.msra.mxu2 %v5188_v45  ;;  %v6641_v40 = vadd.f32 %v3366_v55, %v3344_v43  ;;  %v5198_v55 = vld [vmem:[#allocation2 + $0x16a8] sm:$0xff]  ;;  %v5199_v43 = vld [vmem:[#allocation2 + $0xf00] sm:$0xff]  ;;  %v5201_v54 = vld [vmem:[#allocation2 + $0x1510] sm:$0xff] }
 0x392   :  { %3784 = vmatpush.msrb.mxu3 %v5189_v56  ;;  %3807 = vmatpush.msrb.mxu0 %v5190_v33  ;;  %v5202_v45 = vld [vmem:[#allocation2 + $0x1690] sm:$0xff]  ;;  %v5203_v56 = vld [vmem:[#allocation2 + $0xee8] sm:$0xff] }
 0x393   :  { %7240 = vst [vmem:[#allocation163_spill] sm:$0xff] %v6641_v40  ;;  %3850 = vmatpush.msra.mxu1 %v5191_v31  ;;  %3873 = vmatpush.msra.mxu2 %v5192_v13  ;;  %v5204_v33 = vld [vmem:[#allocation2 + $0x1068] sm:$0xff]  ;;  %v5299_v40 = vld [vmem:[#allocation2 + $0x1300] sm:$0xff] }
 0x394   :  { %3785 = vmatpush.msrb.mxu3 %v5193_v37  ;;  %3808 = vmatpush.msrb.mxu0 %v5194_v14  ;;  %v5205_v31 = vld [vmem:[#allocation2 + $0x1308] sm:$0xff]  ;;  %v5207_v37 = vld [vmem:[#allocation2 + $0xed0] sm:$0xff] }
 0x395   :  { %3851 = vmatpush.msra.mxu1 %v5195_v51  ;;  %3874 = vmatpush.msra.mxu2 %v5196_v22  ;;  %v5206_v13 = vld [vmem:[#allocation2 + $0x1368] sm:$0xff]  ;;  %v5208_v14 = vld [vmem:[#allocation2 + $0x1050] sm:$0xff] }
 0x396   :  { %3786 = vmatpush.msrb.mxu3 %v5197_v41  ;;  %3809 = vmatpush.msrb.mxu0 %v5198_v55  ;;  %v5209_v51 = vld [vmem:[#allocation2 + $0x12f0] sm:$0xff]  ;;  %v5211_v41 = vld [vmem:[#allocation2 + $0xeb8] sm:$0xff] }
 0x397   :  { %3699 = vmatmul.f32.gmra.mxu0 %v6594_v58  ;;  %3852 = vmatpush.msra.mxu1 %v5199_v43  ;;  %v5210_v22 = vld [vmem:[#allocation2 + $0x1350] sm:$0xff]  ;;  %v5214_v55 = vld [vmem:[#allocation2 + $0x1338] sm:$0xff]  ;;  %v5215_v43 = vld [vmem:[#allocation2 + $0xea0] sm:$0xff] }
 0x398   :  { %3875 = vmatpush.msra.mxu2 %v5200_v39  ;;  %3787 = vmatpush.msrb.mxu3 %v5201_v54  ;;  %v5216_v39 = vld [vmem:[#allocation2 + $0x1020] sm:$0xff] }
 0x399   :  { %3768 = vmatmul.f32.gmra.mxu2 %v6628_v8  ;;  %3810 = vmatpush.msrb.mxu0 %v5202_v45  ;;  %v5217_v54 = vld [vmem:[#allocation2 + $0x12c0] sm:$0xff] }
 0x39a   :  { %4498 = vmatmul.msk.f32.gmra.mxu1 %vm398_vm0, %v6610_v27  ;;  %3676 = vmatmul.f32.gmra.mxu3 %v6628_v8  ;;  %v5212_v27 = vld [vmem:[#allocation2 + $0x1038] sm:$0xff]  ;;  %v5218_v45 = vld [vmem:[#allocation2 + $0x1320] sm:$0xff] }
 0x39b   :  { %3853 = vmatpush.msra.mxu1 %v5203_v56  ;;  %3876 = vmatpush.msra.mxu2 %v5204_v33  ;;  %v5213_v8 = vld [vmem:[#allocation2 + $0x12d8] sm:$0xff]  ;;  %v6652_v56 = vld [vmem:[%s7079_s1] sm:$0xff]  ;;  %v6658_v33 = vld [vmem:[%s7079_s1 + $0x8] sm:$0xff] }
 0x39c   :  { %3887 = vmatpush.msra.mxu3 %v5205_v31  ;;  %3922 = vmatpush.msra.mxu0 %v5206_v13 }
 0x39d   :  { %3854 = vmatpush.msra.mxu1 %v5207_v37  ;;  %3877 = vmatpush.msra.mxu2 %v5208_v14  ;;  %v5222_v37 = vld [vmem:[#allocation2 + $0x1310] sm:$0xff] }
 0x39e   :  { %3888 = vmatpush.msra.mxu3 %v5209_v51  ;;  %3923 = vmatpush.msra.mxu0 %v5210_v22  ;;  %v5223_v51 = vld [vmem:[#allocation2 + $0x12a8] sm:$0xff]  ;;  %v5224_v22 = vld [vmem:[#allocation2 + $0xff8] sm:$0xff] }
 0x39f   :  { %3855 = vmatpush.msra.mxu1 %v5211_v41  ;;  %3878 = vmatpush.msra.mxu2 %v5212_v27  ;;  %v5225_v41 = vld [vmem:[#allocation2 + $0x1190] sm:$0xff]  ;;  %v5226_v27 = vld [vmem:[#allocation2 + $0x12f8] sm:$0xff] }
 0x3a0   :  { %3889 = vmatpush.msra.mxu3 %v5213_v8  ;;  %3924 = vmatpush.msra.mxu0 %v5214_v55 }
 0x3a1   :  { %3811 = vmatmul.f32.vlgmr.msrb.gmra.mxu0 %v6547_v61  ;;  %3856 = vmatpush.msra.mxu1 %v5215_v43  ;;  %v5221_v61 = vld [vmem:[#allocation2 + $0x1010] sm:$0xff] }
 0x3a2   :  { %3879 = vmatpush.msra.mxu2 %v5216_v39  ;;  %3890 = vmatpush.msra.mxu3 %v5217_v54  ;;  %v5227_v43 = vld [vmem:[#allocation2 + $0x1290] sm:$0xff]  ;;  %v5228_v39 = vld [vmem:[#allocation2 + $0xfe0] sm:$0xff] }
 0x3a3   :  { %3925 = vmatpush.msra.mxu0 %v5218_v45  ;;  %3857 = vmatmul.f32.vlgmr.msra.gmra.mxu1 %v6652_v56  ;;  %v5229_v45 = vld [vmem:[#allocation2 + $0x1178] sm:$0xff] }
 0x3a4   :  { %3880 = vmatmul.f32.vlgmr.msra.gmra.mxu2 %v6658_v33  ;;  %v3386_v31 = vpop.f32.mrf.mxu2  ;;  %v3409_v13 = vpop.f32.mrf.mxu3  ;;  %3788 = vmatmul.f32.vlgmr.msrb.gmra.mxu3 %v6580_v21  ;;  %v5231_v21 = vld [vmem:[#allocation2 + $0x1278] sm:$0xff] }
 0x3a5   :  { %3933 = vmatpush.msrb.mxu0 %v5221_v61  ;;  %3979 = vmatpush.msrb.mxu2 %v5222_v37  ;;  %v3410_v14 = vadd.f32 %v3409_v13, %v3386_v31  ;;  %v5230_v61 = vld [vmem:[#allocation2 + $0x12e0] sm:$0xff]  ;;  %v5232_v31 = vld [vmem:[#allocation2 + $0xfc8] sm:$0xff] }
 0x3a6   :  { %3891 = vmatpush.msra.mxu3 %v5223_v51  ;;  %3956 = vmatpush.msrb.mxu1 %v5225_v41  ;;  %v5233_v37 = vld [vmem:[#allocation2 + $0x1160] sm:$0xff]  ;;  %v5234_v51 = vld [vmem:[#allocation2 + $0x12c8] sm:$0xff] }
 0x3a7   :  { %3934 = vmatpush.msrb.mxu0 %v5224_v22  ;;  %3980 = vmatpush.msrb.mxu2 %v5226_v27  ;;  %v3432_v8 = vpop.f32.mrf.mxu0  ;;  %v3455_v55 = vpop.f32.mrf.mxu1  ;;  %v5235_v22 = vld [vmem:[#allocation2 + $0x1260] sm:$0xff]  ;;  %v6674_v41 = vld [vmem:[%s7079_s1 + $0x28] sm:$0x3]  ;;  %v5238_v27 = vld [vmem:[#allocation2 + $0xfb0] sm:$0xff] }
 0x3a8   :  { %3892 = vmatpush.msra.mxu3 %v5227_v43  ;;  %v3433_v54 = vadd.f32 %v3432_v8, %v3410_v14  ;;  %3957 = vmatpush.msrb.mxu1 %v5229_v45  ;;  %v6668_v14 = vld [vmem:[%s7079_s1 + $0x20] sm:$0x3]  ;;  %v5239_v8 = vld [vmem:[#allocation2 + $0x1148] sm:$0xff] }
 0x3a9   :  { %3935 = vmatpush.msrb.mxu0 %v5228_v39  ;;  %3981 = vmatpush.msrb.mxu2 %v5230_v61  ;;  %v5242_v39 = vld [vmem:[#allocation2 + $0xf98] sm:$0xff] }
 0x3aa   :  { %3893 = vmatpush.msra.mxu3 %v5231_v21  ;;  %v6662_v13 = vadd.f32 %v3455_v55, %v3433_v54  ;;  %3958 = vmatpush.msrb.mxu1 %v5233_v37  ;;  %v5241_v55 = vld [vmem:[#allocation2 + $0x1248] sm:$0xff]  ;;  %v5243_v54 = vld [vmem:[#allocation2 + $0x1130] sm:$0xff]  ;;  %v5244_v61 = vld [vmem:[#allocation2 + $0x1298] sm:$0xff] }
 0x3ab   :  { %3936 = vmatpush.msrb.mxu0 %v5232_v31  ;;  %3982 = vmatpush.msrb.mxu2 %v5234_v51  ;;  %v5245_v21 = vld [vmem:[#allocation2 + $0x1230] sm:$0xff]  ;;  %v5246_v37 = vld [vmem:[#allocation2 + $0xf80] sm:$0xff]  ;;  %v5247_v51 = vld [vmem:[#allocation2 + $0x1118] sm:$0xff] }
 0x3ac   :  { %7241 = vst [vmem:[#allocation164_spill] sm:$0xff] %v6662_v13  ;;  %3814 = vmatmul.f32.gmra.mxu0 %v6600_v17  ;;  %3894 = vmatpush.msra.mxu3 %v5235_v22  ;;  %v5240_v17 = vld [vmem:[#allocation2 + $0x12b0] sm:$0xff]  ;;  %v5298_v13 = vld [vmem:[#allocation2 + $0x1180] sm:$0xff] }
 0x3ad   :  { %3860 = vmatmul.f32.gmra.mxu1 %v6668_v14  ;;  %3883 = vmatmul.f32.gmra.mxu2 %v6674_v41 }
 0x3ae   :  { %3937 = vmatpush.msrb.mxu0 %v5238_v27  ;;  %3959 = vmatpush.msrb.mxu1 %v5239_v8  ;;  %v5248_v27 = vld [vmem:[#allocation2 + $0x1280] sm:$0xff]  ;;  %v5249_v8 = vld [vmem:[#allocation2 + $0x1218] sm:$0xff] }
 0x3af   :  { %3983 = vmatpush.msrb.mxu2 %v5240_v17  ;;  %3895 = vmatpush.msra.mxu3 %v5241_v55  ;;  %v3412_v43 = vpop.f32.mrf.mxu3  ;;  %v5250_v55 = vld [vmem:[#allocation2 + $0xf68] sm:$0xff] }
 0x3b0   :  { %3938 = vmatpush.msrb.mxu0 %v5242_v39  ;;  %3960 = vmatpush.msrb.mxu1 %v5243_v54  ;;  %v3389_v45 = vpop.f32.mrf.mxu2  ;;  %v5251_v39 = vld [vmem:[#allocation2 + $0x1100] sm:$0xff]  ;;  %v5252_v54 = vld [vmem:[#allocation2 + $0x1268] sm:$0xff] }
 0x3b1   :  { %3984 = vmatpush.msrb.mxu2 %v5244_v61  ;;  %3896 = vmatpush.msra.mxu3 %v5245_v21  ;;  %v3413_v31 = vadd.f32 %v3412_v43, %v3389_v45  ;;  %v5253_v61 = vld [vmem:[#allocation2 + $0x1200] sm:$0xff]  ;;  %v6680_v43 = vld [vmem:[%s7079_s1 + $0x18] sm:$0xff] }
 0x3b2   :  { %3939 = vmatpush.msrb.mxu0 %v5246_v37  ;;  %3961 = vmatpush.msrb.mxu1 %v5247_v51  ;;  %v3435_v22 = vpop.f32.mrf.mxu0  ;;  %v5256_v37 = vld [vmem:[#allocation2 + $0x10e8] sm:$0xff]  ;;  %v5257_v51 = vld [vmem:[#allocation2 + $0x1250] sm:$0xff] }
 0x3b3   :  { %3985 = vmatpush.msrb.mxu2 %v5248_v27  ;;  %3897 = vmatpush.msra.mxu3 %v5249_v8  ;;  %v3436_v17 = vadd.f32 %v3435_v22, %v3413_v31  ;;  %v5255_v31 = vld [vmem:[#allocation2 + $0xf50] sm:$0xff]  ;;  %v5258_v22 = vld [vmem:[#allocation2 + $0x11e8] sm:$0xff]  ;;  %v5259_v27 = vld [vmem:[#allocation2 + $0xf38] sm:$0xff] }
 0x3b4   :  { %3940 = vmatpush.msrb.mxu0 %v5250_v55  ;;  %3962 = vmatpush.msrb.mxu1 %v5251_v39  ;;  %v5260_v8 = vld [vmem:[#allocation2 + $0x10d0] sm:$0xff]  ;;  %v5261_v55 = vld [vmem:[#allocation2 + $0x1238] sm:$0xff] }
 0x3b5   :  { %3986 = vmatpush.msrb.mxu2 %v5252_v54  ;;  %3898 = vmatpush.msra.mxu3 %v5253_v61  ;;  %v3458_v21 = vpop.f32.mrf.mxu1  ;;  %v5262_v39 = vld [vmem:[#allocation2 + $0x11d0] sm:$0xff]  ;;  %v5263_v54 = vld [vmem:[#allocation2 + $0xf20] sm:$0xff]  ;;  %v5266_v61 = vld [vmem:[#allocation2 + $0x11b8] sm:$0xff] }
 0x3b6   :  { %4499 = vmatmul.msk.f32.vlgmr.msra.gmra.mxu0 %vm398_vm0, %v6680_v43  ;;  %3791 = vmatmul.f32.gmra.mxu3 %v6594_v58  ;;  %v6685_v45 = vadd.f32 %v3458_v21, %v3436_v17  ;;  %v5264_v58 = vld [vmem:[#allocation2 + $0x10b8] sm:$0xff]  ;;  %v5265_v17 = vld [vmem:[#allocation2 + $0x1220] sm:$0xff]  ;;  %v5267_v21 = vld [vmem:[#allocation2 + $0xf08] sm:$0xff] }
 0x3b7   :  { %3941 = vmatpush.msrb.mxu0 %v5255_v31  ;;  %3963 = vmatpush.msrb.mxu1 %v5256_v37  ;;  %v5268_v31 = vld [vmem:[#allocation2 + $0x10a0] sm:$0xff]  ;;  %v5269_v37 = vld [vmem:[#allocation2 + $0x1208] sm:$0xff] }
 0x3b8   :  { %7242 = vst [vmem:[#allocation165_spill] sm:$0xff] %v6685_v45  ;;  %3987 = vmatpush.msrb.mxu2 %v5257_v51  ;;  %3899 = vmatpush.msra.mxu3 %v5258_v22  ;;  %v5270_v51 = vld [vmem:[#allocation2 + $0x11a0] sm:$0xff]  ;;  %v6690_v22 = vld [vmem:[%s7079_s1 + $0x38] sm:$0x3] }
 0x3b9   :  { %3942 = vmatpush.msrb.mxu0 %v5259_v27  ;;  %3964 = vmatpush.msrb.mxu1 %v5260_v8  ;;  %v6697_v27 = vld [vmem:[%s7079_s1 + $0x10] sm:$0xff] }
 0x3ba   :  { %3988 = vmatpush.msrb.mxu2 %v5261_v55  ;;  %3900 = vmatpush.msra.mxu3 %v5262_v39  ;;  %v5273_v8 = vld [vmem:[#allocation2 + $0xef0] sm:$0xff]  ;;  %v5274_v55 = vld [vmem:[#allocation2 + $0x1088] sm:$0xff] }
 0x3bb   :  { %3943 = vmatpush.msrb.mxu0 %v5263_v54  ;;  %3965 = vmatpush.msrb.mxu1 %v5264_v58  ;;  %v5275_v39 = vld [vmem:[#allocation2 + $0x11f0] sm:$0xff]  ;;  %v5277_v58 = vld [vmem:[#allocation2 + $0xed8] sm:$0xff] }
 0x3bc   :  { %3989 = vmatpush.msrb.mxu2 %v5265_v17  ;;  %3901 = vmatpush.msra.mxu3 %v5266_v61  ;;  %v5276_v54 = vld [vmem:[#allocation2 + $0x1370] sm:$0xff]  ;;  %v5279_v61 = vld [vmem:[#allocation2 + $0x11d8] sm:$0xff] }
 0x3bd   :  { %3944 = vmatpush.msrb.mxu0 %v5267_v21  ;;  %3966 = vmatpush.msrb.mxu1 %v5268_v31  ;;  %v5278_v17 = vld [vmem:[#allocation2 + $0x1070] sm:$0xff]  ;;  %v5280_v21 = vld [vmem:[#allocation2 + $0x1358] sm:$0xff]  ;;  %v5281_v31 = vld [vmem:[#allocation2 + $0xec0] sm:$0xff] }
 0x3be   :  { %3990 = vmatpush.msrb.mxu2 %v5269_v37  ;;  %3902 = vmatpush.msra.mxu3 %v5270_v51  ;;  %v5282_v37 = vld [vmem:[#allocation2 + $0x1058] sm:$0xff]  ;;  %v5283_v51 = vld [vmem:[#allocation2 + $0x11c0] sm:$0xff] }
 0x3bf   :  { %4500 = vmatmul.msk.f32.gmra.mxu0 %vm398_vm0, %v6690_v22  ;;  %3903 = vmatmul.f32.vlgmr.msra.gmra.mxu3 %v6697_v27 }
 0x3c0   :  { %3945 = vmatpush.msrb.mxu0 %v5273_v8  ;;  %3967 = vmatpush.msrb.mxu1 %v5274_v55  ;;  %v5284_v8 = vld [vmem:[#allocation2 + $0x1340] sm:$0xff]  ;;  %v5285_v55 = vld [vmem:[#allocation2 + $0xea8] sm:$0xff] }
 0x3c1   :  { %3991 = vmatpush.msrb.mxu2 %v5275_v39  ;;  %4014 = vmatpush.msrb.mxu3 %v5276_v54  ;;  %v5286_v39 = vld [vmem:[#allocation2 + $0x1040] sm:$0xff] }
 0x3c2   :  { %3946 = vmatpush.msrb.mxu0 %v5277_v58  ;;  %3968 = vmatpush.msrb.mxu1 %v5278_v17  ;;  %v5287_v58 = vld [vmem:[#allocation2 + $0x11a8] sm:$0xff] }
 0x3c3   :  { %3992 = vmatpush.msrb.mxu2 %v5279_v61  ;;  %4015 = vmatpush.msrb.mxu3 %v5280_v21  ;;  %v5288_v17 = vld [vmem:[#allocation2 + $0x1328] sm:$0xff] }
 0x3c4   :  { %3947 = vmatpush.msrb.mxu0 %v5281_v31  ;;  %3969 = vmatpush.msrb.mxu1 %v5282_v37  ;;  %v5289_v31 = vld [vmem:[#allocation2 + $0x1018] sm:$0xff]  ;;  %v5290_v37 = vld [vmem:[#allocation2 + $0x1028] sm:$0xff] }
 0x3c5   :  { %3993 = vmatpush.msrb.mxu2 %v5283_v51  ;;  %4016 = vmatpush.msrb.mxu3 %v5284_v8  ;;  %v6705_v8 = vld [vmem:[%s7079_s1 + $0x30] sm:$0x3] }
 0x3c6   :  { %3948 = vmatpush.msrb.mxu0 %v5285_v55  ;;  %3970 = vmatpush.msrb.mxu1 %v5286_v39  ;;  %v3501_v54 = vpop.f32.mrf.mxu2  ;;  %v5292_v39 = vld [vmem:[#allocation2 + $0x1000] sm:$0xff] }
 0x3c7   :  { %3994 = vmatpush.msrb.mxu2 %v5287_v58  ;;  %4017 = vmatpush.msrb.mxu3 %v5288_v17  ;;  %v3478_v61 = vpop.f32.mrf.mxu1  ;;  %v5293_v58 = vld [vmem:[#allocation2 + $0x1378] sm:$0xff] }
 0x3c8   :  { %3949 = vmatmul.f32.vlgmr.msrb.gmra.mxu0 %v6652_v56  ;;  %3995 = vmatmul.f32.vlgmr.msrb.gmra.mxu2 %v6697_v27  ;;  %v3502_v21 = vadd.f32 %v3501_v54, %v3478_v61  ;;  %v5294_v54 = vld [vmem:[#allocation2 + $0x1198] sm:$0xff] }
 0x3c9   :  { %4025 = vmatpush.msra.mxu3 %v5289_v31  ;;  %3971 = vmatpush.msrb.mxu1 %v5290_v37  ;;  %v3524_v51 = vpop.f32.mrf.mxu3  ;;  %v5295_v17 = vld [vmem:[#allocation2 + $0x1318] sm:$0xff]  ;;  %v5296_v31 = vld [vmem:[#allocation2 + $0xfe8] sm:$0xff]  ;;  %v5297_v37 = vld [vmem:[#allocation2 + $0x1360] sm:$0xff] }
 0x3ca   :  { %3906 = vmatmul.f32.gmra.mxu3 %v6705_v8  ;;  %3972 = vmatmul.f32.vlgmr.msrb.gmra.mxu1 %v6658_v33  ;;  %v3525_v55 = vadd.f32 %v3524_v51, %v3502_v21  ;;  %v5300_v21 = vld [vmem:[#allocation2 + $0xfd0] sm:$0xff]  ;;  %v5301_v51 = vld [vmem:[#allocation2 + $0x1348] sm:$0xff] }
 0x3cb   :  { %4026 = vmatpush.msra.mxu3 %v5292_v39  ;;  %4106 = vmatpush.msra.mxu2 %v5293_v58  ;;  %v5302_v39 = vld [vmem:[#allocation2 + $0xfb8] sm:$0xff]  ;;  %v5303_v58 = vld [vmem:[#allocation2 + $0x1168] sm:$0xff] }
 0x3cc   :  { %4048 = vmatpush.msra.mxu0 %v5294_v54  ;;  %4071 = vmatpush.msra.mxu1 %v5295_v17  ;;  %v3547_v61 = vpop.f32.mrf.mxu0  ;;  %v5306_v17 = vld [vmem:[#allocation2 + $0x1150] sm:$0xff] }
 0x3cd   :  { %4027 = vmatpush.msra.mxu3 %v5296_v31  ;;  %4107 = vmatpush.msra.mxu2 %v5297_v37  ;;  %v6709_v45 = vadd.f32 %v3547_v61, %v3525_v55  ;;  %v5307_v61 = vld [vmem:[#allocation2 + $0x12e8] sm:$0xff] }
 0x3ce   :  { %4049 = vmatpush.msra.mxu0 %v5298_v13  ;;  %4072 = vmatpush.msra.mxu1 %v5299_v40  ;;  %v5304_v13 = vld [vmem:[#allocation2 + $0xfa0] sm:$0xff]  ;;  %v5305_v40 = vld [vmem:[#allocation2 + $0x1330] sm:$0xff] }
 0x3cf   :  { %7243 = vst [vmem:[#allocation166_spill] sm:$0xff] %v6709_v45  ;;  %4028 = vmatpush.msra.mxu3 %v5300_v21  ;;  %4108 = vmatpush.msra.mxu2 %v5301_v51  ;;  %v3504_v54 = vpop.f32.mrf.mxu2  ;;  %v5308_v21 = vld [vmem:[#allocation2 + $0xf88] sm:$0xff] }
 0x3d0   :  { %3952 = vmatmul.f32.gmra.mxu0 %v6668_v14  ;;  %3998 = vmatmul.f32.gmra.mxu2 %v6705_v8  ;;  %v5309_v51 = vld [vmem:[#allocation2 + $0x19c8] sm:$0xff] }
 0x3d1   :  { %4029 = vmatpush.msra.mxu3 %v5302_v39  ;;  %4050 = vmatpush.msra.mxu0 %v5303_v58  ;;  %v5310_v39 = vld [vmem:[#allocation2 + $0x1138] sm:$0xff]  ;;  %v5311_v58 = vld [vmem:[#allocation2 + $0x12d0] sm:$0xff] }
 0x3d2   :  { %4501 = vmatmul.msk.f32.vlgmr.msrb.gmra.mxu3 %vm398_vm0, %v6680_v43  ;;  %3975 = vmatmul.f32.gmra.mxu1 %v6674_v41 }
 0x3d3   :  { %4030 = vmatpush.msra.mxu3 %v5304_v13  ;;  %4109 = vmatpush.msra.mxu2 %v5305_v40  ;;  %v3481_v55 = vpop.f32.mrf.mxu1  ;;  %v5313_v13 = vld [vmem:[#allocation2 + $0x19b0] sm:$0xff]  ;;  %v5314_v40 = vld [vmem:[#allocation2 + $0x1120] sm:$0xff] }
 0x3d4   :  { %4051 = vmatpush.msra.mxu0 %v5306_v17  ;;  %4073 = vmatpush.msra.mxu1 %v5307_v61  ;;  %v3505_v31 = vadd.f32 %v3504_v54, %v3481_v55  ;;  %v3527_v37 = vpop.f32.mrf.mxu3  ;;  %v5315_v17 = vld [vmem:[#allocation2 + $0x12b8] sm:$0xff] }
 0x3d5   :  { %4031 = vmatpush.msra.mxu3 %v5308_v21  ;;  %4117 = vmatpush.msrb.mxu2 %v5309_v51  ;;  %v5316_v54 = vld [vmem:[#allocation2 + $0xf58] sm:$0xff]  ;;  %v5318_v51 = vld [vmem:[#allocation2 + $0x1108] sm:$0xff] }
 0x3d6   :  { %4052 = vmatpush.msra.mxu0 %v5310_v39  ;;  %4074 = vmatpush.msra.mxu1 %v5311_v58  ;;  %v3528_v45 = vadd.f32 %v3527_v37, %v3505_v31  ;;  %v5317_v55 = vld [vmem:[#allocation2 + $0x1998] sm:$0xff]  ;;  %v5319_v31 = vld [vmem:[#allocation2 + $0xf40] sm:$0xff]  ;;  %v5322_v39 = vld [vmem:[#allocation2 + $0x10f0] sm:$0xff] }
 0x3d7   :  { %4032 = vmatpush.msra.mxu3 %v5312_v5  ;;  %4118 = vmatpush.msrb.mxu2 %v5313_v13  ;;  %v5320_v5 = vld [vmem:[#allocation2 + $0x12a0] sm:$0xff]  ;;  %v5323_v58 = vld [vmem:[#allocation2 + $0xf28] sm:$0xff] }
 0x3d8   :  { %4053 = vmatpush.msra.mxu0 %v5314_v40  ;;  %4075 = vmatpush.msra.mxu1 %v5315_v17  ;;  %v3550_v61 = vpop.f32.mrf.mxu0  ;;  %v5321_v37 = vld [vmem:[#allocation2 + $0x1980] sm:$0xff]  ;;  %v5324_v13 = vld [vmem:[#allocation2 + $0x1288] sm:$0xff]  ;;  %v5327_v17 = vld [vmem:[#allocation2 + $0xf10] sm:$0xff] }
 0x3d9   :  { %4033 = vmatpush.msra.mxu3 %v5316_v54  ;;  %4119 = vmatpush.msrb.mxu2 %v5317_v55  ;;  %v6716_v21 = vadd.f32 %v3550_v61, %v3528_v45  ;;  %v5325_v40 = vld [vmem:[#allocation2 + $0x1968] sm:$0xff]  ;;  %v5326_v45 = vld [vmem:[#allocation2 + $0x10d8] sm:$0xff]  ;;  %v5328_v61 = vld [vmem:[#allocation2 + $0x1270] sm:$0xff] }
 0x3da   :  { %4502 = vmatmul.msk.f32.gmra.mxu3 %vm398_vm0, %v6690_v22  ;;  %4054 = vmatpush.msra.mxu0 %v5318_v51  ;;  %v5329_v54 = vld [vmem:[#allocation2 + $0x1950] sm:$0xff]  ;;  %v5330_v55 = vld [vmem:[#allocation2 + $0x10c0] sm:$0xff]  ;;  %v5331_v51 = vld [vmem:[#allocation2 + $0xef8] sm:$0xff] }
 0x3db   :  { %7244 = vst [vmem:[#allocation167_spill] sm:$0xff] %v6716_v21  ;;  %4034 = vmatpush.msra.mxu3 %v5319_v31  ;;  %4076 = vmatpush.msra.mxu1 %v5320_v5  ;;  %v5332_v31 = vld [vmem:[#allocation2 + $0x1258] sm:$0xff] }
 0x3dc   :  { %4120 = vmatpush.msrb.mxu2 %v5321_v37  ;;  %4055 = vmatpush.msra.mxu0 %v5322_v39  ;;  %v5333_v37 = vld [vmem:[#allocation2 + $0x1938] sm:$0xff]  ;;  %v5334_v39 = vld [vmem:[#allocation2 + $0x10a8] sm:$0xff] }
 0x3dd   :  { %4035 = vmatpush.msra.mxu3 %v5323_v58  ;;  %4077 = vmatpush.msra.mxu1 %v5324_v13  ;;  %v3628_v13 = vpop.f32.mrf.mxu2 }
 0x3de   :  { %4121 = vmatpush.msrb.mxu2 %v5325_v40  ;;  %4056 = vmatpush.msra.mxu0 %v5326_v45  ;;  %v5335_v40 = vld [vmem:[#allocation2 + $0xee0] sm:$0xff] }
 0x3df   :  { %4036 = vmatpush.msra.mxu3 %v5327_v17  ;;  %4078 = vmatpush.msra.mxu1 %v5328_v61  ;;  %v5336_v45 = vld [vmem:[#allocation2 + $0x1240] sm:$0xff] }
 0x3e0   :  { %4122 = vmatpush.msrb.mxu2 %v5329_v54  ;;  %4057 = vmatpush.msra.mxu0 %v5330_v55  ;;  %v5337_v61 = vld [vmem:[#allocation2 + $0x1920] sm:$0xff]  ;;  %v5338_v54 = vld [vmem:[#allocation2 + $0x1090] sm:$0xff] }
 0x3e1   :  { %4037 = vmatpush.msra.mxu3 %v5331_v51  ;;  %4079 = vmatpush.msra.mxu1 %v5332_v31  ;;  %v3582_v5 = vpop.f32.mrf.mxu0  ;;  %v5339_v51 = vld [vmem:[#allocation2 + $0xec8] sm:$0xff] }
 0x3e2   :  { %4123 = vmatpush.msrb.mxu2 %v5333_v37  ;;  %4058 = vmatpush.msra.mxu0 %v5334_v39  ;;  %v3605_v58 = vpop.f32.mrf.mxu1  ;;  %v5340_v31 = vld [vmem:[#allocation2 + $0x1228] sm:$0xff]  ;;  %v5342_v39 = vld [vmem:[#allocation2 + $0x1078] sm:$0xff] }
 0x3e3   :  { %4038 = vmatpush.msra.mxu3 %v5335_v40  ;;  %4080 = vmatpush.msra.mxu1 %v5336_v45  ;;  %v3606_v17 = vadd.f32 %v3605_v58, %v3582_v5  ;;  %v5341_v37 = vld [vmem:[#allocation2 + $0x1908] sm:$0xff]  ;;  %v5344_v40 = vld [vmem:[#allocation2 + $0x1210] sm:$0xff] }
 0x3e4   :  { %4124 = vmatpush.msrb.mxu2 %v5337_v61  ;;  %4059 = vmatpush.msra.mxu0 %v5338_v54  ;;  %v3651_v55 = vpop.f32.mrf.mxu3  ;;  %v5345_v5 = vld [vmem:[#allocation2 + $0x18f0] sm:$0xff]  ;;  %v5346_v58 = vld [vmem:[#allocation2 + $0x1b48] sm:$0xff]  ;;  %v5347_v61 = vld [vmem:[#allocation2 + $0x1060] sm:$0xff] }
 0x3e5   :  { %4039 = vmatpush.msra.mxu3 %v5339_v51  ;;  %4081 = vmatpush.msra.mxu1 %v5340_v31  ;;  %v3629_v21 = vadd.f32 %v3628_v13, %v3606_v17  ;;  %v5348_v54 = vld [vmem:[#allocation2 + $0x11f8] sm:$0xff]  ;;  %v5350_v17 = vld [vmem:[#allocation2 + $0x1b30] sm:$0xff]  ;;  %v5351_v51 = vld [vmem:[#allocation2 + $0x1048] sm:$0xff] }
 0x3e6   :  { %4125 = vmatpush.msrb.mxu2 %v5341_v37  ;;  %4060 = vmatpush.msra.mxu0 %v5342_v39  ;;  %v5349_v13 = vld [vmem:[#allocation2 + $0x18d8] sm:$0xff]  ;;  %v5356_v31 = vld [vmem:[#allocation2 + $0x11c8] sm:$0xff]  ;;  %v5357_v37 = vld [vmem:[#allocation2 + $0x1b00] sm:$0xff] }
 0x3e7   :  { %4040 = vmatpush.msra.mxu3 %v5343_v53  ;;  %4082 = vmatpush.msra.mxu1 %v5344_v40  ;;  %v6720_v45 = vadd.f32 %v3651_v55, %v3629_v21  ;;  %v5352_v53 = vld [vmem:[#allocation2 + $0x11e0] sm:$0xff]  ;;  %v5354_v55 = vld [vmem:[#allocation2 + $0x1b18] sm:$0xff]  ;;  %v5358_v39 = vld [vmem:[#allocation2 + $0x18a8] sm:$0xff] }
 0x3e8   :  { %4041 = vmatmul.f32.vlgmr.msra.gmra.mxu3 %v6652_v56  ;;  %4126 = vmatpush.msrb.mxu2 %v5345_v5  ;;  %v5353_v21 = vld [vmem:[#allocation2 + $0x18c0] sm:$0xff]  ;;  %v5355_v56 = vld [vmem:[#allocation2 + $0x1030] sm:$0xff]  ;;  %v5359_v40 = vld [vmem:[#allocation2 + $0x1ae8] sm:$0xff] }
 0x3e9   :  { %7245 = vst [vmem:[#allocation168_spill] sm:$0xff] %v6720_v45  ;;  %4140 = vmatpush.msrb.mxu3 %v5346_v58  ;;  %4061 = vmatpush.msra.mxu0 %v5347_v61  ;;  %v5360_v5 = vld [vmem:[#allocation2 + $0x1cc8] sm:$0xff]  ;;  %v5361_v58 = vld [vmem:[#allocation2 + $0x11b0] sm:$0xff] }
 0x3ea   :  { %4083 = vmatpush.msra.mxu1 %v5348_v54  ;;  %4127 = vmatpush.msrb.mxu2 %v5349_v13  ;;  %v5362_v61 = vld [vmem:[#allocation2 + $0x1890] sm:$0xff]  ;;  %v5365_v13 = vld [vmem:[#allocation2 + $0x1878] sm:$0xff] }
 0x3eb   :  { %4141 = vmatpush.msrb.mxu3 %v5350_v17  ;;  %4062 = vmatpush.msra.mxu0 %v5351_v51  ;;  %v5364_v54 = vld [vmem:[#allocation2 + $0x1cb0] sm:$0xff]  ;;  %v5366_v17 = vld [vmem:[#allocation2 + $0x1d28] sm:$0xff]  ;;  %v5369_v51 = vld [vmem:[#allocation2 + $0x1860] sm:$0xff] }
 0x3ec   :  { %4084 = vmatpush.msra.mxu1 %v5352_v53  ;;  %4128 = vmatpush.msrb.mxu2 %v5353_v21  ;;  %v5370_v53 = vld [vmem:[#allocation2 + $0x1d10] sm:$0xff]  ;;  %v5372_v21 = vld [vmem:[#allocation2 + $0x1c80] sm:$0xff] }
 0x3ed   :  { %4142 = vmatpush.msrb.mxu3 %v5354_v55  ;;  %4503 = vmatmul.msk.f32.vlgmr.msra.gmra.mxu2 %vm398_vm0, %v6680_v43  ;;  %v5363_v43 = vld [vmem:[#allocation2 + $0x1ad0] sm:$0xff] }
 0x3ee   :  { %4063 = vmatpush.msra.mxu0 %v5355_v56  ;;  %4085 = vmatpush.msra.mxu1 %v5356_v31  ;;  %v5373_v55 = vld [vmem:[#allocation2 + $0x1b50] sm:$0xff]  ;;  %v5374_v56 = vld [vmem:[#allocation2 + $0x1cf8] sm:$0xff]  ;;  %v5375_v31 = vld [vmem:[#allocation2 + $0x1a88] sm:$0xff] }
 0x3ef   :  { %4143 = vmatpush.msrb.mxu3 %v5357_v37  ;;  %4129 = vmatpush.msrb.mxu2 %v5358_v39  ;;  %v5376_v39 = vld [vmem:[#allocation2 + $0x1c68] sm:$0xff]  ;;  %v5457_v45 = vld [vmem:[#allocation2 + $0x1c90] sm:$0xff] }
 0x3f0   :  { %4044 = vmatmul.f32.gmra.mxu3 %v6668_v14  ;;  %4064 = vmatmul.f32.vlgmr.msra.gmra.mxu0 %v6658_v33  ;;  %v5367_v14 = vld [vmem:[#allocation2 + $0x1ab8] sm:$0xff] }
 0x3f1   :  { %4144 = vmatpush.msrb.mxu3 %v5359_v40  ;;  %4163 = vmatpush.msrb.mxu0 %v5360_v5  ;;  %v5368_v33 = vld [vmem:[#allocation2 + $0x1c98] sm:$0xff]  ;;  %v3608_v5 = vpop.f32.mrf.mxu1 }
 0x3f2   :  { %4086 = vmatpush.msra.mxu1 %v5361_v58  ;;  %4130 = vmatpush.msrb.mxu2 %v5362_v61  ;;  %v5377_v40 = vld [vmem:[#allocation2 + $0x1b38] sm:$0xff]  ;;  %v5379_v61 = vld [vmem:[#allocation2 + $0x1a70] sm:$0xff] }
 0x3f3   :  { %4087 = vmatmul.f32.vlgmr.msra.gmra.mxu1 %v6697_v27  ;;  %4145 = vmatpush.msrb.mxu3 %v5363_v43  ;;  %v5371_v27 = vld [vmem:[#allocation2 + $0x1aa0] sm:$0xff] }
 0x3f4   :  { %4164 = vmatpush.msrb.mxu0 %v5364_v54  ;;  %4131 = vmatpush.msrb.mxu2 %v5365_v13  ;;  %v5380_v54 = vld [vmem:[#allocation2 + $0x1c50] sm:$0xff]  ;;  %v3631_v13 = vpop.f32.mrf.mxu2 }
 0x3f5   :  { %4198 = vmatpush.msrb.mxu1 %v5366_v17  ;;  %4146 = vmatpush.msrb.mxu3 %v5367_v14  ;;  %v5382_v17 = vld [vmem:[#allocation2 + $0x1b20] sm:$0xff] }
 0x3f6   :  { %4165 = vmatpush.msrb.mxu0 %v5368_v33  ;;  %4132 = vmatpush.msrb.mxu2 %v5369_v51  ;;  %v5383_v33 = vld [vmem:[#allocation2 + $0x1a58] sm:$0xff] }
 0x3f7   :  { %4199 = vmatpush.msrb.mxu1 %v5370_v53  ;;  %4504 = vmatmul.msk.f32.gmra.mxu2 %vm398_vm0, %v6690_v22  ;;  %v5378_v22 = vld [vmem:[#allocation2 + $0x1ce0] sm:$0xff]  ;;  %v5384_v51 = vld [vmem:[#allocation2 + $0x1c38] sm:$0xff] }
 0x3f8   :  { %4147 = vmatpush.msrb.mxu3 %v5371_v27  ;;  %4166 = vmatpush.msrb.mxu0 %v5372_v21  ;;  %v5385_v53 = vld [vmem:[#allocation2 + $0x19b8] sm:$0xff]  ;;  %v5386_v27 = vld [vmem:[#allocation2 + $0x1b08] sm:$0xff] }
 0x3f9   :  { %4232 = vmatpush.msra.mxu2 %v5373_v55  ;;  %4200 = vmatpush.msrb.mxu1 %v5374_v56  ;;  %v3654_v37 = vpop.f32.mrf.mxu3  ;;  %v5387_v55 = vld [vmem:[#allocation2 + $0x1a40] sm:$0xff] }
 0x3fa   :  { %4067 = vmatmul.f32.gmra.mxu0 %v6674_v41  ;;  %4148 = vmatpush.msrb.mxu3 %v5375_v31  ;;  %v5381_v41 = vld [vmem:[#allocation2 + $0x19d0] sm:$0xff]  ;;  %v5389_v56 = vld [vmem:[#allocation2 + $0x19a0] sm:$0xff] }
 0x3fb   :  { %4167 = vmatpush.msrb.mxu0 %v5376_v39  ;;  %4233 = vmatpush.msra.mxu2 %v5377_v40  ;;  %v3585_v58 = vpop.f32.mrf.mxu0  ;;  %v5390_v31 = vld [vmem:[#allocation2 + $0x1af0] sm:$0xff]  ;;  %v5391_v39 = vld [vmem:[#allocation2 + $0x1a28] sm:$0xff] }
 0x3fc   :  { %4201 = vmatpush.msrb.mxu1 %v5378_v22  ;;  %4149 = vmatpush.msrb.mxu3 %v5379_v61  ;;  %v3609_v43 = vadd.f32 %v3608_v5, %v3585_v58  ;;  %v5392_v40 = vld [vmem:[#allocation2 + $0x1c08] sm:$0xff]  ;;  %v5394_v58 = vld [vmem:[#allocation2 + $0x1ad8] sm:$0xff]  ;;  %v5395_v61 = vld [vmem:[#allocation2 + $0x1a10] sm:$0xff] }
 0x3fd   :  { %4090 = vmatmul.f32.gmra.mxu1 %v6705_v8  ;;  %4168 = vmatpush.msrb.mxu0 %v5380_v54  ;;  %v5388_v8 = vld [vmem:[#allocation2 + $0x1c20] sm:$0xff]  ;;  %v5393_v5 = vld [vmem:[#allocation2 + $0x1988] sm:$0xff]  ;;  %v5397_v54 = vld [vmem:[#allocation2 + $0x1970] sm:$0xff] }
 0x3fe   :  { %4209 = vmatpush.msra.mxu1 %v5381_v41  ;;  %4234 = vmatpush.msra.mxu2 %v5382_v17  ;;  %v3632_v14 = vadd.f32 %v3631_v13, %v3609_v43  ;;  %v5398_v13 = vld [vmem:[#allocation2 + $0x1ac0] sm:$0xff]  ;;  %v5399_v17 = vld [vmem:[#allocation2 + $0x19f8] sm:$0xff] }
 0x3ff   :  { %4150 = vmatpush.msrb.mxu3 %v5383_v33  ;;  %4169 = vmatpush.msrb.mxu0 %v5384_v51  ;;  %v3720_v33 = vpop.f32.mrf.mxu1  ;;  %v5401_v51 = vld [vmem:[#allocation2 + $0x1958] sm:$0xff] }
 0x400   :  { %4210 = vmatpush.msra.mxu1 %v5385_v53  ;;  %4235 = vmatpush.msra.mxu2 %v5386_v27  ;;  %v6732_v21 = vadd.f32 %v3654_v37, %v3632_v14  ;;  %v5396_v37 = vld [vmem:[#allocation2 + $0x1bf0] sm:$0xff]  ;;  %v5400_v14 = vld [vmem:[#allocation2 + $0x1bd8] sm:$0xff]  ;;  %v5402_v53 = vld [vmem:[#allocation2 + $0x1aa8] sm:$0xff] }
 0x401   :  { %4151 = vmatpush.msrb.mxu3 %v5387_v55  ;;  %4170 = vmatpush.msrb.mxu0 %v5388_v8  ;;  %v5403_v55 = vld [vmem:[#allocation2 + $0x19e0] sm:$0xff] }
 0x402   :  { %7246 = vst [vmem:[#allocation169_spill] sm:$0xff] %v6732_v21  ;;  %4211 = vmatpush.msra.mxu1 %v5389_v56  ;;  %4236 = vmatpush.msra.mxu2 %v5390_v31  ;;  %v5404_v8 = vld [vmem:[#allocation2 + $0x1bc0] sm:$0xff]  ;;  %v3743_v56 = vpop.f32.mrf.mxu2  ;;  %v5451_v21 = vld [vmem:[#allocation2 + $0x19d8] sm:$0xff] }
 0x403   :  { %4152 = vmatpush.msrb.mxu3 %v5391_v39  ;;  %4171 = vmatpush.msrb.mxu0 %v5392_v40  ;;  %v3674_v22 = vpop.f32.mrf.mxu3  ;;  %v5405_v31 = vld [vmem:[#allocation2 + $0x1940] sm:$0xff]  ;;  %v5406_v39 = vld [vmem:[#allocation2 + $0x1a90] sm:$0xff] }
 0x404   :  { %4212 = vmatpush.msra.mxu1 %v5393_v5  ;;  %4237 = vmatpush.msra.mxu2 %v5394_v58  ;;  %v6739_v5 = vld [vmem:[%s7081_s3] sm:$0xff]  ;;  %v6745_v58 = vld [vmem:[%s7081_s3 + $0x8] sm:$0xff] }
 0x405   :  { %4153 = vmatpush.msrb.mxu3 %v5395_v61  ;;  %4172 = vmatpush.msrb.mxu0 %v5396_v37  ;;  %v3697_v43 = vpop.f32.mrf.mxu0  ;;  %v5410_v61 = vld [vmem:[#allocation2 + $0x1ba8] sm:$0xff] }
 0x406   :  { %4213 = vmatpush.msra.mxu1 %v5397_v54  ;;  %4238 = vmatpush.msra.mxu2 %v5398_v13  ;;  %v3698_v41 = vadd.f32 %v3697_v43, %v3674_v22  ;;  %v5409_v22 = vld [vmem:[#allocation2 + $0x1cd0] sm:$0xff]  ;;  %v5411_v37 = vld [vmem:[#allocation2 + $0x1928] sm:$0xff]  ;;  %v5412_v43 = vld [vmem:[#allocation2 + $0x1a78] sm:$0xff] }
 0x407   :  { %4154 = vmatpush.msrb.mxu3 %v5399_v17  ;;  %4173 = vmatpush.msrb.mxu0 %v5400_v14  ;;  %v5413_v54 = vld [vmem:[#allocation2 + $0x1cb8] sm:$0xff]  ;;  %v5414_v13 = vld [vmem:[#allocation2 + $0x1b90] sm:$0xff]  ;;  %v5416_v17 = vld [vmem:[#allocation2 + $0x1a60] sm:$0xff] }
 0x408   :  { %4214 = vmatpush.msra.mxu1 %v5401_v51  ;;  %4239 = vmatpush.msra.mxu2 %v5402_v53  ;;  %v3721_v27 = vadd.f32 %v3720_v33, %v3698_v41  ;;  %v5415_v41 = vld [vmem:[#allocation2 + $0x1910] sm:$0xff]  ;;  %v5417_v14 = vld [vmem:[#allocation2 + $0x1ca0] sm:$0xff]  ;;  %v5418_v33 = vld [vmem:[#allocation2 + $0x1b78] sm:$0xff] }
 0x409   :  { %4155 = vmatpush.msrb.mxu3 %v5403_v55  ;;  %4174 = vmatpush.msrb.mxu0 %v5404_v8  ;;  %v5419_v51 = vld [vmem:[#allocation2 + $0x18f8] sm:$0xff]  ;;  %v5420_v53 = vld [vmem:[#allocation2 + $0x1a48] sm:$0xff]  ;;  %v5422_v55 = vld [vmem:[#allocation2 + $0x1b60] sm:$0xff] }
 0x40a   :  { %4215 = vmatpush.msra.mxu1 %v5405_v31  ;;  %4240 = vmatpush.msra.mxu2 %v5406_v39  ;;  %v6734_v40 = vadd.f32 %v3743_v56, %v3721_v27  ;;  %v5421_v27 = vld [vmem:[#allocation2 + $0x1c88] sm:$0xff]  ;;  %v5423_v8 = vld [vmem:[#allocation2 + $0x18e0] sm:$0xff]  ;;  %v5424_v56 = vld [vmem:[#allocation2 + $0x1a30] sm:$0xff] }
 0x40b   :  { %4133 = vmatmul.f32.vlgmr.msrb.gmra.mxu2 %v6739_v5  ;;  %4156 = vmatmul.f32.vlgmr.msrb.gmra.mxu3 %v6745_v58  ;;  %v6751_v31 = vld [vmem:[%s7081_s3 + $0x20] sm:$0x3]  ;;  %v6757_v39 = vld [vmem:[%s7081_s3 + $0x28] sm:$0x3] }
 0x40c   :  { %4255 = vmatpush.msra.mxu3 %v5409_v22  ;;  %4175 = vmatpush.msrb.mxu0 %v5410_v61  ;;  %v6763_v22 = vld [vmem:[%s7081_s3 + $0x10] sm:$0xff] }
 0x40d   :  { %4216 = vmatpush.msra.mxu1 %v5411_v37  ;;  %4241 = vmatpush.msra.mxu2 %v5412_v43  ;;  %v5428_v61 = vld [vmem:[#allocation2 + $0x1c70] sm:$0xff]  ;;  %v5429_v43 = vld [vmem:[#allocation2 + $0x18c8] sm:$0xff] }
 0x40e   :  { %4256 = vmatpush.msra.mxu3 %v5413_v54  ;;  %4176 = vmatpush.msrb.mxu0 %v5414_v13  ;;  %v5430_v54 = vld [vmem:[#allocation2 + $0x1a18] sm:$0xff]  ;;  %v3723_v13 = vpop.f32.mrf.mxu1 }
 0x40f   :  { %4217 = vmatpush.msra.mxu1 %v5415_v41  ;;  %4242 = vmatpush.msra.mxu2 %v5416_v17  ;;  %v6769_v41 = vld [vmem:[%s7081_s3 + $0x18] sm:$0xff] }
 0x410   :  { %4257 = vmatpush.msra.mxu3 %v5417_v14  ;;  %4177 = vmatpush.msrb.mxu0 %v5418_v33  ;;  %v5432_v17 = vld [vmem:[#allocation2 + $0x1c58] sm:$0xff]  ;;  %v5433_v14 = vld [vmem:[#allocation2 + $0x18b0] sm:$0xff]  ;;  %v5434_v33 = vld [vmem:[#allocation2 + $0x1a00] sm:$0xff] }
 0x411   :  { %4218 = vmatpush.msra.mxu1 %v5419_v51  ;;  %4243 = vmatpush.msra.mxu2 %v5420_v53  ;;  %v5435_v51 = vld [vmem:[#allocation2 + $0x1d30] sm:$0xff]  ;;  %v5436_v53 = vld [vmem:[#allocation2 + $0x1c40] sm:$0xff] }
 0x412   :  { %4258 = vmatpush.msra.mxu3 %v5421_v27  ;;  %4178 = vmatpush.msrb.mxu0 %v5422_v55  ;;  %v5437_v27 = vld [vmem:[#allocation2 + $0x1898] sm:$0xff]  ;;  %v5438_v55 = vld [vmem:[#allocation2 + $0x19e8] sm:$0xff] }
 0x413   :  { %4219 = vmatpush.msra.mxu1 %v5423_v8  ;;  %4244 = vmatpush.msra.mxu2 %v5424_v56  ;;  %v5439_v8 = vld [vmem:[#allocation2 + $0x1d18] sm:$0xff]  ;;  %v3746_v56 = vpop.f32.mrf.mxu2 }
 0x414   :  { %4136 = vmatmul.f32.gmra.mxu2 %v6751_v31  ;;  %4159 = vmatmul.f32.gmra.mxu3 %v6757_v39  ;;  %v3700_v37 = vpop.f32.mrf.mxu0 }
 0x415   :  { %4179 = vmatmul.f32.vlgmr.msrb.gmra.mxu0 %v6763_v22  ;;  %4259 = vmatpush.msra.mxu3 %v5428_v61  ;;  %v5440_v61 = vld [vmem:[#allocation2 + $0x1c28] sm:$0xff] }
 0x416   :  { %4220 = vmatpush.msra.mxu1 %v5429_v43  ;;  %4245 = vmatpush.msra.mxu2 %v5430_v54  ;;  %v5441_v43 = vld [vmem:[#allocation2 + $0x1cd8] sm:$0xff]  ;;  %v5442_v54 = vld [vmem:[#allocation2 + $0x1880] sm:$0xff] }
 0x417   :  { %4505 = vmatmul.msk.f32.vlgmr.msrb.gmra.mxu1 %vm398_vm0, %v6769_v41  ;;  %4260 = vmatpush.msra.mxu3 %v5432_v17  ;;  %v5443_v17 = vld [vmem:[#allocation2 + $0x1d00] sm:$0xff] }
 0x418   :  { %4221 = vmatpush.msra.mxu1 %v5433_v14  ;;  %4246 = vmatpush.msra.mxu2 %v5434_v33  ;;  %v5444_v14 = vld [vmem:[#allocation2 + $0x1c10] sm:$0xff] }
 0x419   :  { %4290 = vmatpush.msra.mxu0 %v5435_v51  ;;  %4261 = vmatpush.msra.mxu3 %v5436_v53  ;;  %v6776_v51 = vld [vmem:[%s7081_s3 + $0x30] sm:$0x3]  ;;  %v5446_v53 = vld [vmem:[#allocation2 + $0x1cc0] sm:$0xff] }
 0x41a   :  { %4222 = vmatpush.msra.mxu1 %v5437_v27  ;;  %4247 = vmatpush.msra.mxu2 %v5438_v55  ;;  %v5447_v55 = vld [vmem:[#allocation2 + $0x1868] sm:$0xff] }
 0x41b   :  { %4291 = vmatpush.msra.mxu0 %v5439_v8  ;;  %4262 = vmatpush.msra.mxu3 %v5440_v61  ;;  %v5448_v8 = vld [vmem:[#allocation2 + $0x1ce8] sm:$0xff] }
 0x41c   :  { %4347 = vmatpush.msrb.mxu2 %v5441_v43  ;;  %4223 = vmatpush.msra.mxu1 %v5442_v54  ;;  %v6782_v43 = vld [vmem:[%s7081_s3 + $0x38] sm:$0x3] }
 0x41d   :  { %4292 = vmatpush.msra.mxu0 %v5443_v17  ;;  %4263 = vmatpush.msra.mxu3 %v5444_v14  ;;  %v3677_v33 = vpop.f32.mrf.mxu3  ;;  %v5450_v54 = vld [vmem:[#allocation2 + $0x1bf8] sm:$0xff]  ;;  %v3835_v14 = vpop.f32.mrf.mxu1 }
 0x41e   :  { %4182 = vmatmul.f32.gmra.mxu0 %v6776_v51  ;;  %4348 = vmatpush.msrb.mxu2 %v5446_v53  ;;  %v3701_v27 = vadd.f32 %v3700_v37, %v3677_v33  ;;  %v3812_v61 = vpop.f32.mrf.mxu0  ;;  %v5452_v37 = vld [vmem:[#allocation2 + $0x1b58] sm:$0xff]  ;;  %v5453_v33 = vld [vmem:[#allocation2 + $0x1ca8] sm:$0xff]  ;;  %v5454_v53 = vld [vmem:[#allocation2 + $0x1be0] sm:$0xff] }
 0x41f   :  { %4224 = vmatpush.msra.mxu1 %v5447_v55  ;;  %4293 = vmatpush.msra.mxu0 %v5448_v8  ;;  %v5455_v8 = vld [vmem:[#allocation2 + $0x19c0] sm:$0xff] }
 0x420   :  { %4506 = vmatmul.msk.f32.gmra.mxu1 %vm398_vm0, %v6782_v43  ;;  %4264 = vmatpush.msra.mxu3 %v5450_v54  ;;  %v3724_v17 = vadd.f32 %v3723_v13, %v3701_v27  ;;  %v3766_v13 = vpop.f32.mrf.mxu2  ;;  %v5459_v27 = vld [vmem:[#allocation2 + $0x19a8] sm:$0xff]  ;;  %v5461_v54 = vld [vmem:[#allocation2 + $0x1c78] sm:$0xff] }
 0x421   :  { %4301 = vmatpush.msrb.mxu0 %v5451_v21  ;;  %4324 = vmatpush.msrb.mxu1 %v5452_v37  ;;  %v5460_v21 = vld [vmem:[#allocation2 + $0x1b28] sm:$0xff]  ;;  %v5462_v37 = vld [vmem:[#allocation2 + $0x1bb0] sm:$0xff] }
 0x422   :  { %4349 = vmatpush.msrb.mxu2 %v5453_v33  ;;  %4265 = vmatpush.msra.mxu3 %v5454_v53  ;;  %v6786_v55 = vadd.f32 %v3746_v56, %v3724_v17  ;;  %v5463_v33 = vld [vmem:[#allocation2 + $0x1990] sm:$0xff]  ;;  %v5465_v17 = vld [vmem:[#allocation2 + $0x1c60] sm:$0xff]  ;;  %v5467_v53 = vld [vmem:[#allocation2 + $0x1978] sm:$0xff] }
 0x423   :  { %4302 = vmatpush.msrb.mxu0 %v5455_v8  ;;  %4325 = vmatpush.msrb.mxu1 %v5456_v4  ;;  %v5464_v56 = vld [vmem:[#allocation2 + $0x1b10] sm:$0xff]  ;;  %v5466_v4 = vld [vmem:[#allocation2 + $0x1b98] sm:$0xff] }
 0x424   :  { %4350 = vmatpush.msrb.mxu2 %v5457_v45  ;;  %4266 = vmatpush.msra.mxu3 %v5458_v6  ;;  %v5468_v6 = vld [vmem:[#allocation2 + $0x1af8] sm:$0xff] }
 0x425   :  { %4303 = vmatpush.msrb.mxu0 %v5459_v27  ;;  %4326 = vmatpush.msrb.mxu1 %v5460_v21  ;;  %v5469_v21 = vld [vmem:[#allocation2 + $0x1c48] sm:$0xff] }
 0x426   :  { %4351 = vmatpush.msrb.mxu2 %v5461_v54  ;;  %4267 = vmatpush.msra.mxu3 %v5462_v37  ;;  %v5470_v54 = vld [vmem:[#allocation2 + $0x1b80] sm:$0xff]  ;;  %v6790_v37 = vpop.f32.mrf.mxu1 }
 0x427   :  { %4304 = vmatpush.msrb.mxu0 %v5463_v33  ;;  %4327 = vmatpush.msrb.mxu1 %v5464_v56  ;;  %v3789_v45 = vpop.f32.mrf.mxu3  ;;  %v5471_v33 = vld [vmem:[#allocation2 + $0x1960] sm:$0xff] }
 0x428   :  { %4352 = vmatpush.msrb.mxu2 %v5465_v17  ;;  %4268 = vmatpush.msra.mxu3 %v5466_v4  ;;  %v3790_v8 = vadd.f32 %v3789_v45, %v3766_v13  ;;  %v5472_v17 = vld [vmem:[#allocation2 + $0x1ae0] sm:$0xff]  ;;  %v5473_v4 = vld [vmem:[#allocation2 + $0x1c30] sm:$0xff]  ;;  %v5475_v13 = vld [vmem:[#allocation2 + $0x1948] sm:$0xff] }
 0x429   :  { %4305 = vmatpush.msrb.mxu0 %v5467_v53  ;;  %4328 = vmatpush.msrb.mxu1 %v5468_v6  ;;  %v6788_v27 = vpop.f32.mrf.mxu0  ;;  %v5474_v53 = vld [vmem:[#allocation2 + $0x1b68] sm:$0xff] }
 0x42a   :  { %4353 = vmatpush.msrb.mxu2 %v5469_v21  ;;  %4269 = vmatpush.msra.mxu3 %v5470_v54  ;;  %v3813_v56 = vadd.f32 %v3812_v61, %v3790_v8  ;;  %v5476_v6 = vld [vmem:[#allocation2 + $0x1ac8] sm:$0xff]  ;;  %v5477_v21 = vld [vmem:[#allocation2 + $0x1c18] sm:$0xff]  ;;  %v3769_v54 = vpop.f32.mrf.mxu2  ;;  %v5480_v8 = vld [vmem:[#allocation2 + $0x1ab0] sm:$0xff] }
 0x42b   :  { %4248 = vmatmul.f32.vlgmr.msra.gmra.mxu2 %v6745_v58  ;;  %4306 = vmatpush.msrb.mxu0 %v5471_v33  ;;  %v5479_v61 = vld [vmem:[#allocation2 + $0x1d38] sm:$0xff]  ;;  %v5481_v33 = vld [vmem:[#allocation2 + $0x1c00] sm:$0xff] }
 0x42c   :  { %4329 = vmatpush.msrb.mxu1 %v5472_v17  ;;  %4354 = vmatpush.msrb.mxu2 %v5473_v4  ;;  %v6793_v45 = vadd.f32 %v3835_v14, %v3813_v56  ;;  %v5482_v14 = vld [vmem:[#allocation2 + $0x1a98] sm:$0xff]  ;;  %v5484_v17 = vld [vmem:[#allocation2 + $0x1be8] sm:$0xff] }
 0x42d   :  { %4270 = vmatpush.msra.mxu3 %v5474_v53  ;;  %4307 = vmatpush.msrb.mxu0 %v5475_v13  ;;  %v5483_v56 = vld [vmem:[#allocation2 + $0x1918] sm:$0xff]  ;;  %v5486_v13 = vld [vmem:[#allocation2 + $0x1900] sm:$0xff] }
 0x42e   :  { %4330 = vmatpush.msrb.mxu1 %v5476_v6  ;;  %4355 = vmatpush.msrb.mxu2 %v5477_v21  ;;  %v6802_v53 = vpop.f32.mrf.mxu1  ;;  %v5487_v6 = vld [vmem:[#allocation2 + $0x1a80] sm:$0xff]  ;;  %v5488_v21 = vld [vmem:[#allocation2 + $0x1bd0] sm:$0xff] }
 0x42f   :  { %4271 = vmatmul.f32.vlgmr.msra.gmra.mxu3 %v6763_v22  ;;  %4308 = vmatpush.msrb.mxu0 %v5478_v16  ;;  %v5485_v16 = vld [vmem:[#allocation2 + $0x1d20] sm:$0xff] }
 0x430   :  { %4382 = vmatpush.msrb.mxu3 %v5479_v61  ;;  %4331 = vmatpush.msrb.mxu1 %v5480_v8  ;;  %v5489_v61 = vld [vmem:[#allocation2 + $0x1d08] sm:$0xff] }
 0x431   :  { %4356 = vmatpush.msrb.mxu2 %v5481_v33  ;;  %4225 = vmatmul.f32.vlgmr.msra.gmra.mxu1 %v6739_v5  ;;  %v5490_v8 = vld [vmem:[#allocation2 + $0x18e8] sm:$0xff] }
 0x432   :  { %4507 = vmatmul.msk.f32.vlgmr.msra.gmra.mxu0 %vm398_vm0, %v6769_v41  ;;  %4332 = vmatpush.msrb.mxu1 %v5482_v14  ;;  %v5491_v33 = vld [vmem:[#allocation2 + $0x1a68] sm:$0xff]  ;;  %v5492_v14 = vld [vmem:[#allocation2 + $0x1bb8] sm:$0xff] }
 0x433   :  { %4309 = vmatpush.msrb.mxu0 %v5483_v56  ;;  %4357 = vmatpush.msrb.mxu2 %v5484_v17  ;;  %v6799_v4 = vpop.f32.mrf.mxu0  ;;  %v6805_v56 = vpop.f32.mrf.mxu2  ;;  %v5493_v17 = vld [vmem:[#allocation2 + $0x18d0] sm:$0xff] }
 0x434   :  { %7247 = vst [vmem:[#allocation170_spill] sm:$0xff] %v6799_v4  ;;  %4251 = vmatmul.f32.gmra.mxu2 %v6757_v39  ;;  %4383 = vmatpush.msrb.mxu3 %v5485_v16  ;;  %v5494_v16 = vld [vmem:[#allocation2 + $0x1a50] sm:$0xff]  ;;  %v5500_v4 = vld [vmem:[#allocation2 + $0x1a20] sm:$0xff] }
 0x435   :  { %4310 = vmatpush.msrb.mxu0 %v5486_v13  ;;  %4333 = vmatpush.msrb.mxu1 %v5487_v6  ;;  %7248 = vst [vmem:[#allocation171_spill] sm:$0xff] %v6805_v56  ;;  %v5495_v6 = vld [vmem:[#allocation2 + $0x1ba0] sm:$0xff] }
 0x436   :  { %4358 = vmatpush.msrb.mxu2 %v5488_v21  ;;  %4384 = vmatpush.msrb.mxu3 %v5489_v61  ;;  %v5496_v61 = vld [vmem:[#allocation2 + $0x1a38] sm:$0xff]  ;;  %v6814_v56 = vpop.f32.mrf.mxu1 }
 0x437   :  { %4311 = vmatpush.msrb.mxu0 %v5490_v8  ;;  %4334 = vmatpush.msrb.mxu1 %v5491_v33  ;;  %v5497_v8 = vld [vmem:[#allocation2 + $0x18b8] sm:$0xff]  ;;  %v5498_v33 = vld [vmem:[#allocation2 + $0x1b88] sm:$0xff] }
 0x438   :  { %4359 = vmatpush.msrb.mxu2 %v5492_v14  ;;  %4274 = vmatmul.f32.gmra.mxu3 %v6776_v51 }
 0x439   :  { %4312 = vmatpush.msrb.mxu0 %v5493_v17  ;;  %4335 = vmatpush.msrb.mxu1 %v5494_v16  ;;  %v3792_v13 = vpop.f32.mrf.mxu3  ;;  %v5499_v16 = vld [vmem:[#allocation2 + $0x1cf0] sm:$0xff] }
 0x43a   :  { %4360 = vmatpush.msrb.mxu2 %v5495_v6  ;;  %4228 = vmatmul.f32.gmra.mxu1 %v6751_v31  ;;  %v3793_v21 = vadd.f32 %v3792_v13, %v3769_v54  ;;  %v5501_v6 = vld [vmem:[#allocation2 + $0x18a0] sm:$0xff]  ;;  %v5502_v54 = vld [vmem:[#allocation2 + $0x1b70] sm:$0xff] }
 0x43b   :  { %4508 = vmatmul.msk.f32.gmra.mxu0 %vm398_vm0, %v6782_v43  ;;  %4336 = vmatpush.msrb.mxu1 %v5496_v61  ;;  %v5503_v61 = vld [vmem:[#allocation2 + $0x1a08] sm:$0xff] }
 0x43c   :  { %4313 = vmatpush.msrb.mxu0 %v5497_v8  ;;  %4361 = vmatpush.msrb.mxu2 %v5498_v33  ;;  %v3816_v14 = vadd.f32 %v6788_v27, %v3793_v21  ;;  %v6811_v17 = vpop.f32.mrf.mxu0  ;;  %v5504_v8 = vld [vmem:[#allocation2 + $0x1888] sm:$0xff]  ;;  %v5505_v27 = vld [vmem:[#allocation2 + $0x19f0] sm:$0xff]  ;;  %v6820_v21 = vpop.f32.mrf.mxu2 }
 0x43d   :  { %7249 = vst [vmem:[#allocation172_spill] sm:$0xff] %v6811_v17  ;;  %4385 = vmatpush.msrb.mxu3 %v5499_v16  ;;  %4337 = vmatpush.msrb.mxu1 %v5500_v4  ;;  %v5506_v4 = vld [vmem:[#allocation2 + $0x1870] sm:$0xff] }
 0x43e   :  { %4314 = vmatpush.msrb.mxu0 %v5501_v6  ;;  %4362 = vmatpush.msrb.mxu2 %v5502_v54  ;;  %v3839_v13 = vadd.f32 %v6790_v37, %v3816_v14 }
 0x43f   :  { %4363 = vmatmul.f32.vlgmr.msrb.gmra.mxu2 %v6763_v22  ;;  %4338 = vmatpush.msrb.mxu1 %v5503_v61 }
 0x440   :  { %4315 = vmatpush.msrb.mxu0 %v5504_v8  ;;  %4509 = vmatmul.msk.f32.vlgmr.msrb.gmra.mxu3 %vm398_vm0, %v6769_v41 }
 0x441   :  { %4339 = vmatpush.msrb.mxu1 %v5505_v27 }
 0x442   :  { %4316 = vmatpush.msrb.mxu0 %v5506_v4  ;;  %4340 = vmatmul.f32.vlgmr.msrb.gmra.mxu1 %v6745_v58  ;;  %v6823_v37 = vpop.f32.mrf.mxu3 }
 0x443   :  { %4317 = vmatmul.f32.vlgmr.msrb.gmra.mxu0 %v6739_v5 }
 0x445   :  { %v3950_v22 = vpop.f32.mrf.mxu0 }
 0x446   :  { %v3951_v33 = vadd.f32 %v3950_v22, %v6734_v40 }
 0x447   :  { %4366 = vmatmul.f32.gmra.mxu2 %v6776_v51  ;;  %v3973_v14 = vpop.f32.mrf.mxu1 }
 0x448   :  { %4510 = vmatmul.msk.f32.gmra.mxu3 %vm398_vm0, %v6782_v43  ;;  %v3974_v41 = vadd.f32 %v3973_v14, %v3951_v33 }
 0x44a   :  { %4343 = vmatmul.f32.gmra.mxu1 %v6757_v39 }
 0x44b   :  { %4320 = vmatmul.f32.gmra.mxu0 %v6751_v31  ;;  %v3996_v58 = vpop.f32.mrf.mxu2 }
 0x44c   :  { %v3997_v16 = vadd.f32 %v3996_v58, %v3974_v41 }
 0x44d   :  { %v6831_v6 = vpop.f32.mrf.mxu3  ;;  %v3953_v5 = vpop.f32.mrf.mxu0 }
 0x44e   :  { %7250 = vst [vmem:[#allocation173_spill] sm:$0xff] %v6831_v6  ;;  %v3954_v54 = vadd.f32 %v3953_v5, %v6786_v55 }
 0x44f   :  { %v3976_v61 = vpop.f32.mrf.mxu1 }
 0x450   :  { %v3977_v40 = vadd.f32 %v3976_v61, %v3954_v54 }
 0x453   :  { %v3999_v8 = vpop.f32.mrf.mxu2 }
 0x454   :  { %v4000_v51 = vadd.f32 %v3999_v8, %v3977_v40 }
 0x455   :  { %v4019_v27 = vpop.f32.mrf.mxu3 }
 0x456   :  { %v6834_v4 = vadd.f32 %v4019_v27, %v3997_v16  ;;  %v1763_v16 = vadd.f32 %v6175_v46, %v6180_v19  ;;  %v1766_v46 = vadd.f32 %v6187_v34, %v6192_v1 }
 0x458   :  { %v1786_v27 = vadd.f32 %v6178_v26, %v1763_v16  ;;  %v7262_v16 = vld [vmem:[#allocation49_spill] sm:$0xff] }
 0x45d   :  { %v4022_v43 = vpop.f32.mrf.mxu3 }
 0x45e   :  { %v6836_v22 = vadd.f32 %v4022_v43, %v4000_v51  ;;  %v446_v51 = vadd.f32 %v5910_v62, %v5929_v57  ;;  %v2760_v43 = vadd.f32 %v6466_v30, %v6468_v52  ;;  %v449_v57 = vadd.f32 %v5937_v28, %v5948_v12  ;;  %v7252_v30 = vld [vmem:[#allocation140_spill] sm:$0xff] }
 0x45f   :  { %v2472_v52 = vadd.f32 %v6360_v60, %v6354_v7 }
 0x460   :  { %v472_v28 = vadd.f32 %v5892_v44, %v449_v57  ;;  %v7268_v57 = vld [vmem:[#allocation106_spill] sm:$0xff] }
 0x46b   :  { %v4042_v39 = vpop.f32.mrf.mxu3 }
 0x46c   :  { %v4043_v31 = vadd.f32 %v4042_v39, %v6793_v45  ;;  %v1809_v39 = vadd.f32 %v6182_v49, %v1786_v27  ;;  %v1789_v49 = vadd.f32 %v6190_v10, %v1766_v46  ;;  %v7265_v27 = vld [vmem:[#allocation24_spill] sm:$0xff] }
 0x46d   :  { %v4065_v33 = vpop.f32.mrf.mxu0 }
 0x46e   :  { %v4066_v14 = vadd.f32 %v4065_v33, %v4043_v31  ;;  %v2783_v31 = vadd.f32 %v6463_v42, %v2760_v43  ;;  %v2016_v62 = vadd.f32 %v6266_v25, %v1809_v39  ;;  %v2763_v42 = vadd.f32 %v6474_v20, %v6476_v38  ;;  %v7253_v20 = vld [vmem:[#allocation168_spill] sm:$0xff]  ;;  %v7257_v33 = vld [vmem:[#allocation123_spill] sm:$0xff]  ;;  %v7266_v39 = vld [vmem:[#allocation141_spill] sm:$0xff] }
 0x46f   :  { %v1812_v10 = vadd.f32 %v6194_v0, %v1789_v49  ;;  %v3859_v38 = vadd.f32 %v6802_v53, %v7253_v20  ;;  %v7254_v0 = vld [vmem:[#allocation26_spill] sm:$0xff]  ;;  %v7263_v53 = vld [vmem:[#allocation83_spill] sm:$0xff]  ;;  %v7277_v20 = vld [vmem:[#allocation169_spill] sm:$0xff] }
 0x470   :  { %v4088_v41 = vpop.f32.mrf.mxu1  ;;  %v4111_v58 = vpop.f32.mrf.mxu2  ;;  %v2039_v34 = vadd.f32 %v6256_v63, %v2016_v62  ;;  %v2786_v7 = vadd.f32 %v6472_v48, %v2763_v42  ;;  %v7255_v48 = vld [vmem:[#allocation103_spill] sm:$0xff] }
 0x471   :  { %v4089_v17 = vadd.f32 %v4088_v41, %v4066_v14  ;;  %v2019_v63 = vadd.f32 %v6288_v47, %v1812_v10  ;;  %v7258_v41 = vld [vmem:[#allocation45_spill] sm:$0xff] }
 0x473   :  { %v6839_v6 = vadd.f32 %v4111_v58, %v4089_v17  ;;  %v4045_v55 = vpop.f32.mrf.mxu3  ;;  %v7259_v58 = vld [vmem:[#allocation82_spill] sm:$0xff] }
 0x474   :  { %v4046_v5 = vadd.f32 %v4045_v55, %v3839_v13  ;;  %v469_v13 = vadd.f32 %v5880_v29, %v446_v51  ;;  %v2806_v29 = vadd.f32 %v6460_v36, %v2783_v31  ;;  %v7251_v36 = vld [vmem:[#allocation102_spill] sm:$0xff]  ;;  %v7260_v55 = vld [vmem:[#allocation171_spill] sm:$0xff]  ;;  %v7264_v51 = vld [vmem:[#allocation145_spill] sm:$0xff] }
 0x476   :  { %v492_v19 = vadd.f32 %v5902_v18, %v469_v13  ;;  %v1167_v18 = vadd.f32 %v6118_v24, %v6116_v2  ;;  %v3013_v1 = vadd.f32 %v6530_v35, %v2806_v29  ;;  %v2062_v2 = vadd.f32 %v6268_v3, %v2039_v34  ;;  %v7256_v35 = vld [vmem:[#allocation105_spill] sm:$0xff] }
 0x477   :  { %v4068_v54 = vpop.f32.mrf.mxu0  ;;  %v495_v24 = vadd.f32 %v5921_v9, %v472_v28  ;;  %v2809_v3 = vadd.f32 %v7257_v33, %v2786_v7  ;;  %v7271_v28 = vld [vmem:[#allocation46_spill] sm:$0xff]  ;;  %v6905_v7 = vld [vmem:[#allocation4] sm:$0x7] }
 0x478   :  { %v4069_v61 = vadd.f32 %v4068_v54, %v4046_v5  ;;  %v705_v26 = vadd.f32 %v6010_v50, %v492_v19  ;;  %v2495_v50 = vadd.f32 %v6362_v23, %v2472_v52  ;;  %v3036_v25 = vadd.f32 %v6524_v11, %v3013_v1  ;;  %v7267_v19 = vld [vmem:[#allocation27_spill] sm:$0xff] }
 0x479   :  { %v1190_v60 = vadd.f32 %v6110_v32, %v1167_v18  ;;  %v708_v11 = vadd.f32 %v7254_v0, %v495_v24  ;;  %v2475_v32 = vadd.f32 %v7256_v35, %v7255_v48  ;;  %v3882_v5 = vadd.f32 %v7260_v55, %v3859_v38  ;;  %v7269_v52 = vld [vmem:[#allocation143_spill] sm:$0xff]  ;;  %v7270_v18 = vld [vmem:[#allocation162_spill] sm:$0xff]  ;;  %v7278_v0 = vld [vmem:[#allocation12_spill] sm:$0xff] }
 0x47a   :  { %v4091_v40 = vpop.f32.mrf.mxu1  ;;  %v4114_v8 = vpop.f32.mrf.mxu2  ;;  %v728_v12 = vadd.f32 %v6019_v59, %v705_v26  ;;  %v2518_v59 = vadd.f32 %v7251_v36, %v2495_v50  ;;  %v3059_v23 = vadd.f32 %v7252_v30, %v3036_v25  ;;  %v7272_v50 = vld [vmem:[#allocation84_spill] sm:$0xff]  ;;  %v7276_v30 = vld [vmem:[#allocation142_spill] sm:$0xff]  ;;  %v3862_v38 = vadd.f32 %v6814_v56, %v7277_v20 }
 0x47b   :  { %v4092_v45 = vadd.f32 %v4091_v40, %v4069_v61  ;;  %v1213_v47 = vadd.f32 %v7258_v41, %v1190_v60  ;;  %v7261_v61 = vld [vmem:[#allocation48_spill] sm:$0xff]  ;;  %v3905_v46 = vadd.f32 %v6823_v37, %v3882_v5  ;;  %v731_v62 = vadd.f32 %v7267_v19, %v708_v11  ;;  %v7273_v37 = vld [vmem:[#allocation170_spill] sm:$0xff] }
 0x47c   :  { %v751_v44 = vadd.f32 %v6002_v15, %v728_v12  ;;  %v2085_v15 = vadd.f32 %v7259_v58, %v2062_v2  ;;  %v1170_v40 = vadd.f32 %v7262_v16, %v7261_v61  ;;  %v3082_v31 = vadd.f32 %v7266_v39, %v3059_v23  ;;  %v7275_v36 = vld [vmem:[#allocation104_spill] sm:$0xff]  ;;  %v7279_v11 = vld [vmem:[#allocation14_spill] sm:$0xff] }
 0x47d   :  { %v6848_v17 = vadd.f32 %v4114_v8, %v4092_v45  ;;  %v2042_v8 = vadd.f32 %v7263_v53, %v2019_v63  ;;  %v3016_v45 = vadd.f32 %v7264_v51, %v2809_v3  ;;  %v2498_v26 = vadd.f32 %v7268_v57, %v2475_v32  ;;  %v7274_v63 = vld [vmem:[#allocation25_spill] sm:$0xff]  ;;  %v7282_v5 = vld [vmem:[#allocation16_spill] sm:$0xff]  ;;  %v7289_v19 = vld [vmem:[#allocation10_spill] sm:$0xff] }
 0x47e   :  { %v774_v43 = vadd.f32 %v7265_v27, %v751_v44  ;;  %v2707_v13 = vadd.f32 %v2518_v59, %v2085_v15  ;;  %v3553_v34 = vadd.f32 %v7270_v18, %v3082_v31  ;;  %v1193_v12 = vadd.f32 %v7271_v28, %v1170_v40  ;;  %v7284_v16 = vld [vmem:[#allocation28_spill] sm:$0xff]  ;;  %v7290_v57 = vld [vmem:[#allocation163_spill] sm:$0xff] }
 0x47f   :  { %v3039_v29 = vadd.f32 %v7269_v52, %v3016_v45  ;;  %v2065_v25 = vadd.f32 %v7272_v50, %v2042_v8  ;;  %v3928_v2 = vadd.f32 %v7273_v37, %v3905_v46  ;;  %v754_v44 = vadd.f32 %v7274_v63, %v731_v62  ;;  %v7285_v8 = vld [vmem:[#allocation144_spill] sm:$0xff]  ;;  %v7286_v45 = vld [vmem:[#allocation173_spill] sm:$0xff]  ;;  %v7293_v50 = vld [vmem:[#allocation66_spill] sm:$0xff] }
 0x480   :  { %v1402_v42 = vadd.f32 %v1213_v47, %v774_v43  ;;  %v2521_v59 = vadd.f32 %v7275_v36, %v2498_v26  ;;  %v538_v48 = vadd.f32 %v7279_v11, %v7278_v0  ;;  %v4407_v33 = vperm.slane %v6905_v7, 0  ;;  %v7281_v47 = vld [vmem:[#allocation85_spill] sm:$0xff]  ;;  %v7297_v36 = vld [vmem:[#allocation20_spill] sm:$0xff] }
 0x481   :  { %v3062_v23 = vadd.f32 %v7276_v30, %v3039_v29  ;;  %v2088_v58 = vadd.f32 %v7281_v47, %v2065_v25  ;;  %v3885_v15 = vadd.f32 %v6820_v21, %v3862_v38  ;;  %v777_v40 = vadd.f32 %v7284_v16, %v754_v44  ;;  %v7287_v43 = vld [vmem:[#allocation69_spill] sm:$0xff]  ;;  %v7305_v47 = vld [vmem:[#allocation72_spill] sm:$0xff] }
 0x482   :  { %v2713_v60 = vmax.f32 %v1402_v42, %v2707_v13  ;;  %v7288_v13 = vld [vmem:[#allocation68_spill] sm:$0xff]  ;;  %v561_v62 = vadd.f32 %v7289_v19, %v538_v48  ;;  %v7291_v42 = vld [vmem:[#allocation11_spill] sm:$0xff]  ;;  %v7300_v38 = vld [vmem:[#allocation9_spill] sm:$0xff] }
 0x483   :  { %v2710_v53 = vadd.f32 %v2521_v59, %v2088_v58  ;;  %v3085_v51 = vadd.f32 %v7285_v8, %v3062_v23  ;;  %v3908_v27 = vadd.f32 %v7286_v45, %v3885_v15  ;;  %v1855_v39 = vadd.f32 %v7288_v13, %v7287_v43  ;;  %v7298_v59 = vld [vmem:[#allocation15_spill] sm:$0xff]  ;;  %v7299_v23 = vld [vmem:[#allocation30_spill] sm:$0xff]  ;;  %v7309_v16 = vld [vmem:[#allocation21_spill] sm:$0xff] }
 0x484   :  { %v3559_v35 = vmax.f32 %v2713_v60, %v3553_v34  ;;  %v7295_v60 = vld [vmem:[#allocation127_spill] sm:$0xff]  ;;  %v630_v30 = vadd.f32 %v7298_v59, %v7297_v36  ;;  %v7311_v8 = vld [vmem:[#allocation18_spill] sm:$0xff] }
 0x485   :  { %v3556_v26 = vadd.f32 %v7290_v57, %v3085_v51  ;;  %v1878_v25 = vadd.f32 %v7293_v50, %v1855_v39  ;;  %v7301_v48 = vld [vmem:[#allocation67_spill] sm:$0xff]  ;;  %v7314_v39 = vld [vmem:[#allocation52_spill] sm:$0xff]  ;;  %v7329_v59 = vld [vmem:[#allocation86_spill] sm:$0xff] }
 0x486   :  { %v7312_v45 = vld [vmem:[#allocation31_spill] sm:$0xff] }
 0x487   :  { %v7313_v13 = vld [vmem:[#allocation51_spill] sm:$0xff] }
 0x48e   :  { %v4134_v14 = vpop.f32.mrf.mxu2  ;;  %v4157_v9 = vpop.f32.mrf.mxu3 }
 0x48f   :  { %v4158_v54 = vadd.f32 %v4157_v9, %v4134_v14  ;;  %v7280_v9 = vld [vmem:[#allocation47_spill] sm:$0xff] }
 0x490   :  { %v1216_v41 = vadd.f32 %v7280_v9, %v1193_v12 }
 0x492   :  { %v4180_v49 = vpop.f32.mrf.mxu0  ;;  %v1405_v21 = vadd.f32 %v1216_v41, %v777_v40  ;;  %v7304_v41 = vld [vmem:[#allocation73_spill] sm:$0xff]  ;;  %v653_v40 = vadd.f32 %v7309_v16, %v630_v30 }
 0x493   :  { %v4181_v1 = vadd.f32 %v4180_v49, %v4158_v54  ;;  %v7283_v54 = vld [vmem:[#allocation19_spill] sm:$0xff]  ;;  %v1858_v58 = vadd.f32 %v7305_v47, %v7304_v41  ;;  %v7336_v41 = vld [vmem:[#allocation56_spill] sm:$0xff] }
 0x494   :  { %v4203_v10 = vpop.f32.mrf.mxu1  ;;  %v541_v61 = vadd.f32 %v7283_v54, %v7282_v5  ;;  %v2716_v34 = vmax.f32 %v1405_v21, %v2710_v53  ;;  %v7307_v54 = vld [vmem:[#allocation108_spill] sm:$0xff]  ;;  %v7310_v53 = vld [vmem:[#allocation22_spill] sm:$0xff]  ;;  %v7317_v21 = vld [vmem:[#allocation35_spill] sm:$0xff] }
 0x495   :  { %v4204_v24 = vadd.f32 %v4203_v10, %v4181_v1  ;;  %v7292_v1 = vld [vmem:[#allocation172_spill] sm:$0xff]  ;;  %v633_v51 = vadd.f32 %v7311_v8, %v7310_v53  ;;  %v7342_v53 = vld [vmem:[#allocation111_spill] sm:$0xff] }
 0x496   :  { %v564_v18 = vadd.f32 %v7291_v42, %v541_v61  ;;  %v3931_v28 = vadd.f32 %v7292_v1, %v3908_v27  ;;  %v7294_v10 = vld [vmem:[#allocation124_spill] sm:$0xff]  ;;  %v3562_v63 = vmax.f32 %v2716_v34, %v3556_v26  ;;  %v7308_v61 = vld [vmem:[#allocation107_spill] sm:$0xff]  ;;  %v7318_v26 = vld [vmem:[#allocation70_spill] sm:$0xff] }
 0x497   :  { %v4393_v32 = vadd.f32 %v4204_v24, %v3928_v2  ;;  %v4137_v3 = vpop.f32.mrf.mxu2  ;;  %v4160_v14 = vpop.f32.mrf.mxu3  ;;  %v2852_v37 = vadd.f32 %v7295_v60, %v7294_v10  ;;  %v7296_v2 = vld [vmem:[#allocation8_spill] sm:$0xff]  ;;  %v7325_v60 = vld [vmem:[#allocation13_spill] sm:$0xff] }
 0x498   :  { %v4161_v55 = vadd.f32 %v4160_v14, %v4137_v3  ;;  %v584_v24 = vadd.f32 %v7296_v2, %v561_v62  ;;  %v587_v0 = vadd.f32 %v7300_v38, %v564_v18  ;;  %v7303_v14 = vld [vmem:[#allocation34_spill] sm:$0xff]  ;;  %v7316_v62 = vld [vmem:[#allocation125_spill] sm:$0xff]  ;;  %v7322_v1 = vld [vmem:[#allocation148_spill] sm:$0xff] }
 0x499   :  { %v4399_v56 = vmax.f32 %v3559_v35, %v4393_v32  ;;  %v1901_v35 = vadd.f32 %v7301_v48, %v1878_v25  ;;  %v7302_v32 = vld [vmem:[#allocation126_spill] sm:$0xff]  ;;  %v7321_v18 = vld [vmem:[#allocation109_spill] sm:$0xff]  ;;  %v7324_v25 = vld [vmem:[#allocation32_spill] sm:$0xff] }
 0x49a   :  { %v797_v20 = vadd.f32 %v7299_v23, %v584_v24  ;;  %v2875_v3 = vadd.f32 %v7302_v32, %v2852_v37  ;;  %v800_v9 = vadd.f32 %v7303_v14, %v587_v0  ;;  %v676_v37 = vadd.f32 %v7325_v60, %v653_v40  ;;  %v7326_v2 = vld [vmem:[#allocation53_spill] sm:$0xff]  ;;  %v7331_v38 = vld [vmem:[#allocation39_spill] sm:$0xff]  ;;  %v7341_v40 = vld [vmem:[#allocation112_spill] sm:$0xff] }
 0x49b   :  { %v4413_v31 = vadd.f32 %v4407_v33, %v4399_v56  ;;  %v4183_v46 = vpop.f32.mrf.mxu0  ;;  %v2564_v56 = vadd.f32 %v7308_v61, %v7307_v54  ;;  %v7330_v23 = vld [vmem:[#allocation149_spill] sm:$0xff]  ;;  %v2567_v8 = vadd.f32 %v7342_v53, %v7341_v40  ;;  %v7369_v40 = vld [vmem:[#allocation59_spill] sm:$0xff] }
 0x49c   :  { %v4184_v52 = vadd.f32 %v4183_v46, %v4161_v55  ;;  %v7306_v55 = vld [vmem:[#allocation89_spill] sm:$0xff]  ;;  %v820_v27 = vadd.f32 %v7312_v45, %v797_v20  ;;  %v7315_v46 = vld [vmem:[#allocation87_spill] sm:$0xff]  ;;  %v823_v57 = vadd.f32 %v7317_v21, %v800_v9  ;;  %v889_v0 = vadd.f32 %v7331_v38, %v676_v37  ;;  %v7344_v45 = vld [vmem:[#allocation132_spill] sm:$0xff] }
 0x49d   :  { %v4419_v29 = vmax.f32 %v4413_v31, 0.0  ;;  %v4206_v49 = vpop.f32.mrf.mxu1  ;;  %v2108_v5 = vadd.f32 %v7306_v55, %v1901_v35  ;;  %v1259_v31 = vadd.f32 %v7314_v39, %v7313_v13  ;;  %v2587_v34 = vadd.f32 %v7321_v18, %v2564_v56  ;;  %v7333_v35 = vld [vmem:[#allocation71_spill] sm:$0xff]  ;;  %v7338_v55 = vld [vmem:[#allocation146_spill] sm:$0xff]  ;;  %v7339_v54 = vld [vmem:[#allocation37_spill] sm:$0xff] }
 0x49e   :  { %v4207_v12 = vadd.f32 %v4206_v49, %v4184_v52  ;;  %v1881_v52 = vadd.f32 %v7318_v26, %v1858_v58  ;;  %v7320_v49 = vld [vmem:[#allocation130_spill] sm:$0xff]  ;;  %v843_v10 = vadd.f32 %v7324_v25, %v820_v27  ;;  %v7335_v9 = vld [vmem:[#allocation55_spill] sm:$0xff]  ;;  %v912_v61 = vadd.f32 %v7339_v54, %v889_v0  ;;  %v7340_v56 = vld [vmem:[#allocation93_spill] sm:$0xff] }
 0x49f   :  { %4425 = vst [vmem:[%s7084_s6] sm:$0xff] %v4419_v29  ;;  %v2131_v19 = vadd.f32 %v7315_v46, %v2108_v5  ;;  %v7319_v29 = vld [vmem:[#allocation128_spill] sm:$0xff]  ;;  %v1282_v24 = vadd.f32 %v7326_v2, %v1259_v31  ;;  %v1262_v47 = vadd.f32 %v7336_v41, %v7335_v9  ;;  %v7337_v58 = vld [vmem:[#allocation110_spill] sm:$0xff]  ;;  %v7345_v39 = vld [vmem:[#allocation17_spill] sm:$0xff] }
 0x4a0   :  { %v4396_v44 = vadd.f32 %v4207_v12, %v3931_v28  ;;  %v2855_v42 = vadd.f32 %v7320_v49, %v7319_v29  ;;  %v7323_v12 = vld [vmem:[#allocation23_spill] sm:$0xff]  ;;  %v1904_v32 = vadd.f32 %v7333_v35, %v1881_v52  ;;  %v7346_v46 = vld [vmem:[#allocation50_spill] sm:$0xff]  ;;  %v7348_v21 = vld [vmem:[#allocation88_spill] sm:$0xff] }
 0x4a1   :  { %v656_v50 = vadd.f32 %v7323_v12, %v633_v51  ;;  %v2154_v30 = vadd.f32 %v7329_v59, %v2131_v19  ;;  %v7343_v51 = vld [vmem:[#allocation133_spill] sm:$0xff]  ;;  %v1305_v19 = vadd.f32 %v7346_v46, %v1282_v24  ;;  %v7351_v18 = vld [vmem:[#allocation91_spill] sm:$0xff]  ;;  %v7355_v24 = vld [vmem:[#allocation38_spill] sm:$0xff] }
 0x4a2   :  { %v4402_v11 = vmax.f32 %v3562_v63, %v4396_v44  ;;  %v7327_v63 = vld [vmem:[#allocation75_spill] sm:$0xff]  ;;  %v7328_v44 = vld [vmem:[#allocation77_spill] sm:$0xff]  ;;  %v2111_v16 = vadd.f32 %v7340_v56, %v1904_v32  ;;  %v2944_v27 = vadd.f32 %v7344_v45, %v7343_v51  ;;  %v7357_v59 = vld [vmem:[#allocation134_spill] sm:$0xff] }
 0x4a3   :  { %v1947_v36 = vadd.f32 %v7328_v44, %v7327_v63  ;;  %v679_v31 = vadd.f32 %v7345_v39, %v656_v50  ;;  %v7349_v52 = vld [vmem:[#allocation29_spill] sm:$0xff]  ;;  %v7354_v37 = vld [vmem:[#allocation147_spill] sm:$0xff]  ;;  %v935_v63 = vadd.f32 %v7355_v24, %v912_v61  ;;  %v7359_v0 = vld [vmem:[#allocation74_spill] sm:$0xff] }
 0x4a4   :  { %v4416_v15 = vadd.f32 %v4407_v33, %v4402_v11  ;;  %v2898_v33 = vadd.f32 %v7316_v62, %v2875_v3  ;;  %v7332_v11 = vld [vmem:[#allocation36_spill] sm:$0xff]  ;;  %v7334_v3 = vld [vmem:[#allocation131_spill] sm:$0xff]  ;;  %v866_v29 = vadd.f32 %v7349_v52, %v843_v10  ;;  %v7350_v49 = vld [vmem:[#allocation33_spill] sm:$0xff] }
 0x4a5   :  { %v846_v48 = vadd.f32 %v7332_v11, %v823_v57  ;;  %v2878_v14 = vadd.f32 %v7334_v3, %v2855_v42  ;;  %v7347_v62 = vld [vmem:[#allocation76_spill] sm:$0xff]  ;;  %v2177_v57 = vadd.f32 %v7348_v21, %v2154_v30  ;;  %v7353_v12 = vld [vmem:[#allocation57_spill] sm:$0xff]  ;;  %v2967_v30 = vadd.f32 %v7357_v59, %v2944_v27  ;;  %v7361_v3 = vld [vmem:[#allocation78_spill] sm:$0xff] }
 0x4a6   :  { %v4422_v43 = vmax.f32 %v4416_v15, 0.0  ;;  %v3105_v28 = vadd.f32 %v7322_v1, %v2898_v33  ;;  %v2610_v15 = vadd.f32 %v7337_v58, %v2587_v34  ;;  %v1970_v33 = vadd.f32 %v7347_v62, %v1947_v36  ;;  %v7352_v1 = vld [vmem:[#allocation129_spill] sm:$0xff]  ;;  %v7363_v41 = vld [vmem:[#allocation90_spill] sm:$0xff]  ;;  %v7370_v45 = vld [vmem:[#allocation96_spill] sm:$0xff] }
 0x4a7   :  { %v869_v42 = vadd.f32 %v7350_v49, %v846_v48  ;;  %v2134_v34 = vadd.f32 %v7351_v18, %v2111_v16  ;;  %v1285_v25 = vadd.f32 %v7353_v12, %v1262_v47  ;;  %v7356_v44 = vld [vmem:[#allocation113_spill] sm:$0xff]  ;;  %v1403_v38 = vadd.f32 %v1305_v19, %v866_v29  ;;  %v7360_v48 = vld [vmem:[#allocation164_spill] sm:$0xff]  ;;  %v7367_v61 = vld [vmem:[#allocation54_spill] sm:$0xff] }
 0x4a8   :  { %4429 = vst [vmem:[%s7084_s6 + $0x18] sm:$0x3] %v4422_v43  ;;  %v3128_v20 = vadd.f32 %v7330_v23, %v3105_v28  ;;  %v2901_v28 = vadd.f32 %v7352_v1, %v2878_v14  ;;  %v2708_v60 = vadd.f32 %v2610_v15, %v2177_v57  ;;  %v2590_v36 = vadd.f32 %v7356_v44, %v2567_v8  ;;  %v7358_v23 = vld [vmem:[#allocation152_spill] sm:$0xff]  ;;  %v7362_v14 = vld [vmem:[#allocation79_spill] sm:$0xff]  ;;  %v7364_v58 = vld [vmem:[#allocation117_spill] sm:$0xff] }
 0x4a9   :  { %v1993_v11 = vadd.f32 %v7359_v0, %v1970_v33  ;;  %v1950_v9 = vadd.f32 %v7362_v14, %v7361_v3  ;;  %v2157_v47 = vadd.f32 %v7363_v41, %v2134_v34  ;;  %v7365_v15 = vld [vmem:[#allocation116_spill] sm:$0xff]  ;;  %v1308_v56 = vadd.f32 %v7367_v61, %v1285_v25  ;;  %v7368_v16 = vld [vmem:[#allocation58_spill] sm:$0xff]  ;;  %v7372_v39 = vld [vmem:[#allocation135_spill] sm:$0xff] }
 0x4aa   :  { %v3151_v5 = vadd.f32 %v7338_v55, %v3128_v20  ;;  %v3108_v10 = vadd.f32 %v7358_v23, %v2901_v28  ;;  %v2656_v55 = vadd.f32 %v7365_v15, %v7364_v58  ;;  %v1351_v53 = vadd.f32 %v7369_v40, %v7368_v16  ;;  %v7373_v19 = vld [vmem:[#allocation150_spill] sm:$0xff]  ;;  %v7374_v33 = vld [vmem:[#allocation137_spill] sm:$0xff]  ;;  %v7375_v21 = vld [vmem:[#allocation136_spill] sm:$0xff] }
 0x4ab   :  { %v2714_v8 = vmax.f32 %v1403_v38, %v2708_v60  ;;  %v2200_v27 = vadd.f32 %v7370_v45, %v1993_v11  ;;  %v2990_v46 = vadd.f32 %v7372_v39, %v2967_v30  ;;  %v2947_v57 = vadd.f32 %v7375_v21, %v7374_v33  ;;  %v7376_v1 = vld [vmem:[#allocation81_spill] sm:$0xff]  ;;  %v7378_v25 = vld [vmem:[#allocation92_spill] sm:$0xff]  ;;  %v7380_v24 = vld [vmem:[#allocation43_spill] sm:$0xff] }
 0x4ac   :  { %v3174_v50 = vadd.f32 %v7354_v37, %v3151_v5  ;;  %v7366_v5 = vld [vmem:[#allocation153_spill] sm:$0xff]  ;;  %v4408_v49 = vperm.slane %v6905_v7, 1  ;;  %v2180_v60 = vadd.f32 %v7378_v25, %v2157_v47  ;;  %v7379_v37 = vld [vmem:[#allocation115_spill] sm:$0xff]  ;;  %v892_v44 = vadd.f32 %v7380_v24, %v679_v31  ;;  %v7386_v14 = vld [vmem:[#allocation138_spill] sm:$0xff] }
 0x4ad   :  { %v3131_v54 = vadd.f32 %v7366_v5, %v3108_v10  ;;  %v7377_v28 = vld [vmem:[#allocation97_spill] sm:$0xff]  ;;  %v7382_v30 = vld [vmem:[#allocation155_spill] sm:$0xff]  ;;  %v7387_v58 = vld [vmem:[#allocation80_spill] sm:$0xff] }
 0x4ae   :  { %v4226_v43 = vpop.f32.mrf.mxu1  ;;  %v4249_v13 = vpop.f32.mrf.mxu2  ;;  %v3554_v35 = vadd.f32 %v7360_v48, %v3174_v50  ;;  %v2223_v12 = vadd.f32 %v7377_v28, %v2200_v27  ;;  %v2679_v50 = vadd.f32 %v7379_v37, %v2656_v55  ;;  %v3197_v23 = vadd.f32 %v7382_v30, %v2990_v46  ;;  %v7383_v10 = vld [vmem:[#allocation95_spill] sm:$0xff]  ;;  %v7388_v15 = vld [vmem:[#allocation118_spill] sm:$0xff]  ;;  %v7389_v55 = vld [vmem:[#allocation165_spill] sm:$0xff] }
 0x4af   :  { %v4295_v26 = vpop.f32.mrf.mxu0  ;;  %v4250_v2 = vadd.f32 %v4249_v13, %v4226_v43  ;;  %v7371_v43 = vld [vmem:[#allocation114_spill] sm:$0xff]  ;;  %v3154_v62 = vadd.f32 %v7373_v19, %v3131_v54  ;;  %v7384_v0 = vld [vmem:[#allocation151_spill] sm:$0xff]  ;;  %v7395_v27 = vld [vmem:[#allocation100_spill] sm:$0xff] }
 0x4b0   :  { %v2613_v13 = vadd.f32 %v7371_v43, %v2590_v36  ;;  %v3560_v52 = vmax.f32 %v2714_v8, %v3554_v35  ;;  %v7381_v36 = vld [vmem:[#allocation40_spill] sm:$0xff]  ;;  %v1406_v35 = vadd.f32 %v1308_v56, %v869_v42  ;;  %v7390_v61 = vld [vmem:[#allocation62_spill] sm:$0xff]  ;;  %v7391_v16 = vld [vmem:[#allocation63_spill] sm:$0xff] }
 0x4b1   :  { %v958_v59 = vadd.f32 %v7381_v36, %v935_v63  ;;  %v3177_v11 = vadd.f32 %v7384_v0, %v3154_v62  ;;  %v2702_v63 = vadd.f32 %v7388_v15, %v2679_v50  ;;  %v1354_v40 = vadd.f32 %v7391_v16, %v7390_v61  ;;  %v7392_v8 = vld [vmem:[#allocation121_spill] sm:$0xff]  ;;  %v7394_v42 = vld [vmem:[#allocation156_spill] sm:$0xff]  ;;  %v7402_v50 = vld [vmem:[#allocation119_spill] sm:$0xff] }
 0x4b2   :  { %v4272_v20 = vpop.f32.mrf.mxu3  ;;  %v2711_v38 = vadd.f32 %v2613_v13, %v2180_v60  ;;  %v3220_v56 = vadd.f32 %v7394_v42, %v3197_v23  ;;  %v7396_v13 = vld [vmem:[#allocation94_spill] sm:$0xff]  ;;  %v7397_v62 = vld [vmem:[#allocation41_spill] sm:$0xff]  ;;  %v7403_v24 = vld [vmem:[#allocation159_spill] sm:$0xff]  ;;  %v4409_v42 = vperm.slane %v6905_v7, 2 }
 0x4b3   :  { %v4273_v32 = vadd.f32 %v4272_v20, %v4250_v2  ;;  %v2246_v20 = vadd.f32 %v7383_v10, %v2223_v12  ;;  %v3557_v5 = vadd.f32 %v7389_v55, %v3177_v11  ;;  %v915_v33 = vadd.f32 %v7397_v62, %v892_v44  ;;  %v7398_v21 = vld [vmem:[#allocation61_spill] sm:$0xff]  ;;  %v7404_v36 = vld [vmem:[#allocation154_spill] sm:$0xff]  ;;  %v7410_v15 = vld [vmem:[#allocation160_spill] sm:$0xff] }
 0x4b4   :  { %v2717_v46 = vmax.f32 %v1406_v35, %v2711_v38  ;;  %v7407_v35 = vld [vmem:[#allocation166_spill] sm:$0xff] }
 0x4b5   :  { %v4296_v51 = vadd.f32 %v4295_v26, %v4273_v32  ;;  %v1973_v26 = vadd.f32 %v7376_v1, %v1950_v9  ;;  %v7385_v32 = vld [vmem:[#allocation60_spill] sm:$0xff]  ;;  %v2970_v9 = vadd.f32 %v7386_v14, %v2947_v57  ;;  %v2269_v39 = vadd.f32 %v7396_v13, %v2246_v20  ;;  %v7406_v20 = vld [vmem:[#allocation99_spill] sm:$0xff]  ;;  %v7412_v61 = vld [vmem:[#allocation98_spill] sm:$0xff] }
 0x4b6   :  { %v1374_v3 = vadd.f32 %v7385_v32, %v1351_v53  ;;  %v3563_v25 = vmax.f32 %v2717_v46, %v3557_v5  ;;  %v7411_v5 = vld [vmem:[#allocation65_spill] sm:$0xff]  ;;  %v7415_v13 = vld [vmem:[#allocation158_spill] sm:$0xff] }
 0x4b7   :  { %v4394_v29 = vadd.f32 %v4296_v51, %v6834_v4  ;;  %v4229_v18 = vpop.f32.mrf.mxu1  ;;  %v4252_v34 = vpop.f32.mrf.mxu2  ;;  %v1996_v31 = vadd.f32 %v7387_v58, %v1973_v26  ;;  %v7393_v51 = vld [vmem:[#allocation120_spill] sm:$0xff]  ;;  %v7401_v26 = vld [vmem:[#allocation101_spill] sm:$0xff]  ;;  %v2709_v12 = vadd.f32 %v2702_v63, %v2269_v39  ;;  %v7409_v58 = vld [vmem:[#allocation122_spill] sm:$0xff] }
 0x4b8   :  { %v4298_v2 = vpop.f32.mrf.mxu0  ;;  %v4253_v48 = vadd.f32 %v4252_v34, %v4229_v18  ;;  %v2659_v45 = vadd.f32 %v7393_v51, %v7392_v8  ;;  %v1397_v57 = vadd.f32 %v7398_v21, %v1374_v3  ;;  %v7400_v18 = vld [vmem:[#allocation139_spill] sm:$0xff]  ;;  %v7413_v8 = vld [vmem:[#allocation161_spill] sm:$0xff] }
 0x4b9   :  { %v4400_v4 = vmax.f32 %v3560_v52, %v4394_v29  ;;  %v2203_v43 = vadd.f32 %v7395_v27, %v1996_v31  ;;  %v7399_v52 = vld [vmem:[#allocation157_spill] sm:$0xff]  ;;  %v2993_v34 = vadd.f32 %v7400_v18, %v2970_v9  ;;  %v7416_v21 = vld [vmem:[#allocation167_spill] sm:$0xff] }
 0x4ba   :  { %v3243_v29 = vadd.f32 %v7399_v52, %v3220_v56 }
 0x4bb   :  { %v4414_v41 = vadd.f32 %v4408_v49, %v4400_v4  ;;  %v4275_v47 = vpop.f32.mrf.mxu3  ;;  %v2226_v28 = vadd.f32 %v7401_v26, %v2203_v43  ;;  %v3200_v44 = vadd.f32 %v7403_v24, %v2993_v34  ;;  %v7405_v4 = vld [vmem:[#allocation64_spill] sm:$0xff] }
 0x4bc   :  { %v4276_v54 = vadd.f32 %v4275_v47, %v4253_v48  ;;  %v3266_v30 = vadd.f32 %v7404_v36, %v3243_v29  ;;  %v1377_v10 = vadd.f32 %v7405_v4, %v1354_v40  ;;  %v1404_v48 = vadd.f32 %v1397_v57, %v958_v59 }
 0x4bd   :  { %v4420_v53 = vmax.f32 %v4414_v41, 0.0  ;;  %v2249_v38 = vadd.f32 %v7406_v20, %v2226_v28  ;;  %v3223_v63 = vadd.f32 %v7410_v15, %v3200_v44 }
 0x4be   :  { %v4299_v19 = vadd.f32 %v4298_v2, %v4276_v54  ;;  %v2682_v2 = vadd.f32 %v7402_v50, %v2659_v45  ;;  %v3555_v32 = vadd.f32 %v7407_v35, %v3266_v30  ;;  %v2715_v47 = vmax.f32 %v1404_v48, %v2709_v12 }
 0x4bf   :  { %4426 = vst [vmem:[%s7084_s6 + $0x8] sm:$0xff] %v4420_v53  ;;  %v4341_v1 = vpop.f32.mrf.mxu1  ;;  %v1400_v54 = vadd.f32 %v7411_v5, %v1377_v10  ;;  %v2272_v16 = vadd.f32 %v7412_v61, %v2249_v38  ;;  %v3246_v59 = vadd.f32 %v7413_v8, %v3223_v63 }
 0x4c0   :  { %v4397_v60 = vadd.f32 %v4299_v19, %v6836_v22  ;;  %v4318_v37 = vpop.f32.mrf.mxu0  ;;  %v7408_v22 = vld [vmem:[#allocation42_spill] sm:$0xff]  ;;  %v2705_v31 = vadd.f32 %v7409_v58, %v2682_v2  ;;  %v3561_v51 = vmax.f32 %v2715_v47, %v3555_v32 }
 0x4c1   :  { %v4342_v23 = vadd.f32 %v4341_v1, %v4318_v37  ;;  %v938_v9 = vadd.f32 %v7408_v22, %v915_v33  ;;  %v3269_v39 = vadd.f32 %v7415_v13, %v3246_v59 }
 0x4c2   :  { %v4403_v0 = vmax.f32 %v3563_v25, %v4397_v60  ;;  %v4364_v11 = vpop.f32.mrf.mxu2  ;;  %v2712_v43 = vadd.f32 %v2705_v31, %v2272_v16 }
 0x4c3   :  { %v4365_v3 = vadd.f32 %v4364_v11, %v4342_v23  ;;  %v4387_v14 = vpop.f32.mrf.mxu3  ;;  %v3558_v57 = vadd.f32 %v7416_v21, %v3269_v39 }
 0x4c4   :  { %v4417_v41 = vadd.f32 %v4408_v49, %v4403_v0  ;;  %v7414_v49 = vld [vmem:[#allocation44_spill] sm:$0xff] }
 0x4c5   :  { %v4388_v55 = vadd.f32 %v4387_v14, %v4365_v3  ;;  %v961_v53 = vadd.f32 %v7414_v49, %v938_v9 }
 0x4c6   :  { %v4423_v40 = vmax.f32 %v4417_v41, 0.0 }
 0x4c7   :  { %v4395_v45 = vadd.f32 %v4388_v55, %v6839_v6  ;;  %v4344_v56 = vpop.f32.mrf.mxu1  ;;  %v1407_v33 = vadd.f32 %v1400_v54, %v961_v53 }
 0x4c8   :  { %4430 = vst [vmem:[%s7084_s6 + $0x20] sm:$0x3] %v4423_v40  ;;  %v4321_v27 = vpop.f32.mrf.mxu0 }
 0x4c9   :  { %v4401_v46 = vmax.f32 %v3561_v51, %v4395_v45  ;;  %v4345_v19 = vadd.f32 %v4344_v56, %v4321_v27  ;;  %v2718_v29 = vmax.f32 %v1407_v33, %v2712_v43 }
 0x4ca   :  { %v4367_v62 = vpop.f32.mrf.mxu2 }
 0x4cb   :  { %v4415_v6 = vadd.f32 %v4409_v42, %v4401_v46  ;;  %v4368_v52 = vadd.f32 %v4367_v62, %v4345_v19  ;;  %v4390_v7 = vpop.f32.mrf.mxu3  ;;  %v3564_v1 = vmax.f32 %v2718_v29, %v3558_v57 }
 0x4cd   :  { %v4421_v18 = vmax.f32 %v4415_v6, 0.0  ;;  %v4391_v34 = vadd.f32 %v4390_v7, %v4368_v52 }
 0x4cf   :  { %4428 = vst.msk [vmem:[%s7084_s6 + $0x10] sm:$0xff] %vm4427_vm1, %v4421_v18  ;;  %v4398_v26 = vadd.f32 %v4391_v34, %v6848_v17 }
 0x4d1   :  { %v4404_v28 = vmax.f32 %v3564_v1, %v4398_v26 }
 0x4d3   :  { %v4418_v12 = vadd.f32 %v4409_v42, %v4404_v28 }
 0x4d5   :  { %v4424_v25 = vmax.f32 %v4418_v12, 0.0 }
 0x4d7   :  { %4432 = vst.msk [vmem:[%s7084_s6 + $0x28] sm:$0x3] %vm4431_vm2, %v4424_v25 }
 0x4d8   :  { %4437 = vsyncpa [#allocation3], 1 }
 0x4d9   :  { %4438 = vsyncpa [#allocation5], 1 }

</bundles_post_ra>
